<compile_context>
chip_gen: v7x
topology: tpu7x:2x2x1
jax: 0.10.0
libtpu: 0.0.40
codegen_flags: <defaults>
</compile_context>

<pallas_src>
import math

import jax
import jax.numpy as jnp
from jax.experimental import pallas as pl
from jax.experimental.pallas import tpu as pltpu

# ----------------------------- synthetic config ------------------------------
BATCH = 2
IN_CHANNELS = 3
IMG_SIZE = 16
PATCH = 4
NUM_PATCHES = (IMG_SIZE // PATCH) ** 2          # 16
VISION_WIDTH = 32
VISION_HEADS = 4
VISION_LAYERS = 2
IMAGE_PROMPT_LAYERS = [0]                       # args.image_prompt_layer
PROMPT_TOKENS = 2                               # prefix-tuning: 2 rows -> half=1 for k, 1 for v

NUM_CLASSES = 5
CONTEXT_LEN = 8
N_CTX = 4
TEXT_WIDTH = 32
TEXT_HEADS = 4
TEXT_LAYERS = 2

EMBED_DIM = 32                                  # shared CLIP embedding dim

NEG_INF = -1e9

_BLOCK_KEYS = ("wq", "wk", "wv", "bq", "bk", "bv", "wo", "bo",
               "ln1_g", "ln1_b", "ln2_g", "ln2_b", "fc_w", "fc_b", "pj_w", "pj_b")

# --------------------------- in-kernel building blocks ------------------------


def _ln(x, g, b, eps=1e-5):
    """LayerNorm over the last dim.  x: (S, D); g, b: (1, D)."""
    m = jnp.mean(x, axis=-1, keepdims=True)
    var = jnp.mean(jnp.square(x - m), axis=-1, keepdims=True)
    return (x - m) * jax.lax.rsqrt(var + eps) * g + b


def _res_block(x, l, n_heads, w, mask=None, prompt_kv=None):
    """One CLIP residual attention block, fully in-kernel.

    x: (S, D) f32.  Weights are refs of stacked per-layer / per-head arrays.
    prompt_kv: optional (pk, pv) raw prompt rows, each (1, D)  (prefix tuning, half=1);
    the extra key/value pair is folded into the softmax (== concatenation in PyTorch,
    since the vision branch uses no attention mask).
    """
    (wq, wk, wv, bq, bk, bv, wo, bo,
     ln1g, ln1b, ln2g, ln2b, fcw, fcb, pjw, pjb) = w
    S, D = x.shape
    hd = D // n_heads
    scale = 1.0 / math.sqrt(hd)

    q_in = _ln(x, ln1g[l], ln1b[l])

    attn_out = jnp.zeros((S, D), jnp.float32)
    for h in range(n_heads):
        i = l * n_heads + h
        qh = jnp.dot(q_in, wq[i], preferred_element_type=jnp.float32) + bq[i]   # (S, hd)
        kh = jnp.dot(q_in, wk[i], preferred_element_type=jnp.float32) + bk[i]   # (S, hd)
        vh = jnp.dot(q_in, wv[i], preferred_element_type=jnp.float32) + bv[i]   # (S, hd)
        s = jnp.dot(qh, kh.T, preferred_element_type=jnp.float32) * scale       # (S, S)
        if mask is not None:
            s = s + mask
        if prompt_kv is None:
            m = jnp.max(s, axis=-1, keepdims=True)
            e = jnp.exp(s - m)
            inv = pl.reciprocal(jnp.sum(e, axis=-1, keepdims=True), approx=True)
            oh = jnp.dot(e, vh, preferred_element_type=jnp.float32) * inv
        else:
            # Prefix tuning: one extra (key, value) token.  No mask is ever supplied on
            # prompted layers (vision branch), matching the PyTorch forward_prefix path.
            pk, pv = prompt_kv                                                   # (1, D)
            pkh = jnp.dot(pk, wk[i], preferred_element_type=jnp.float32) + bk[i]  # (1, hd)
            pvh = jnp.dot(pv, wv[i], preferred_element_type=jnp.float32) + bv[i]  # (1, hd)
            sp = jnp.sum(qh * pkh, axis=-1, keepdims=True) * scale                # (S, 1)
            m = jnp.maximum(jnp.max(s, axis=-1, keepdims=True), sp)
            e = jnp.exp(s - m)
            ep = jnp.exp(sp - m)
            inv = pl.reciprocal(jnp.sum(e, axis=-1, keepdims=True) + ep, approx=True)
            oh = (jnp.dot(e, vh, preferred_element_type=jnp.float32) + ep * pvh) * inv
        attn_out = attn_out + jnp.dot(oh, wo[i], preferred_element_type=jnp.float32)

    x = x + attn_out + bo[l]

    y = _ln(x, ln2g[l], ln2b[l])
    hmid = jnp.dot(y, fcw[l], preferred_element_type=jnp.float32) + fcb[l]
    hmid = hmid * jax.nn.sigmoid(1.702 * hmid)                      # CLIP QuickGELU
    x = x + jnp.dot(hmid, pjw[l], preferred_element_type=jnp.float32) + pjb[l]
    return x


# ------------------------------- Pallas kernels -------------------------------


def _vision_kernel(patches_ref, conv_w_ref, cls_pos_ref, ln_pre_g_ref, ln_pre_b_ref,
                   wq, wk, wv, bq, bk, bv, wo, bo,
                   ln1g, ln1b, ln2g, ln2b, fcw, fcb, pjw, pjb,
                   ln_post_g_ref, ln_post_b_ref, vproj_ref,
                   pk_ref, pv_ref, txt_ref, scale_ref,
                   logits_ref):
    """One image per grid step: patch-embed -> ln_pre -> prefix transformer -> logits."""
    w = (wq, wk, wv, bq, bk, bv, wo, bo, ln1g, ln1b, ln2g, ln2b, fcw, fcb, pjw, pjb)

    # conv1 (kernel==stride==patch) as a matmul; row 0 of `patches` is all-zero and the
    # class embedding arrives via cls_pos (pos_embedding with class token added to row 0).
    patches = patches_ref[0]                                               # (S, C*P*P)
    x = jnp.dot(patches, conv_w_ref[...],
                preferred_element_type=jnp.float32) + cls_pos_ref[...]     # (S, D)
    x = _ln(x, ln_pre_g_ref[...], ln_pre_b_ref[...])

    for l in range(VISION_LAYERS):
        if l in IMAGE_PROMPT_LAYERS:
            idx = IMAGE_PROMPT_LAYERS.index(l)
            prompt_kv = (pk_ref[idx], pv_ref[idx])                         # (1, D) each
        else:
            prompt_kv = None
        x = _res_block(x, l, VISION_HEADS, w, mask=None, prompt_kv=prompt_kv)

    cls_tok = _ln(x[0:1, :], ln_post_g_ref[...], ln_post_b_ref[...])       # (1, D)
    img = jnp.dot(cls_tok, vproj_ref[...], preferred_element_type=jnp.float32)   # (1, E)
    img = img * jax.lax.rsqrt(jnp.sum(img * img, axis=-1, keepdims=True) + 1e-12)

    txt = txt_ref[...]                                                     # (C, E), unit norm
    logits = scale_ref[0, 0] * jnp.dot(img, txt.T, preferred_element_type=jnp.float32)
    logits_ref[0] = logits.astype(logits_ref.dtype)                        # (1, NUM_CLASSES)


def _text_kernel(x_ref, pos_ref, mask_ref,
                 wq, wk, wv, bq, bk, bv, wo, bo,
                 ln1g, ln1b, ln2g, ln2b, fcw, fcb, pjw, pjb,
                 ln_final_g_ref, ln_final_b_ref, tproj_ref, eot_ref,
                 out_ref):
    """One class prompt per grid step: text transformer -> ln_final -> EOT -> proj -> norm."""
    w = (wq, wk, wv, bq, bk, bv, wo, bo, ln1g, ln1b, ln2g, ln2b, fcw, fcb, pjw, pjb)

    x = x_ref[0] + pos_ref[...]                                            # (L, D)
    L = x.shape[0]
    mask = mask_ref[...]                                                   # causal mask (L, L)

    for l in range(TEXT_LAYERS):
        x = _res_block(x, l, TEXT_HEADS, w, mask=mask)

    x = _ln(x, ln_final_g_ref[...], ln_final_b_ref[...])                   # (L, D)

    c = pl.program_id(0)
    eot = eot_ref[c]                                                       # scalar from SMEM
    onehot = (jax.lax.broadcasted_iota(jnp.int32, (1, L), 1) == eot).astype(jnp.float32)
    feat = jnp.dot(onehot, x, preferred_element_type=jnp.float32)          # (1, D)  EOT token
    feat = jnp.dot(feat, tproj_ref[...], preferred_element_type=jnp.float32)   # (1, E)
    feat = feat * jax.lax.rsqrt(jnp.sum(feat * feat, axis=-1, keepdims=True) + 1e-12)
    out_ref[0] = feat.astype(out_ref.dtype)


# ------------------------------ pallas_call wrappers ---------------------------


def _full_spec(a):
    nd = a.ndim
    return pl.BlockSpec(a.shape, lambda i, _nd=nd: (0,) * _nd)


def _text_forward(text_x, mask, t):
    Cn, L, D = text_x.shape
    blk = [t["blk"][k] for k in _BLOCK_KEYS]
    weights = ([t["pos_embedding"], mask] + blk
               + [t["ln_final_g"], t["ln_final_b"], t["text_projection"]])
    in_specs = ([pl.BlockSpec((1, L, D), lambda c: (c, 0, 0))]
                + [_full_spec(a) for a in weights]
                + [pl.BlockSpec(memory_space=pltpu.MemorySpace.SMEM)])     # eot_idx
    out3d = pl.pallas_call(
        _text_kernel,
        out_shape=jax.ShapeDtypeStruct((Cn, 1, EMBED_DIM), jnp.float32),
        grid=(Cn,),
        in_specs=in_specs,
        out_specs=pl.BlockSpec((1, 1, EMBED_DIM), lambda c: (c, 0, 0)),
        compiler_params=pltpu.CompilerParams(dimension_semantics=("parallel",)),
    )(text_x, *weights, t["eot_idx"])
    return out3d.reshape(Cn, EMBED_DIM)


def _vision_forward(patches, cls_pos, txt_feat, scale, kp):
    v = kp["vision"]
    B, S, CPP = patches.shape
    blk = [v["blk"][k] for k in _BLOCK_KEYS]
    weights = ([v["conv_w"], cls_pos, v["ln_pre_g"], v["ln_pre_b"]] + blk
               + [v["ln_post_g"], v["ln_post_b"], v["proj"],
                  kp["prompt_k"], kp["prompt_v"], txt_feat])
    in_specs = ([pl.BlockSpec((1, S, CPP), lambda i: (i, 0, 0))]
                + [_full_spec(a) for a in weights]
                + [pl.BlockSpec(memory_space=pltpu.MemorySpace.SMEM)])     # logit scale
    out3d = pl.pallas_call(
        _vision_kernel,
        out_shape=jax.ShapeDtypeStruct((B, 1, NUM_CLASSES), jnp.float32),
        grid=(B,),
        in_specs=in_specs,
        out_specs=pl.BlockSpec((1, 1, NUM_CLASSES), lambda i: (i, 0, 0)),
        compiler_params=pltpu.CompilerParams(dimension_semantics=("parallel",)),
    )(patches, *weights, scale)
    return out3d.reshape(B, NUM_CLASSES)


@jax.jit
def clip_test_time_tuning_forward(image, kp):
    """ClipTestTimeTuning.forward == inference(image)."""
    B, Cin, H, W = image.shape
    v, t = kp["vision"], kp["text"]
    Hp, Wp = H // PATCH, W // PATCH

    # conv1 (stride == kernel == patch) expressed as patch extraction + in-kernel matmul.
    patches = (image.reshape(B, Cin, Hp, PATCH, Wp, PATCH)
                    .transpose(0, 2, 4, 1, 3, 5)
                    .reshape(B, Hp * Wp, Cin * PATCH * PATCH))
    # Prepend an all-zero "patch" row for the class-token slot; its embedding comes from
    # cls_pos = positional_embedding with class_embedding added to row 0.
    patches = jnp.concatenate(
        [jnp.zeros((B, 1, patches.shape[-1]), patches.dtype), patches], axis=1)
    cls_pos = v["pos_embedding"].at[0].add(v["class_embedding"])            # (S, D)

    # learnable_text == 'a': cat(begin, a, cls, end)
    text_x = jnp.concatenate([t["begin"], t["a"], t["cls"], t["end"]], axis=1)
    scale = jnp.exp(kp["logit_scale"]).reshape(1, 1).astype(jnp.float32)

    # Causal attention mask for the text transformer, built once (shared by all classes).
    L = text_x.shape[1]
    rows = jnp.arange(L, dtype=jnp.int32)[:, None]
    cols = jnp.arange(L, dtype=jnp.int32)[None, :]
    mask = jnp.where(cols > rows, NEG_INF, 0.0).astype(jnp.float32)         # (L, L)

    txt_feat = _text_forward(text_x, mask, t)                               # (C, E), unit norm
    return _vision_forward(patches, cls_pos, txt_feat, scale, kp)           # (B, NUM_CLASSES)


# ------------------------------ parameter handling -----------------------------
# TODO(synk): the real module loads pretrained CLIP weights and a tokenizer; here all
# parameters (and the pre-computed token embeddings begin/a/cls/end) are synthetic.


def init_params(key):
    keys = iter(jax.random.split(key, 64))

    def nrm(shape, scale=0.02):
        return (scale * jax.random.normal(next(keys), shape)).astype(jnp.float32)

    def attn_params(D):
        return {"wq": nrm((D, D)), "bq": jnp.zeros((D,), jnp.float32),
                "wk": nrm((D, D)), "bk": jnp.zeros((D,), jnp.float32),
                "wv": nrm((D, D)), "bv": jnp.zeros((D,), jnp.float32),
                "wo": nrm((D, D)), "bo": jnp.zeros((D,), jnp.float32)}

    def block_params(D):
        return {"ln1_g": jnp.ones((D,), jnp.float32), "ln1_b": jnp.zeros((D,), jnp.float32),
                "ln2_g": jnp.ones((D,), jnp.float32), "ln2_b": jnp.zeros((D,), jnp.float32),
                "attn": attn_params(D),
                "fc_w": nrm((D, 4 * D)), "fc_b": jnp.zeros((4 * D,), jnp.float32),
                "proj_w": nrm((4 * D, D)), "proj_b": jnp.zeros((D,), jnp.float32)}

    vision = {
        "conv_w": nrm((IN_CHANNELS * PATCH * PATCH, VISION_WIDTH)),   # conv1 weight, flattened
        "class_embedding": nrm((VISION_WIDTH,)),
        "pos_embedding": nrm((NUM_PATCHES + 1, VISION_WIDTH)),
        "ln_pre_g": jnp.ones((VISION_WIDTH,), jnp.float32),
        "ln_pre_b": jnp.zeros((VISION_WIDTH,), jnp.float32),
        "blocks": [block_params(VISION_WIDTH) for _ in range(VISION_LAYERS)],
        "ln_post_g": jnp.ones((VISION_WIDTH,), jnp.float32),
        "ln_post_b": jnp.zeros((VISION_WIDTH,), jnp.float32),
        "proj": nrm((VISION_WIDTH, EMBED_DIM)),
    }
    text = {
        "begin": nrm((NUM_CLASSES, 1, TEXT_WIDTH)),
        "a": nrm((NUM_CLASSES, N_CTX, TEXT_WIDTH)),
        "cls": nrm((NUM_CLASSES, 1, TEXT_WIDTH)),
        "end": nrm((NUM_CLASSES, CONTEXT_LEN - N_CTX - 2, TEXT_WIDTH)),
        "pos_embedding": nrm((CONTEXT_LEN, TEXT_WIDTH)),
        "blocks": [block_params(TEXT_WIDTH) for _ in range(TEXT_LAYERS)],
        "ln_final_g": jnp.ones((TEXT_WIDTH,), jnp.float32),
        "ln_final_b": jnp.zeros((TEXT_WIDTH,), jnp.float32),
        "text_projection": nrm((TEXT_WIDTH, EMBED_DIM)),
        "eot_idx": jnp.full((NUM_CLASSES,), N_CTX + 2, jnp.int32),    # tokenized_text.argmax(-1)
    }
    image_prompts = jax.random.uniform(
        next(keys), (1, len(IMAGE_PROMPT_LAYERS), PROMPT_TOKENS, VISION_WIDTH),
        minval=-1.0, maxval=1.0, dtype=jnp.float32)                   # uniform_(-1, 1)
    return {"vision": vision, "text": text, "image_prompts": image_prompts,
            "logit_scale": jnp.asarray(math.log(1.0 / 0.07), jnp.float32)}


def _pack_blocks(blocks, D, H):
    """Stack per-layer weights and split q/k/v/out projections per head so the kernels
    never need lane slicing of activations.  Shapes: wq/wk/wv (L*H, D, hd), wo (L*H, hd, D),
    biases (L*H, 1, hd) / (L, 1, D), MLP (L, D, 4D) / (L, 4D, D)."""
    L = len(blocks)
    hd = D // H

    def stack(f):
        return jnp.stack([f(b) for b in blocks], axis=0)

    def per_head_in(w):                       # (L, D, D) columns -> heads
        return w.reshape(L, D, H, hd).transpose(0, 2, 1, 3).reshape(L * H, D, hd)

    def per_head_bias(f):                     # (L, D) -> (L*H, 1, hd)
        return stack(f).reshape(L * H, 1, hd)

    return {
        "wq": per_head_in(stack(lambda b: b["attn"]["wq"])),
        "wk": per_head_in(stack(lambda b: b["attn"]["wk"])),
        "wv": per_head_in(stack(lambda b: b["attn"]["wv"])),
        "bq": per_head_bias(lambda b: b["attn"]["bq"]),
        "bk": per_head_bias(lambda b: b["attn"]["bk"]),
        "bv": per_head_bias(lambda b: b["attn"]["bv"]),
        "wo": stack(lambda b: b["attn"]["wo"]).reshape(L, H, hd, D).reshape(L * H, hd, D),
        "bo": stack(lambda b: b["attn"]["bo"]).reshape(L, 1, D),
        "ln1_g": stack(lambda b: b["ln1_g"]).reshape(L, 1, D),
        "ln1_b": stack(lambda b: b["ln1_b"]).reshape(L, 1, D),
        "ln2_g": stack(lambda b: b["ln2_g"]).reshape(L, 1, D),
        "ln2_b": stack(lambda b: b["ln2_b"]).reshape(L, 1, D),
        "fc_w": stack(lambda b: b["fc_w"]),
        "fc_b": stack(lambda b: b["fc_b"]).reshape(L, 1, 4 * D),
        "pj_w": stack(lambda b: b["proj_w"]),
        "pj_b": stack(lambda b: b["proj_b"]).reshape(L, 1, D),
    }


def pack_params(params):
    """One-time conversion of the PyTorch-like parameter tree into kernel-ready arrays."""
    vp, tp = params["vision"], params["text"]
    Dv, Dt = VISION_WIDTH, TEXT_WIDTH
    vision = {
        "conv_w": vp["conv_w"],
        "class_embedding": vp["class_embedding"],
        "pos_embedding": vp["pos_embedding"],
        "ln_pre_g": vp["ln_pre_g"].reshape(1, Dv), "ln_pre_b": vp["ln_pre_b"].reshape(1, Dv),
        "blk": _pack_blocks(vp["blocks"], VISION_WIDTH, VISION_HEADS),
        "ln_post_g": vp["ln_post_g"].reshape(1, Dv), "ln_post_b": vp["ln_post_b"].reshape(1, Dv),
        "proj": vp["proj"],
    }
    text = {
        "begin": tp["begin"], "a": tp["a"], "cls": tp["cls"], "end": tp["end"],
        "pos_embedding": tp["pos_embedding"],
        "blk": _pack_blocks(tp["blocks"], TEXT_WIDTH, TEXT_HEADS),
        "ln_final_g": tp["ln_final_g"].reshape(1, Dt), "ln_final_b": tp["ln_final_b"].reshape(1, Dt),
        "text_projection": tp["text_projection"],
        "eot_idx": tp["eot_idx"],
    }
    prompts = params["image_prompts"][0]            # (len(IMAGE_PROMPT_LAYERS), 2, D)
    return {"vision": vision, "text": text,
            "prompt_k": prompts[:, 0:1, :],          # key prompt rows   (len, 1, D)
            "prompt_v": prompts[:, 1:2, :],          # value prompt rows (len, 1, D)
            "logit_scale": params["logit_scale"]}


if __name__ == "__main__":
    root = jax.random.PRNGKey(0)
    pkey, xkey = jax.random.split(root)
    params = init_params(pkey)
    packed = pack_params(params)
    image = jax.random.normal(xkey, (BATCH, IN_CHANNELS, IMG_SIZE, IMG_SIZE), jnp.float32)

    logits = clip_test_time_tuning_forward(image, packed)
    jax.block_until_ready(logits)

    assert logits.shape == (BATCH, NUM_CLASSES), logits.shape
    assert bool(jnp.all(jnp.isfinite(logits)))
    print("KERNEL_OK")
</pallas_src>

<mosaic_0001>
module attributes {stable_mosaic.version = 11 : i64} {
  func.func @_text_kernel(%arg0: i32, %arg1: memref<1x8x32xf32, #tpu.memory_space<vmem>>, %arg2: memref<8x32xf32, #tpu.memory_space<vmem>>, %arg3: memref<8x8xf32, #tpu.memory_space<vmem>>, %arg4: memref<8x32x8xf32, #tpu.memory_space<vmem>>, %arg5: memref<8x32x8xf32, #tpu.memory_space<vmem>>, %arg6: memref<8x32x8xf32, #tpu.memory_space<vmem>>, %arg7: memref<8x1x8xf32, #tpu.memory_space<vmem>>, %arg8: memref<8x1x8xf32, #tpu.memory_space<vmem>>, %arg9: memref<8x1x8xf32, #tpu.memory_space<vmem>>, %arg10: memref<8x8x32xf32, #tpu.memory_space<vmem>>, %arg11: memref<2x1x32xf32, #tpu.memory_space<vmem>>, %arg12: memref<2x1x32xf32, #tpu.memory_space<vmem>>, %arg13: memref<2x1x32xf32, #tpu.memory_space<vmem>>, %arg14: memref<2x1x32xf32, #tpu.memory_space<vmem>>, %arg15: memref<2x1x32xf32, #tpu.memory_space<vmem>>, %arg16: memref<2x32x128xf32, #tpu.memory_space<vmem>>, %arg17: memref<2x1x128xf32, #tpu.memory_space<vmem>>, %arg18: memref<2x128x32xf32, #tpu.memory_space<vmem>>, %arg19: memref<2x1x32xf32, #tpu.memory_space<vmem>>, %arg20: memref<1x32xf32, #tpu.memory_space<vmem>>, %arg21: memref<1x32xf32, #tpu.memory_space<vmem>>, %arg22: memref<32x32xf32, #tpu.memory_space<vmem>>, %arg23: memref<5xi32, #tpu.memory_space<smem>>, %arg24: memref<1x1x32xf32, #tpu.memory_space<vmem>>) attributes {dimension_semantics = [#tpu.dimension_semantics<parallel>], iteration_bounds = array<i64: 5>, scalar_prefetch = 0 : i64, scratch_operands = 0 : i64, tpu.core_type = #tpu.core_type<tc>, window_params = [{transform_indices = @transform_0, window_bounds = array<i64: 1, 8, 32>}, {pipeline_mode = #tpu.pipeline_mode<synchronous>, transform_indices = @transform_1, window_bounds = array<i64: 8, 32>}, {pipeline_mode = #tpu.pipeline_mode<synchronous>, transform_indices = @transform_2, window_bounds = array<i64: 8, 8>}, {pipeline_mode = #tpu.pipeline_mode<synchronous>, transform_indices = @transform_3, window_bounds = array<i64: 8, 32, 8>}, {pipeline_mode = #tpu.pipeline_mode<synchronous>, transform_indices = @transform_4, window_bounds = array<i64: 8, 32, 8>}, {pipeline_mode = #tpu.pipeline_mode<synchronous>, transform_indices = @transform_5, window_bounds = array<i64: 8, 32, 8>}, {pipeline_mode = #tpu.pipeline_mode<synchronous>, transform_indices = @transform_6, window_bounds = array<i64: 8, 1, 8>}, {pipeline_mode = #tpu.pipeline_mode<synchronous>, transform_indices = @transform_7, window_bounds = array<i64: 8, 1, 8>}, {pipeline_mode = #tpu.pipeline_mode<synchronous>, transform_indices = @transform_8, window_bounds = array<i64: 8, 1, 8>}, {pipeline_mode = #tpu.pipeline_mode<synchronous>, transform_indices = @transform_9, window_bounds = array<i64: 8, 8, 32>}, {pipeline_mode = #tpu.pipeline_mode<synchronous>, transform_indices = @transform_10, window_bounds = array<i64: 2, 1, 32>}, {pipeline_mode = #tpu.pipeline_mode<synchronous>, transform_indices = @transform_11, window_bounds = array<i64: 2, 1, 32>}, {pipeline_mode = #tpu.pipeline_mode<synchronous>, transform_indices = @transform_12, window_bounds = array<i64: 2, 1, 32>}, {pipeline_mode = #tpu.pipeline_mode<synchronous>, transform_indices = @transform_13, window_bounds = array<i64: 2, 1, 32>}, {pipeline_mode = #tpu.pipeline_mode<synchronous>, transform_indices = @transform_14, window_bounds = array<i64: 2, 1, 32>}, {pipeline_mode = #tpu.pipeline_mode<synchronous>, transform_indices = @transform_15, window_bounds = array<i64: 2, 32, 128>}, {pipeline_mode = #tpu.pipeline_mode<synchronous>, transform_indices = @transform_16, window_bounds = array<i64: 2, 1, 128>}, {pipeline_mode = #tpu.pipeline_mode<synchronous>, transform_indices = @transform_17, window_bounds = array<i64: 2, 128, 32>}, {pipeline_mode = #tpu.pipeline_mode<synchronous>, transform_indices = @transform_18, window_bounds = array<i64: 2, 1, 32>}, {pipeline_mode = #tpu.pipeline_mode<synchronous>, transform_indices = @transform_19, window_bounds = array<i64: 1, 32>}, {pipeline_mode = #tpu.pipeline_mode<synchronous>, transform_indices = @transform_20, window_bounds = array<i64: 1, 32>}, {pipeline_mode = #tpu.pipeline_mode<synchronous>, transform_indices = @transform_21, window_bounds = array<i64: 32, 32>}, {transform_indices = @transform_22, window_bounds = array<i64: 5>}, {transform_indices = @transform_23, window_bounds = array<i64: 1, 1, 32>}]} {
    %c0 = arith.constant 0 : index
    %c0_0 = arith.constant 0 : index
    %c0_1 = arith.constant 0 : index
    %0 = vector.load %arg1[%c0, %c0_0, %c0_1] : memref<1x8x32xf32, #tpu.memory_space<vmem>>, vector<1x8x32xf32>
    %1 = vector.shape_cast %0 : vector<1x8x32xf32> to vector<8x32xf32>
    %c0_2 = arith.constant 0 : index
    %c0_3 = arith.constant 0 : index
    %2 = vector.load %arg2[%c0_2, %c0_3] : memref<8x32xf32, #tpu.memory_space<vmem>>, vector<8x32xf32>
    %3 = arith.addf %1, %2 : vector<8x32xf32>
    %c0_4 = arith.constant 0 : index
    %c0_5 = arith.constant 0 : index
    %4 = vector.load %arg3[%c0_4, %c0_5] : memref<8x8xf32, #tpu.memory_space<vmem>>, vector<8x8xf32>
    %c0_6 = arith.constant 0 : index
    %c0_7 = arith.constant 0 : index
    %c0_8 = arith.constant 0 : index
    %5 = vector.load %arg12[%c0_6, %c0_7, %c0_8] : memref<2x1x32xf32, #tpu.memory_space<vmem>>, vector<1x1x32xf32>
    %6 = vector.shape_cast %5 : vector<1x1x32xf32> to vector<1x32xf32>
    %c0_9 = arith.constant 0 : index
    %c0_10 = arith.constant 0 : index
    %c0_11 = arith.constant 0 : index
    %7 = vector.load %arg13[%c0_9, %c0_10, %c0_11] : memref<2x1x32xf32, #tpu.memory_space<vmem>>, vector<1x1x32xf32>
    %8 = vector.shape_cast %7 : vector<1x1x32xf32> to vector<1x32xf32>
    %cst = arith.constant dense<0.000000e+00> : vector<8xf32>
    %9 = vector.multi_reduction <add>, %3, %cst [1] : vector<8x32xf32> to vector<8xf32>
    %10 = vector.shape_cast %9 : vector<8xf32> to vector<8x1xf32>
    %cst_12 = arith.constant 3.200000e+01 : f32
    %11 = vector.broadcast %cst_12 : f32 to vector<8x1xf32>
    %12 = arith.divf %10, %11 : vector<8x1xf32>
    %13 = vector.broadcast %12 : vector<8x1xf32> to vector<8x32xf32>
    %14 = arith.subf %3, %13 : vector<8x32xf32>
    %15 = arith.mulf %14, %14 : vector<8x32xf32>
    %cst_13 = arith.constant dense<0.000000e+00> : vector<8xf32>
    %16 = vector.multi_reduction <add>, %15, %cst_13 [1] : vector<8x32xf32> to vector<8xf32>
    %17 = vector.shape_cast %16 : vector<8xf32> to vector<8x1xf32>
    %cst_14 = arith.constant 3.200000e+01 : f32
    %18 = vector.broadcast %cst_14 : f32 to vector<8x1xf32>
    %19 = arith.divf %17, %18 : vector<8x1xf32>
    %20 = vector.broadcast %12 : vector<8x1xf32> to vector<8x32xf32>
    %21 = arith.subf %3, %20 : vector<8x32xf32>
    %cst_15 = arith.constant 9.99999974E-6 : f32
    %22 = vector.broadcast %cst_15 : f32 to vector<8x1xf32>
    %23 = arith.addf %19, %22 : vector<8x1xf32>
    %24 = math.rsqrt %23 : vector<8x1xf32>
    %25 = vector.broadcast %24 : vector<8x1xf32> to vector<8x32xf32>
    %26 = arith.mulf %21, %25 : vector<8x32xf32>
    %27 = vector.broadcast %6 : vector<1x32xf32> to vector<8x32xf32>
    %28 = arith.mulf %26, %27 : vector<8x32xf32>
    %29 = vector.broadcast %8 : vector<1x32xf32> to vector<8x32xf32>
    %30 = arith.addf %28, %29 : vector<8x32xf32>
    %cst_16 = arith.constant 0.000000e+00 : f32
    %31 = vector.broadcast %cst_16 : f32 to vector<8x32xf32>
    %c0_17 = arith.constant 0 : index
    %c0_18 = arith.constant 0 : index
    %c0_19 = arith.constant 0 : index
    %32 = vector.load %arg4[%c0_17, %c0_18, %c0_19] : memref<8x32x8xf32, #tpu.memory_space<vmem>>, vector<1x32x8xf32>
    %33 = vector.shape_cast %32 : vector<1x32x8xf32> to vector<32x8xf32>
    %cst_20 = arith.constant dense<0.000000e+00> : vector<8x8xf32>
    %34 = tpu.matmul %30, %33, %cst_20 {dimension_numbers = #tpu.dot_dimension_numbers<[1], [0], [0], [1], [0, 0, 1, 1], [], []>} : vector<8x32xf32>, vector<32x8xf32>, vector<8x8xf32> -> vector<8x8xf32>
    %c0_21 = arith.constant 0 : index
    %c0_22 = arith.constant 0 : index
    %c0_23 = arith.constant 0 : index
    %35 = vector.load %arg7[%c0_21, %c0_22, %c0_23] : memref<8x1x8xf32, #tpu.memory_space<vmem>>, vector<1x1x8xf32>
    %36 = vector.shape_cast %35 : vector<1x1x8xf32> to vector<1x8xf32>
    %37 = vector.broadcast %36 : vector<1x8xf32> to vector<8x8xf32>
    %38 = arith.addf %34, %37 : vector<8x8xf32>
    %c0_24 = arith.constant 0 : index
    %c0_25 = arith.constant 0 : index
    %c0_26 = arith.constant 0 : index
    %39 = vector.load %arg5[%c0_24, %c0_25, %c0_26] : memref<8x32x8xf32, #tpu.memory_space<vmem>>, vector<1x32x8xf32>
    %40 = vector.shape_cast %39 : vector<1x32x8xf32> to vector<32x8xf32>
    %cst_27 = arith.constant dense<0.000000e+00> : vector<8x8xf32>
    %41 = tpu.matmul %30, %40, %cst_27 {dimension_numbers = #tpu.dot_dimension_numbers<[1], [0], [0], [1], [0, 0, 1, 1], [], []>} : vector<8x32xf32>, vector<32x8xf32>, vector<8x8xf32> -> vector<8x8xf32>
    %c0_28 = arith.constant 0 : index
    %c0_29 = arith.constant 0 : index
    %c0_30 = arith.constant 0 : index
    %42 = vector.load %arg8[%c0_28, %c0_29, %c0_30] : memref<8x1x8xf32, #tpu.memory_space<vmem>>, vector<1x1x8xf32>
    %43 = vector.shape_cast %42 : vector<1x1x8xf32> to vector<1x8xf32>
    %44 = vector.broadcast %43 : vector<1x8xf32> to vector<8x8xf32>
    %45 = arith.addf %41, %44 : vector<8x8xf32>
    %c0_31 = arith.constant 0 : index
    %c0_32 = arith.constant 0 : index
    %c0_33 = arith.constant 0 : index
    %46 = vector.load %arg6[%c0_31, %c0_32, %c0_33] : memref<8x32x8xf32, #tpu.memory_space<vmem>>, vector<1x32x8xf32>
    %47 = vector.shape_cast %46 : vector<1x32x8xf32> to vector<32x8xf32>
    %cst_34 = arith.constant dense<0.000000e+00> : vector<8x8xf32>
    %48 = tpu.matmul %30, %47, %cst_34 {dimension_numbers = #tpu.dot_dimension_numbers<[1], [0], [0], [1], [0, 0, 1, 1], [], []>} : vector<8x32xf32>, vector<32x8xf32>, vector<8x8xf32> -> vector<8x8xf32>
    %c0_35 = arith.constant 0 : index
    %c0_36 = arith.constant 0 : index
    %c0_37 = arith.constant 0 : index
    %49 = vector.load %arg9[%c0_35, %c0_36, %c0_37] : memref<8x1x8xf32, #tpu.memory_space<vmem>>, vector<1x1x8xf32>
    %50 = vector.shape_cast %49 : vector<1x1x8xf32> to vector<1x8xf32>
    %51 = vector.broadcast %50 : vector<1x8xf32> to vector<8x8xf32>
    %52 = arith.addf %48, %51 : vector<8x8xf32>
    %53 = tpu.transpose %45, [1, 0] : vector<8x8xf32> -> vector<8x8xf32>
    %cst_38 = arith.constant dense<0.000000e+00> : vector<8x8xf32>
    %54 = tpu.matmul %38, %53, %cst_38 {dimension_numbers = #tpu.dot_dimension_numbers<[1], [0], [0], [1], [0, 0, 1, 1], [], []>} : vector<8x8xf32>, vector<8x8xf32>, vector<8x8xf32> -> vector<8x8xf32>
    %cst_39 = arith.constant 0.353553385 : f32
    %55 = vector.broadcast %cst_39 : f32 to vector<8x8xf32>
    %56 = arith.mulf %54, %55 : vector<8x8xf32>
    %57 = arith.addf %56, %4 : vector<8x8xf32>
    %cst_40 = arith.constant dense<0xFF800000> : vector<8xf32>
    %58 = vector.multi_reduction <maximumf>, %57, %cst_40 [1] : vector<8x8xf32> to vector<8xf32>
    %59 = vector.shape_cast %58 : vector<8xf32> to vector<8x1xf32>
    %60 = vector.broadcast %59 : vector<8x1xf32> to vector<8x8xf32>
    %61 = arith.subf %57, %60 : vector<8x8xf32>
    %62 = math.exp %61 : vector<8x8xf32>
    %cst_41 = arith.constant dense<0.000000e+00> : vector<8xf32>
    %63 = vector.multi_reduction <add>, %62, %cst_41 [1] : vector<8x8xf32> to vector<8xf32>
    %64 = vector.shape_cast %63 : vector<8xf32> to vector<8x1xf32>
    %65 = tpu.reciprocal %64 {approx = true} : vector<8x1xf32> -> vector<8x1xf32>
    %cst_42 = arith.constant dense<0.000000e+00> : vector<8x8xf32>
    %66 = tpu.matmul %62, %52, %cst_42 {dimension_numbers = #tpu.dot_dimension_numbers<[1], [0], [0], [1], [0, 0, 1, 1], [], []>} : vector<8x8xf32>, vector<8x8xf32>, vector<8x8xf32> -> vector<8x8xf32>
    %67 = vector.broadcast %65 : vector<8x1xf32> to vector<8x8xf32>
    %68 = arith.mulf %66, %67 : vector<8x8xf32>
    %c0_43 = arith.constant 0 : index
    %c0_44 = arith.constant 0 : index
    %c0_45 = arith.constant 0 : index
    %69 = vector.load %arg10[%c0_43, %c0_44, %c0_45] : memref<8x8x32xf32, #tpu.memory_space<vmem>>, vector<1x8x32xf32>
    %70 = vector.shape_cast %69 : vector<1x8x32xf32> to vector<8x32xf32>
    %cst_46 = arith.constant dense<0.000000e+00> : vector<8x32xf32>
    %71 = tpu.matmul %68, %70, %cst_46 {dimension_numbers = #tpu.dot_dimension_numbers<[1], [0], [0], [1], [0, 0, 1, 1], [], []>} : vector<8x8xf32>, vector<8x32xf32>, vector<8x32xf32> -> vector<8x32xf32>
    %72 = arith.addf %31, %71 : vector<8x32xf32>
    %c1 = arith.constant 1 : index
    %c0_47 = arith.constant 0 : index
    %c0_48 = arith.constant 0 : index
    %73 = vector.load %arg4[%c1, %c0_47, %c0_48] : memref<8x32x8xf32, #tpu.memory_space<vmem>>, vector<1x32x8xf32>
    %74 = vector.shape_cast %73 : vector<1x32x8xf32> to vector<32x8xf32>
    %cst_49 = arith.constant dense<0.000000e+00> : vector<8x8xf32>
    %75 = tpu.matmul %30, %74, %cst_49 {dimension_numbers = #tpu.dot_dimension_numbers<[1], [0], [0], [1], [0, 0, 1, 1], [], []>} : vector<8x32xf32>, vector<32x8xf32>, vector<8x8xf32> -> vector<8x8xf32>
    %c1_50 = arith.constant 1 : index
    %c0_51 = arith.constant 0 : index
    %c0_52 = arith.constant 0 : index
    %76 = vector.load %arg7[%c1_50, %c0_51, %c0_52] : memref<8x1x8xf32, #tpu.memory_space<vmem>>, vector<1x1x8xf32>
    %77 = vector.shape_cast %76 : vector<1x1x8xf32> to vector<1x8xf32>
    %78 = vector.broadcast %77 : vector<1x8xf32> to vector<8x8xf32>
    %79 = arith.addf %75, %78 : vector<8x8xf32>
    %c1_53 = arith.constant 1 : index
    %c0_54 = arith.constant 0 : index
    %c0_55 = arith.constant 0 : index
    %80 = vector.load %arg5[%c1_53, %c0_54, %c0_55] : memref<8x32x8xf32, #tpu.memory_space<vmem>>, vector<1x32x8xf32>
    %81 = vector.shape_cast %80 : vector<1x32x8xf32> to vector<32x8xf32>
    %cst_56 = arith.constant dense<0.000000e+00> : vector<8x8xf32>
    %82 = tpu.matmul %30, %81, %cst_56 {dimension_numbers = #tpu.dot_dimension_numbers<[1], [0], [0], [1], [0, 0, 1, 1], [], []>} : vector<8x32xf32>, vector<32x8xf32>, vector<8x8xf32> -> vector<8x8xf32>
    %c1_57 = arith.constant 1 : index
    %c0_58 = arith.constant 0 : index
    %c0_59 = arith.constant 0 : index
    %83 = vector.load %arg8[%c1_57, %c0_58, %c0_59] : memref<8x1x8xf32, #tpu.memory_space<vmem>>, vector<1x1x8xf32>
    %84 = vector.shape_cast %83 : vector<1x1x8xf32> to vector<1x8xf32>
    %85 = vector.broadcast %84 : vector<1x8xf32> to vector<8x8xf32>
    %86 = arith.addf %82, %85 : vector<8x8xf32>
    %c1_60 = arith.constant 1 : index
    %c0_61 = arith.constant 0 : index
    %c0_62 = arith.constant 0 : index
    %87 = vector.load %arg6[%c1_60, %c0_61, %c0_62] : memref<8x32x8xf32, #tpu.memory_space<vmem>>, vector<1x32x8xf32>
    %88 = vector.shape_cast %87 : vector<1x32x8xf32> to vector<32x8xf32>
    %cst_63 = arith.constant dense<0.000000e+00> : vector<8x8xf32>
    %89 = tpu.matmul %30, %88, %cst_63 {dimension_numbers = #tpu.dot_dimension_numbers<[1], [0], [0], [1], [0, 0, 1, 1], [], []>} : vector<8x32xf32>, vector<32x8xf32>, vector<8x8xf32> -> vector<8x8xf32>
    %c1_64 = arith.constant 1 : index
    %c0_65 = arith.constant 0 : index
    %c0_66 = arith.constant 0 : index
    %90 = vector.load %arg9[%c1_64, %c0_65, %c0_66] : memref<8x1x8xf32, #tpu.memory_space<vmem>>, vector<1x1x8xf32>
    %91 = vector.shape_cast %90 : vector<1x1x8xf32> to vector<1x8xf32>
    %92 = vector.broadcast %91 : vector<1x8xf32> to vector<8x8xf32>
    %93 = arith.addf %89, %92 : vector<8x8xf32>
    %94 = tpu.transpose %86, [1, 0] : vector<8x8xf32> -> vector<8x8xf32>
    %cst_67 = arith.constant dense<0.000000e+00> : vector<8x8xf32>
    %95 = tpu.matmul %79, %94, %cst_67 {dimension_numbers = #tpu.dot_dimension_numbers<[1], [0], [0], [1], [0, 0, 1, 1], [], []>} : vector<8x8xf32>, vector<8x8xf32>, vector<8x8xf32> -> vector<8x8xf32>
    %cst_68 = arith.constant 0.353553385 : f32
    %96 = vector.broadcast %cst_68 : f32 to vector<8x8xf32>
    %97 = arith.mulf %95, %96 : vector<8x8xf32>
    %98 = arith.addf %97, %4 : vector<8x8xf32>
    %cst_69 = arith.constant dense<0xFF800000> : vector<8xf32>
    %99 = vector.multi_reduction <maximumf>, %98, %cst_69 [1] : vector<8x8xf32> to vector<8xf32>
    %100 = vector.shape_cast %99 : vector<8xf32> to vector<8x1xf32>
    %101 = vector.broadcast %100 : vector<8x1xf32> to vector<8x8xf32>
    %102 = arith.subf %98, %101 : vector<8x8xf32>
    %103 = math.exp %102 : vector<8x8xf32>
    %cst_70 = arith.constant dense<0.000000e+00> : vector<8xf32>
    %104 = vector.multi_reduction <add>, %103, %cst_70 [1] : vector<8x8xf32> to vector<8xf32>
    %105 = vector.shape_cast %104 : vector<8xf32> to vector<8x1xf32>
    %106 = tpu.reciprocal %105 {approx = true} : vector<8x1xf32> -> vector<8x1xf32>
    %cst_71 = arith.constant dense<0.000000e+00> : vector<8x8xf32>
    %107 = tpu.matmul %103, %93, %cst_71 {dimension_numbers = #tpu.dot_dimension_numbers<[1], [0], [0], [1], [0, 0, 1, 1], [], []>} : vector<8x8xf32>, vector<8x8xf32>, vector<8x8xf32> -> vector<8x8xf32>
    %108 = vector.broadcast %106 : vector<8x1xf32> to vector<8x8xf32>
    %109 = arith.mulf %107, %108 : vector<8x8xf32>
    %c1_72 = arith.constant 1 : index
    %c0_73 = arith.constant 0 : index
    %c0_74 = arith.constant 0 : index
    %110 = vector.load %arg10[%c1_72, %c0_73, %c0_74] : memref<8x8x32xf32, #tpu.memory_space<vmem>>, vector<1x8x32xf32>
    %111 = vector.shape_cast %110 : vector<1x8x32xf32> to vector<8x32xf32>
    %cst_75 = arith.constant dense<0.000000e+00> : vector<8x32xf32>
    %112 = tpu.matmul %109, %111, %cst_75 {dimension_numbers = #tpu.dot_dimension_numbers<[1], [0], [0], [1], [0, 0, 1, 1], [], []>} : vector<8x8xf32>, vector<8x32xf32>, vector<8x32xf32> -> vector<8x32xf32>
    %113 = arith.addf %72, %112 : vector<8x32xf32>
    %c2 = arith.constant 2 : index
    %c0_76 = arith.constant 0 : index
    %c0_77 = arith.constant 0 : index
    %114 = vector.load %arg4[%c2, %c0_76, %c0_77] : memref<8x32x8xf32, #tpu.memory_space<vmem>>, vector<1x32x8xf32>
    %115 = vector.shape_cast %114 : vector<1x32x8xf32> to vector<32x8xf32>
    %cst_78 = arith.constant dense<0.000000e+00> : vector<8x8xf32>
    %116 = tpu.matmul %30, %115, %cst_78 {dimension_numbers = #tpu.dot_dimension_numbers<[1], [0], [0], [1], [0, 0, 1, 1], [], []>} : vector<8x32xf32>, vector<32x8xf32>, vector<8x8xf32> -> vector<8x8xf32>
    %c2_79 = arith.constant 2 : index
    %c0_80 = arith.constant 0 : index
    %c0_81 = arith.constant 0 : index
    %117 = vector.load %arg7[%c2_79, %c0_80, %c0_81] : memref<8x1x8xf32, #tpu.memory_space<vmem>>, vector<1x1x8xf32>
    %118 = vector.shape_cast %117 : vector<1x1x8xf32> to vector<1x8xf32>
    %119 = vector.broadcast %118 : vector<1x8xf32> to vector<8x8xf32>
    %120 = arith.addf %116, %119 : vector<8x8xf32>
    %c2_82 = arith.constant 2 : index
    %c0_83 = arith.constant 0 : index
    %c0_84 = arith.constant 0 : index
    %121 = vector.load %arg5[%c2_82, %c0_83, %c0_84] : memref<8x32x8xf32, #tpu.memory_space<vmem>>, vector<1x32x8xf32>
    %122 = vector.shape_cast %121 : vector<1x32x8xf32> to vector<32x8xf32>
    %cst_85 = arith.constant dense<0.000000e+00> : vector<8x8xf32>
    %123 = tpu.matmul %30, %122, %cst_85 {dimension_numbers = #tpu.dot_dimension_numbers<[1], [0], [0], [1], [0, 0, 1, 1], [], []>} : vector<8x32xf32>, vector<32x8xf32>, vector<8x8xf32> -> vector<8x8xf32>
    %c2_86 = arith.constant 2 : index
    %c0_87 = arith.constant 0 : index
    %c0_88 = arith.constant 0 : index
    %124 = vector.load %arg8[%c2_86, %c0_87, %c0_88] : memref<8x1x8xf32, #tpu.memory_space<vmem>>, vector<1x1x8xf32>
    %125 = vector.shape_cast %124 : vector<1x1x8xf32> to vector<1x8xf32>
    %126 = vector.broadcast %125 : vector<1x8xf32> to vector<8x8xf32>
    %127 = arith.addf %123, %126 : vector<8x8xf32>
    %c2_89 = arith.constant 2 : index
    %c0_90 = arith.constant 0 : index
    %c0_91 = arith.constant 0 : index
    %128 = vector.load %arg6[%c2_89, %c0_90, %c0_91] : memref<8x32x8xf32, #tpu.memory_space<vmem>>, vector<1x32x8xf32>
    %129 = vector.shape_cast %128 : vector<1x32x8xf32> to vector<32x8xf32>
    %cst_92 = arith.constant dense<0.000000e+00> : vector<8x8xf32>
    %130 = tpu.matmul %30, %129, %cst_92 {dimension_numbers = #tpu.dot_dimension_numbers<[1], [0], [0], [1], [0, 0, 1, 1], [], []>} : vector<8x32xf32>, vector<32x8xf32>, vector<8x8xf32> -> vector<8x8xf32>
    %c2_93 = arith.constant 2 : index
    %c0_94 = arith.constant 0 : index
    %c0_95 = arith.constant 0 : index
    %131 = vector.load %arg9[%c2_93, %c0_94, %c0_95] : memref<8x1x8xf32, #tpu.memory_space<vmem>>, vector<1x1x8xf32>
    %132 = vector.shape_cast %131 : vector<1x1x8xf32> to vector<1x8xf32>
    %133 = vector.broadcast %132 : vector<1x8xf32> to vector<8x8xf32>
    %134 = arith.addf %130, %133 : vector<8x8xf32>
    %135 = tpu.transpose %127, [1, 0] : vector<8x8xf32> -> vector<8x8xf32>
    %cst_96 = arith.constant dense<0.000000e+00> : vector<8x8xf32>
    %136 = tpu.matmul %120, %135, %cst_96 {dimension_numbers = #tpu.dot_dimension_numbers<[1], [0], [0], [1], [0, 0, 1, 1], [], []>} : vector<8x8xf32>, vector<8x8xf32>, vector<8x8xf32> -> vector<8x8xf32>
    %cst_97 = arith.constant 0.353553385 : f32
    %137 = vector.broadcast %cst_97 : f32 to vector<8x8xf32>
    %138 = arith.mulf %136, %137 : vector<8x8xf32>
    %139 = arith.addf %138, %4 : vector<8x8xf32>
    %cst_98 = arith.constant dense<0xFF800000> : vector<8xf32>
    %140 = vector.multi_reduction <maximumf>, %139, %cst_98 [1] : vector<8x8xf32> to vector<8xf32>
    %141 = vector.shape_cast %140 : vector<8xf32> to vector<8x1xf32>
    %142 = vector.broadcast %141 : vector<8x1xf32> to vector<8x8xf32>
    %143 = arith.subf %139, %142 : vector<8x8xf32>
    %144 = math.exp %143 : vector<8x8xf32>
    %cst_99 = arith.constant dense<0.000000e+00> : vector<8xf32>
    %145 = vector.multi_reduction <add>, %144, %cst_99 [1] : vector<8x8xf32> to vector<8xf32>
    %146 = vector.shape_cast %145 : vector<8xf32> to vector<8x1xf32>
    %147 = tpu.reciprocal %146 {approx = true} : vector<8x1xf32> -> vector<8x1xf32>
    %cst_100 = arith.constant dense<0.000000e+00> : vector<8x8xf32>
    %148 = tpu.matmul %144, %134, %cst_100 {dimension_numbers = #tpu.dot_dimension_numbers<[1], [0], [0], [1], [0, 0, 1, 1], [], []>} : vector<8x8xf32>, vector<8x8xf32>, vector<8x8xf32> -> vector<8x8xf32>
    %149 = vector.broadcast %147 : vector<8x1xf32> to vector<8x8xf32>
    %150 = arith.mulf %148, %149 : vector<8x8xf32>
    %c2_101 = arith.constant 2 : index
    %c0_102 = arith.constant 0 : index
    %c0_103 = arith.constant 0 : index
    %151 = vector.load %arg10[%c2_101, %c0_102, %c0_103] : memref<8x8x32xf32, #tpu.memory_space<vmem>>, vector<1x8x32xf32>
    %152 = vector.shape_cast %151 : vector<1x8x32xf32> to vector<8x32xf32>
    %cst_104 = arith.constant dense<0.000000e+00> : vector<8x32xf32>
    %153 = tpu.matmul %150, %152, %cst_104 {dimension_numbers = #tpu.dot_dimension_numbers<[1], [0], [0], [1], [0, 0, 1, 1], [], []>} : vector<8x8xf32>, vector<8x32xf32>, vector<8x32xf32> -> vector<8x32xf32>
    %154 = arith.addf %113, %153 : vector<8x32xf32>
    %c3 = arith.constant 3 : index
    %c0_105 = arith.constant 0 : index
    %c0_106 = arith.constant 0 : index
    %155 = vector.load %arg4[%c3, %c0_105, %c0_106] : memref<8x32x8xf32, #tpu.memory_space<vmem>>, vector<1x32x8xf32>
    %156 = vector.shape_cast %155 : vector<1x32x8xf32> to vector<32x8xf32>
    %cst_107 = arith.constant dense<0.000000e+00> : vector<8x8xf32>
    %157 = tpu.matmul %30, %156, %cst_107 {dimension_numbers = #tpu.dot_dimension_numbers<[1], [0], [0], [1], [0, 0, 1, 1], [], []>} : vector<8x32xf32>, vector<32x8xf32>, vector<8x8xf32> -> vector<8x8xf32>
    %c3_108 = arith.constant 3 : index
    %c0_109 = arith.constant 0 : index
    %c0_110 = arith.constant 0 : index
    %158 = vector.load %arg7[%c3_108, %c0_109, %c0_110] : memref<8x1x8xf32, #tpu.memory_space<vmem>>, vector<1x1x8xf32>
    %159 = vector.shape_cast %158 : vector<1x1x8xf32> to vector<1x8xf32>
    %160 = vector.broadcast %159 : vector<1x8xf32> to vector<8x8xf32>
    %161 = arith.addf %157, %160 : vector<8x8xf32>
    %c3_111 = arith.constant 3 : index
    %c0_112 = arith.constant 0 : index
    %c0_113 = arith.constant 0 : index
    %162 = vector.load %arg5[%c3_111, %c0_112, %c0_113] : memref<8x32x8xf32, #tpu.memory_space<vmem>>, vector<1x32x8xf32>
    %163 = vector.shape_cast %162 : vector<1x32x8xf32> to vector<32x8xf32>
    %cst_114 = arith.constant dense<0.000000e+00> : vector<8x8xf32>
    %164 = tpu.matmul %30, %163, %cst_114 {dimension_numbers = #tpu.dot_dimension_numbers<[1], [0], [0], [1], [0, 0, 1, 1], [], []>} : vector<8x32xf32>, vector<32x8xf32>, vector<8x8xf32> -> vector<8x8xf32>
    %c3_115 = arith.constant 3 : index
    %c0_116 = arith.constant 0 : index
    %c0_117 = arith.constant 0 : index
    %165 = vector.load %arg8[%c3_115, %c0_116, %c0_117] : memref<8x1x8xf32, #tpu.memory_space<vmem>>, vector<1x1x8xf32>
    %166 = vector.shape_cast %165 : vector<1x1x8xf32> to vector<1x8xf32>
    %167 = vector.broadcast %166 : vector<1x8xf32> to vector<8x8xf32>
    %168 = arith.addf %164, %167 : vector<8x8xf32>
    %c3_118 = arith.constant 3 : index
    %c0_119 = arith.constant 0 : index
    %c0_120 = arith.constant 0 : index
    %169 = vector.load %arg6[%c3_118, %c0_119, %c0_120] : memref<8x32x8xf32, #tpu.memory_space<vmem>>, vector<1x32x8xf32>
    %170 = vector.shape_cast %169 : vector<1x32x8xf32> to vector<32x8xf32>
    %cst_121 = arith.constant dense<0.000000e+00> : vector<8x8xf32>
    %171 = tpu.matmul %30, %170, %cst_121 {dimension_numbers = #tpu.dot_dimension_numbers<[1], [0], [0], [1], [0, 0, 1, 1], [], []>} : vector<8x32xf32>, vector<32x8xf32>, vector<8x8xf32> -> vector<8x8xf32>
    %c3_122 = arith.constant 3 : index
    %c0_123 = arith.constant 0 : index
    %c0_124 = arith.constant 0 : index
    %172 = vector.load %arg9[%c3_122, %c0_123, %c0_124] : memref<8x1x8xf32, #tpu.memory_space<vmem>>, vector<1x1x8xf32>
    %173 = vector.shape_cast %172 : vector<1x1x8xf32> to vector<1x8xf32>
    %174 = vector.broadcast %173 : vector<1x8xf32> to vector<8x8xf32>
    %175 = arith.addf %171, %174 : vector<8x8xf32>
    %176 = tpu.transpose %168, [1, 0] : vector<8x8xf32> -> vector<8x8xf32>
    %cst_125 = arith.constant dense<0.000000e+00> : vector<8x8xf32>
    %177 = tpu.matmul %161, %176, %cst_125 {dimension_numbers = #tpu.dot_dimension_numbers<[1], [0], [0], [1], [0, 0, 1, 1], [], []>} : vector<8x8xf32>, vector<8x8xf32>, vector<8x8xf32> -> vector<8x8xf32>
    %cst_126 = arith.constant 0.353553385 : f32
    %178 = vector.broadcast %cst_126 : f32 to vector<8x8xf32>
    %179 = arith.mulf %177, %178 : vector<8x8xf32>
    %180 = arith.addf %179, %4 : vector<8x8xf32>
    %cst_127 = arith.constant dense<0xFF800000> : vector<8xf32>
    %181 = vector.multi_reduction <maximumf>, %180, %cst_127 [1] : vector<8x8xf32> to vector<8xf32>
    %182 = vector.shape_cast %181 : vector<8xf32> to vector<8x1xf32>
    %183 = vector.broadcast %182 : vector<8x1xf32> to vector<8x8xf32>
    %184 = arith.subf %180, %183 : vector<8x8xf32>
    %185 = math.exp %184 : vector<8x8xf32>
    %cst_128 = arith.constant dense<0.000000e+00> : vector<8xf32>
    %186 = vector.multi_reduction <add>, %185, %cst_128 [1] : vector<8x8xf32> to vector<8xf32>
    %187 = vector.shape_cast %186 : vector<8xf32> to vector<8x1xf32>
    %188 = tpu.reciprocal %187 {approx = true} : vector<8x1xf32> -> vector<8x1xf32>
    %cst_129 = arith.constant dense<0.000000e+00> : vector<8x8xf32>
    %189 = tpu.matmul %185, %175, %cst_129 {dimension_numbers = #tpu.dot_dimension_numbers<[1], [0], [0], [1], [0, 0, 1, 1], [], []>} : vector<8x8xf32>, vector<8x8xf32>, vector<8x8xf32> -> vector<8x8xf32>
    %190 = vector.broadcast %188 : vector<8x1xf32> to vector<8x8xf32>
    %191 = arith.mulf %189, %190 : vector<8x8xf32>
    %c3_130 = arith.constant 3 : index
    %c0_131 = arith.constant 0 : index
    %c0_132 = arith.constant 0 : index
    %192 = vector.load %arg10[%c3_130, %c0_131, %c0_132] : memref<8x8x32xf32, #tpu.memory_space<vmem>>, vector<1x8x32xf32>
    %193 = vector.shape_cast %192 : vector<1x8x32xf32> to vector<8x32xf32>
    %cst_133 = arith.constant dense<0.000000e+00> : vector<8x32xf32>
    %194 = tpu.matmul %191, %193, %cst_133 {dimension_numbers = #tpu.dot_dimension_numbers<[1], [0], [0], [1], [0, 0, 1, 1], [], []>} : vector<8x8xf32>, vector<8x32xf32>, vector<8x32xf32> -> vector<8x32xf32>
    %195 = arith.addf %154, %194 : vector<8x32xf32>
    %196 = arith.addf %3, %195 : vector<8x32xf32>
    %c0_134 = arith.constant 0 : index
    %c0_135 = arith.constant 0 : index
    %c0_136 = arith.constant 0 : index
    %197 = vector.load %arg11[%c0_134, %c0_135, %c0_136] : memref<2x1x32xf32, #tpu.memory_space<vmem>>, vector<1x1x32xf32>
    %198 = vector.shape_cast %197 : vector<1x1x32xf32> to vector<1x32xf32>
    %199 = vector.broadcast %198 : vector<1x32xf32> to vector<8x32xf32>
    %200 = arith.addf %196, %199 : vector<8x32xf32>
    %c0_137 = arith.constant 0 : index
    %c0_138 = arith.constant 0 : index
    %c0_139 = arith.constant 0 : index
    %201 = vector.load %arg14[%c0_137, %c0_138, %c0_139] : memref<2x1x32xf32, #tpu.memory_space<vmem>>, vector<1x1x32xf32>
    %202 = vector.shape_cast %201 : vector<1x1x32xf32> to vector<1x32xf32>
    %c0_140 = arith.constant 0 : index
    %c0_141 = arith.constant 0 : index
    %c0_142 = arith.constant 0 : index
    %203 = vector.load %arg15[%c0_140, %c0_141, %c0_142] : memref<2x1x32xf32, #tpu.memory_space<vmem>>, vector<1x1x32xf32>
    %204 = vector.shape_cast %203 : vector<1x1x32xf32> to vector<1x32xf32>
    %cst_143 = arith.constant dense<0.000000e+00> : vector<8xf32>
    %205 = vector.multi_reduction <add>, %200, %cst_143 [1] : vector<8x32xf32> to vector<8xf32>
    %206 = vector.shape_cast %205 : vector<8xf32> to vector<8x1xf32>
    %cst_144 = arith.constant 3.200000e+01 : f32
    %207 = vector.broadcast %cst_144 : f32 to vector<8x1xf32>
    %208 = arith.divf %206, %207 : vector<8x1xf32>
    %209 = vector.broadcast %208 : vector<8x1xf32> to vector<8x32xf32>
    %210 = arith.subf %200, %209 : vector<8x32xf32>
    %211 = arith.mulf %210, %210 : vector<8x32xf32>
    %cst_145 = arith.constant dense<0.000000e+00> : vector<8xf32>
    %212 = vector.multi_reduction <add>, %211, %cst_145 [1] : vector<8x32xf32> to vector<8xf32>
    %213 = vector.shape_cast %212 : vector<8xf32> to vector<8x1xf32>
    %cst_146 = arith.constant 3.200000e+01 : f32
    %214 = vector.broadcast %cst_146 : f32 to vector<8x1xf32>
    %215 = arith.divf %213, %214 : vector<8x1xf32>
    %216 = vector.broadcast %208 : vector<8x1xf32> to vector<8x32xf32>
    %217 = arith.subf %200, %216 : vector<8x32xf32>
    %cst_147 = arith.constant 9.99999974E-6 : f32
    %218 = vector.broadcast %cst_147 : f32 to vector<8x1xf32>
    %219 = arith.addf %215, %218 : vector<8x1xf32>
    %220 = math.rsqrt %219 : vector<8x1xf32>
    %221 = vector.broadcast %220 : vector<8x1xf32> to vector<8x32xf32>
    %222 = arith.mulf %217, %221 : vector<8x32xf32>
    %223 = vector.broadcast %202 : vector<1x32xf32> to vector<8x32xf32>
    %224 = arith.mulf %222, %223 : vector<8x32xf32>
    %225 = vector.broadcast %204 : vector<1x32xf32> to vector<8x32xf32>
    %226 = arith.addf %224, %225 : vector<8x32xf32>
    %c0_148 = arith.constant 0 : index
    %c0_149 = arith.constant 0 : index
    %c0_150 = arith.constant 0 : index
    %227 = vector.load %arg16[%c0_148, %c0_149, %c0_150] : memref<2x32x128xf32, #tpu.memory_space<vmem>>, vector<1x32x128xf32>
    %228 = vector.shape_cast %227 : vector<1x32x128xf32> to vector<32x128xf32>
    %cst_151 = arith.constant dense<0.000000e+00> : vector<8x128xf32>
    %229 = tpu.matmul %226, %228, %cst_151 {dimension_numbers = #tpu.dot_dimension_numbers<[1], [0], [0], [1], [0, 0, 1, 1], [], []>} : vector<8x32xf32>, vector<32x128xf32>, vector<8x128xf32> -> vector<8x128xf32>
    %c0_152 = arith.constant 0 : index
    %c0_153 = arith.constant 0 : index
    %c0_154 = arith.constant 0 : index
    %230 = vector.load %arg17[%c0_152, %c0_153, %c0_154] : memref<2x1x128xf32, #tpu.memory_space<vmem>>, vector<1x1x128xf32>
    %231 = vector.shape_cast %230 : vector<1x1x128xf32> to vector<1x128xf32>
    %232 = vector.broadcast %231 : vector<1x128xf32> to vector<8x128xf32>
    %233 = arith.addf %229, %232 : vector<8x128xf32>
    %cst_155 = arith.constant 1.702000e+00 : f32
    %234 = vector.broadcast %cst_155 : f32 to vector<8x128xf32>
    %235 = arith.mulf %234, %233 : vector<8x128xf32>
    %236 = arith.negf %235 : vector<8x128xf32>
    %237 = math.exp %236 : vector<8x128xf32>
    %cst_156 = arith.constant 1.000000e+00 : f32
    %238 = vector.broadcast %cst_156 : f32 to vector<8x128xf32>
    %239 = arith.addf %238, %237 : vector<8x128xf32>
    %240 = arith.divf %238, %239 : vector<8x128xf32>
    %241 = arith.mulf %233, %240 : vector<8x128xf32>
    %c0_157 = arith.constant 0 : index
    %c0_158 = arith.constant 0 : index
    %c0_159 = arith.constant 0 : index
    %242 = vector.load %arg18[%c0_157, %c0_158, %c0_159] : memref<2x128x32xf32, #tpu.memory_space<vmem>>, vector<1x128x32xf32>
    %243 = vector.shape_cast %242 : vector<1x128x32xf32> to vector<128x32xf32>
    %cst_160 = arith.constant dense<0.000000e+00> : vector<8x32xf32>
    %244 = tpu.matmul %241, %243, %cst_160 {dimension_numbers = #tpu.dot_dimension_numbers<[1], [0], [0], [1], [0, 0, 1, 1], [], []>} : vector<8x128xf32>, vector<128x32xf32>, vector<8x32xf32> -> vector<8x32xf32>
    %245 = arith.addf %200, %244 : vector<8x32xf32>
    %c0_161 = arith.constant 0 : index
    %c0_162 = arith.constant 0 : index
    %c0_163 = arith.constant 0 : index
    %246 = vector.load %arg19[%c0_161, %c0_162, %c0_163] : memref<2x1x32xf32, #tpu.memory_space<vmem>>, vector<1x1x32xf32>
    %247 = vector.shape_cast %246 : vector<1x1x32xf32> to vector<1x32xf32>
    %248 = vector.broadcast %247 : vector<1x32xf32> to vector<8x32xf32>
    %249 = arith.addf %245, %248 : vector<8x32xf32>
    %c1_164 = arith.constant 1 : index
    %c0_165 = arith.constant 0 : index
    %c0_166 = arith.constant 0 : index
    %250 = vector.load %arg12[%c1_164, %c0_165, %c0_166] : memref<2x1x32xf32, #tpu.memory_space<vmem>>, vector<1x1x32xf32>
    %251 = vector.shape_cast %250 : vector<1x1x32xf32> to vector<1x32xf32>
    %c1_167 = arith.constant 1 : index
    %c0_168 = arith.constant 0 : index
    %c0_169 = arith.constant 0 : index
    %252 = vector.load %arg13[%c1_167, %c0_168, %c0_169] : memref<2x1x32xf32, #tpu.memory_space<vmem>>, vector<1x1x32xf32>
    %253 = vector.shape_cast %252 : vector<1x1x32xf32> to vector<1x32xf32>
    %cst_170 = arith.constant dense<0.000000e+00> : vector<8xf32>
    %254 = vector.multi_reduction <add>, %249, %cst_170 [1] : vector<8x32xf32> to vector<8xf32>
    %255 = vector.shape_cast %254 : vector<8xf32> to vector<8x1xf32>
    %cst_171 = arith.constant 3.200000e+01 : f32
    %256 = vector.broadcast %cst_171 : f32 to vector<8x1xf32>
    %257 = arith.divf %255, %256 : vector<8x1xf32>
    %258 = vector.broadcast %257 : vector<8x1xf32> to vector<8x32xf32>
    %259 = arith.subf %249, %258 : vector<8x32xf32>
    %260 = arith.mulf %259, %259 : vector<8x32xf32>
    %cst_172 = arith.constant dense<0.000000e+00> : vector<8xf32>
    %261 = vector.multi_reduction <add>, %260, %cst_172 [1] : vector<8x32xf32> to vector<8xf32>
    %262 = vector.shape_cast %261 : vector<8xf32> to vector<8x1xf32>
    %cst_173 = arith.constant 3.200000e+01 : f32
    %263 = vector.broadcast %cst_173 : f32 to vector<8x1xf32>
    %264 = arith.divf %262, %263 : vector<8x1xf32>
    %265 = vector.broadcast %257 : vector<8x1xf32> to vector<8x32xf32>
    %266 = arith.subf %249, %265 : vector<8x32xf32>
    %cst_174 = arith.constant 9.99999974E-6 : f32
    %267 = vector.broadcast %cst_174 : f32 to vector<8x1xf32>
    %268 = arith.addf %264, %267 : vector<8x1xf32>
    %269 = math.rsqrt %268 : vector<8x1xf32>
    %270 = vector.broadcast %269 : vector<8x1xf32> to vector<8x32xf32>
    %271 = arith.mulf %266, %270 : vector<8x32xf32>
    %272 = vector.broadcast %251 : vector<1x32xf32> to vector<8x32xf32>
    %273 = arith.mulf %271, %272 : vector<8x32xf32>
    %274 = vector.broadcast %253 : vector<1x32xf32> to vector<8x32xf32>
    %275 = arith.addf %273, %274 : vector<8x32xf32>
    %cst_175 = arith.constant 0.000000e+00 : f32
    %276 = vector.broadcast %cst_175 : f32 to vector<8x32xf32>
    %c4 = arith.constant 4 : index
    %c0_176 = arith.constant 0 : index
    %c0_177 = arith.constant 0 : index
    %277 = vector.load %arg4[%c4, %c0_176, %c0_177] : memref<8x32x8xf32, #tpu.memory_space<vmem>>, vector<1x32x8xf32>
    %278 = vector.shape_cast %277 : vector<1x32x8xf32> to vector<32x8xf32>
    %cst_178 = arith.constant dense<0.000000e+00> : vector<8x8xf32>
    %279 = tpu.matmul %275, %278, %cst_178 {dimension_numbers = #tpu.dot_dimension_numbers<[1], [0], [0], [1], [0, 0, 1, 1], [], []>} : vector<8x32xf32>, vector<32x8xf32>, vector<8x8xf32> -> vector<8x8xf32>
    %c4_179 = arith.constant 4 : index
    %c0_180 = arith.constant 0 : index
    %c0_181 = arith.constant 0 : index
    %280 = vector.load %arg7[%c4_179, %c0_180, %c0_181] : memref<8x1x8xf32, #tpu.memory_space<vmem>>, vector<1x1x8xf32>
    %281 = vector.shape_cast %280 : vector<1x1x8xf32> to vector<1x8xf32>
    %282 = vector.broadcast %281 : vector<1x8xf32> to vector<8x8xf32>
    %283 = arith.addf %279, %282 : vector<8x8xf32>
    %c4_182 = arith.constant 4 : index
    %c0_183 = arith.constant 0 : index
    %c0_184 = arith.constant 0 : index
    %284 = vector.load %arg5[%c4_182, %c0_183, %c0_184] : memref<8x32x8xf32, #tpu.memory_space<vmem>>, vector<1x32x8xf32>
    %285 = vector.shape_cast %284 : vector<1x32x8xf32> to vector<32x8xf32>
    %cst_185 = arith.constant dense<0.000000e+00> : vector<8x8xf32>
    %286 = tpu.matmul %275, %285, %cst_185 {dimension_numbers = #tpu.dot_dimension_numbers<[1], [0], [0], [1], [0, 0, 1, 1], [], []>} : vector<8x32xf32>, vector<32x8xf32>, vector<8x8xf32> -> vector<8x8xf32>
    %c4_186 = arith.constant 4 : index
    %c0_187 = arith.constant 0 : index
    %c0_188 = arith.constant 0 : index
    %287 = vector.load %arg8[%c4_186, %c0_187, %c0_188] : memref<8x1x8xf32, #tpu.memory_space<vmem>>, vector<1x1x8xf32>
    %288 = vector.shape_cast %287 : vector<1x1x8xf32> to vector<1x8xf32>
    %289 = vector.broadcast %288 : vector<1x8xf32> to vector<8x8xf32>
    %290 = arith.addf %286, %289 : vector<8x8xf32>
    %c4_189 = arith.constant 4 : index
    %c0_190 = arith.constant 0 : index
    %c0_191 = arith.constant 0 : index
    %291 = vector.load %arg6[%c4_189, %c0_190, %c0_191] : memref<8x32x8xf32, #tpu.memory_space<vmem>>, vector<1x32x8xf32>
    %292 = vector.shape_cast %291 : vector<1x32x8xf32> to vector<32x8xf32>
    %cst_192 = arith.constant dense<0.000000e+00> : vector<8x8xf32>
    %293 = tpu.matmul %275, %292, %cst_192 {dimension_numbers = #tpu.dot_dimension_numbers<[1], [0], [0], [1], [0, 0, 1, 1], [], []>} : vector<8x32xf32>, vector<32x8xf32>, vector<8x8xf32> -> vector<8x8xf32>
    %c4_193 = arith.constant 4 : index
    %c0_194 = arith.constant 0 : index
    %c0_195 = arith.constant 0 : index
    %294 = vector.load %arg9[%c4_193, %c0_194, %c0_195] : memref<8x1x8xf32, #tpu.memory_space<vmem>>, vector<1x1x8xf32>
    %295 = vector.shape_cast %294 : vector<1x1x8xf32> to vector<1x8xf32>
    %296 = vector.broadcast %295 : vector<1x8xf32> to vector<8x8xf32>
    %297 = arith.addf %293, %296 : vector<8x8xf32>
    %298 = tpu.transpose %290, [1, 0] : vector<8x8xf32> -> vector<8x8xf32>
    %cst_196 = arith.constant dense<0.000000e+00> : vector<8x8xf32>
    %299 = tpu.matmul %283, %298, %cst_196 {dimension_numbers = #tpu.dot_dimension_numbers<[1], [0], [0], [1], [0, 0, 1, 1], [], []>} : vector<8x8xf32>, vector<8x8xf32>, vector<8x8xf32> -> vector<8x8xf32>
    %cst_197 = arith.constant 0.353553385 : f32
    %300 = vector.broadcast %cst_197 : f32 to vector<8x8xf32>
    %301 = arith.mulf %299, %300 : vector<8x8xf32>
    %302 = arith.addf %301, %4 : vector<8x8xf32>
    %cst_198 = arith.constant dense<0xFF800000> : vector<8xf32>
    %303 = vector.multi_reduction <maximumf>, %302, %cst_198 [1] : vector<8x8xf32> to vector<8xf32>
    %304 = vector.shape_cast %303 : vector<8xf32> to vector<8x1xf32>
    %305 = vector.broadcast %304 : vector<8x1xf32> to vector<8x8xf32>
    %306 = arith.subf %302, %305 : vector<8x8xf32>
    %307 = math.exp %306 : vector<8x8xf32>
    %cst_199 = arith.constant dense<0.000000e+00> : vector<8xf32>
    %308 = vector.multi_reduction <add>, %307, %cst_199 [1] : vector<8x8xf32> to vector<8xf32>
    %309 = vector.shape_cast %308 : vector<8xf32> to vector<8x1xf32>
    %310 = tpu.reciprocal %309 {approx = true} : vector<8x1xf32> -> vector<8x1xf32>
    %cst_200 = arith.constant dense<0.000000e+00> : vector<8x8xf32>
    %311 = tpu.matmul %307, %297, %cst_200 {dimension_numbers = #tpu.dot_dimension_numbers<[1], [0], [0], [1], [0, 0, 1, 1], [], []>} : vector<8x8xf32>, vector<8x8xf32>, vector<8x8xf32> -> vector<8x8xf32>
    %312 = vector.broadcast %310 : vector<8x1xf32> to vector<8x8xf32>
    %313 = arith.mulf %311, %312 : vector<8x8xf32>
    %c4_201 = arith.constant 4 : index
    %c0_202 = arith.constant 0 : index
    %c0_203 = arith.constant 0 : index
    %314 = vector.load %arg10[%c4_201, %c0_202, %c0_203] : memref<8x8x32xf32, #tpu.memory_space<vmem>>, vector<1x8x32xf32>
    %315 = vector.shape_cast %314 : vector<1x8x32xf32> to vector<8x32xf32>
    %cst_204 = arith.constant dense<0.000000e+00> : vector<8x32xf32>
    %316 = tpu.matmul %313, %315, %cst_204 {dimension_numbers = #tpu.dot_dimension_numbers<[1], [0], [0], [1], [0, 0, 1, 1], [], []>} : vector<8x8xf32>, vector<8x32xf32>, vector<8x32xf32> -> vector<8x32xf32>
    %317 = arith.addf %276, %316 : vector<8x32xf32>
    %c5 = arith.constant 5 : index
    %c0_205 = arith.constant 0 : index
    %c0_206 = arith.constant 0 : index
    %318 = vector.load %arg4[%c5, %c0_205, %c0_206] : memref<8x32x8xf32, #tpu.memory_space<vmem>>, vector<1x32x8xf32>
    %319 = vector.shape_cast %318 : vector<1x32x8xf32> to vector<32x8xf32>
    %cst_207 = arith.constant dense<0.000000e+00> : vector<8x8xf32>
    %320 = tpu.matmul %275, %319, %cst_207 {dimension_numbers = #tpu.dot_dimension_numbers<[1], [0], [0], [1], [0, 0, 1, 1], [], []>} : vector<8x32xf32>, vector<32x8xf32>, vector<8x8xf32> -> vector<8x8xf32>
    %c5_208 = arith.constant 5 : index
    %c0_209 = arith.constant 0 : index
    %c0_210 = arith.constant 0 : index
    %321 = vector.load %arg7[%c5_208, %c0_209, %c0_210] : memref<8x1x8xf32, #tpu.memory_space<vmem>>, vector<1x1x8xf32>
    %322 = vector.shape_cast %321 : vector<1x1x8xf32> to vector<1x8xf32>
    %323 = vector.broadcast %322 : vector<1x8xf32> to vector<8x8xf32>
    %324 = arith.addf %320, %323 : vector<8x8xf32>
    %c5_211 = arith.constant 5 : index
    %c0_212 = arith.constant 0 : index
    %c0_213 = arith.constant 0 : index
    %325 = vector.load %arg5[%c5_211, %c0_212, %c0_213] : memref<8x32x8xf32, #tpu.memory_space<vmem>>, vector<1x32x8xf32>
    %326 = vector.shape_cast %325 : vector<1x32x8xf32> to vector<32x8xf32>
    %cst_214 = arith.constant dense<0.000000e+00> : vector<8x8xf32>
    %327 = tpu.matmul %275, %326, %cst_214 {dimension_numbers = #tpu.dot_dimension_numbers<[1], [0], [0], [1], [0, 0, 1, 1], [], []>} : vector<8x32xf32>, vector<32x8xf32>, vector<8x8xf32> -> vector<8x8xf32>
    %c5_215 = arith.constant 5 : index
    %c0_216 = arith.constant 0 : index
    %c0_217 = arith.constant 0 : index
    %328 = vector.load %arg8[%c5_215, %c0_216, %c0_217] : memref<8x1x8xf32, #tpu.memory_space<vmem>>, vector<1x1x8xf32>
    %329 = vector.shape_cast %328 : vector<1x1x8xf32> to vector<1x8xf32>
    %330 = vector.broadcast %329 : vector<1x8xf32> to vector<8x8xf32>
    %331 = arith.addf %327, %330 : vector<8x8xf32>
    %c5_218 = arith.constant 5 : index
    %c0_219 = arith.constant 0 : index
    %c0_220 = arith.constant 0 : index
    %332 = vector.load %arg6[%c5_218, %c0_219, %c0_220] : memref<8x32x8xf32, #tpu.memory_space<vmem>>, vector<1x32x8xf32>
    %333 = vector.shape_cast %332 : vector<1x32x8xf32> to vector<32x8xf32>
    %cst_221 = arith.constant dense<0.000000e+00> : vector<8x8xf32>
    %334 = tpu.matmul %275, %333, %cst_221 {dimension_numbers = #tpu.dot_dimension_numbers<[1], [0], [0], [1], [0, 0, 1, 1], [], []>} : vector<8x32xf32>, vector<32x8xf32>, vector<8x8xf32> -> vector<8x8xf32>
    %c5_222 = arith.constant 5 : index
    %c0_223 = arith.constant 0 : index
    %c0_224 = arith.constant 0 : index
    %335 = vector.load %arg9[%c5_222, %c0_223, %c0_224] : memref<8x1x8xf32, #tpu.memory_space<vmem>>, vector<1x1x8xf32>
    %336 = vector.shape_cast %335 : vector<1x1x8xf32> to vector<1x8xf32>
    %337 = vector.broadcast %336 : vector<1x8xf32> to vector<8x8xf32>
    %338 = arith.addf %334, %337 : vector<8x8xf32>
    %339 = tpu.transpose %331, [1, 0] : vector<8x8xf32> -> vector<8x8xf32>
    %cst_225 = arith.constant dense<0.000000e+00> : vector<8x8xf32>
    %340 = tpu.matmul %324, %339, %cst_225 {dimension_numbers = #tpu.dot_dimension_numbers<[1], [0], [0], [1], [0, 0, 1, 1], [], []>} : vector<8x8xf32>, vector<8x8xf32>, vector<8x8xf32> -> vector<8x8xf32>
    %cst_226 = arith.constant 0.353553385 : f32
    %341 = vector.broadcast %cst_226 : f32 to vector<8x8xf32>
    %342 = arith.mulf %340, %341 : vector<8x8xf32>
    %343 = arith.addf %342, %4 : vector<8x8xf32>
    %cst_227 = arith.constant dense<0xFF800000> : vector<8xf32>
    %344 = vector.multi_reduction <maximumf>, %343, %cst_227 [1] : vector<8x8xf32> to vector<8xf32>
    %345 = vector.shape_cast %344 : vector<8xf32> to vector<8x1xf32>
    %346 = vector.broadcast %345 : vector<8x1xf32> to vector<8x8xf32>
    %347 = arith.subf %343, %346 : vector<8x8xf32>
    %348 = math.exp %347 : vector<8x8xf32>
    %cst_228 = arith.constant dense<0.000000e+00> : vector<8xf32>
    %349 = vector.multi_reduction <add>, %348, %cst_228 [1] : vector<8x8xf32> to vector<8xf32>
    %350 = vector.shape_cast %349 : vector<8xf32> to vector<8x1xf32>
    %351 = tpu.reciprocal %350 {approx = true} : vector<8x1xf32> -> vector<8x1xf32>
    %cst_229 = arith.constant dense<0.000000e+00> : vector<8x8xf32>
    %352 = tpu.matmul %348, %338, %cst_229 {dimension_numbers = #tpu.dot_dimension_numbers<[1], [0], [0], [1], [0, 0, 1, 1], [], []>} : vector<8x8xf32>, vector<8x8xf32>, vector<8x8xf32> -> vector<8x8xf32>
    %353 = vector.broadcast %351 : vector<8x1xf32> to vector<8x8xf32>
    %354 = arith.mulf %352, %353 : vector<8x8xf32>
    %c5_230 = arith.constant 5 : index
    %c0_231 = arith.constant 0 : index
    %c0_232 = arith.constant 0 : index
    %355 = vector.load %arg10[%c5_230, %c0_231, %c0_232] : memref<8x8x32xf32, #tpu.memory_space<vmem>>, vector<1x8x32xf32>
    %356 = vector.shape_cast %355 : vector<1x8x32xf32> to vector<8x32xf32>
    %cst_233 = arith.constant dense<0.000000e+00> : vector<8x32xf32>
    %357 = tpu.matmul %354, %356, %cst_233 {dimension_numbers = #tpu.dot_dimension_numbers<[1], [0], [0], [1], [0, 0, 1, 1], [], []>} : vector<8x8xf32>, vector<8x32xf32>, vector<8x32xf32> -> vector<8x32xf32>
    %358 = arith.addf %317, %357 : vector<8x32xf32>
    %c6 = arith.constant 6 : index
    %c0_234 = arith.constant 0 : index
    %c0_235 = arith.constant 0 : index
    %359 = vector.load %arg4[%c6, %c0_234, %c0_235] : memref<8x32x8xf32, #tpu.memory_space<vmem>>, vector<1x32x8xf32>
    %360 = vector.shape_cast %359 : vector<1x32x8xf32> to vector<32x8xf32>
    %cst_236 = arith.constant dense<0.000000e+00> : vector<8x8xf32>
    %361 = tpu.matmul %275, %360, %cst_236 {dimension_numbers = #tpu.dot_dimension_numbers<[1], [0], [0], [1], [0, 0, 1, 1], [], []>} : vector<8x32xf32>, vector<32x8xf32>, vector<8x8xf32> -> vector<8x8xf32>
    %c6_237 = arith.constant 6 : index
    %c0_238 = arith.constant 0 : index
    %c0_239 = arith.constant 0 : index
    %362 = vector.load %arg7[%c6_237, %c0_238, %c0_239] : memref<8x1x8xf32, #tpu.memory_space<vmem>>, vector<1x1x8xf32>
    %363 = vector.shape_cast %362 : vector<1x1x8xf32> to vector<1x8xf32>
    %364 = vector.broadcast %363 : vector<1x8xf32> to vector<8x8xf32>
    %365 = arith.addf %361, %364 : vector<8x8xf32>
    %c6_240 = arith.constant 6 : index
    %c0_241 = arith.constant 0 : index
    %c0_242 = arith.constant 0 : index
    %366 = vector.load %arg5[%c6_240, %c0_241, %c0_242] : memref<8x32x8xf32, #tpu.memory_space<vmem>>, vector<1x32x8xf32>
    %367 = vector.shape_cast %366 : vector<1x32x8xf32> to vector<32x8xf32>
    %cst_243 = arith.constant dense<0.000000e+00> : vector<8x8xf32>
    %368 = tpu.matmul %275, %367, %cst_243 {dimension_numbers = #tpu.dot_dimension_numbers<[1], [0], [0], [1], [0, 0, 1, 1], [], []>} : vector<8x32xf32>, vector<32x8xf32>, vector<8x8xf32> -> vector<8x8xf32>
    %c6_244 = arith.constant 6 : index
    %c0_245 = arith.constant 0 : index
    %c0_246 = arith.constant 0 : index
    %369 = vector.load %arg8[%c6_244, %c0_245, %c0_246] : memref<8x1x8xf32, #tpu.memory_space<vmem>>, vector<1x1x8xf32>
    %370 = vector.shape_cast %369 : vector<1x1x8xf32> to vector<1x8xf32>
    %371 = vector.broadcast %370 : vector<1x8xf32> to vector<8x8xf32>
    %372 = arith.addf %368, %371 : vector<8x8xf32>
    %c6_247 = arith.constant 6 : index
    %c0_248 = arith.constant 0 : index
    %c0_249 = arith.constant 0 : index
    %373 = vector.load %arg6[%c6_247, %c0_248, %c0_249] : memref<8x32x8xf32, #tpu.memory_space<vmem>>, vector<1x32x8xf32>
    %374 = vector.shape_cast %373 : vector<1x32x8xf32> to vector<32x8xf32>
    %cst_250 = arith.constant dense<0.000000e+00> : vector<8x8xf32>
    %375 = tpu.matmul %275, %374, %cst_250 {dimension_numbers = #tpu.dot_dimension_numbers<[1], [0], [0], [1], [0, 0, 1, 1], [], []>} : vector<8x32xf32>, vector<32x8xf32>, vector<8x8xf32> -> vector<8x8xf32>
    %c6_251 = arith.constant 6 : index
    %c0_252 = arith.constant 0 : index
    %c0_253 = arith.constant 0 : index
    %376 = vector.load %arg9[%c6_251, %c0_252, %c0_253] : memref<8x1x8xf32, #tpu.memory_space<vmem>>, vector<1x1x8xf32>
    %377 = vector.shape_cast %376 : vector<1x1x8xf32> to vector<1x8xf32>
    %378 = vector.broadcast %377 : vector<1x8xf32> to vector<8x8xf32>
    %379 = arith.addf %375, %378 : vector<8x8xf32>
    %380 = tpu.transpose %372, [1, 0] : vector<8x8xf32> -> vector<8x8xf32>
    %cst_254 = arith.constant dense<0.000000e+00> : vector<8x8xf32>
    %381 = tpu.matmul %365, %380, %cst_254 {dimension_numbers = #tpu.dot_dimension_numbers<[1], [0], [0], [1], [0, 0, 1, 1], [], []>} : vector<8x8xf32>, vector<8x8xf32>, vector<8x8xf32> -> vector<8x8xf32>
    %cst_255 = arith.constant 0.353553385 : f32
    %382 = vector.broadcast %cst_255 : f32 to vector<8x8xf32>
    %383 = arith.mulf %381, %382 : vector<8x8xf32>
    %384 = arith.addf %383, %4 : vector<8x8xf32>
    %cst_256 = arith.constant dense<0xFF800000> : vector<8xf32>
    %385 = vector.multi_reduction <maximumf>, %384, %cst_256 [1] : vector<8x8xf32> to vector<8xf32>
    %386 = vector.shape_cast %385 : vector<8xf32> to vector<8x1xf32>
    %387 = vector.broadcast %386 : vector<8x1xf32> to vector<8x8xf32>
    %388 = arith.subf %384, %387 : vector<8x8xf32>
    %389 = math.exp %388 : vector<8x8xf32>
    %cst_257 = arith.constant dense<0.000000e+00> : vector<8xf32>
    %390 = vector.multi_reduction <add>, %389, %cst_257 [1] : vector<8x8xf32> to vector<8xf32>
    %391 = vector.shape_cast %390 : vector<8xf32> to vector<8x1xf32>
    %392 = tpu.reciprocal %391 {approx = true} : vector<8x1xf32> -> vector<8x1xf32>
    %cst_258 = arith.constant dense<0.000000e+00> : vector<8x8xf32>
    %393 = tpu.matmul %389, %379, %cst_258 {dimension_numbers = #tpu.dot_dimension_numbers<[1], [0], [0], [1], [0, 0, 1, 1], [], []>} : vector<8x8xf32>, vector<8x8xf32>, vector<8x8xf32> -> vector<8x8xf32>
    %394 = vector.broadcast %392 : vector<8x1xf32> to vector<8x8xf32>
    %395 = arith.mulf %393, %394 : vector<8x8xf32>
    %c6_259 = arith.constant 6 : index
    %c0_260 = arith.constant 0 : index
    %c0_261 = arith.constant 0 : index
    %396 = vector.load %arg10[%c6_259, %c0_260, %c0_261] : memref<8x8x32xf32, #tpu.memory_space<vmem>>, vector<1x8x32xf32>
    %397 = vector.shape_cast %396 : vector<1x8x32xf32> to vector<8x32xf32>
    %cst_262 = arith.constant dense<0.000000e+00> : vector<8x32xf32>
    %398 = tpu.matmul %395, %397, %cst_262 {dimension_numbers = #tpu.dot_dimension_numbers<[1], [0], [0], [1], [0, 0, 1, 1], [], []>} : vector<8x8xf32>, vector<8x32xf32>, vector<8x32xf32> -> vector<8x32xf32>
    %399 = arith.addf %358, %398 : vector<8x32xf32>
    %c7 = arith.constant 7 : index
    %c0_263 = arith.constant 0 : index
    %c0_264 = arith.constant 0 : index
    %400 = vector.load %arg4[%c7, %c0_263, %c0_264] : memref<8x32x8xf32, #tpu.memory_space<vmem>>, vector<1x32x8xf32>
    %401 = vector.shape_cast %400 : vector<1x32x8xf32> to vector<32x8xf32>
    %cst_265 = arith.constant dense<0.000000e+00> : vector<8x8xf32>
    %402 = tpu.matmul %275, %401, %cst_265 {dimension_numbers = #tpu.dot_dimension_numbers<[1], [0], [0], [1], [0, 0, 1, 1], [], []>} : vector<8x32xf32>, vector<32x8xf32>, vector<8x8xf32> -> vector<8x8xf32>
    %c7_266 = arith.constant 7 : index
    %c0_267 = arith.constant 0 : index
    %c0_268 = arith.constant 0 : index
    %403 = vector.load %arg7[%c7_266, %c0_267, %c0_268] : memref<8x1x8xf32, #tpu.memory_space<vmem>>, vector<1x1x8xf32>
    %404 = vector.shape_cast %403 : vector<1x1x8xf32> to vector<1x8xf32>
    %405 = vector.broadcast %404 : vector<1x8xf32> to vector<8x8xf32>
    %406 = arith.addf %402, %405 : vector<8x8xf32>
    %c7_269 = arith.constant 7 : index
    %c0_270 = arith.constant 0 : index
    %c0_271 = arith.constant 0 : index
    %407 = vector.load %arg5[%c7_269, %c0_270, %c0_271] : memref<8x32x8xf32, #tpu.memory_space<vmem>>, vector<1x32x8xf32>
    %408 = vector.shape_cast %407 : vector<1x32x8xf32> to vector<32x8xf32>
    %cst_272 = arith.constant dense<0.000000e+00> : vector<8x8xf32>
    %409 = tpu.matmul %275, %408, %cst_272 {dimension_numbers = #tpu.dot_dimension_numbers<[1], [0], [0], [1], [0, 0, 1, 1], [], []>} : vector<8x32xf32>, vector<32x8xf32>, vector<8x8xf32> -> vector<8x8xf32>
    %c7_273 = arith.constant 7 : index
    %c0_274 = arith.constant 0 : index
    %c0_275 = arith.constant 0 : index
    %410 = vector.load %arg8[%c7_273, %c0_274, %c0_275] : memref<8x1x8xf32, #tpu.memory_space<vmem>>, vector<1x1x8xf32>
    %411 = vector.shape_cast %410 : vector<1x1x8xf32> to vector<1x8xf32>
    %412 = vector.broadcast %411 : vector<1x8xf32> to vector<8x8xf32>
    %413 = arith.addf %409, %412 : vector<8x8xf32>
    %c7_276 = arith.constant 7 : index
    %c0_277 = arith.constant 0 : index
    %c0_278 = arith.constant 0 : index
    %414 = vector.load %arg6[%c7_276, %c0_277, %c0_278] : memref<8x32x8xf32, #tpu.memory_space<vmem>>, vector<1x32x8xf32>
    %415 = vector.shape_cast %414 : vector<1x32x8xf32> to vector<32x8xf32>
    %cst_279 = arith.constant dense<0.000000e+00> : vector<8x8xf32>
    %416 = tpu.matmul %275, %415, %cst_279 {dimension_numbers = #tpu.dot_dimension_numbers<[1], [0], [0], [1], [0, 0, 1, 1], [], []>} : vector<8x32xf32>, vector<32x8xf32>, vector<8x8xf32> -> vector<8x8xf32>
    %c7_280 = arith.constant 7 : index
    %c0_281 = arith.constant 0 : index
    %c0_282 = arith.constant 0 : index
    %417 = vector.load %arg9[%c7_280, %c0_281, %c0_282] : memref<8x1x8xf32, #tpu.memory_space<vmem>>, vector<1x1x8xf32>
    %418 = vector.shape_cast %417 : vector<1x1x8xf32> to vector<1x8xf32>
    %419 = vector.broadcast %418 : vector<1x8xf32> to vector<8x8xf32>
    %420 = arith.addf %416, %419 : vector<8x8xf32>
    %421 = tpu.transpose %413, [1, 0] : vector<8x8xf32> -> vector<8x8xf32>
    %cst_283 = arith.constant dense<0.000000e+00> : vector<8x8xf32>
    %422 = tpu.matmul %406, %421, %cst_283 {dimension_numbers = #tpu.dot_dimension_numbers<[1], [0], [0], [1], [0, 0, 1, 1], [], []>} : vector<8x8xf32>, vector<8x8xf32>, vector<8x8xf32> -> vector<8x8xf32>
    %cst_284 = arith.constant 0.353553385 : f32
    %423 = vector.broadcast %cst_284 : f32 to vector<8x8xf32>
    %424 = arith.mulf %422, %423 : vector<8x8xf32>
    %425 = arith.addf %424, %4 : vector<8x8xf32>
    %cst_285 = arith.constant dense<0xFF800000> : vector<8xf32>
    %426 = vector.multi_reduction <maximumf>, %425, %cst_285 [1] : vector<8x8xf32> to vector<8xf32>
    %427 = vector.shape_cast %426 : vector<8xf32> to vector<8x1xf32>
    %428 = vector.broadcast %427 : vector<8x1xf32> to vector<8x8xf32>
    %429 = arith.subf %425, %428 : vector<8x8xf32>
    %430 = math.exp %429 : vector<8x8xf32>
    %cst_286 = arith.constant dense<0.000000e+00> : vector<8xf32>
    %431 = vector.multi_reduction <add>, %430, %cst_286 [1] : vector<8x8xf32> to vector<8xf32>
    %432 = vector.shape_cast %431 : vector<8xf32> to vector<8x1xf32>
    %433 = tpu.reciprocal %432 {approx = true} : vector<8x1xf32> -> vector<8x1xf32>
    %cst_287 = arith.constant dense<0.000000e+00> : vector<8x8xf32>
    %434 = tpu.matmul %430, %420, %cst_287 {dimension_numbers = #tpu.dot_dimension_numbers<[1], [0], [0], [1], [0, 0, 1, 1], [], []>} : vector<8x8xf32>, vector<8x8xf32>, vector<8x8xf32> -> vector<8x8xf32>
    %435 = vector.broadcast %433 : vector<8x1xf32> to vector<8x8xf32>
    %436 = arith.mulf %434, %435 : vector<8x8xf32>
    %c7_288 = arith.constant 7 : index
    %c0_289 = arith.constant 0 : index
    %c0_290 = arith.constant 0 : index
    %437 = vector.load %arg10[%c7_288, %c0_289, %c0_290] : memref<8x8x32xf32, #tpu.memory_space<vmem>>, vector<1x8x32xf32>
    %438 = vector.shape_cast %437 : vector<1x8x32xf32> to vector<8x32xf32>
    %cst_291 = arith.constant dense<0.000000e+00> : vector<8x32xf32>
    %439 = tpu.matmul %436, %438, %cst_291 {dimension_numbers = #tpu.dot_dimension_numbers<[1], [0], [0], [1], [0, 0, 1, 1], [], []>} : vector<8x8xf32>, vector<8x32xf32>, vector<8x32xf32> -> vector<8x32xf32>
    %440 = arith.addf %399, %439 : vector<8x32xf32>
    %441 = arith.addf %249, %440 : vector<8x32xf32>
    %c1_292 = arith.constant 1 : index
    %c0_293 = arith.constant 0 : index
    %c0_294 = arith.constant 0 : index
    %442 = vector.load %arg11[%c1_292, %c0_293, %c0_294] : memref<2x1x32xf32, #tpu.memory_space<vmem>>, vector<1x1x32xf32>
    %443 = vector.shape_cast %442 : vector<1x1x32xf32> to vector<1x32xf32>
    %444 = vector.broadcast %443 : vector<1x32xf32> to vector<8x32xf32>
    %445 = arith.addf %441, %444 : vector<8x32xf32>
    %c1_295 = arith.constant 1 : index
    %c0_296 = arith.constant 0 : index
    %c0_297 = arith.constant 0 : index
    %446 = vector.load %arg14[%c1_295, %c0_296, %c0_297] : memref<2x1x32xf32, #tpu.memory_space<vmem>>, vector<1x1x32xf32>
    %447 = vector.shape_cast %446 : vector<1x1x32xf32> to vector<1x32xf32>
    %c1_298 = arith.constant 1 : index
    %c0_299 = arith.constant 0 : index
    %c0_300 = arith.constant 0 : index
    %448 = vector.load %arg15[%c1_298, %c0_299, %c0_300] : memref<2x1x32xf32, #tpu.memory_space<vmem>>, vector<1x1x32xf32>
    %449 = vector.shape_cast %448 : vector<1x1x32xf32> to vector<1x32xf32>
    %cst_301 = arith.constant dense<0.000000e+00> : vector<8xf32>
    %450 = vector.multi_reduction <add>, %445, %cst_301 [1] : vector<8x32xf32> to vector<8xf32>
    %451 = vector.shape_cast %450 : vector<8xf32> to vector<8x1xf32>
    %cst_302 = arith.constant 3.200000e+01 : f32
    %452 = vector.broadcast %cst_302 : f32 to vector<8x1xf32>
    %453 = arith.divf %451, %452 : vector<8x1xf32>
    %454 = vector.broadcast %453 : vector<8x1xf32> to vector<8x32xf32>
    %455 = arith.subf %445, %454 : vector<8x32xf32>
    %456 = arith.mulf %455, %455 : vector<8x32xf32>
    %cst_303 = arith.constant dense<0.000000e+00> : vector<8xf32>
    %457 = vector.multi_reduction <add>, %456, %cst_303 [1] : vector<8x32xf32> to vector<8xf32>
    %458 = vector.shape_cast %457 : vector<8xf32> to vector<8x1xf32>
    %cst_304 = arith.constant 3.200000e+01 : f32
    %459 = vector.broadcast %cst_304 : f32 to vector<8x1xf32>
    %460 = arith.divf %458, %459 : vector<8x1xf32>
    %461 = vector.broadcast %453 : vector<8x1xf32> to vector<8x32xf32>
    %462 = arith.subf %445, %461 : vector<8x32xf32>
    %cst_305 = arith.constant 9.99999974E-6 : f32
    %463 = vector.broadcast %cst_305 : f32 to vector<8x1xf32>
    %464 = arith.addf %460, %463 : vector<8x1xf32>
    %465 = math.rsqrt %464 : vector<8x1xf32>
    %466 = vector.broadcast %465 : vector<8x1xf32> to vector<8x32xf32>
    %467 = arith.mulf %462, %466 : vector<8x32xf32>
    %468 = vector.broadcast %447 : vector<1x32xf32> to vector<8x32xf32>
    %469 = arith.mulf %467, %468 : vector<8x32xf32>
    %470 = vector.broadcast %449 : vector<1x32xf32> to vector<8x32xf32>
    %471 = arith.addf %469, %470 : vector<8x32xf32>
    %c1_306 = arith.constant 1 : index
    %c0_307 = arith.constant 0 : index
    %c0_308 = arith.constant 0 : index
    %472 = vector.load %arg16[%c1_306, %c0_307, %c0_308] : memref<2x32x128xf32, #tpu.memory_space<vmem>>, vector<1x32x128xf32>
    %473 = vector.shape_cast %472 : vector<1x32x128xf32> to vector<32x128xf32>
    %cst_309 = arith.constant dense<0.000000e+00> : vector<8x128xf32>
    %474 = tpu.matmul %471, %473, %cst_309 {dimension_numbers = #tpu.dot_dimension_numbers<[1], [0], [0], [1], [0, 0, 1, 1], [], []>} : vector<8x32xf32>, vector<32x128xf32>, vector<8x128xf32> -> vector<8x128xf32>
    %c1_310 = arith.constant 1 : index
    %c0_311 = arith.constant 0 : index
    %c0_312 = arith.constant 0 : index
    %475 = vector.load %arg17[%c1_310, %c0_311, %c0_312] : memref<2x1x128xf32, #tpu.memory_space<vmem>>, vector<1x1x128xf32>
    %476 = vector.shape_cast %475 : vector<1x1x128xf32> to vector<1x128xf32>
    %477 = vector.broadcast %476 : vector<1x128xf32> to vector<8x128xf32>
    %478 = arith.addf %474, %477 : vector<8x128xf32>
    %cst_313 = arith.constant 1.702000e+00 : f32
    %479 = vector.broadcast %cst_313 : f32 to vector<8x128xf32>
    %480 = arith.mulf %479, %478 : vector<8x128xf32>
    %481 = arith.negf %480 : vector<8x128xf32>
    %482 = math.exp %481 : vector<8x128xf32>
    %cst_314 = arith.constant 1.000000e+00 : f32
    %483 = vector.broadcast %cst_314 : f32 to vector<8x128xf32>
    %484 = arith.addf %483, %482 : vector<8x128xf32>
    %485 = arith.divf %483, %484 : vector<8x128xf32>
    %486 = arith.mulf %478, %485 : vector<8x128xf32>
    %c1_315 = arith.constant 1 : index
    %c0_316 = arith.constant 0 : index
    %c0_317 = arith.constant 0 : index
    %487 = vector.load %arg18[%c1_315, %c0_316, %c0_317] : memref<2x128x32xf32, #tpu.memory_space<vmem>>, vector<1x128x32xf32>
    %488 = vector.shape_cast %487 : vector<1x128x32xf32> to vector<128x32xf32>
    %cst_318 = arith.constant dense<0.000000e+00> : vector<8x32xf32>
    %489 = tpu.matmul %486, %488, %cst_318 {dimension_numbers = #tpu.dot_dimension_numbers<[1], [0], [0], [1], [0, 0, 1, 1], [], []>} : vector<8x128xf32>, vector<128x32xf32>, vector<8x32xf32> -> vector<8x32xf32>
    %490 = arith.addf %445, %489 : vector<8x32xf32>
    %c1_319 = arith.constant 1 : index
    %c0_320 = arith.constant 0 : index
    %c0_321 = arith.constant 0 : index
    %491 = vector.load %arg19[%c1_319, %c0_320, %c0_321] : memref<2x1x32xf32, #tpu.memory_space<vmem>>, vector<1x1x32xf32>
    %492 = vector.shape_cast %491 : vector<1x1x32xf32> to vector<1x32xf32>
    %493 = vector.broadcast %492 : vector<1x32xf32> to vector<8x32xf32>
    %494 = arith.addf %490, %493 : vector<8x32xf32>
    %c0_322 = arith.constant 0 : index
    %c0_323 = arith.constant 0 : index
    %495 = vector.load %arg20[%c0_322, %c0_323] : memref<1x32xf32, #tpu.memory_space<vmem>>, vector<1x32xf32>
    %c0_324 = arith.constant 0 : index
    %c0_325 = arith.constant 0 : index
    %496 = vector.load %arg21[%c0_324, %c0_325] : memref<1x32xf32, #tpu.memory_space<vmem>>, vector<1x32xf32>
    %cst_326 = arith.constant dense<0.000000e+00> : vector<8xf32>
    %497 = vector.multi_reduction <add>, %494, %cst_326 [1] : vector<8x32xf32> to vector<8xf32>
    %498 = vector.shape_cast %497 : vector<8xf32> to vector<8x1xf32>
    %cst_327 = arith.constant 3.200000e+01 : f32
    %499 = vector.broadcast %cst_327 : f32 to vector<8x1xf32>
    %500 = arith.divf %498, %499 : vector<8x1xf32>
    %501 = vector.broadcast %500 : vector<8x1xf32> to vector<8x32xf32>
    %502 = arith.subf %494, %501 : vector<8x32xf32>
    %503 = arith.mulf %502, %502 : vector<8x32xf32>
    %cst_328 = arith.constant dense<0.000000e+00> : vector<8xf32>
    %504 = vector.multi_reduction <add>, %503, %cst_328 [1] : vector<8x32xf32> to vector<8xf32>
    %505 = vector.shape_cast %504 : vector<8xf32> to vector<8x1xf32>
    %cst_329 = arith.constant 3.200000e+01 : f32
    %506 = vector.broadcast %cst_329 : f32 to vector<8x1xf32>
    %507 = arith.divf %505, %506 : vector<8x1xf32>
    %508 = vector.broadcast %500 : vector<8x1xf32> to vector<8x32xf32>
    %509 = arith.subf %494, %508 : vector<8x32xf32>
    %cst_330 = arith.constant 9.99999974E-6 : f32
    %510 = vector.broadcast %cst_330 : f32 to vector<8x1xf32>
    %511 = arith.addf %507, %510 : vector<8x1xf32>
    %512 = math.rsqrt %511 : vector<8x1xf32>
    %513 = vector.broadcast %512 : vector<8x1xf32> to vector<8x32xf32>
    %514 = arith.mulf %509, %513 : vector<8x32xf32>
    %515 = vector.broadcast %495 : vector<1x32xf32> to vector<8x32xf32>
    %516 = arith.mulf %514, %515 : vector<8x32xf32>
    %517 = vector.broadcast %496 : vector<1x32xf32> to vector<8x32xf32>
    %518 = arith.addf %516, %517 : vector<8x32xf32>
    %519 = arith.index_cast %arg0 : i32 to index
    %520 = memref.load %arg23[%519] : memref<5xi32, #tpu.memory_space<smem>>
    %521 = tpu.iota {dimensions = array<i32: 1>} : vector<1x8xi32>
    %522 = vector.broadcast %520 : i32 to vector<1x8xi32>
    %523 = arith.cmpi eq, %521, %522 : vector<1x8xi32>
    %524 = arith.extui %523 : vector<1x8xi1> to vector<1x8xi32>
    %525 = arith.sitofp %524 : vector<1x8xi32> to vector<1x8xf32>
    %cst_331 = arith.constant dense<0.000000e+00> : vector<1x32xf32>
    %526 = tpu.matmul %525, %518, %cst_331 {dimension_numbers = #tpu.dot_dimension_numbers<[1], [0], [0], [1], [0, 0, 1, 1], [], []>} : vector<1x8xf32>, vector<8x32xf32>, vector<1x32xf32> -> vector<1x32xf32>
    %c0_332 = arith.constant 0 : index
    %c0_333 = arith.constant 0 : index
    %527 = vector.load %arg22[%c0_332, %c0_333] : memref<32x32xf32, #tpu.memory_space<vmem>>, vector<32x32xf32>
    %cst_334 = arith.constant dense<0.000000e+00> : vector<1x32xf32>
    %528 = tpu.matmul %526, %527, %cst_334 {dimension_numbers = #tpu.dot_dimension_numbers<[1], [0], [0], [1], [0, 0, 1, 1], [], []>} : vector<1x32xf32>, vector<32x32xf32>, vector<1x32xf32> -> vector<1x32xf32>
    %529 = arith.mulf %528, %528 : vector<1x32xf32>
    %cst_335 = arith.constant dense<0.000000e+00> : vector<1xf32>
    %530 = vector.multi_reduction <add>, %529, %cst_335 [1] : vector<1x32xf32> to vector<1xf32>
    %531 = vector.shape_cast %530 : vector<1xf32> to vector<1x1xf32>
    %cst_336 = arith.constant 9.99999996E-13 : f32
    %532 = vector.broadcast %cst_336 : f32 to vector<1x1xf32>
    %533 = arith.addf %531, %532 : vector<1x1xf32>
    %534 = math.rsqrt %533 : vector<1x1xf32>
    %535 = vector.broadcast %534 : vector<1x1xf32> to vector<1x32xf32>
    %536 = arith.mulf %528, %535 : vector<1x32xf32>
    %c0_337 = arith.constant 0 : index
    %c0_338 = arith.constant 0 : index
    %c0_339 = arith.constant 0 : index
    %537 = vector.load %arg24[%c0_337, %c0_338, %c0_339] : memref<1x1x32xf32, #tpu.memory_space<vmem>>, vector<1x1x32xf32>
    %538 = vector.shape_cast %537 : vector<1x1x32xf32> to vector<1x32xf32>
    %539 = vector.shape_cast %536 : vector<1x32xf32> to vector<1x1x32xf32>
    tpu.vector_store %arg24[%c0_337, %c0_338, %c0_339], %539 {strides = array<i32>} : memref<1x1x32xf32, #tpu.memory_space<vmem>>, vector<1x1x32xf32>,
    return
  }
  func.func @transform_0(%arg0: i32) -> (i32, i32, i32) {
    %c0_i32 = arith.constant 0 : i32
    %c0_i32_0 = arith.constant 0 : i32
    %c0_i32_1 = arith.constant 0 : i32
    return %arg0, %c0_i32, %c0_i32_0 : i32, i32, i32
  }
  func.func @transform_1(%arg0: i32) -> (i32, i32) {
    %c0_i32 = arith.constant 0 : i32
    %c0_i32_0 = arith.constant 0 : i32
    %c0_i32_1 = arith.constant 0 : i32
    return %c0_i32, %c0_i32_0 : i32, i32
  }
  func.func @transform_2(%arg0: i32) -> (i32, i32) {
    %c0_i32 = arith.constant 0 : i32
    %c0_i32_0 = arith.constant 0 : i32
    %c0_i32_1 = arith.constant 0 : i32
    return %c0_i32, %c0_i32_0 : i32, i32
  }
  func.func @transform_3(%arg0: i32) -> (i32, i32, i32) {
    %c0_i32 = arith.constant 0 : i32
    %c0_i32_0 = arith.constant 0 : i32
    %c0_i32_1 = arith.constant 0 : i32
    %c0_i32_2 = arith.constant 0 : i32
    return %c0_i32, %c0_i32_0, %c0_i32_1 : i32, i32, i32
  }
  func.func @transform_4(%arg0: i32) -> (i32, i32, i32) {
    %c0_i32 = arith.constant 0 : i32
    %c0_i32_0 = arith.constant 0 : i32
    %c0_i32_1 = arith.constant 0 : i32
    %c0_i32_2 = arith.constant 0 : i32
    return %c0_i32, %c0_i32_0, %c0_i32_1 : i32, i32, i32
  }
  func.func @transform_5(%arg0: i32) -> (i32, i32, i32) {
    %c0_i32 = arith.constant 0 : i32
    %c0_i32_0 = arith.constant 0 : i32
    %c0_i32_1 = arith.constant 0 : i32
    %c0_i32_2 = arith.constant 0 : i32
    return %c0_i32, %c0_i32_0, %c0_i32_1 : i32, i32, i32
  }
  func.func @transform_6(%arg0: i32) -> (i32, i32, i32) {
    %c0_i32 = arith.constant 0 : i32
    %c0_i32_0 = arith.constant 0 : i32
    %c0_i32_1 = arith.constant 0 : i32
    %c0_i32_2 = arith.constant 0 : i32
    return %c0_i32, %c0_i32_0, %c0_i32_1 : i32, i32, i32
  }
  func.func @transform_7(%arg0: i32) -> (i32, i32, i32) {
    %c0_i32 = arith.constant 0 : i32
    %c0_i32_0 = arith.constant 0 : i32
    %c0_i32_1 = arith.constant 0 : i32
    %c0_i32_2 = arith.constant 0 : i32
    return %c0_i32, %c0_i32_0, %c0_i32_1 : i32, i32, i32
  }
  func.func @transform_8(%arg0: i32) -> (i32, i32, i32) {
    %c0_i32 = arith.constant 0 : i32
    %c0_i32_0 = arith.constant 0 : i32
    %c0_i32_1 = arith.constant 0 : i32
    %c0_i32_2 = arith.constant 0 : i32
    return %c0_i32, %c0_i32_0, %c0_i32_1 : i32, i32, i32
  }
  func.func @transform_9(%arg0: i32) -> (i32, i32, i32) {
    %c0_i32 = arith.constant 0 : i32
    %c0_i32_0 = arith.constant 0 : i32
    %c0_i32_1 = arith.constant 0 : i32
    %c0_i32_2 = arith.constant 0 : i32
    return %c0_i32, %c0_i32_0, %c0_i32_1 : i32, i32, i32
  }
  func.func @transform_10(%arg0: i32) -> (i32, i32, i32) {
    %c0_i32 = arith.constant 0 : i32
    %c0_i32_0 = arith.constant 0 : i32
    %c0_i32_1 = arith.constant 0 : i32
    %c0_i32_2 = arith.constant 0 : i32
    return %c0_i32, %c0_i32_0, %c0_i32_1 : i32, i32, i32
  }
  func.func @transform_11(%arg0: i32) -> (i32, i32, i32) {
    %c0_i32 = arith.constant 0 : i32
    %c0_i32_0 = arith.constant 0 : i32
    %c0_i32_1 = arith.constant 0 : i32
    %c0_i32_2 = arith.constant 0 : i32
    return %c0_i32, %c0_i32_0, %c0_i32_1 : i32, i32, i32
  }
  func.func @transform_12(%arg0: i32) -> (i32, i32, i32) {
    %c0_i32 = arith.constant 0 : i32
    %c0_i32_0 = arith.constant 0 : i32
    %c0_i32_1 = arith.constant 0 : i32
    %c0_i32_2 = arith.constant 0 : i32
    return %c0_i32, %c0_i32_0, %c0_i32_1 : i32, i32, i32
  }
  func.func @transform_13(%arg0: i32) -> (i32, i32, i32) {
    %c0_i32 = arith.constant 0 : i32
    %c0_i32_0 = arith.constant 0 : i32
    %c0_i32_1 = arith.constant 0 : i32
    %c0_i32_2 = arith.constant 0 : i32
    return %c0_i32, %c0_i32_0, %c0_i32_1 : i32, i32, i32
  }
  func.func @transform_14(%arg0: i32) -> (i32, i32, i32) {
    %c0_i32 = arith.constant 0 : i32
    %c0_i32_0 = arith.constant 0 : i32
    %c0_i32_1 = arith.constant 0 : i32
    %c0_i32_2 = arith.constant 0 : i32
    return %c0_i32, %c0_i32_0, %c0_i32_1 : i32, i32, i32
  }
  func.func @transform_15(%arg0: i32) -> (i32, i32, i32) {
    %c0_i32 = arith.constant 0 : i32
    %c0_i32_0 = arith.constant 0 : i32
    %c0_i32_1 = arith.constant 0 : i32
    %c0_i32_2 = arith.constant 0 : i32
    return %c0_i32, %c0_i32_0, %c0_i32_1 : i32, i32, i32
  }
  func.func @transform_16(%arg0: i32) -> (i32, i32, i32) {
    %c0_i32 = arith.constant 0 : i32
    %c0_i32_0 = arith.constant 0 : i32
    %c0_i32_1 = arith.constant 0 : i32
    %c0_i32_2 = arith.constant 0 : i32
    return %c0_i32, %c0_i32_0, %c0_i32_1 : i32, i32, i32
  }
  func.func @transform_17(%arg0: i32) -> (i32, i32, i32) {
    %c0_i32 = arith.constant 0 : i32
    %c0_i32_0 = arith.constant 0 : i32
    %c0_i32_1 = arith.constant 0 : i32
    %c0_i32_2 = arith.constant 0 : i32
    return %c0_i32, %c0_i32_0, %c0_i32_1 : i32, i32, i32
  }
  func.func @transform_18(%arg0: i32) -> (i32, i32, i32) {
    %c0_i32 = arith.constant 0 : i32
    %c0_i32_0 = arith.constant 0 : i32
    %c0_i32_1 = arith.constant 0 : i32
    %c0_i32_2 = arith.constant 0 : i32
    return %c0_i32, %c0_i32_0, %c0_i32_1 : i32, i32, i32
  }
  func.func @transform_19(%arg0: i32) -> (i32, i32) {
    %c0_i32 = arith.constant 0 : i32
    %c0_i32_0 = arith.constant 0 : i32
    %c0_i32_1 = arith.constant 0 : i32
    return %c0_i32, %c0_i32_0 : i32, i32
  }
  func.func @transform_20(%arg0: i32) -> (i32, i32) {
    %c0_i32 = arith.constant 0 : i32
    %c0_i32_0 = arith.constant 0 : i32
    %c0_i32_1 = arith.constant 0 : i32
    return %c0_i32, %c0_i32_0 : i32, i32
  }
  func.func @transform_21(%arg0: i32) -> (i32, i32) {
    %c0_i32 = arith.constant 0 : i32
    %c0_i32_0 = arith.constant 0 : i32
    %c0_i32_1 = arith.constant 0 : i32
    return %c0_i32, %c0_i32_0 : i32, i32
  }
  func.func @transform_22(%arg0: i32) -> i32 {
    %c0_i32 = arith.constant 0 : i32
    %c0_i32_0 = arith.constant 0 : i32
    return %c0_i32 : i32
  }
  func.func @transform_23(%arg0: i32) -> (i32, i32, i32) {
    %c0_i32 = arith.constant 0 : i32
    %c0_i32_0 = arith.constant 0 : i32
    %c0_i32_1 = arith.constant 0 : i32
    return %arg0, %c0_i32, %c0_i32_0 : i32, i32, i32
  }
}

module attributes {stable_mosaic.version = 11 : i64} {
  func.func @_vision_kernel(%arg0: i32, %arg1: memref<1x17x48xf32, #tpu.memory_space<vmem>>, %arg2: memref<48x32xf32, #tpu.memory_space<vmem>>, %arg3: memref<17x32xf32, #tpu.memory_space<vmem>>, %arg4: memref<1x32xf32, #tpu.memory_space<vmem>>, %arg5: memref<1x32xf32, #tpu.memory_space<vmem>>, %arg6: memref<8x32x8xf32, #tpu.memory_space<vmem>>, %arg7: memref<8x32x8xf32, #tpu.memory_space<vmem>>, %arg8: memref<8x32x8xf32, #tpu.memory_space<vmem>>, %arg9: memref<8x1x8xf32, #tpu.memory_space<vmem>>, %arg10: memref<8x1x8xf32, #tpu.memory_space<vmem>>, %arg11: memref<8x1x8xf32, #tpu.memory_space<vmem>>, %arg12: memref<8x8x32xf32, #tpu.memory_space<vmem>>, %arg13: memref<2x1x32xf32, #tpu.memory_space<vmem>>, %arg14: memref<2x1x32xf32, #tpu.memory_space<vmem>>, %arg15: memref<2x1x32xf32, #tpu.memory_space<vmem>>, %arg16: memref<2x1x32xf32, #tpu.memory_space<vmem>>, %arg17: memref<2x1x32xf32, #tpu.memory_space<vmem>>, %arg18: memref<2x32x128xf32, #tpu.memory_space<vmem>>, %arg19: memref<2x1x128xf32, #tpu.memory_space<vmem>>, %arg20: memref<2x128x32xf32, #tpu.memory_space<vmem>>, %arg21: memref<2x1x32xf32, #tpu.memory_space<vmem>>, %arg22: memref<1x32xf32, #tpu.memory_space<vmem>>, %arg23: memref<1x32xf32, #tpu.memory_space<vmem>>, %arg24: memref<32x32xf32, #tpu.memory_space<vmem>>, %arg25: memref<1x1x32xf32, #tpu.memory_space<vmem>>, %arg26: memref<1x1x32xf32, #tpu.memory_space<vmem>>, %arg27: memref<5x32xf32, #tpu.memory_space<vmem>>, %arg28: memref<1x1xf32, #tpu.memory_space<smem>>, %arg29: memref<1x1x5xf32, #tpu.memory_space<vmem>>) attributes {dimension_semantics = [#tpu.dimension_semantics<parallel>], iteration_bounds = array<i64: 2>, scalar_prefetch = 0 : i64, scratch_operands = 0 : i64, tpu.core_type = #tpu.core_type<tc>, window_params = [{transform_indices = @transform_0, window_bounds = array<i64: 1, 17, 48>}, {pipeline_mode = #tpu.pipeline_mode<synchronous>, transform_indices = @transform_1, window_bounds = array<i64: 48, 32>}, {pipeline_mode = #tpu.pipeline_mode<synchronous>, transform_indices = @transform_2, window_bounds = array<i64: 17, 32>}, {pipeline_mode = #tpu.pipeline_mode<synchronous>, transform_indices = @transform_3, window_bounds = array<i64: 1, 32>}, {pipeline_mode = #tpu.pipeline_mode<synchronous>, transform_indices = @transform_4, window_bounds = array<i64: 1, 32>}, {pipeline_mode = #tpu.pipeline_mode<synchronous>, transform_indices = @transform_5, window_bounds = array<i64: 8, 32, 8>}, {pipeline_mode = #tpu.pipeline_mode<synchronous>, transform_indices = @transform_6, window_bounds = array<i64: 8, 32, 8>}, {pipeline_mode = #tpu.pipeline_mode<synchronous>, transform_indices = @transform_7, window_bounds = array<i64: 8, 32, 8>}, {pipeline_mode = #tpu.pipeline_mode<synchronous>, transform_indices = @transform_8, window_bounds = array<i64: 8, 1, 8>}, {pipeline_mode = #tpu.pipeline_mode<synchronous>, transform_indices = @transform_9, window_bounds = array<i64: 8, 1, 8>}, {pipeline_mode = #tpu.pipeline_mode<synchronous>, transform_indices = @transform_10, window_bounds = array<i64: 8, 1, 8>}, {pipeline_mode = #tpu.pipeline_mode<synchronous>, transform_indices = @transform_11, window_bounds = array<i64: 8, 8, 32>}, {pipeline_mode = #tpu.pipeline_mode<synchronous>, transform_indices = @transform_12, window_bounds = array<i64: 2, 1, 32>}, {pipeline_mode = #tpu.pipeline_mode<synchronous>, transform_indices = @transform_13, window_bounds = array<i64: 2, 1, 32>}, {pipeline_mode = #tpu.pipeline_mode<synchronous>, transform_indices = @transform_14, window_bounds = array<i64: 2, 1, 32>}, {pipeline_mode = #tpu.pipeline_mode<synchronous>, transform_indices = @transform_15, window_bounds = array<i64: 2, 1, 32>}, {pipeline_mode = #tpu.pipeline_mode<synchronous>, transform_indices = @transform_16, window_bounds = array<i64: 2, 1, 32>}, {pipeline_mode = #tpu.pipeline_mode<synchronous>, transform_indices = @transform_17, window_bounds = array<i64: 2, 32, 128>}, {pipeline_mode = #tpu.pipeline_mode<synchronous>, transform_indices = @transform_18, window_bounds = array<i64: 2, 1, 128>}, {pipeline_mode = #tpu.pipeline_mode<synchronous>, transform_indices = @transform_19, window_bounds = array<i64: 2, 128, 32>}, {pipeline_mode = #tpu.pipeline_mode<synchronous>, transform_indices = @transform_20, window_bounds = array<i64: 2, 1, 32>}, {pipeline_mode = #tpu.pipeline_mode<synchronous>, transform_indices = @transform_21, window_bounds = array<i64: 1, 32>}, {pipeline_mode = #tpu.pipeline_mode<synchronous>, transform_indices = @transform_22, window_bounds = array<i64: 1, 32>}, {pipeline_mode = #tpu.pipeline_mode<synchronous>, transform_indices = @transform_23, window_bounds = array<i64: 32, 32>}, {pipeline_mode = #tpu.pipeline_mode<synchronous>, transform_indices = @transform_24, window_bounds = array<i64: 1, 1, 32>}, {pipeline_mode = #tpu.pipeline_mode<synchronous>, transform_indices = @transform_25, window_bounds = array<i64: 1, 1, 32>}, {pipeline_mode = #tpu.pipeline_mode<synchronous>, transform_indices = @transform_26, window_bounds = array<i64: 5, 32>}, {transform_indices = @transform_27, window_bounds = array<i64: 1, 1>}, {transform_indices = @transform_28, window_bounds = array<i64: 1, 1, 5>}]} {
    %c0 = arith.constant 0 : index
    %c0_0 = arith.constant 0 : index
    %c0_1 = arith.constant 0 : index
    %0 = vector.load %arg1[%c0, %c0_0, %c0_1] : memref<1x17x48xf32, #tpu.memory_space<vmem>>, vector<1x17x48xf32>
    %1 = vector.shape_cast %0 : vector<1x17x48xf32> to vector<17x48xf32>
    %c0_2 = arith.constant 0 : index
    %c0_3 = arith.constant 0 : index
    %2 = vector.load %arg2[%c0_2, %c0_3] : memref<48x32xf32, #tpu.memory_space<vmem>>, vector<48x32xf32>
    %cst = arith.constant dense<0.000000e+00> : vector<17x32xf32>
    %3 = tpu.matmul %1, %2, %cst {dimension_numbers = #tpu.dot_dimension_numbers<[1], [0], [0], [1], [0, 0, 1, 1], [], []>} : vector<17x48xf32>, vector<48x32xf32>, vector<17x32xf32> -> vector<17x32xf32>
    %c0_4 = arith.constant 0 : index
    %c0_5 = arith.constant 0 : index
    %4 = vector.load %arg3[%c0_4, %c0_5] : memref<17x32xf32, #tpu.memory_space<vmem>>, vector<17x32xf32>
    %5 = arith.addf %3, %4 : vector<17x32xf32>
    %c0_6 = arith.constant 0 : index
    %c0_7 = arith.constant 0 : index
    %6 = vector.load %arg4[%c0_6, %c0_7] : memref<1x32xf32, #tpu.memory_space<vmem>>, vector<1x32xf32>
    %c0_8 = arith.constant 0 : index
    %c0_9 = arith.constant 0 : index
    %7 = vector.load %arg5[%c0_8, %c0_9] : memref<1x32xf32, #tpu.memory_space<vmem>>, vector<1x32xf32>
    %cst_10 = arith.constant dense<0.000000e+00> : vector<17xf32>
    %8 = vector.multi_reduction <add>, %5, %cst_10 [1] : vector<17x32xf32> to vector<17xf32>
    %9 = vector.shape_cast %8 : vector<17xf32> to vector<17x1xf32>
    %cst_11 = arith.constant 3.200000e+01 : f32
    %10 = vector.broadcast %cst_11 : f32 to vector<17x1xf32>
    %11 = arith.divf %9, %10 : vector<17x1xf32>
    %12 = vector.broadcast %11 : vector<17x1xf32> to vector<17x32xf32>
    %13 = arith.subf %5, %12 : vector<17x32xf32>
    %14 = arith.mulf %13, %13 : vector<17x32xf32>
    %cst_12 = arith.constant dense<0.000000e+00> : vector<17xf32>
    %15 = vector.multi_reduction <add>, %14, %cst_12 [1] : vector<17x32xf32> to vector<17xf32>
    %16 = vector.shape_cast %15 : vector<17xf32> to vector<17x1xf32>
    %cst_13 = arith.constant 3.200000e+01 : f32
    %17 = vector.broadcast %cst_13 : f32 to vector<17x1xf32>
    %18 = arith.divf %16, %17 : vector<17x1xf32>
    %19 = vector.broadcast %11 : vector<17x1xf32> to vector<17x32xf32>
    %20 = arith.subf %5, %19 : vector<17x32xf32>
    %cst_14 = arith.constant 9.99999974E-6 : f32
    %21 = vector.broadcast %cst_14 : f32 to vector<17x1xf32>
    %22 = arith.addf %18, %21 : vector<17x1xf32>
    %23 = math.rsqrt %22 : vector<17x1xf32>
    %24 = vector.broadcast %23 : vector<17x1xf32> to vector<17x32xf32>
    %25 = arith.mulf %20, %24 : vector<17x32xf32>
    %26 = vector.broadcast %6 : vector<1x32xf32> to vector<17x32xf32>
    %27 = arith.mulf %25, %26 : vector<17x32xf32>
    %28 = vector.broadcast %7 : vector<1x32xf32> to vector<17x32xf32>
    %29 = arith.addf %27, %28 : vector<17x32xf32>
    %c0_15 = arith.constant 0 : index
    %c0_16 = arith.constant 0 : index
    %c0_17 = arith.constant 0 : index
    %30 = vector.load %arg25[%c0_15, %c0_16, %c0_17] : memref<1x1x32xf32, #tpu.memory_space<vmem>>, vector<1x1x32xf32>
    %31 = vector.shape_cast %30 : vector<1x1x32xf32> to vector<1x32xf32>
    %c0_18 = arith.constant 0 : index
    %c0_19 = arith.constant 0 : index
    %c0_20 = arith.constant 0 : index
    %32 = vector.load %arg26[%c0_18, %c0_19, %c0_20] : memref<1x1x32xf32, #tpu.memory_space<vmem>>, vector<1x1x32xf32>
    %33 = vector.shape_cast %32 : vector<1x1x32xf32> to vector<1x32xf32>
    %c0_21 = arith.constant 0 : index
    %c0_22 = arith.constant 0 : index
    %c0_23 = arith.constant 0 : index
    %34 = vector.load %arg14[%c0_21, %c0_22, %c0_23] : memref<2x1x32xf32, #tpu.memory_space<vmem>>, vector<1x1x32xf32>
    %35 = vector.shape_cast %34 : vector<1x1x32xf32> to vector<1x32xf32>
    %c0_24 = arith.constant 0 : index
    %c0_25 = arith.constant 0 : index
    %c0_26 = arith.constant 0 : index
    %36 = vector.load %arg15[%c0_24, %c0_25, %c0_26] : memref<2x1x32xf32, #tpu.memory_space<vmem>>, vector<1x1x32xf32>
    %37 = vector.shape_cast %36 : vector<1x1x32xf32> to vector<1x32xf32>
    %cst_27 = arith.constant dense<0.000000e+00> : vector<17xf32>
    %38 = vector.multi_reduction <add>, %29, %cst_27 [1] : vector<17x32xf32> to vector<17xf32>
    %39 = vector.shape_cast %38 : vector<17xf32> to vector<17x1xf32>
    %cst_28 = arith.constant 3.200000e+01 : f32
    %40 = vector.broadcast %cst_28 : f32 to vector<17x1xf32>
    %41 = arith.divf %39, %40 : vector<17x1xf32>
    %42 = vector.broadcast %41 : vector<17x1xf32> to vector<17x32xf32>
    %43 = arith.subf %29, %42 : vector<17x32xf32>
    %44 = arith.mulf %43, %43 : vector<17x32xf32>
    %cst_29 = arith.constant dense<0.000000e+00> : vector<17xf32>
    %45 = vector.multi_reduction <add>, %44, %cst_29 [1] : vector<17x32xf32> to vector<17xf32>
    %46 = vector.shape_cast %45 : vector<17xf32> to vector<17x1xf32>
    %cst_30 = arith.constant 3.200000e+01 : f32
    %47 = vector.broadcast %cst_30 : f32 to vector<17x1xf32>
    %48 = arith.divf %46, %47 : vector<17x1xf32>
    %49 = vector.broadcast %41 : vector<17x1xf32> to vector<17x32xf32>
    %50 = arith.subf %29, %49 : vector<17x32xf32>
    %cst_31 = arith.constant 9.99999974E-6 : f32
    %51 = vector.broadcast %cst_31 : f32 to vector<17x1xf32>
    %52 = arith.addf %48, %51 : vector<17x1xf32>
    %53 = math.rsqrt %52 : vector<17x1xf32>
    %54 = vector.broadcast %53 : vector<17x1xf32> to vector<17x32xf32>
    %55 = arith.mulf %50, %54 : vector<17x32xf32>
    %56 = vector.broadcast %35 : vector<1x32xf32> to vector<17x32xf32>
    %57 = arith.mulf %55, %56 : vector<17x32xf32>
    %58 = vector.broadcast %37 : vector<1x32xf32> to vector<17x32xf32>
    %59 = arith.addf %57, %58 : vector<17x32xf32>
    %cst_32 = arith.constant 0.000000e+00 : f32
    %60 = vector.broadcast %cst_32 : f32 to vector<17x32xf32>
    %c0_33 = arith.constant 0 : index
    %c0_34 = arith.constant 0 : index
    %c0_35 = arith.constant 0 : index
    %61 = vector.load %arg6[%c0_33, %c0_34, %c0_35] : memref<8x32x8xf32, #tpu.memory_space<vmem>>, vector<1x32x8xf32>
    %62 = vector.shape_cast %61 : vector<1x32x8xf32> to vector<32x8xf32>
    %cst_36 = arith.constant dense<0.000000e+00> : vector<17x8xf32>
    %63 = tpu.matmul %59, %62, %cst_36 {dimension_numbers = #tpu.dot_dimension_numbers<[1], [0], [0], [1], [0, 0, 1, 1], [], []>} : vector<17x32xf32>, vector<32x8xf32>, vector<17x8xf32> -> vector<17x8xf32>
    %c0_37 = arith.constant 0 : index
    %c0_38 = arith.constant 0 : index
    %c0_39 = arith.constant 0 : index
    %64 = vector.load %arg9[%c0_37, %c0_38, %c0_39] : memref<8x1x8xf32, #tpu.memory_space<vmem>>, vector<1x1x8xf32>
    %65 = vector.shape_cast %64 : vector<1x1x8xf32> to vector<1x8xf32>
    %66 = vector.broadcast %65 : vector<1x8xf32> to vector<17x8xf32>
    %67 = arith.addf %63, %66 : vector<17x8xf32>
    %c0_40 = arith.constant 0 : index
    %c0_41 = arith.constant 0 : index
    %c0_42 = arith.constant 0 : index
    %68 = vector.load %arg7[%c0_40, %c0_41, %c0_42] : memref<8x32x8xf32, #tpu.memory_space<vmem>>, vector<1x32x8xf32>
    %69 = vector.shape_cast %68 : vector<1x32x8xf32> to vector<32x8xf32>
    %cst_43 = arith.constant dense<0.000000e+00> : vector<17x8xf32>
    %70 = tpu.matmul %59, %69, %cst_43 {dimension_numbers = #tpu.dot_dimension_numbers<[1], [0], [0], [1], [0, 0, 1, 1], [], []>} : vector<17x32xf32>, vector<32x8xf32>, vector<17x8xf32> -> vector<17x8xf32>
    %c0_44 = arith.constant 0 : index
    %c0_45 = arith.constant 0 : index
    %c0_46 = arith.constant 0 : index
    %71 = vector.load %arg10[%c0_44, %c0_45, %c0_46] : memref<8x1x8xf32, #tpu.memory_space<vmem>>, vector<1x1x8xf32>
    %72 = vector.shape_cast %71 : vector<1x1x8xf32> to vector<1x8xf32>
    %73 = vector.broadcast %72 : vector<1x8xf32> to vector<17x8xf32>
    %74 = arith.addf %70, %73 : vector<17x8xf32>
    %c0_47 = arith.constant 0 : index
    %c0_48 = arith.constant 0 : index
    %c0_49 = arith.constant 0 : index
    %75 = vector.load %arg8[%c0_47, %c0_48, %c0_49] : memref<8x32x8xf32, #tpu.memory_space<vmem>>, vector<1x32x8xf32>
    %76 = vector.shape_cast %75 : vector<1x32x8xf32> to vector<32x8xf32>
    %cst_50 = arith.constant dense<0.000000e+00> : vector<17x8xf32>
    %77 = tpu.matmul %59, %76, %cst_50 {dimension_numbers = #tpu.dot_dimension_numbers<[1], [0], [0], [1], [0, 0, 1, 1], [], []>} : vector<17x32xf32>, vector<32x8xf32>, vector<17x8xf32> -> vector<17x8xf32>
    %c0_51 = arith.constant 0 : index
    %c0_52 = arith.constant 0 : index
    %c0_53 = arith.constant 0 : index
    %78 = vector.load %arg11[%c0_51, %c0_52, %c0_53] : memref<8x1x8xf32, #tpu.memory_space<vmem>>, vector<1x1x8xf32>
    %79 = vector.shape_cast %78 : vector<1x1x8xf32> to vector<1x8xf32>
    %80 = vector.broadcast %79 : vector<1x8xf32> to vector<17x8xf32>
    %81 = arith.addf %77, %80 : vector<17x8xf32>
    %82 = tpu.transpose %74, [1, 0] : vector<17x8xf32> -> vector<8x17xf32>
    %cst_54 = arith.constant dense<0.000000e+00> : vector<17x17xf32>
    %83 = tpu.matmul %67, %82, %cst_54 {dimension_numbers = #tpu.dot_dimension_numbers<[1], [0], [0], [1], [0, 0, 1, 1], [], []>} : vector<17x8xf32>, vector<8x17xf32>, vector<17x17xf32> -> vector<17x17xf32>
    %cst_55 = arith.constant 0.353553385 : f32
    %84 = vector.broadcast %cst_55 : f32 to vector<17x17xf32>
    %85 = arith.mulf %83, %84 : vector<17x17xf32>
    %c0_56 = arith.constant 0 : index
    %c0_57 = arith.constant 0 : index
    %c0_58 = arith.constant 0 : index
    %86 = vector.load %arg7[%c0_56, %c0_57, %c0_58] : memref<8x32x8xf32, #tpu.memory_space<vmem>>, vector<1x32x8xf32>
    %87 = vector.shape_cast %86 : vector<1x32x8xf32> to vector<32x8xf32>
    %cst_59 = arith.constant dense<0.000000e+00> : vector<1x8xf32>
    %88 = tpu.matmul %31, %87, %cst_59 {dimension_numbers = #tpu.dot_dimension_numbers<[1], [0], [0], [1], [0, 0, 1, 1], [], []>} : vector<1x32xf32>, vector<32x8xf32>, vector<1x8xf32> -> vector<1x8xf32>
    %c0_60 = arith.constant 0 : index
    %c0_61 = arith.constant 0 : index
    %c0_62 = arith.constant 0 : index
    %89 = vector.load %arg10[%c0_60, %c0_61, %c0_62] : memref<8x1x8xf32, #tpu.memory_space<vmem>>, vector<1x1x8xf32>
    %90 = vector.shape_cast %89 : vector<1x1x8xf32> to vector<1x8xf32>
    %91 = arith.addf %88, %90 : vector<1x8xf32>
    %c0_63 = arith.constant 0 : index
    %c0_64 = arith.constant 0 : index
    %c0_65 = arith.constant 0 : index
    %92 = vector.load %arg8[%c0_63, %c0_64, %c0_65] : memref<8x32x8xf32, #tpu.memory_space<vmem>>, vector<1x32x8xf32>
    %93 = vector.shape_cast %92 : vector<1x32x8xf32> to vector<32x8xf32>
    %cst_66 = arith.constant dense<0.000000e+00> : vector<1x8xf32>
    %94 = tpu.matmul %33, %93, %cst_66 {dimension_numbers = #tpu.dot_dimension_numbers<[1], [0], [0], [1], [0, 0, 1, 1], [], []>} : vector<1x32xf32>, vector<32x8xf32>, vector<1x8xf32> -> vector<1x8xf32>
    %c0_67 = arith.constant 0 : index
    %c0_68 = arith.constant 0 : index
    %c0_69 = arith.constant 0 : index
    %95 = vector.load %arg11[%c0_67, %c0_68, %c0_69] : memref<8x1x8xf32, #tpu.memory_space<vmem>>, vector<1x1x8xf32>
    %96 = vector.shape_cast %95 : vector<1x1x8xf32> to vector<1x8xf32>
    %97 = arith.addf %94, %96 : vector<1x8xf32>
    %98 = vector.broadcast %91 : vector<1x8xf32> to vector<17x8xf32>
    %99 = arith.mulf %67, %98 : vector<17x8xf32>
    %cst_70 = arith.constant dense<0.000000e+00> : vector<17xf32>
    %100 = vector.multi_reduction <add>, %99, %cst_70 [1] : vector<17x8xf32> to vector<17xf32>
    %101 = vector.shape_cast %100 : vector<17xf32> to vector<17x1xf32>
    %cst_71 = arith.constant 0.353553385 : f32
    %102 = vector.broadcast %cst_71 : f32 to vector<17x1xf32>
    %103 = arith.mulf %101, %102 : vector<17x1xf32>
    %cst_72 = arith.constant dense<0xFF800000> : vector<17xf32>
    %104 = vector.multi_reduction <maximumf>, %85, %cst_72 [1] : vector<17x17xf32> to vector<17xf32>
    %105 = vector.shape_cast %104 : vector<17xf32> to vector<17x1xf32>
    %106 = arith.maximumf %105, %103 : vector<17x1xf32>
    %107 = vector.broadcast %106 : vector<17x1xf32> to vector<17x17xf32>
    %108 = arith.subf %85, %107 : vector<17x17xf32>
    %109 = math.exp %108 : vector<17x17xf32>
    %110 = arith.subf %103, %106 : vector<17x1xf32>
    %111 = math.exp %110 : vector<17x1xf32>
    %cst_73 = arith.constant dense<0.000000e+00> : vector<17xf32>
    %112 = vector.multi_reduction <add>, %109, %cst_73 [1] : vector<17x17xf32> to vector<17xf32>
    %113 = vector.shape_cast %112 : vector<17xf32> to vector<17x1xf32>
    %114 = arith.addf %113, %111 : vector<17x1xf32>
    %115 = tpu.reciprocal %114 {approx = true} : vector<17x1xf32> -> vector<17x1xf32>
    %cst_74 = arith.constant dense<0.000000e+00> : vector<17x8xf32>
    %116 = tpu.matmul %109, %81, %cst_74 {dimension_numbers = #tpu.dot_dimension_numbers<[1], [0], [0], [1], [0, 0, 1, 1], [], []>} : vector<17x17xf32>, vector<17x8xf32>, vector<17x8xf32> -> vector<17x8xf32>
    %117 = vector.broadcast %111 : vector<17x1xf32> to vector<17x8xf32>
    %118 = vector.broadcast %97 : vector<1x8xf32> to vector<17x8xf32>
    %119 = arith.mulf %117, %118 : vector<17x8xf32>
    %120 = arith.addf %116, %119 : vector<17x8xf32>
    %121 = vector.broadcast %115 : vector<17x1xf32> to vector<17x8xf32>
    %122 = arith.mulf %120, %121 : vector<17x8xf32>
    %c0_75 = arith.constant 0 : index
    %c0_76 = arith.constant 0 : index
    %c0_77 = arith.constant 0 : index
    %123 = vector.load %arg12[%c0_75, %c0_76, %c0_77] : memref<8x8x32xf32, #tpu.memory_space<vmem>>, vector<1x8x32xf32>
    %124 = vector.shape_cast %123 : vector<1x8x32xf32> to vector<8x32xf32>
    %cst_78 = arith.constant dense<0.000000e+00> : vector<17x32xf32>
    %125 = tpu.matmul %122, %124, %cst_78 {dimension_numbers = #tpu.dot_dimension_numbers<[1], [0], [0], [1], [0, 0, 1, 1], [], []>} : vector<17x8xf32>, vector<8x32xf32>, vector<17x32xf32> -> vector<17x32xf32>
    %126 = arith.addf %60, %125 : vector<17x32xf32>
    %c1 = arith.constant 1 : index
    %c0_79 = arith.constant 0 : index
    %c0_80 = arith.constant 0 : index
    %127 = vector.load %arg6[%c1, %c0_79, %c0_80] : memref<8x32x8xf32, #tpu.memory_space<vmem>>, vector<1x32x8xf32>
    %128 = vector.shape_cast %127 : vector<1x32x8xf32> to vector<32x8xf32>
    %cst_81 = arith.constant dense<0.000000e+00> : vector<17x8xf32>
    %129 = tpu.matmul %59, %128, %cst_81 {dimension_numbers = #tpu.dot_dimension_numbers<[1], [0], [0], [1], [0, 0, 1, 1], [], []>} : vector<17x32xf32>, vector<32x8xf32>, vector<17x8xf32> -> vector<17x8xf32>
    %c1_82 = arith.constant 1 : index
    %c0_83 = arith.constant 0 : index
    %c0_84 = arith.constant 0 : index
    %130 = vector.load %arg9[%c1_82, %c0_83, %c0_84] : memref<8x1x8xf32, #tpu.memory_space<vmem>>, vector<1x1x8xf32>
    %131 = vector.shape_cast %130 : vector<1x1x8xf32> to vector<1x8xf32>
    %132 = vector.broadcast %131 : vector<1x8xf32> to vector<17x8xf32>
    %133 = arith.addf %129, %132 : vector<17x8xf32>
    %c1_85 = arith.constant 1 : index
    %c0_86 = arith.constant 0 : index
    %c0_87 = arith.constant 0 : index
    %134 = vector.load %arg7[%c1_85, %c0_86, %c0_87] : memref<8x32x8xf32, #tpu.memory_space<vmem>>, vector<1x32x8xf32>
    %135 = vector.shape_cast %134 : vector<1x32x8xf32> to vector<32x8xf32>
    %cst_88 = arith.constant dense<0.000000e+00> : vector<17x8xf32>
    %136 = tpu.matmul %59, %135, %cst_88 {dimension_numbers = #tpu.dot_dimension_numbers<[1], [0], [0], [1], [0, 0, 1, 1], [], []>} : vector<17x32xf32>, vector<32x8xf32>, vector<17x8xf32> -> vector<17x8xf32>
    %c1_89 = arith.constant 1 : index
    %c0_90 = arith.constant 0 : index
    %c0_91 = arith.constant 0 : index
    %137 = vector.load %arg10[%c1_89, %c0_90, %c0_91] : memref<8x1x8xf32, #tpu.memory_space<vmem>>, vector<1x1x8xf32>
    %138 = vector.shape_cast %137 : vector<1x1x8xf32> to vector<1x8xf32>
    %139 = vector.broadcast %138 : vector<1x8xf32> to vector<17x8xf32>
    %140 = arith.addf %136, %139 : vector<17x8xf32>
    %c1_92 = arith.constant 1 : index
    %c0_93 = arith.constant 0 : index
    %c0_94 = arith.constant 0 : index
    %141 = vector.load %arg8[%c1_92, %c0_93, %c0_94] : memref<8x32x8xf32, #tpu.memory_space<vmem>>, vector<1x32x8xf32>
    %142 = vector.shape_cast %141 : vector<1x32x8xf32> to vector<32x8xf32>
    %cst_95 = arith.constant dense<0.000000e+00> : vector<17x8xf32>
    %143 = tpu.matmul %59, %142, %cst_95 {dimension_numbers = #tpu.dot_dimension_numbers<[1], [0], [0], [1], [0, 0, 1, 1], [], []>} : vector<17x32xf32>, vector<32x8xf32>, vector<17x8xf32> -> vector<17x8xf32>
    %c1_96 = arith.constant 1 : index
    %c0_97 = arith.constant 0 : index
    %c0_98 = arith.constant 0 : index
    %144 = vector.load %arg11[%c1_96, %c0_97, %c0_98] : memref<8x1x8xf32, #tpu.memory_space<vmem>>, vector<1x1x8xf32>
    %145 = vector.shape_cast %144 : vector<1x1x8xf32> to vector<1x8xf32>
    %146 = vector.broadcast %145 : vector<1x8xf32> to vector<17x8xf32>
    %147 = arith.addf %143, %146 : vector<17x8xf32>
    %148 = tpu.transpose %140, [1, 0] : vector<17x8xf32> -> vector<8x17xf32>
    %cst_99 = arith.constant dense<0.000000e+00> : vector<17x17xf32>
    %149 = tpu.matmul %133, %148, %cst_99 {dimension_numbers = #tpu.dot_dimension_numbers<[1], [0], [0], [1], [0, 0, 1, 1], [], []>} : vector<17x8xf32>, vector<8x17xf32>, vector<17x17xf32> -> vector<17x17xf32>
    %cst_100 = arith.constant 0.353553385 : f32
    %150 = vector.broadcast %cst_100 : f32 to vector<17x17xf32>
    %151 = arith.mulf %149, %150 : vector<17x17xf32>
    %c1_101 = arith.constant 1 : index
    %c0_102 = arith.constant 0 : index
    %c0_103 = arith.constant 0 : index
    %152 = vector.load %arg7[%c1_101, %c0_102, %c0_103] : memref<8x32x8xf32, #tpu.memory_space<vmem>>, vector<1x32x8xf32>
    %153 = vector.shape_cast %152 : vector<1x32x8xf32> to vector<32x8xf32>
    %cst_104 = arith.constant dense<0.000000e+00> : vector<1x8xf32>
    %154 = tpu.matmul %31, %153, %cst_104 {dimension_numbers = #tpu.dot_dimension_numbers<[1], [0], [0], [1], [0, 0, 1, 1], [], []>} : vector<1x32xf32>, vector<32x8xf32>, vector<1x8xf32> -> vector<1x8xf32>
    %c1_105 = arith.constant 1 : index
    %c0_106 = arith.constant 0 : index
    %c0_107 = arith.constant 0 : index
    %155 = vector.load %arg10[%c1_105, %c0_106, %c0_107] : memref<8x1x8xf32, #tpu.memory_space<vmem>>, vector<1x1x8xf32>
    %156 = vector.shape_cast %155 : vector<1x1x8xf32> to vector<1x8xf32>
    %157 = arith.addf %154, %156 : vector<1x8xf32>
    %c1_108 = arith.constant 1 : index
    %c0_109 = arith.constant 0 : index
    %c0_110 = arith.constant 0 : index
    %158 = vector.load %arg8[%c1_108, %c0_109, %c0_110] : memref<8x32x8xf32, #tpu.memory_space<vmem>>, vector<1x32x8xf32>
    %159 = vector.shape_cast %158 : vector<1x32x8xf32> to vector<32x8xf32>
    %cst_111 = arith.constant dense<0.000000e+00> : vector<1x8xf32>
    %160 = tpu.matmul %33, %159, %cst_111 {dimension_numbers = #tpu.dot_dimension_numbers<[1], [0], [0], [1], [0, 0, 1, 1], [], []>} : vector<1x32xf32>, vector<32x8xf32>, vector<1x8xf32> -> vector<1x8xf32>
    %c1_112 = arith.constant 1 : index
    %c0_113 = arith.constant 0 : index
    %c0_114 = arith.constant 0 : index
    %161 = vector.load %arg11[%c1_112, %c0_113, %c0_114] : memref<8x1x8xf32, #tpu.memory_space<vmem>>, vector<1x1x8xf32>
    %162 = vector.shape_cast %161 : vector<1x1x8xf32> to vector<1x8xf32>
    %163 = arith.addf %160, %162 : vector<1x8xf32>
    %164 = vector.broadcast %157 : vector<1x8xf32> to vector<17x8xf32>
    %165 = arith.mulf %133, %164 : vector<17x8xf32>
    %cst_115 = arith.constant dense<0.000000e+00> : vector<17xf32>
    %166 = vector.multi_reduction <add>, %165, %cst_115 [1] : vector<17x8xf32> to vector<17xf32>
    %167 = vector.shape_cast %166 : vector<17xf32> to vector<17x1xf32>
    %cst_116 = arith.constant 0.353553385 : f32
    %168 = vector.broadcast %cst_116 : f32 to vector<17x1xf32>
    %169 = arith.mulf %167, %168 : vector<17x1xf32>
    %cst_117 = arith.constant dense<0xFF800000> : vector<17xf32>
    %170 = vector.multi_reduction <maximumf>, %151, %cst_117 [1] : vector<17x17xf32> to vector<17xf32>
    %171 = vector.shape_cast %170 : vector<17xf32> to vector<17x1xf32>
    %172 = arith.maximumf %171, %169 : vector<17x1xf32>
    %173 = vector.broadcast %172 : vector<17x1xf32> to vector<17x17xf32>
    %174 = arith.subf %151, %173 : vector<17x17xf32>
    %175 = math.exp %174 : vector<17x17xf32>
    %176 = arith.subf %169, %172 : vector<17x1xf32>
    %177 = math.exp %176 : vector<17x1xf32>
    %cst_118 = arith.constant dense<0.000000e+00> : vector<17xf32>
    %178 = vector.multi_reduction <add>, %175, %cst_118 [1] : vector<17x17xf32> to vector<17xf32>
    %179 = vector.shape_cast %178 : vector<17xf32> to vector<17x1xf32>
    %180 = arith.addf %179, %177 : vector<17x1xf32>
    %181 = tpu.reciprocal %180 {approx = true} : vector<17x1xf32> -> vector<17x1xf32>
    %cst_119 = arith.constant dense<0.000000e+00> : vector<17x8xf32>
    %182 = tpu.matmul %175, %147, %cst_119 {dimension_numbers = #tpu.dot_dimension_numbers<[1], [0], [0], [1], [0, 0, 1, 1], [], []>} : vector<17x17xf32>, vector<17x8xf32>, vector<17x8xf32> -> vector<17x8xf32>
    %183 = vector.broadcast %177 : vector<17x1xf32> to vector<17x8xf32>
    %184 = vector.broadcast %163 : vector<1x8xf32> to vector<17x8xf32>
    %185 = arith.mulf %183, %184 : vector<17x8xf32>
    %186 = arith.addf %182, %185 : vector<17x8xf32>
    %187 = vector.broadcast %181 : vector<17x1xf32> to vector<17x8xf32>
    %188 = arith.mulf %186, %187 : vector<17x8xf32>
    %c1_120 = arith.constant 1 : index
    %c0_121 = arith.constant 0 : index
    %c0_122 = arith.constant 0 : index
    %189 = vector.load %arg12[%c1_120, %c0_121, %c0_122] : memref<8x8x32xf32, #tpu.memory_space<vmem>>, vector<1x8x32xf32>
    %190 = vector.shape_cast %189 : vector<1x8x32xf32> to vector<8x32xf32>
    %cst_123 = arith.constant dense<0.000000e+00> : vector<17x32xf32>
    %191 = tpu.matmul %188, %190, %cst_123 {dimension_numbers = #tpu.dot_dimension_numbers<[1], [0], [0], [1], [0, 0, 1, 1], [], []>} : vector<17x8xf32>, vector<8x32xf32>, vector<17x32xf32> -> vector<17x32xf32>
    %192 = arith.addf %126, %191 : vector<17x32xf32>
    %c2 = arith.constant 2 : index
    %c0_124 = arith.constant 0 : index
    %c0_125 = arith.constant 0 : index
    %193 = vector.load %arg6[%c2, %c0_124, %c0_125] : memref<8x32x8xf32, #tpu.memory_space<vmem>>, vector<1x32x8xf32>
    %194 = vector.shape_cast %193 : vector<1x32x8xf32> to vector<32x8xf32>
    %cst_126 = arith.constant dense<0.000000e+00> : vector<17x8xf32>
    %195 = tpu.matmul %59, %194, %cst_126 {dimension_numbers = #tpu.dot_dimension_numbers<[1], [0], [0], [1], [0, 0, 1, 1], [], []>} : vector<17x32xf32>, vector<32x8xf32>, vector<17x8xf32> -> vector<17x8xf32>
    %c2_127 = arith.constant 2 : index
    %c0_128 = arith.constant 0 : index
    %c0_129 = arith.constant 0 : index
    %196 = vector.load %arg9[%c2_127, %c0_128, %c0_129] : memref<8x1x8xf32, #tpu.memory_space<vmem>>, vector<1x1x8xf32>
    %197 = vector.shape_cast %196 : vector<1x1x8xf32> to vector<1x8xf32>
    %198 = vector.broadcast %197 : vector<1x8xf32> to vector<17x8xf32>
    %199 = arith.addf %195, %198 : vector<17x8xf32>
    %c2_130 = arith.constant 2 : index
    %c0_131 = arith.constant 0 : index
    %c0_132 = arith.constant 0 : index
    %200 = vector.load %arg7[%c2_130, %c0_131, %c0_132] : memref<8x32x8xf32, #tpu.memory_space<vmem>>, vector<1x32x8xf32>
    %201 = vector.shape_cast %200 : vector<1x32x8xf32> to vector<32x8xf32>
    %cst_133 = arith.constant dense<0.000000e+00> : vector<17x8xf32>
    %202 = tpu.matmul %59, %201, %cst_133 {dimension_numbers = #tpu.dot_dimension_numbers<[1], [0], [0], [1], [0, 0, 1, 1], [], []>} : vector<17x32xf32>, vector<32x8xf32>, vector<17x8xf32> -> vector<17x8xf32>
    %c2_134 = arith.constant 2 : index
    %c0_135 = arith.constant 0 : index
    %c0_136 = arith.constant 0 : index
    %203 = vector.load %arg10[%c2_134, %c0_135, %c0_136] : memref<8x1x8xf32, #tpu.memory_space<vmem>>, vector<1x1x8xf32>
    %204 = vector.shape_cast %203 : vector<1x1x8xf32> to vector<1x8xf32>
    %205 = vector.broadcast %204 : vector<1x8xf32> to vector<17x8xf32>
    %206 = arith.addf %202, %205 : vector<17x8xf32>
    %c2_137 = arith.constant 2 : index
    %c0_138 = arith.constant 0 : index
    %c0_139 = arith.constant 0 : index
    %207 = vector.load %arg8[%c2_137, %c0_138, %c0_139] : memref<8x32x8xf32, #tpu.memory_space<vmem>>, vector<1x32x8xf32>
    %208 = vector.shape_cast %207 : vector<1x32x8xf32> to vector<32x8xf32>
    %cst_140 = arith.constant dense<0.000000e+00> : vector<17x8xf32>
    %209 = tpu.matmul %59, %208, %cst_140 {dimension_numbers = #tpu.dot_dimension_numbers<[1], [0], [0], [1], [0, 0, 1, 1], [], []>} : vector<17x32xf32>, vector<32x8xf32>, vector<17x8xf32> -> vector<17x8xf32>
    %c2_141 = arith.constant 2 : index
    %c0_142 = arith.constant 0 : index
    %c0_143 = arith.constant 0 : index
    %210 = vector.load %arg11[%c2_141, %c0_142, %c0_143] : memref<8x1x8xf32, #tpu.memory_space<vmem>>, vector<1x1x8xf32>
    %211 = vector.shape_cast %210 : vector<1x1x8xf32> to vector<1x8xf32>
    %212 = vector.broadcast %211 : vector<1x8xf32> to vector<17x8xf32>
    %213 = arith.addf %209, %212 : vector<17x8xf32>
    %214 = tpu.transpose %206, [1, 0] : vector<17x8xf32> -> vector<8x17xf32>
    %cst_144 = arith.constant dense<0.000000e+00> : vector<17x17xf32>
    %215 = tpu.matmul %199, %214, %cst_144 {dimension_numbers = #tpu.dot_dimension_numbers<[1], [0], [0], [1], [0, 0, 1, 1], [], []>} : vector<17x8xf32>, vector<8x17xf32>, vector<17x17xf32> -> vector<17x17xf32>
    %cst_145 = arith.constant 0.353553385 : f32
    %216 = vector.broadcast %cst_145 : f32 to vector<17x17xf32>
    %217 = arith.mulf %215, %216 : vector<17x17xf32>
    %c2_146 = arith.constant 2 : index
    %c0_147 = arith.constant 0 : index
    %c0_148 = arith.constant 0 : index
    %218 = vector.load %arg7[%c2_146, %c0_147, %c0_148] : memref<8x32x8xf32, #tpu.memory_space<vmem>>, vector<1x32x8xf32>
    %219 = vector.shape_cast %218 : vector<1x32x8xf32> to vector<32x8xf32>
    %cst_149 = arith.constant dense<0.000000e+00> : vector<1x8xf32>
    %220 = tpu.matmul %31, %219, %cst_149 {dimension_numbers = #tpu.dot_dimension_numbers<[1], [0], [0], [1], [0, 0, 1, 1], [], []>} : vector<1x32xf32>, vector<32x8xf32>, vector<1x8xf32> -> vector<1x8xf32>
    %c2_150 = arith.constant 2 : index
    %c0_151 = arith.constant 0 : index
    %c0_152 = arith.constant 0 : index
    %221 = vector.load %arg10[%c2_150, %c0_151, %c0_152] : memref<8x1x8xf32, #tpu.memory_space<vmem>>, vector<1x1x8xf32>
    %222 = vector.shape_cast %221 : vector<1x1x8xf32> to vector<1x8xf32>
    %223 = arith.addf %220, %222 : vector<1x8xf32>
    %c2_153 = arith.constant 2 : index
    %c0_154 = arith.constant 0 : index
    %c0_155 = arith.constant 0 : index
    %224 = vector.load %arg8[%c2_153, %c0_154, %c0_155] : memref<8x32x8xf32, #tpu.memory_space<vmem>>, vector<1x32x8xf32>
    %225 = vector.shape_cast %224 : vector<1x32x8xf32> to vector<32x8xf32>
    %cst_156 = arith.constant dense<0.000000e+00> : vector<1x8xf32>
    %226 = tpu.matmul %33, %225, %cst_156 {dimension_numbers = #tpu.dot_dimension_numbers<[1], [0], [0], [1], [0, 0, 1, 1], [], []>} : vector<1x32xf32>, vector<32x8xf32>, vector<1x8xf32> -> vector<1x8xf32>
    %c2_157 = arith.constant 2 : index
    %c0_158 = arith.constant 0 : index
    %c0_159 = arith.constant 0 : index
    %227 = vector.load %arg11[%c2_157, %c0_158, %c0_159] : memref<8x1x8xf32, #tpu.memory_space<vmem>>, vector<1x1x8xf32>
    %228 = vector.shape_cast %227 : vector<1x1x8xf32> to vector<1x8xf32>
    %229 = arith.addf %226, %228 : vector<1x8xf32>
    %230 = vector.broadcast %223 : vector<1x8xf32> to vector<17x8xf32>
    %231 = arith.mulf %199, %230 : vector<17x8xf32>
    %cst_160 = arith.constant dense<0.000000e+00> : vector<17xf32>
    %232 = vector.multi_reduction <add>, %231, %cst_160 [1] : vector<17x8xf32> to vector<17xf32>
    %233 = vector.shape_cast %232 : vector<17xf32> to vector<17x1xf32>
    %cst_161 = arith.constant 0.353553385 : f32
    %234 = vector.broadcast %cst_161 : f32 to vector<17x1xf32>
    %235 = arith.mulf %233, %234 : vector<17x1xf32>
    %cst_162 = arith.constant dense<0xFF800000> : vector<17xf32>
    %236 = vector.multi_reduction <maximumf>, %217, %cst_162 [1] : vector<17x17xf32> to vector<17xf32>
    %237 = vector.shape_cast %236 : vector<17xf32> to vector<17x1xf32>
    %238 = arith.maximumf %237, %235 : vector<17x1xf32>
    %239 = vector.broadcast %238 : vector<17x1xf32> to vector<17x17xf32>
    %240 = arith.subf %217, %239 : vector<17x17xf32>
    %241 = math.exp %240 : vector<17x17xf32>
    %242 = arith.subf %235, %238 : vector<17x1xf32>
    %243 = math.exp %242 : vector<17x1xf32>
    %cst_163 = arith.constant dense<0.000000e+00> : vector<17xf32>
    %244 = vector.multi_reduction <add>, %241, %cst_163 [1] : vector<17x17xf32> to vector<17xf32>
    %245 = vector.shape_cast %244 : vector<17xf32> to vector<17x1xf32>
    %246 = arith.addf %245, %243 : vector<17x1xf32>
    %247 = tpu.reciprocal %246 {approx = true} : vector<17x1xf32> -> vector<17x1xf32>
    %cst_164 = arith.constant dense<0.000000e+00> : vector<17x8xf32>
    %248 = tpu.matmul %241, %213, %cst_164 {dimension_numbers = #tpu.dot_dimension_numbers<[1], [0], [0], [1], [0, 0, 1, 1], [], []>} : vector<17x17xf32>, vector<17x8xf32>, vector<17x8xf32> -> vector<17x8xf32>
    %249 = vector.broadcast %243 : vector<17x1xf32> to vector<17x8xf32>
    %250 = vector.broadcast %229 : vector<1x8xf32> to vector<17x8xf32>
    %251 = arith.mulf %249, %250 : vector<17x8xf32>
    %252 = arith.addf %248, %251 : vector<17x8xf32>
    %253 = vector.broadcast %247 : vector<17x1xf32> to vector<17x8xf32>
    %254 = arith.mulf %252, %253 : vector<17x8xf32>
    %c2_165 = arith.constant 2 : index
    %c0_166 = arith.constant 0 : index
    %c0_167 = arith.constant 0 : index
    %255 = vector.load %arg12[%c2_165, %c0_166, %c0_167] : memref<8x8x32xf32, #tpu.memory_space<vmem>>, vector<1x8x32xf32>
    %256 = vector.shape_cast %255 : vector<1x8x32xf32> to vector<8x32xf32>
    %cst_168 = arith.constant dense<0.000000e+00> : vector<17x32xf32>
    %257 = tpu.matmul %254, %256, %cst_168 {dimension_numbers = #tpu.dot_dimension_numbers<[1], [0], [0], [1], [0, 0, 1, 1], [], []>} : vector<17x8xf32>, vector<8x32xf32>, vector<17x32xf32> -> vector<17x32xf32>
    %258 = arith.addf %192, %257 : vector<17x32xf32>
    %c3 = arith.constant 3 : index
    %c0_169 = arith.constant 0 : index
    %c0_170 = arith.constant 0 : index
    %259 = vector.load %arg6[%c3, %c0_169, %c0_170] : memref<8x32x8xf32, #tpu.memory_space<vmem>>, vector<1x32x8xf32>
    %260 = vector.shape_cast %259 : vector<1x32x8xf32> to vector<32x8xf32>
    %cst_171 = arith.constant dense<0.000000e+00> : vector<17x8xf32>
    %261 = tpu.matmul %59, %260, %cst_171 {dimension_numbers = #tpu.dot_dimension_numbers<[1], [0], [0], [1], [0, 0, 1, 1], [], []>} : vector<17x32xf32>, vector<32x8xf32>, vector<17x8xf32> -> vector<17x8xf32>
    %c3_172 = arith.constant 3 : index
    %c0_173 = arith.constant 0 : index
    %c0_174 = arith.constant 0 : index
    %262 = vector.load %arg9[%c3_172, %c0_173, %c0_174] : memref<8x1x8xf32, #tpu.memory_space<vmem>>, vector<1x1x8xf32>
    %263 = vector.shape_cast %262 : vector<1x1x8xf32> to vector<1x8xf32>
    %264 = vector.broadcast %263 : vector<1x8xf32> to vector<17x8xf32>
    %265 = arith.addf %261, %264 : vector<17x8xf32>
    %c3_175 = arith.constant 3 : index
    %c0_176 = arith.constant 0 : index
    %c0_177 = arith.constant 0 : index
    %266 = vector.load %arg7[%c3_175, %c0_176, %c0_177] : memref<8x32x8xf32, #tpu.memory_space<vmem>>, vector<1x32x8xf32>
    %267 = vector.shape_cast %266 : vector<1x32x8xf32> to vector<32x8xf32>
    %cst_178 = arith.constant dense<0.000000e+00> : vector<17x8xf32>
    %268 = tpu.matmul %59, %267, %cst_178 {dimension_numbers = #tpu.dot_dimension_numbers<[1], [0], [0], [1], [0, 0, 1, 1], [], []>} : vector<17x32xf32>, vector<32x8xf32>, vector<17x8xf32> -> vector<17x8xf32>
    %c3_179 = arith.constant 3 : index
    %c0_180 = arith.constant 0 : index
    %c0_181 = arith.constant 0 : index
    %269 = vector.load %arg10[%c3_179, %c0_180, %c0_181] : memref<8x1x8xf32, #tpu.memory_space<vmem>>, vector<1x1x8xf32>
    %270 = vector.shape_cast %269 : vector<1x1x8xf32> to vector<1x8xf32>
    %271 = vector.broadcast %270 : vector<1x8xf32> to vector<17x8xf32>
    %272 = arith.addf %268, %271 : vector<17x8xf32>
    %c3_182 = arith.constant 3 : index
    %c0_183 = arith.constant 0 : index
    %c0_184 = arith.constant 0 : index
    %273 = vector.load %arg8[%c3_182, %c0_183, %c0_184] : memref<8x32x8xf32, #tpu.memory_space<vmem>>, vector<1x32x8xf32>
    %274 = vector.shape_cast %273 : vector<1x32x8xf32> to vector<32x8xf32>
    %cst_185 = arith.constant dense<0.000000e+00> : vector<17x8xf32>
    %275 = tpu.matmul %59, %274, %cst_185 {dimension_numbers = #tpu.dot_dimension_numbers<[1], [0], [0], [1], [0, 0, 1, 1], [], []>} : vector<17x32xf32>, vector<32x8xf32>, vector<17x8xf32> -> vector<17x8xf32>
    %c3_186 = arith.constant 3 : index
    %c0_187 = arith.constant 0 : index
    %c0_188 = arith.constant 0 : index
    %276 = vector.load %arg11[%c3_186, %c0_187, %c0_188] : memref<8x1x8xf32, #tpu.memory_space<vmem>>, vector<1x1x8xf32>
    %277 = vector.shape_cast %276 : vector<1x1x8xf32> to vector<1x8xf32>
    %278 = vector.broadcast %277 : vector<1x8xf32> to vector<17x8xf32>
    %279 = arith.addf %275, %278 : vector<17x8xf32>
    %280 = tpu.transpose %272, [1, 0] : vector<17x8xf32> -> vector<8x17xf32>
    %cst_189 = arith.constant dense<0.000000e+00> : vector<17x17xf32>
    %281 = tpu.matmul %265, %280, %cst_189 {dimension_numbers = #tpu.dot_dimension_numbers<[1], [0], [0], [1], [0, 0, 1, 1], [], []>} : vector<17x8xf32>, vector<8x17xf32>, vector<17x17xf32> -> vector<17x17xf32>
    %cst_190 = arith.constant 0.353553385 : f32
    %282 = vector.broadcast %cst_190 : f32 to vector<17x17xf32>
    %283 = arith.mulf %281, %282 : vector<17x17xf32>
    %c3_191 = arith.constant 3 : index
    %c0_192 = arith.constant 0 : index
    %c0_193 = arith.constant 0 : index
    %284 = vector.load %arg7[%c3_191, %c0_192, %c0_193] : memref<8x32x8xf32, #tpu.memory_space<vmem>>, vector<1x32x8xf32>
    %285 = vector.shape_cast %284 : vector<1x32x8xf32> to vector<32x8xf32>
    %cst_194 = arith.constant dense<0.000000e+00> : vector<1x8xf32>
    %286 = tpu.matmul %31, %285, %cst_194 {dimension_numbers = #tpu.dot_dimension_numbers<[1], [0], [0], [1], [0, 0, 1, 1], [], []>} : vector<1x32xf32>, vector<32x8xf32>, vector<1x8xf32> -> vector<1x8xf32>
    %c3_195 = arith.constant 3 : index
    %c0_196 = arith.constant 0 : index
    %c0_197 = arith.constant 0 : index
    %287 = vector.load %arg10[%c3_195, %c0_196, %c0_197] : memref<8x1x8xf32, #tpu.memory_space<vmem>>, vector<1x1x8xf32>
    %288 = vector.shape_cast %287 : vector<1x1x8xf32> to vector<1x8xf32>
    %289 = arith.addf %286, %288 : vector<1x8xf32>
    %c3_198 = arith.constant 3 : index
    %c0_199 = arith.constant 0 : index
    %c0_200 = arith.constant 0 : index
    %290 = vector.load %arg8[%c3_198, %c0_199, %c0_200] : memref<8x32x8xf32, #tpu.memory_space<vmem>>, vector<1x32x8xf32>
    %291 = vector.shape_cast %290 : vector<1x32x8xf32> to vector<32x8xf32>
    %cst_201 = arith.constant dense<0.000000e+00> : vector<1x8xf32>
    %292 = tpu.matmul %33, %291, %cst_201 {dimension_numbers = #tpu.dot_dimension_numbers<[1], [0], [0], [1], [0, 0, 1, 1], [], []>} : vector<1x32xf32>, vector<32x8xf32>, vector<1x8xf32> -> vector<1x8xf32>
    %c3_202 = arith.constant 3 : index
    %c0_203 = arith.constant 0 : index
    %c0_204 = arith.constant 0 : index
    %293 = vector.load %arg11[%c3_202, %c0_203, %c0_204] : memref<8x1x8xf32, #tpu.memory_space<vmem>>, vector<1x1x8xf32>
    %294 = vector.shape_cast %293 : vector<1x1x8xf32> to vector<1x8xf32>
    %295 = arith.addf %292, %294 : vector<1x8xf32>
    %296 = vector.broadcast %289 : vector<1x8xf32> to vector<17x8xf32>
    %297 = arith.mulf %265, %296 : vector<17x8xf32>
    %cst_205 = arith.constant dense<0.000000e+00> : vector<17xf32>
    %298 = vector.multi_reduction <add>, %297, %cst_205 [1] : vector<17x8xf32> to vector<17xf32>
    %299 = vector.shape_cast %298 : vector<17xf32> to vector<17x1xf32>
    %cst_206 = arith.constant 0.353553385 : f32
    %300 = vector.broadcast %cst_206 : f32 to vector<17x1xf32>
    %301 = arith.mulf %299, %300 : vector<17x1xf32>
    %cst_207 = arith.constant dense<0xFF800000> : vector<17xf32>
    %302 = vector.multi_reduction <maximumf>, %283, %cst_207 [1] : vector<17x17xf32> to vector<17xf32>
    %303 = vector.shape_cast %302 : vector<17xf32> to vector<17x1xf32>
    %304 = arith.maximumf %303, %301 : vector<17x1xf32>
    %305 = vector.broadcast %304 : vector<17x1xf32> to vector<17x17xf32>
    %306 = arith.subf %283, %305 : vector<17x17xf32>
    %307 = math.exp %306 : vector<17x17xf32>
    %308 = arith.subf %301, %304 : vector<17x1xf32>
    %309 = math.exp %308 : vector<17x1xf32>
    %cst_208 = arith.constant dense<0.000000e+00> : vector<17xf32>
    %310 = vector.multi_reduction <add>, %307, %cst_208 [1] : vector<17x17xf32> to vector<17xf32>
    %311 = vector.shape_cast %310 : vector<17xf32> to vector<17x1xf32>
    %312 = arith.addf %311, %309 : vector<17x1xf32>
    %313 = tpu.reciprocal %312 {approx = true} : vector<17x1xf32> -> vector<17x1xf32>
    %cst_209 = arith.constant dense<0.000000e+00> : vector<17x8xf32>
    %314 = tpu.matmul %307, %279, %cst_209 {dimension_numbers = #tpu.dot_dimension_numbers<[1], [0], [0], [1], [0, 0, 1, 1], [], []>} : vector<17x17xf32>, vector<17x8xf32>, vector<17x8xf32> -> vector<17x8xf32>
    %315 = vector.broadcast %309 : vector<17x1xf32> to vector<17x8xf32>
    %316 = vector.broadcast %295 : vector<1x8xf32> to vector<17x8xf32>
    %317 = arith.mulf %315, %316 : vector<17x8xf32>
    %318 = arith.addf %314, %317 : vector<17x8xf32>
    %319 = vector.broadcast %313 : vector<17x1xf32> to vector<17x8xf32>
    %320 = arith.mulf %318, %319 : vector<17x8xf32>
    %c3_210 = arith.constant 3 : index
    %c0_211 = arith.constant 0 : index
    %c0_212 = arith.constant 0 : index
    %321 = vector.load %arg12[%c3_210, %c0_211, %c0_212] : memref<8x8x32xf32, #tpu.memory_space<vmem>>, vector<1x8x32xf32>
    %322 = vector.shape_cast %321 : vector<1x8x32xf32> to vector<8x32xf32>
    %cst_213 = arith.constant dense<0.000000e+00> : vector<17x32xf32>
    %323 = tpu.matmul %320, %322, %cst_213 {dimension_numbers = #tpu.dot_dimension_numbers<[1], [0], [0], [1], [0, 0, 1, 1], [], []>} : vector<17x8xf32>, vector<8x32xf32>, vector<17x32xf32> -> vector<17x32xf32>
    %324 = arith.addf %258, %323 : vector<17x32xf32>
    %325 = arith.addf %29, %324 : vector<17x32xf32>
    %c0_214 = arith.constant 0 : index
    %c0_215 = arith.constant 0 : index
    %c0_216 = arith.constant 0 : index
    %326 = vector.load %arg13[%c0_214, %c0_215, %c0_216] : memref<2x1x32xf32, #tpu.memory_space<vmem>>, vector<1x1x32xf32>
    %327 = vector.shape_cast %326 : vector<1x1x32xf32> to vector<1x32xf32>
    %328 = vector.broadcast %327 : vector<1x32xf32> to vector<17x32xf32>
    %329 = arith.addf %325, %328 : vector<17x32xf32>
    %c0_217 = arith.constant 0 : index
    %c0_218 = arith.constant 0 : index
    %c0_219 = arith.constant 0 : index
    %330 = vector.load %arg16[%c0_217, %c0_218, %c0_219] : memref<2x1x32xf32, #tpu.memory_space<vmem>>, vector<1x1x32xf32>
    %331 = vector.shape_cast %330 : vector<1x1x32xf32> to vector<1x32xf32>
    %c0_220 = arith.constant 0 : index
    %c0_221 = arith.constant 0 : index
    %c0_222 = arith.constant 0 : index
    %332 = vector.load %arg17[%c0_220, %c0_221, %c0_222] : memref<2x1x32xf32, #tpu.memory_space<vmem>>, vector<1x1x32xf32>
    %333 = vector.shape_cast %332 : vector<1x1x32xf32> to vector<1x32xf32>
    %cst_223 = arith.constant dense<0.000000e+00> : vector<17xf32>
    %334 = vector.multi_reduction <add>, %329, %cst_223 [1] : vector<17x32xf32> to vector<17xf32>
    %335 = vector.shape_cast %334 : vector<17xf32> to vector<17x1xf32>
    %cst_224 = arith.constant 3.200000e+01 : f32
    %336 = vector.broadcast %cst_224 : f32 to vector<17x1xf32>
    %337 = arith.divf %335, %336 : vector<17x1xf32>
    %338 = vector.broadcast %337 : vector<17x1xf32> to vector<17x32xf32>
    %339 = arith.subf %329, %338 : vector<17x32xf32>
    %340 = arith.mulf %339, %339 : vector<17x32xf32>
    %cst_225 = arith.constant dense<0.000000e+00> : vector<17xf32>
    %341 = vector.multi_reduction <add>, %340, %cst_225 [1] : vector<17x32xf32> to vector<17xf32>
    %342 = vector.shape_cast %341 : vector<17xf32> to vector<17x1xf32>
    %cst_226 = arith.constant 3.200000e+01 : f32
    %343 = vector.broadcast %cst_226 : f32 to vector<17x1xf32>
    %344 = arith.divf %342, %343 : vector<17x1xf32>
    %345 = vector.broadcast %337 : vector<17x1xf32> to vector<17x32xf32>
    %346 = arith.subf %329, %345 : vector<17x32xf32>
    %cst_227 = arith.constant 9.99999974E-6 : f32
    %347 = vector.broadcast %cst_227 : f32 to vector<17x1xf32>
    %348 = arith.addf %344, %347 : vector<17x1xf32>
    %349 = math.rsqrt %348 : vector<17x1xf32>
    %350 = vector.broadcast %349 : vector<17x1xf32> to vector<17x32xf32>
    %351 = arith.mulf %346, %350 : vector<17x32xf32>
    %352 = vector.broadcast %331 : vector<1x32xf32> to vector<17x32xf32>
    %353 = arith.mulf %351, %352 : vector<17x32xf32>
    %354 = vector.broadcast %333 : vector<1x32xf32> to vector<17x32xf32>
    %355 = arith.addf %353, %354 : vector<17x32xf32>
    %c0_228 = arith.constant 0 : index
    %c0_229 = arith.constant 0 : index
    %c0_230 = arith.constant 0 : index
    %356 = vector.load %arg18[%c0_228, %c0_229, %c0_230] : memref<2x32x128xf32, #tpu.memory_space<vmem>>, vector<1x32x128xf32>
    %357 = vector.shape_cast %356 : vector<1x32x128xf32> to vector<32x128xf32>
    %cst_231 = arith.constant dense<0.000000e+00> : vector<17x128xf32>
    %358 = tpu.matmul %355, %357, %cst_231 {dimension_numbers = #tpu.dot_dimension_numbers<[1], [0], [0], [1], [0, 0, 1, 1], [], []>} : vector<17x32xf32>, vector<32x128xf32>, vector<17x128xf32> -> vector<17x128xf32>
    %c0_232 = arith.constant 0 : index
    %c0_233 = arith.constant 0 : index
    %c0_234 = arith.constant 0 : index
    %359 = vector.load %arg19[%c0_232, %c0_233, %c0_234] : memref<2x1x128xf32, #tpu.memory_space<vmem>>, vector<1x1x128xf32>
    %360 = vector.shape_cast %359 : vector<1x1x128xf32> to vector<1x128xf32>
    %361 = vector.broadcast %360 : vector<1x128xf32> to vector<17x128xf32>
    %362 = arith.addf %358, %361 : vector<17x128xf32>
    %cst_235 = arith.constant 1.702000e+00 : f32
    %363 = vector.broadcast %cst_235 : f32 to vector<17x128xf32>
    %364 = arith.mulf %363, %362 : vector<17x128xf32>
    %365 = arith.negf %364 : vector<17x128xf32>
    %366 = math.exp %365 : vector<17x128xf32>
    %cst_236 = arith.constant 1.000000e+00 : f32
    %367 = vector.broadcast %cst_236 : f32 to vector<17x128xf32>
    %368 = arith.addf %367, %366 : vector<17x128xf32>
    %369 = arith.divf %367, %368 : vector<17x128xf32>
    %370 = arith.mulf %362, %369 : vector<17x128xf32>
    %c0_237 = arith.constant 0 : index
    %c0_238 = arith.constant 0 : index
    %c0_239 = arith.constant 0 : index
    %371 = vector.load %arg20[%c0_237, %c0_238, %c0_239] : memref<2x128x32xf32, #tpu.memory_space<vmem>>, vector<1x128x32xf32>
    %372 = vector.shape_cast %371 : vector<1x128x32xf32> to vector<128x32xf32>
    %cst_240 = arith.constant dense<0.000000e+00> : vector<17x32xf32>
    %373 = tpu.matmul %370, %372, %cst_240 {dimension_numbers = #tpu.dot_dimension_numbers<[1], [0], [0], [1], [0, 0, 1, 1], [], []>} : vector<17x128xf32>, vector<128x32xf32>, vector<17x32xf32> -> vector<17x32xf32>
    %374 = arith.addf %329, %373 : vector<17x32xf32>
    %c0_241 = arith.constant 0 : index
    %c0_242 = arith.constant 0 : index
    %c0_243 = arith.constant 0 : index
    %375 = vector.load %arg21[%c0_241, %c0_242, %c0_243] : memref<2x1x32xf32, #tpu.memory_space<vmem>>, vector<1x1x32xf32>
    %376 = vector.shape_cast %375 : vector<1x1x32xf32> to vector<1x32xf32>
    %377 = vector.broadcast %376 : vector<1x32xf32> to vector<17x32xf32>
    %378 = arith.addf %374, %377 : vector<17x32xf32>
    %c1_244 = arith.constant 1 : index
    %c0_245 = arith.constant 0 : index
    %c0_246 = arith.constant 0 : index
    %379 = vector.load %arg14[%c1_244, %c0_245, %c0_246] : memref<2x1x32xf32, #tpu.memory_space<vmem>>, vector<1x1x32xf32>
    %380 = vector.shape_cast %379 : vector<1x1x32xf32> to vector<1x32xf32>
    %c1_247 = arith.constant 1 : index
    %c0_248 = arith.constant 0 : index
    %c0_249 = arith.constant 0 : index
    %381 = vector.load %arg15[%c1_247, %c0_248, %c0_249] : memref<2x1x32xf32, #tpu.memory_space<vmem>>, vector<1x1x32xf32>
    %382 = vector.shape_cast %381 : vector<1x1x32xf32> to vector<1x32xf32>
    %cst_250 = arith.constant dense<0.000000e+00> : vector<17xf32>
    %383 = vector.multi_reduction <add>, %378, %cst_250 [1] : vector<17x32xf32> to vector<17xf32>
    %384 = vector.shape_cast %383 : vector<17xf32> to vector<17x1xf32>
    %cst_251 = arith.constant 3.200000e+01 : f32
    %385 = vector.broadcast %cst_251 : f32 to vector<17x1xf32>
    %386 = arith.divf %384, %385 : vector<17x1xf32>
    %387 = vector.broadcast %386 : vector<17x1xf32> to vector<17x32xf32>
    %388 = arith.subf %378, %387 : vector<17x32xf32>
    %389 = arith.mulf %388, %388 : vector<17x32xf32>
    %cst_252 = arith.constant dense<0.000000e+00> : vector<17xf32>
    %390 = vector.multi_reduction <add>, %389, %cst_252 [1] : vector<17x32xf32> to vector<17xf32>
    %391 = vector.shape_cast %390 : vector<17xf32> to vector<17x1xf32>
    %cst_253 = arith.constant 3.200000e+01 : f32
    %392 = vector.broadcast %cst_253 : f32 to vector<17x1xf32>
    %393 = arith.divf %391, %392 : vector<17x1xf32>
    %394 = vector.broadcast %386 : vector<17x1xf32> to vector<17x32xf32>
    %395 = arith.subf %378, %394 : vector<17x32xf32>
    %cst_254 = arith.constant 9.99999974E-6 : f32
    %396 = vector.broadcast %cst_254 : f32 to vector<17x1xf32>
    %397 = arith.addf %393, %396 : vector<17x1xf32>
    %398 = math.rsqrt %397 : vector<17x1xf32>
    %399 = vector.broadcast %398 : vector<17x1xf32> to vector<17x32xf32>
    %400 = arith.mulf %395, %399 : vector<17x32xf32>
    %401 = vector.broadcast %380 : vector<1x32xf32> to vector<17x32xf32>
    %402 = arith.mulf %400, %401 : vector<17x32xf32>
    %403 = vector.broadcast %382 : vector<1x32xf32> to vector<17x32xf32>
    %404 = arith.addf %402, %403 : vector<17x32xf32>
    %cst_255 = arith.constant 0.000000e+00 : f32
    %405 = vector.broadcast %cst_255 : f32 to vector<17x32xf32>
    %c4 = arith.constant 4 : index
    %c0_256 = arith.constant 0 : index
    %c0_257 = arith.constant 0 : index
    %406 = vector.load %arg6[%c4, %c0_256, %c0_257] : memref<8x32x8xf32, #tpu.memory_space<vmem>>, vector<1x32x8xf32>
    %407 = vector.shape_cast %406 : vector<1x32x8xf32> to vector<32x8xf32>
    %cst_258 = arith.constant dense<0.000000e+00> : vector<17x8xf32>
    %408 = tpu.matmul %404, %407, %cst_258 {dimension_numbers = #tpu.dot_dimension_numbers<[1], [0], [0], [1], [0, 0, 1, 1], [], []>} : vector<17x32xf32>, vector<32x8xf32>, vector<17x8xf32> -> vector<17x8xf32>
    %c4_259 = arith.constant 4 : index
    %c0_260 = arith.constant 0 : index
    %c0_261 = arith.constant 0 : index
    %409 = vector.load %arg9[%c4_259, %c0_260, %c0_261] : memref<8x1x8xf32, #tpu.memory_space<vmem>>, vector<1x1x8xf32>
    %410 = vector.shape_cast %409 : vector<1x1x8xf32> to vector<1x8xf32>
    %411 = vector.broadcast %410 : vector<1x8xf32> to vector<17x8xf32>
    %412 = arith.addf %408, %411 : vector<17x8xf32>
    %c4_262 = arith.constant 4 : index
    %c0_263 = arith.constant 0 : index
    %c0_264 = arith.constant 0 : index
    %413 = vector.load %arg7[%c4_262, %c0_263, %c0_264] : memref<8x32x8xf32, #tpu.memory_space<vmem>>, vector<1x32x8xf32>
    %414 = vector.shape_cast %413 : vector<1x32x8xf32> to vector<32x8xf32>
    %cst_265 = arith.constant dense<0.000000e+00> : vector<17x8xf32>
    %415 = tpu.matmul %404, %414, %cst_265 {dimension_numbers = #tpu.dot_dimension_numbers<[1], [0], [0], [1], [0, 0, 1, 1], [], []>} : vector<17x32xf32>, vector<32x8xf32>, vector<17x8xf32> -> vector<17x8xf32>
    %c4_266 = arith.constant 4 : index
    %c0_267 = arith.constant 0 : index
    %c0_268 = arith.constant 0 : index
    %416 = vector.load %arg10[%c4_266, %c0_267, %c0_268] : memref<8x1x8xf32, #tpu.memory_space<vmem>>, vector<1x1x8xf32>
    %417 = vector.shape_cast %416 : vector<1x1x8xf32> to vector<1x8xf32>
    %418 = vector.broadcast %417 : vector<1x8xf32> to vector<17x8xf32>
    %419 = arith.addf %415, %418 : vector<17x8xf32>
    %c4_269 = arith.constant 4 : index
    %c0_270 = arith.constant 0 : index
    %c0_271 = arith.constant 0 : index
    %420 = vector.load %arg8[%c4_269, %c0_270, %c0_271] : memref<8x32x8xf32, #tpu.memory_space<vmem>>, vector<1x32x8xf32>
    %421 = vector.shape_cast %420 : vector<1x32x8xf32> to vector<32x8xf32>
    %cst_272 = arith.constant dense<0.000000e+00> : vector<17x8xf32>
    %422 = tpu.matmul %404, %421, %cst_272 {dimension_numbers = #tpu.dot_dimension_numbers<[1], [0], [0], [1], [0, 0, 1, 1], [], []>} : vector<17x32xf32>, vector<32x8xf32>, vector<17x8xf32> -> vector<17x8xf32>
    %c4_273 = arith.constant 4 : index
    %c0_274 = arith.constant 0 : index
    %c0_275 = arith.constant 0 : index
    %423 = vector.load %arg11[%c4_273, %c0_274, %c0_275] : memref<8x1x8xf32, #tpu.memory_space<vmem>>, vector<1x1x8xf32>
    %424 = vector.shape_cast %423 : vector<1x1x8xf32> to vector<1x8xf32>
    %425 = vector.broadcast %424 : vector<1x8xf32> to vector<17x8xf32>
    %426 = arith.addf %422, %425 : vector<17x8xf32>
    %427 = tpu.transpose %419, [1, 0] : vector<17x8xf32> -> vector<8x17xf32>
    %cst_276 = arith.constant dense<0.000000e+00> : vector<17x17xf32>
    %428 = tpu.matmul %412, %427, %cst_276 {dimension_numbers = #tpu.dot_dimension_numbers<[1], [0], [0], [1], [0, 0, 1, 1], [], []>} : vector<17x8xf32>, vector<8x17xf32>, vector<17x17xf32> -> vector<17x17xf32>
    %cst_277 = arith.constant 0.353553385 : f32
    %429 = vector.broadcast %cst_277 : f32 to vector<17x17xf32>
    %430 = arith.mulf %428, %429 : vector<17x17xf32>
    %cst_278 = arith.constant dense<0xFF800000> : vector<17xf32>
    %431 = vector.multi_reduction <maximumf>, %430, %cst_278 [1] : vector<17x17xf32> to vector<17xf32>
    %432 = vector.shape_cast %431 : vector<17xf32> to vector<17x1xf32>
    %433 = vector.broadcast %432 : vector<17x1xf32> to vector<17x17xf32>
    %434 = arith.subf %430, %433 : vector<17x17xf32>
    %435 = math.exp %434 : vector<17x17xf32>
    %cst_279 = arith.constant dense<0.000000e+00> : vector<17xf32>
    %436 = vector.multi_reduction <add>, %435, %cst_279 [1] : vector<17x17xf32> to vector<17xf32>
    %437 = vector.shape_cast %436 : vector<17xf32> to vector<17x1xf32>
    %438 = tpu.reciprocal %437 {approx = true} : vector<17x1xf32> -> vector<17x1xf32>
    %cst_280 = arith.constant dense<0.000000e+00> : vector<17x8xf32>
    %439 = tpu.matmul %435, %426, %cst_280 {dimension_numbers = #tpu.dot_dimension_numbers<[1], [0], [0], [1], [0, 0, 1, 1], [], []>} : vector<17x17xf32>, vector<17x8xf32>, vector<17x8xf32> -> vector<17x8xf32>
    %440 = vector.broadcast %438 : vector<17x1xf32> to vector<17x8xf32>
    %441 = arith.mulf %439, %440 : vector<17x8xf32>
    %c4_281 = arith.constant 4 : index
    %c0_282 = arith.constant 0 : index
    %c0_283 = arith.constant 0 : index
    %442 = vector.load %arg12[%c4_281, %c0_282, %c0_283] : memref<8x8x32xf32, #tpu.memory_space<vmem>>, vector<1x8x32xf32>
    %443 = vector.shape_cast %442 : vector<1x8x32xf32> to vector<8x32xf32>
    %cst_284 = arith.constant dense<0.000000e+00> : vector<17x32xf32>
    %444 = tpu.matmul %441, %443, %cst_284 {dimension_numbers = #tpu.dot_dimension_numbers<[1], [0], [0], [1], [0, 0, 1, 1], [], []>} : vector<17x8xf32>, vector<8x32xf32>, vector<17x32xf32> -> vector<17x32xf32>
    %445 = arith.addf %405, %444 : vector<17x32xf32>
    %c5 = arith.constant 5 : index
    %c0_285 = arith.constant 0 : index
    %c0_286 = arith.constant 0 : index
    %446 = vector.load %arg6[%c5, %c0_285, %c0_286] : memref<8x32x8xf32, #tpu.memory_space<vmem>>, vector<1x32x8xf32>
    %447 = vector.shape_cast %446 : vector<1x32x8xf32> to vector<32x8xf32>
    %cst_287 = arith.constant dense<0.000000e+00> : vector<17x8xf32>
    %448 = tpu.matmul %404, %447, %cst_287 {dimension_numbers = #tpu.dot_dimension_numbers<[1], [0], [0], [1], [0, 0, 1, 1], [], []>} : vector<17x32xf32>, vector<32x8xf32>, vector<17x8xf32> -> vector<17x8xf32>
    %c5_288 = arith.constant 5 : index
    %c0_289 = arith.constant 0 : index
    %c0_290 = arith.constant 0 : index
    %449 = vector.load %arg9[%c5_288, %c0_289, %c0_290] : memref<8x1x8xf32, #tpu.memory_space<vmem>>, vector<1x1x8xf32>
    %450 = vector.shape_cast %449 : vector<1x1x8xf32> to vector<1x8xf32>
    %451 = vector.broadcast %450 : vector<1x8xf32> to vector<17x8xf32>
    %452 = arith.addf %448, %451 : vector<17x8xf32>
    %c5_291 = arith.constant 5 : index
    %c0_292 = arith.constant 0 : index
    %c0_293 = arith.constant 0 : index
    %453 = vector.load %arg7[%c5_291, %c0_292, %c0_293] : memref<8x32x8xf32, #tpu.memory_space<vmem>>, vector<1x32x8xf32>
    %454 = vector.shape_cast %453 : vector<1x32x8xf32> to vector<32x8xf32>
    %cst_294 = arith.constant dense<0.000000e+00> : vector<17x8xf32>
    %455 = tpu.matmul %404, %454, %cst_294 {dimension_numbers = #tpu.dot_dimension_numbers<[1], [0], [0], [1], [0, 0, 1, 1], [], []>} : vector<17x32xf32>, vector<32x8xf32>, vector<17x8xf32> -> vector<17x8xf32>
    %c5_295 = arith.constant 5 : index
    %c0_296 = arith.constant 0 : index
    %c0_297 = arith.constant 0 : index
    %456 = vector.load %arg10[%c5_295, %c0_296, %c0_297] : memref<8x1x8xf32, #tpu.memory_space<vmem>>, vector<1x1x8xf32>
    %457 = vector.shape_cast %456 : vector<1x1x8xf32> to vector<1x8xf32>
    %458 = vector.broadcast %457 : vector<1x8xf32> to vector<17x8xf32>
    %459 = arith.addf %455, %458 : vector<17x8xf32>
    %c5_298 = arith.constant 5 : index
    %c0_299 = arith.constant 0 : index
    %c0_300 = arith.constant 0 : index
    %460 = vector.load %arg8[%c5_298, %c0_299, %c0_300] : memref<8x32x8xf32, #tpu.memory_space<vmem>>, vector<1x32x8xf32>
    %461 = vector.shape_cast %460 : vector<1x32x8xf32> to vector<32x8xf32>
    %cst_301 = arith.constant dense<0.000000e+00> : vector<17x8xf32>
    %462 = tpu.matmul %404, %461, %cst_301 {dimension_numbers = #tpu.dot_dimension_numbers<[1], [0], [0], [1], [0, 0, 1, 1], [], []>} : vector<17x32xf32>, vector<32x8xf32>, vector<17x8xf32> -> vector<17x8xf32>
    %c5_302 = arith.constant 5 : index
    %c0_303 = arith.constant 0 : index
    %c0_304 = arith.constant 0 : index
    %463 = vector.load %arg11[%c5_302, %c0_303, %c0_304] : memref<8x1x8xf32, #tpu.memory_space<vmem>>, vector<1x1x8xf32>
    %464 = vector.shape_cast %463 : vector<1x1x8xf32> to vector<1x8xf32>
    %465 = vector.broadcast %464 : vector<1x8xf32> to vector<17x8xf32>
    %466 = arith.addf %462, %465 : vector<17x8xf32>
    %467 = tpu.transpose %459, [1, 0] : vector<17x8xf32> -> vector<8x17xf32>
    %cst_305 = arith.constant dense<0.000000e+00> : vector<17x17xf32>
    %468 = tpu.matmul %452, %467, %cst_305 {dimension_numbers = #tpu.dot_dimension_numbers<[1], [0], [0], [1], [0, 0, 1, 1], [], []>} : vector<17x8xf32>, vector<8x17xf32>, vector<17x17xf32> -> vector<17x17xf32>
    %cst_306 = arith.constant 0.353553385 : f32
    %469 = vector.broadcast %cst_306 : f32 to vector<17x17xf32>
    %470 = arith.mulf %468, %469 : vector<17x17xf32>
    %cst_307 = arith.constant dense<0xFF800000> : vector<17xf32>
    %471 = vector.multi_reduction <maximumf>, %470, %cst_307 [1] : vector<17x17xf32> to vector<17xf32>
    %472 = vector.shape_cast %471 : vector<17xf32> to vector<17x1xf32>
    %473 = vector.broadcast %472 : vector<17x1xf32> to vector<17x17xf32>
    %474 = arith.subf %470, %473 : vector<17x17xf32>
    %475 = math.exp %474 : vector<17x17xf32>
    %cst_308 = arith.constant dense<0.000000e+00> : vector<17xf32>
    %476 = vector.multi_reduction <add>, %475, %cst_308 [1] : vector<17x17xf32> to vector<17xf32>
    %477 = vector.shape_cast %476 : vector<17xf32> to vector<17x1xf32>
    %478 = tpu.reciprocal %477 {approx = true} : vector<17x1xf32> -> vector<17x1xf32>
    %cst_309 = arith.constant dense<0.000000e+00> : vector<17x8xf32>
    %479 = tpu.matmul %475, %466, %cst_309 {dimension_numbers = #tpu.dot_dimension_numbers<[1], [0], [0], [1], [0, 0, 1, 1], [], []>} : vector<17x17xf32>, vector<17x8xf32>, vector<17x8xf32> -> vector<17x8xf32>
    %480 = vector.broadcast %478 : vector<17x1xf32> to vector<17x8xf32>
    %481 = arith.mulf %479, %480 : vector<17x8xf32>
    %c5_310 = arith.constant 5 : index
    %c0_311 = arith.constant 0 : index
    %c0_312 = arith.constant 0 : index
    %482 = vector.load %arg12[%c5_310, %c0_311, %c0_312] : memref<8x8x32xf32, #tpu.memory_space<vmem>>, vector<1x8x32xf32>
    %483 = vector.shape_cast %482 : vector<1x8x32xf32> to vector<8x32xf32>
    %cst_313 = arith.constant dense<0.000000e+00> : vector<17x32xf32>
    %484 = tpu.matmul %481, %483, %cst_313 {dimension_numbers = #tpu.dot_dimension_numbers<[1], [0], [0], [1], [0, 0, 1, 1], [], []>} : vector<17x8xf32>, vector<8x32xf32>, vector<17x32xf32> -> vector<17x32xf32>
    %485 = arith.addf %445, %484 : vector<17x32xf32>
    %c6 = arith.constant 6 : index
    %c0_314 = arith.constant 0 : index
    %c0_315 = arith.constant 0 : index
    %486 = vector.load %arg6[%c6, %c0_314, %c0_315] : memref<8x32x8xf32, #tpu.memory_space<vmem>>, vector<1x32x8xf32>
    %487 = vector.shape_cast %486 : vector<1x32x8xf32> to vector<32x8xf32>
    %cst_316 = arith.constant dense<0.000000e+00> : vector<17x8xf32>
    %488 = tpu.matmul %404, %487, %cst_316 {dimension_numbers = #tpu.dot_dimension_numbers<[1], [0], [0], [1], [0, 0, 1, 1], [], []>} : vector<17x32xf32>, vector<32x8xf32>, vector<17x8xf32> -> vector<17x8xf32>
    %c6_317 = arith.constant 6 : index
    %c0_318 = arith.constant 0 : index
    %c0_319 = arith.constant 0 : index
    %489 = vector.load %arg9[%c6_317, %c0_318, %c0_319] : memref<8x1x8xf32, #tpu.memory_space<vmem>>, vector<1x1x8xf32>
    %490 = vector.shape_cast %489 : vector<1x1x8xf32> to vector<1x8xf32>
    %491 = vector.broadcast %490 : vector<1x8xf32> to vector<17x8xf32>
    %492 = arith.addf %488, %491 : vector<17x8xf32>
    %c6_320 = arith.constant 6 : index
    %c0_321 = arith.constant 0 : index
    %c0_322 = arith.constant 0 : index
    %493 = vector.load %arg7[%c6_320, %c0_321, %c0_322] : memref<8x32x8xf32, #tpu.memory_space<vmem>>, vector<1x32x8xf32>
    %494 = vector.shape_cast %493 : vector<1x32x8xf32> to vector<32x8xf32>
    %cst_323 = arith.constant dense<0.000000e+00> : vector<17x8xf32>
    %495 = tpu.matmul %404, %494, %cst_323 {dimension_numbers = #tpu.dot_dimension_numbers<[1], [0], [0], [1], [0, 0, 1, 1], [], []>} : vector<17x32xf32>, vector<32x8xf32>, vector<17x8xf32> -> vector<17x8xf32>
    %c6_324 = arith.constant 6 : index
    %c0_325 = arith.constant 0 : index
    %c0_326 = arith.constant 0 : index
    %496 = vector.load %arg10[%c6_324, %c0_325, %c0_326] : memref<8x1x8xf32, #tpu.memory_space<vmem>>, vector<1x1x8xf32>
    %497 = vector.shape_cast %496 : vector<1x1x8xf32> to vector<1x8xf32>
    %498 = vector.broadcast %497 : vector<1x8xf32> to vector<17x8xf32>
    %499 = arith.addf %495, %498 : vector<17x8xf32>
    %c6_327 = arith.constant 6 : index
    %c0_328 = arith.constant 0 : index
    %c0_329 = arith.constant 0 : index
    %500 = vector.load %arg8[%c6_327, %c0_328, %c0_329] : memref<8x32x8xf32, #tpu.memory_space<vmem>>, vector<1x32x8xf32>
    %501 = vector.shape_cast %500 : vector<1x32x8xf32> to vector<32x8xf32>
    %cst_330 = arith.constant dense<0.000000e+00> : vector<17x8xf32>
    %502 = tpu.matmul %404, %501, %cst_330 {dimension_numbers = #tpu.dot_dimension_numbers<[1], [0], [0], [1], [0, 0, 1, 1], [], []>} : vector<17x32xf32>, vector<32x8xf32>, vector<17x8xf32> -> vector<17x8xf32>
    %c6_331 = arith.constant 6 : index
    %c0_332 = arith.constant 0 : index
    %c0_333 = arith.constant 0 : index
    %503 = vector.load %arg11[%c6_331, %c0_332, %c0_333] : memref<8x1x8xf32, #tpu.memory_space<vmem>>, vector<1x1x8xf32>
    %504 = vector.shape_cast %503 : vector<1x1x8xf32> to vector<1x8xf32>
    %505 = vector.broadcast %504 : vector<1x8xf32> to vector<17x8xf32>
    %506 = arith.addf %502, %505 : vector<17x8xf32>
    %507 = tpu.transpose %499, [1, 0] : vector<17x8xf32> -> vector<8x17xf32>
    %cst_334 = arith.constant dense<0.000000e+00> : vector<17x17xf32>
    %508 = tpu.matmul %492, %507, %cst_334 {dimension_numbers = #tpu.dot_dimension_numbers<[1], [0], [0], [1], [0, 0, 1, 1], [], []>} : vector<17x8xf32>, vector<8x17xf32>, vector<17x17xf32> -> vector<17x17xf32>
    %cst_335 = arith.constant 0.353553385 : f32
    %509 = vector.broadcast %cst_335 : f32 to vector<17x17xf32>
    %510 = arith.mulf %508, %509 : vector<17x17xf32>
    %cst_336 = arith.constant dense<0xFF800000> : vector<17xf32>
    %511 = vector.multi_reduction <maximumf>, %510, %cst_336 [1] : vector<17x17xf32> to vector<17xf32>
    %512 = vector.shape_cast %511 : vector<17xf32> to vector<17x1xf32>
    %513 = vector.broadcast %512 : vector<17x1xf32> to vector<17x17xf32>
    %514 = arith.subf %510, %513 : vector<17x17xf32>
    %515 = math.exp %514 : vector<17x17xf32>
    %cst_337 = arith.constant dense<0.000000e+00> : vector<17xf32>
    %516 = vector.multi_reduction <add>, %515, %cst_337 [1] : vector<17x17xf32> to vector<17xf32>
    %517 = vector.shape_cast %516 : vector<17xf32> to vector<17x1xf32>
    %518 = tpu.reciprocal %517 {approx = true} : vector<17x1xf32> -> vector<17x1xf32>
    %cst_338 = arith.constant dense<0.000000e+00> : vector<17x8xf32>
    %519 = tpu.matmul %515, %506, %cst_338 {dimension_numbers = #tpu.dot_dimension_numbers<[1], [0], [0], [1], [0, 0, 1, 1], [], []>} : vector<17x17xf32>, vector<17x8xf32>, vector<17x8xf32> -> vector<17x8xf32>
    %520 = vector.broadcast %518 : vector<17x1xf32> to vector<17x8xf32>
    %521 = arith.mulf %519, %520 : vector<17x8xf32>
    %c6_339 = arith.constant 6 : index
    %c0_340 = arith.constant 0 : index
    %c0_341 = arith.constant 0 : index
    %522 = vector.load %arg12[%c6_339, %c0_340, %c0_341] : memref<8x8x32xf32, #tpu.memory_space<vmem>>, vector<1x8x32xf32>
    %523 = vector.shape_cast %522 : vector<1x8x32xf32> to vector<8x32xf32>
    %cst_342 = arith.constant dense<0.000000e+00> : vector<17x32xf32>
    %524 = tpu.matmul %521, %523, %cst_342 {dimension_numbers = #tpu.dot_dimension_numbers<[1], [0], [0], [1], [0, 0, 1, 1], [], []>} : vector<17x8xf32>, vector<8x32xf32>, vector<17x32xf32> -> vector<17x32xf32>
    %525 = arith.addf %485, %524 : vector<17x32xf32>
    %c7 = arith.constant 7 : index
    %c0_343 = arith.constant 0 : index
    %c0_344 = arith.constant 0 : index
    %526 = vector.load %arg6[%c7, %c0_343, %c0_344] : memref<8x32x8xf32, #tpu.memory_space<vmem>>, vector<1x32x8xf32>
    %527 = vector.shape_cast %526 : vector<1x32x8xf32> to vector<32x8xf32>
    %cst_345 = arith.constant dense<0.000000e+00> : vector<17x8xf32>
    %528 = tpu.matmul %404, %527, %cst_345 {dimension_numbers = #tpu.dot_dimension_numbers<[1], [0], [0], [1], [0, 0, 1, 1], [], []>} : vector<17x32xf32>, vector<32x8xf32>, vector<17x8xf32> -> vector<17x8xf32>
    %c7_346 = arith.constant 7 : index
    %c0_347 = arith.constant 0 : index
    %c0_348 = arith.constant 0 : index
    %529 = vector.load %arg9[%c7_346, %c0_347, %c0_348] : memref<8x1x8xf32, #tpu.memory_space<vmem>>, vector<1x1x8xf32>
    %530 = vector.shape_cast %529 : vector<1x1x8xf32> to vector<1x8xf32>
    %531 = vector.broadcast %530 : vector<1x8xf32> to vector<17x8xf32>
    %532 = arith.addf %528, %531 : vector<17x8xf32>
    %c7_349 = arith.constant 7 : index
    %c0_350 = arith.constant 0 : index
    %c0_351 = arith.constant 0 : index
    %533 = vector.load %arg7[%c7_349, %c0_350, %c0_351] : memref<8x32x8xf32, #tpu.memory_space<vmem>>, vector<1x32x8xf32>
    %534 = vector.shape_cast %533 : vector<1x32x8xf32> to vector<32x8xf32>
    %cst_352 = arith.constant dense<0.000000e+00> : vector<17x8xf32>
    %535 = tpu.matmul %404, %534, %cst_352 {dimension_numbers = #tpu.dot_dimension_numbers<[1], [0], [0], [1], [0, 0, 1, 1], [], []>} : vector<17x32xf32>, vector<32x8xf32>, vector<17x8xf32> -> vector<17x8xf32>
    %c7_353 = arith.constant 7 : index
    %c0_354 = arith.constant 0 : index
    %c0_355 = arith.constant 0 : index
    %536 = vector.load %arg10[%c7_353, %c0_354, %c0_355] : memref<8x1x8xf32, #tpu.memory_space<vmem>>, vector<1x1x8xf32>
    %537 = vector.shape_cast %536 : vector<1x1x8xf32> to vector<1x8xf32>
    %538 = vector.broadcast %537 : vector<1x8xf32> to vector<17x8xf32>
    %539 = arith.addf %535, %538 : vector<17x8xf32>
    %c7_356 = arith.constant 7 : index
    %c0_357 = arith.constant 0 : index
    %c0_358 = arith.constant 0 : index
    %540 = vector.load %arg8[%c7_356, %c0_357, %c0_358] : memref<8x32x8xf32, #tpu.memory_space<vmem>>, vector<1x32x8xf32>
    %541 = vector.shape_cast %540 : vector<1x32x8xf32> to vector<32x8xf32>
    %cst_359 = arith.constant dense<0.000000e+00> : vector<17x8xf32>
    %542 = tpu.matmul %404, %541, %cst_359 {dimension_numbers = #tpu.dot_dimension_numbers<[1], [0], [0], [1], [0, 0, 1, 1], [], []>} : vector<17x32xf32>, vector<32x8xf32>, vector<17x8xf32> -> vector<17x8xf32>
    %c7_360 = arith.constant 7 : index
    %c0_361 = arith.constant 0 : index
    %c0_362 = arith.constant 0 : index
    %543 = vector.load %arg11[%c7_360, %c0_361, %c0_362] : memref<8x1x8xf32, #tpu.memory_space<vmem>>, vector<1x1x8xf32>
    %544 = vector.shape_cast %543 : vector<1x1x8xf32> to vector<1x8xf32>
    %545 = vector.broadcast %544 : vector<1x8xf32> to vector<17x8xf32>
    %546 = arith.addf %542, %545 : vector<17x8xf32>
    %547 = tpu.transpose %539, [1, 0] : vector<17x8xf32> -> vector<8x17xf32>
    %cst_363 = arith.constant dense<0.000000e+00> : vector<17x17xf32>
    %548 = tpu.matmul %532, %547, %cst_363 {dimension_numbers = #tpu.dot_dimension_numbers<[1], [0], [0], [1], [0, 0, 1, 1], [], []>} : vector<17x8xf32>, vector<8x17xf32>, vector<17x17xf32> -> vector<17x17xf32>
    %cst_364 = arith.constant 0.353553385 : f32
    %549 = vector.broadcast %cst_364 : f32 to vector<17x17xf32>
    %550 = arith.mulf %548, %549 : vector<17x17xf32>
    %cst_365 = arith.constant dense<0xFF800000> : vector<17xf32>
    %551 = vector.multi_reduction <maximumf>, %550, %cst_365 [1] : vector<17x17xf32> to vector<17xf32>
    %552 = vector.shape_cast %551 : vector<17xf32> to vector<17x1xf32>
    %553 = vector.broadcast %552 : vector<17x1xf32> to vector<17x17xf32>
    %554 = arith.subf %550, %553 : vector<17x17xf32>
    %555 = math.exp %554 : vector<17x17xf32>
    %cst_366 = arith.constant dense<0.000000e+00> : vector<17xf32>
    %556 = vector.multi_reduction <add>, %555, %cst_366 [1] : vector<17x17xf32> to vector<17xf32>
    %557 = vector.shape_cast %556 : vector<17xf32> to vector<17x1xf32>
    %558 = tpu.reciprocal %557 {approx = true} : vector<17x1xf32> -> vector<17x1xf32>
    %cst_367 = arith.constant dense<0.000000e+00> : vector<17x8xf32>
    %559 = tpu.matmul %555, %546, %cst_367 {dimension_numbers = #tpu.dot_dimension_numbers<[1], [0], [0], [1], [0, 0, 1, 1], [], []>} : vector<17x17xf32>, vector<17x8xf32>, vector<17x8xf32> -> vector<17x8xf32>
    %560 = vector.broadcast %558 : vector<17x1xf32> to vector<17x8xf32>
    %561 = arith.mulf %559, %560 : vector<17x8xf32>
    %c7_368 = arith.constant 7 : index
    %c0_369 = arith.constant 0 : index
    %c0_370 = arith.constant 0 : index
    %562 = vector.load %arg12[%c7_368, %c0_369, %c0_370] : memref<8x8x32xf32, #tpu.memory_space<vmem>>, vector<1x8x32xf32>
    %563 = vector.shape_cast %562 : vector<1x8x32xf32> to vector<8x32xf32>
    %cst_371 = arith.constant dense<0.000000e+00> : vector<17x32xf32>
    %564 = tpu.matmul %561, %563, %cst_371 {dimension_numbers = #tpu.dot_dimension_numbers<[1], [0], [0], [1], [0, 0, 1, 1], [], []>} : vector<17x8xf32>, vector<8x32xf32>, vector<17x32xf32> -> vector<17x32xf32>
    %565 = arith.addf %525, %564 : vector<17x32xf32>
    %566 = arith.addf %378, %565 : vector<17x32xf32>
    %c1_372 = arith.constant 1 : index
    %c0_373 = arith.constant 0 : index
    %c0_374 = arith.constant 0 : index
    %567 = vector.load %arg13[%c1_372, %c0_373, %c0_374] : memref<2x1x32xf32, #tpu.memory_space<vmem>>, vector<1x1x32xf32>
    %568 = vector.shape_cast %567 : vector<1x1x32xf32> to vector<1x32xf32>
    %569 = vector.broadcast %568 : vector<1x32xf32> to vector<17x32xf32>
    %570 = arith.addf %566, %569 : vector<17x32xf32>
    %c1_375 = arith.constant 1 : index
    %c0_376 = arith.constant 0 : index
    %c0_377 = arith.constant 0 : index
    %571 = vector.load %arg16[%c1_375, %c0_376, %c0_377] : memref<2x1x32xf32, #tpu.memory_space<vmem>>, vector<1x1x32xf32>
    %572 = vector.shape_cast %571 : vector<1x1x32xf32> to vector<1x32xf32>
    %c1_378 = arith.constant 1 : index
    %c0_379 = arith.constant 0 : index
    %c0_380 = arith.constant 0 : index
    %573 = vector.load %arg17[%c1_378, %c0_379, %c0_380] : memref<2x1x32xf32, #tpu.memory_space<vmem>>, vector<1x1x32xf32>
    %574 = vector.shape_cast %573 : vector<1x1x32xf32> to vector<1x32xf32>
    %cst_381 = arith.constant dense<0.000000e+00> : vector<17xf32>
    %575 = vector.multi_reduction <add>, %570, %cst_381 [1] : vector<17x32xf32> to vector<17xf32>
    %576 = vector.shape_cast %575 : vector<17xf32> to vector<17x1xf32>
    %cst_382 = arith.constant 3.200000e+01 : f32
    %577 = vector.broadcast %cst_382 : f32 to vector<17x1xf32>
    %578 = arith.divf %576, %577 : vector<17x1xf32>
    %579 = vector.broadcast %578 : vector<17x1xf32> to vector<17x32xf32>
    %580 = arith.subf %570, %579 : vector<17x32xf32>
    %581 = arith.mulf %580, %580 : vector<17x32xf32>
    %cst_383 = arith.constant dense<0.000000e+00> : vector<17xf32>
    %582 = vector.multi_reduction <add>, %581, %cst_383 [1] : vector<17x32xf32> to vector<17xf32>
    %583 = vector.shape_cast %582 : vector<17xf32> to vector<17x1xf32>
    %cst_384 = arith.constant 3.200000e+01 : f32
    %584 = vector.broadcast %cst_384 : f32 to vector<17x1xf32>
    %585 = arith.divf %583, %584 : vector<17x1xf32>
    %586 = vector.broadcast %578 : vector<17x1xf32> to vector<17x32xf32>
    %587 = arith.subf %570, %586 : vector<17x32xf32>
    %cst_385 = arith.constant 9.99999974E-6 : f32
    %588 = vector.broadcast %cst_385 : f32 to vector<17x1xf32>
    %589 = arith.addf %585, %588 : vector<17x1xf32>
    %590 = math.rsqrt %589 : vector<17x1xf32>
    %591 = vector.broadcast %590 : vector<17x1xf32> to vector<17x32xf32>
    %592 = arith.mulf %587, %591 : vector<17x32xf32>
    %593 = vector.broadcast %572 : vector<1x32xf32> to vector<17x32xf32>
    %594 = arith.mulf %592, %593 : vector<17x32xf32>
    %595 = vector.broadcast %574 : vector<1x32xf32> to vector<17x32xf32>
    %596 = arith.addf %594, %595 : vector<17x32xf32>
    %c1_386 = arith.constant 1 : index
    %c0_387 = arith.constant 0 : index
    %c0_388 = arith.constant 0 : index
    %597 = vector.load %arg18[%c1_386, %c0_387, %c0_388] : memref<2x32x128xf32, #tpu.memory_space<vmem>>, vector<1x32x128xf32>
    %598 = vector.shape_cast %597 : vector<1x32x128xf32> to vector<32x128xf32>
    %cst_389 = arith.constant dense<0.000000e+00> : vector<17x128xf32>
    %599 = tpu.matmul %596, %598, %cst_389 {dimension_numbers = #tpu.dot_dimension_numbers<[1], [0], [0], [1], [0, 0, 1, 1], [], []>} : vector<17x32xf32>, vector<32x128xf32>, vector<17x128xf32> -> vector<17x128xf32>
    %c1_390 = arith.constant 1 : index
    %c0_391 = arith.constant 0 : index
    %c0_392 = arith.constant 0 : index
    %600 = vector.load %arg19[%c1_390, %c0_391, %c0_392] : memref<2x1x128xf32, #tpu.memory_space<vmem>>, vector<1x1x128xf32>
    %601 = vector.shape_cast %600 : vector<1x1x128xf32> to vector<1x128xf32>
    %602 = vector.broadcast %601 : vector<1x128xf32> to vector<17x128xf32>
    %603 = arith.addf %599, %602 : vector<17x128xf32>
    %cst_393 = arith.constant 1.702000e+00 : f32
    %604 = vector.broadcast %cst_393 : f32 to vector<17x128xf32>
    %605 = arith.mulf %604, %603 : vector<17x128xf32>
    %606 = arith.negf %605 : vector<17x128xf32>
    %607 = math.exp %606 : vector<17x128xf32>
    %cst_394 = arith.constant 1.000000e+00 : f32
    %608 = vector.broadcast %cst_394 : f32 to vector<17x128xf32>
    %609 = arith.addf %608, %607 : vector<17x128xf32>
    %610 = arith.divf %608, %609 : vector<17x128xf32>
    %611 = arith.mulf %603, %610 : vector<17x128xf32>
    %c1_395 = arith.constant 1 : index
    %c0_396 = arith.constant 0 : index
    %c0_397 = arith.constant 0 : index
    %612 = vector.load %arg20[%c1_395, %c0_396, %c0_397] : memref<2x128x32xf32, #tpu.memory_space<vmem>>, vector<1x128x32xf32>
    %613 = vector.shape_cast %612 : vector<1x128x32xf32> to vector<128x32xf32>
    %cst_398 = arith.constant dense<0.000000e+00> : vector<17x32xf32>
    %614 = tpu.matmul %611, %613, %cst_398 {dimension_numbers = #tpu.dot_dimension_numbers<[1], [0], [0], [1], [0, 0, 1, 1], [], []>} : vector<17x128xf32>, vector<128x32xf32>, vector<17x32xf32> -> vector<17x32xf32>
    %615 = arith.addf %570, %614 : vector<17x32xf32>
    %c1_399 = arith.constant 1 : index
    %c0_400 = arith.constant 0 : index
    %c0_401 = arith.constant 0 : index
    %616 = vector.load %arg21[%c1_399, %c0_400, %c0_401] : memref<2x1x32xf32, #tpu.memory_space<vmem>>, vector<1x1x32xf32>
    %617 = vector.shape_cast %616 : vector<1x1x32xf32> to vector<1x32xf32>
    %618 = vector.broadcast %617 : vector<1x32xf32> to vector<17x32xf32>
    %619 = arith.addf %615, %618 : vector<17x32xf32>
    %620 = vector.extract_strided_slice %619 {offsets = [0, 0], sizes = [1, 32], strides = [1, 1]} : vector<17x32xf32> to vector<1x32xf32>
    %c0_402 = arith.constant 0 : index
    %c0_403 = arith.constant 0 : index
    %621 = vector.load %arg22[%c0_402, %c0_403] : memref<1x32xf32, #tpu.memory_space<vmem>>, vector<1x32xf32>
    %c0_404 = arith.constant 0 : index
    %c0_405 = arith.constant 0 : index
    %622 = vector.load %arg23[%c0_404, %c0_405] : memref<1x32xf32, #tpu.memory_space<vmem>>, vector<1x32xf32>
    %cst_406 = arith.constant dense<0.000000e+00> : vector<1xf32>
    %623 = vector.multi_reduction <add>, %620, %cst_406 [1] : vector<1x32xf32> to vector<1xf32>
    %624 = vector.shape_cast %623 : vector<1xf32> to vector<1x1xf32>
    %cst_407 = arith.constant 3.200000e+01 : f32
    %625 = vector.broadcast %cst_407 : f32 to vector<1x1xf32>
    %626 = arith.divf %624, %625 : vector<1x1xf32>
    %627 = vector.broadcast %626 : vector<1x1xf32> to vector<1x32xf32>
    %628 = arith.subf %620, %627 : vector<1x32xf32>
    %629 = arith.mulf %628, %628 : vector<1x32xf32>
    %cst_408 = arith.constant dense<0.000000e+00> : vector<1xf32>
    %630 = vector.multi_reduction <add>, %629, %cst_408 [1] : vector<1x32xf32> to vector<1xf32>
    %631 = vector.shape_cast %630 : vector<1xf32> to vector<1x1xf32>
    %cst_409 = arith.constant 3.200000e+01 : f32
    %632 = vector.broadcast %cst_409 : f32 to vector<1x1xf32>
    %633 = arith.divf %631, %632 : vector<1x1xf32>
    %634 = vector.broadcast %626 : vector<1x1xf32> to vector<1x32xf32>
    %635 = arith.subf %620, %634 : vector<1x32xf32>
    %cst_410 = arith.constant 9.99999974E-6 : f32
    %636 = vector.broadcast %cst_410 : f32 to vector<1x1xf32>
    %637 = arith.addf %633, %636 : vector<1x1xf32>
    %638 = math.rsqrt %637 : vector<1x1xf32>
    %639 = vector.broadcast %638 : vector<1x1xf32> to vector<1x32xf32>
    %640 = arith.mulf %635, %639 : vector<1x32xf32>
    %641 = arith.mulf %640, %621 : vector<1x32xf32>
    %642 = arith.addf %641, %622 : vector<1x32xf32>
    %c0_411 = arith.constant 0 : index
    %c0_412 = arith.constant 0 : index
    %643 = vector.load %arg24[%c0_411, %c0_412] : memref<32x32xf32, #tpu.memory_space<vmem>>, vector<32x32xf32>
    %cst_413 = arith.constant dense<0.000000e+00> : vector<1x32xf32>
    %644 = tpu.matmul %642, %643, %cst_413 {dimension_numbers = #tpu.dot_dimension_numbers<[1], [0], [0], [1], [0, 0, 1, 1], [], []>} : vector<1x32xf32>, vector<32x32xf32>, vector<1x32xf32> -> vector<1x32xf32>
    %645 = arith.mulf %644, %644 : vector<1x32xf32>
    %cst_414 = arith.constant dense<0.000000e+00> : vector<1xf32>
    %646 = vector.multi_reduction <add>, %645, %cst_414 [1] : vector<1x32xf32> to vector<1xf32>
    %647 = vector.shape_cast %646 : vector<1xf32> to vector<1x1xf32>
    %cst_415 = arith.constant 9.99999996E-13 : f32
    %648 = vector.broadcast %cst_415 : f32 to vector<1x1xf32>
    %649 = arith.addf %647, %648 : vector<1x1xf32>
    %650 = math.rsqrt %649 : vector<1x1xf32>
    %651 = vector.broadcast %650 : vector<1x1xf32> to vector<1x32xf32>
    %652 = arith.mulf %644, %651 : vector<1x32xf32>
    %c0_416 = arith.constant 0 : index
    %c0_417 = arith.constant 0 : index
    %653 = vector.load %arg27[%c0_416, %c0_417] : memref<5x32xf32, #tpu.memory_space<vmem>>, vector<5x32xf32>
    %c0_418 = arith.constant 0 : index
    %c0_419 = arith.constant 0 : index
    %654 = memref.load %arg28[%c0_418, %c0_419] : memref<1x1xf32, #tpu.memory_space<smem>>
    %655 = tpu.transpose %653, [1, 0] : vector<5x32xf32> -> vector<32x5xf32>
    %cst_420 = arith.constant dense<0.000000e+00> : vector<1x5xf32>
    %656 = tpu.matmul %652, %655, %cst_420 {dimension_numbers = #tpu.dot_dimension_numbers<[1], [0], [0], [1], [0, 0, 1, 1], [], []>} : vector<1x32xf32>, vector<32x5xf32>, vector<1x5xf32> -> vector<1x5xf32>
    %657 = vector.broadcast %654 : f32 to vector<1x5xf32>
    %658 = arith.mulf %657, %656 : vector<1x5xf32>
    %c0_421 = arith.constant 0 : index
    %c0_422 = arith.constant 0 : index
    %c0_423 = arith.constant 0 : index
    %659 = vector.load %arg29[%c0_421, %c0_422, %c0_423] : memref<1x1x5xf32, #tpu.memory_space<vmem>>, vector<1x1x5xf32>
    %660 = vector.shape_cast %659 : vector<1x1x5xf32> to vector<1x5xf32>
    %661 = vector.shape_cast %658 : vector<1x5xf32> to vector<1x1x5xf32>
    tpu.vector_store %arg29[%c0_421, %c0_422, %c0_423], %661 {strides = array<i32>} : memref<1x1x5xf32, #tpu.memory_space<vmem>>, vector<1x1x5xf32>,
    return
  }
  func.func @transform_0(%arg0: i32) -> (i32, i32, i32) {
    %c0_i32 = arith.constant 0 : i32
    %c0_i32_0 = arith.constant 0 : i32
    %c0_i32_1 = arith.constant 0 : i32
    return %arg0, %c0_i32, %c0_i32_0 : i32, i32, i32
  }
  func.func @transform_1(%arg0: i32) -> (i32, i32) {
    %c0_i32 = arith.constant 0 : i32
    %c0_i32_0 = arith.constant 0 : i32
    %c0_i32_1 = arith.constant 0 : i32
    return %c0_i32, %c0_i32_0 : i32, i32
  }
  func.func @transform_2(%arg0: i32) -> (i32, i32) {
    %c0_i32 = arith.constant 0 : i32
    %c0_i32_0 = arith.constant 0 : i32
    %c0_i32_1 = arith.constant 0 : i32
    return %c0_i32, %c0_i32_0 : i32, i32
  }
  func.func @transform_3(%arg0: i32) -> (i32, i32) {
    %c0_i32 = arith.constant 0 : i32
    %c0_i32_0 = arith.constant 0 : i32
    %c0_i32_1 = arith.constant 0 : i32
    return %c0_i32, %c0_i32_0 : i32, i32
  }
  func.func @transform_4(%arg0: i32) -> (i32, i32) {
    %c0_i32 = arith.constant 0 : i32
    %c0_i32_0 = arith.constant 0 : i32
    %c0_i32_1 = arith.constant 0 : i32
    return %c0_i32, %c0_i32_0 : i32, i32
  }
  func.func @transform_5(%arg0: i32) -> (i32, i32, i32) {
    %c0_i32 = arith.constant 0 : i32
    %c0_i32_0 = arith.constant 0 : i32
    %c0_i32_1 = arith.constant 0 : i32
    %c0_i32_2 = arith.constant 0 : i32
    return %c0_i32, %c0_i32_0, %c0_i32_1 : i32, i32, i32
  }
  func.func @transform_6(%arg0: i32) -> (i32, i32, i32) {
    %c0_i32 = arith.constant 0 : i32
    %c0_i32_0 = arith.constant 0 : i32
    %c0_i32_1 = arith.constant 0 : i32
    %c0_i32_2 = arith.constant 0 : i32
    return %c0_i32, %c0_i32_0, %c0_i32_1 : i32, i32, i32
  }
  func.func @transform_7(%arg0: i32) -> (i32, i32, i32) {
    %c0_i32 = arith.constant 0 : i32
    %c0_i32_0 = arith.constant 0 : i32
    %c0_i32_1 = arith.constant 0 : i32
    %c0_i32_2 = arith.constant 0 : i32
    return %c0_i32, %c0_i32_0, %c0_i32_1 : i32, i32, i32
  }
  func.func @transform_8(%arg0: i32) -> (i32, i32, i32) {
    %c0_i32 = arith.constant 0 : i32
    %c0_i32_0 = arith.constant 0 : i32
    %c0_i32_1 = arith.constant 0 : i32
    %c0_i32_2 = arith.constant 0 : i32
    return %c0_i32, %c0_i32_0, %c0_i32_1 : i32, i32, i32
  }
  func.func @transform_9(%arg0: i32) -> (i32, i32, i32) {
    %c0_i32 = arith.constant 0 : i32
    %c0_i32_0 = arith.constant 0 : i32
    %c0_i32_1 = arith.constant 0 : i32
    %c0_i32_2 = arith.constant 0 : i32
    return %c0_i32, %c0_i32_0, %c0_i32_1 : i32, i32, i32
  }
  func.func @transform_10(%arg0: i32) -> (i32, i32, i32) {
    %c0_i32 = arith.constant 0 : i32
    %c0_i32_0 = arith.constant 0 : i32
    %c0_i32_1 = arith.constant 0 : i32
    %c0_i32_2 = arith.constant 0 : i32
    return %c0_i32, %c0_i32_0, %c0_i32_1 : i32, i32, i32
  }
  func.func @transform_11(%arg0: i32) -> (i32, i32, i32) {
    %c0_i32 = arith.constant 0 : i32
    %c0_i32_0 = arith.constant 0 : i32
    %c0_i32_1 = arith.constant 0 : i32
    %c0_i32_2 = arith.constant 0 : i32
    return %c0_i32, %c0_i32_0, %c0_i32_1 : i32, i32, i32
  }
  func.func @transform_12(%arg0: i32) -> (i32, i32, i32) {
    %c0_i32 = arith.constant 0 : i32
    %c0_i32_0 = arith.constant 0 : i32
    %c0_i32_1 = arith.constant 0 : i32
    %c0_i32_2 = arith.constant 0 : i32
    return %c0_i32, %c0_i32_0, %c0_i32_1 : i32, i32, i32
  }
  func.func @transform_13(%arg0: i32) -> (i32, i32, i32) {
    %c0_i32 = arith.constant 0 : i32
    %c0_i32_0 = arith.constant 0 : i32
    %c0_i32_1 = arith.constant 0 : i32
    %c0_i32_2 = arith.constant 0 : i32
    return %c0_i32, %c0_i32_0, %c0_i32_1 : i32, i32, i32
  }
  func.func @transform_14(%arg0: i32) -> (i32, i32, i32) {
    %c0_i32 = arith.constant 0 : i32
    %c0_i32_0 = arith.constant 0 : i32
    %c0_i32_1 = arith.constant 0 : i32
    %c0_i32_2 = arith.constant 0 : i32
    return %c0_i32, %c0_i32_0, %c0_i32_1 : i32, i32, i32
  }
  func.func @transform_15(%arg0: i32) -> (i32, i32, i32) {
    %c0_i32 = arith.constant 0 : i32
    %c0_i32_0 = arith.constant 0 : i32
    %c0_i32_1 = arith.constant 0 : i32
    %c0_i32_2 = arith.constant 0 : i32
    return %c0_i32, %c0_i32_0, %c0_i32_1 : i32, i32, i32
  }
  func.func @transform_16(%arg0: i32) -> (i32, i32, i32) {
    %c0_i32 = arith.constant 0 : i32
    %c0_i32_0 = arith.constant 0 : i32
    %c0_i32_1 = arith.constant 0 : i32
    %c0_i32_2 = arith.constant 0 : i32
    return %c0_i32, %c0_i32_0, %c0_i32_1 : i32, i32, i32
  }
  func.func @transform_17(%arg0: i32) -> (i32, i32, i32) {
    %c0_i32 = arith.constant 0 : i32
    %c0_i32_0 = arith.constant 0 : i32
    %c0_i32_1 = arith.constant 0 : i32
    %c0_i32_2 = arith.constant 0 : i32
    return %c0_i32, %c0_i32_0, %c0_i32_1 : i32, i32, i32
  }
  func.func @transform_18(%arg0: i32) -> (i32, i32, i32) {
    %c0_i32 = arith.constant 0 : i32
    %c0_i32_0 = arith.constant 0 : i32
    %c0_i32_1 = arith.constant 0 : i32
    %c0_i32_2 = arith.constant 0 : i32
    return %c0_i32, %c0_i32_0, %c0_i32_1 : i32, i32, i32
  }
  func.func @transform_19(%arg0: i32) -> (i32, i32, i32) {
    %c0_i32 = arith.constant 0 : i32
    %c0_i32_0 = arith.constant 0 : i32
    %c0_i32_1 = arith.constant 0 : i32
    %c0_i32_2 = arith.constant 0 : i32
    return %c0_i32, %c0_i32_0, %c0_i32_1 : i32, i32, i32
  }
  func.func @transform_20(%arg0: i32) -> (i32, i32, i32) {
    %c0_i32 = arith.constant 0 : i32
    %c0_i32_0 = arith.constant 0 : i32
    %c0_i32_1 = arith.constant 0 : i32
    %c0_i32_2 = arith.constant 0 : i32
    return %c0_i32, %c0_i32_0, %c0_i32_1 : i32, i32, i32
  }
  func.func @transform_21(%arg0: i32) -> (i32, i32) {
    %c0_i32 = arith.constant 0 : i32
    %c0_i32_0 = arith.constant 0 : i32
    %c0_i32_1 = arith.constant 0 : i32
    return %c0_i32, %c0_i32_0 : i32, i32
  }
  func.func @transform_22(%arg0: i32) -> (i32, i32) {
    %c0_i32 = arith.constant 0 : i32
    %c0_i32_0 = arith.constant 0 : i32
    %c0_i32_1 = arith.constant 0 : i32
    return %c0_i32, %c0_i32_0 : i32, i32
  }
  func.func @transform_23(%arg0: i32) -> (i32, i32) {
    %c0_i32 = arith.constant 0 : i32
    %c0_i32_0 = arith.constant 0 : i32
    %c0_i32_1 = arith.constant 0 : i32
    return %c0_i32, %c0_i32_0 : i32, i32
  }
  func.func @transform_24(%arg0: i32) -> (i32, i32, i32) {
    %c0_i32 = arith.constant 0 : i32
    %c0_i32_0 = arith.constant 0 : i32
    %c0_i32_1 = arith.constant 0 : i32
    %c0_i32_2 = arith.constant 0 : i32
    return %c0_i32, %c0_i32_0, %c0_i32_1 : i32, i32, i32
  }
  func.func @transform_25(%arg0: i32) -> (i32, i32, i32) {
    %c0_i32 = arith.constant 0 : i32
    %c0_i32_0 = arith.constant 0 : i32
    %c0_i32_1 = arith.constant 0 : i32
    %c0_i32_2 = arith.constant 0 : i32
    return %c0_i32, %c0_i32_0, %c0_i32_1 : i32, i32, i32
  }
  func.func @transform_26(%arg0: i32) -> (i32, i32) {
    %c0_i32 = arith.constant 0 : i32
    %c0_i32_0 = arith.constant 0 : i32
    %c0_i32_1 = arith.constant 0 : i32
    return %c0_i32, %c0_i32_0 : i32, i32
  }
  func.func @transform_27(%arg0: i32) -> (i32, i32) {
    %c0_i32 = arith.constant 0 : i32
    %c0_i32_0 = arith.constant 0 : i32
    %c0_i32_1 = arith.constant 0 : i32
    return %c0_i32, %c0_i32_0 : i32, i32
  }
  func.func @transform_28(%arg0: i32) -> (i32, i32, i32) {
    %c0_i32 = arith.constant 0 : i32
    %c0_i32_0 = arith.constant 0 : i32
    %c0_i32_1 = arith.constant 0 : i32
    return %arg0, %c0_i32, %c0_i32_0 : i32, i32, i32
  }
}

</mosaic_0001>

<bundles_post_ra>
// kernel: clip_test_time_tuning_forward.2
= control target key start
LH: loop header
LB: loop body
LE: loop exit
PB: predicated region body
PF: predicated region fallthrough
CT: control target
= control target key end

     0   :  { %s7759_s0 = inlined_call_operand.vmem [shape: f32[5,8,32], index: 0, kind: input, shape index: {}]   ;;  %s7760_s1 = inlined_call_operand.vmem [shape: f32[8,32], index: 1, kind: input, shape index: {}]   ;;  %s7761_s2 = inlined_call_operand.vmem [shape: f32[8,8], index: 2, kind: input, shape index: {}]   ;;  %s7762_s3 = inlined_call_operand.vmem [shape: f32[8,32,8], index: 3, kind: input, shape index: {}]   ;;  %s7763_s4 = inlined_call_operand.vmem [shape: f32[8,32,8], index: 4, kind: input, shape index: {}]   ;;  %s7764_s5 = inlined_call_operand.vmem [shape: f32[8,32,8], index: 5, kind: input, shape index: {}]   ;;  %s7765_s6 = inlined_call_operand.vmem [shape: f32[8,1,8], index: 6, kind: input, shape index: {}]   ;;  %s7766_s7 = inlined_call_operand.vmem [shape: f32[8,1,8], index: 7, kind: input, shape index: {}]   ;;  %s7767_s8 = inlined_call_operand.vmem [shape: f32[8,1,8], index: 8, kind: input, shape index: {}]   ;;  %s7768_s9 = inlined_call_operand.vmem [shape: f32[8,8,32], index: 9, kind: input, shape index: {}]   ;;  %s7769_s10 = inlined_call_operand.vmem [shape: f32[2,1,32], index: 10, kind: input, shape index: {}]   ;;  %s7770_s11 = inlined_call_operand.vmem [shape: f32[2,1,32], index: 11, kind: input, shape index: {}]   ;;  %s7771_s12 = inlined_call_operand.vmem [shape: f32[2,1,32], index: 12, kind: input, shape index: {}]   ;;  %s7772_s13 = inlined_call_operand.vmem [shape: f32[2,1,32], index: 13, kind: input, shape index: {}]   ;;  %s7773_s14 = inlined_call_operand.vmem [shape: f32[2,1,32], index: 14, kind: input, shape index: {}]   ;;  %s7774_s15 = inlined_call_operand.vmem [shape: f32[2,32,128], index: 15, kind: input, shape index: {}]   ;;  %s7775_s16 = inlined_call_operand.vmem [shape: f32[2,1,128], index: 16, kind: input, shape index: {}]   ;;  %s7776_s17 = inlined_call_operand.vmem [shape: f32[2,128,32], index: 17, kind: input, shape index: {}]   ;;  %s7777_s18 = inlined_call_operand.vmem [shape: f32[2,1,32], index: 18, kind: input, shape index: {}]   ;;  %s7778_s19 = inlined_call_operand.vmem [shape: f32[1,32], index: 19, kind: input, shape index: {}]   ;;  %s7779_s20 = inlined_call_operand.vmem [shape: f32[1,32], index: 20, kind: input, shape index: {}]   ;;  %s7780_s21 = inlined_call_operand.vmem [shape: f32[32,32], index: 21, kind: input, shape index: {}]   ;;  %s7781_s22 = inlined_call_operand.vmem [shape: s32[5], index: 22, kind: input, shape index: {}]   ;;  %s7782_s23 = inlined_call_operand.vmem [shape: f32[5,1,32], index: 23, kind: output, shape index: {}]  }
   0x1   :  { %7791 = sst [smem:[#allocation7_spill]] %s7759_s0 }
   0x2   :  { %7792 = sst [smem:[#allocation8_spill]] %s7760_s1 }
   0x3   :  { %7793 = sst [smem:[#allocation9_spill]] %s7761_s2 }
   0x4   :  { %7794 = sst [smem:[#allocation10_spill]] %s7762_s3 }
   0x5   :  { %7795 = sst [smem:[#allocation11_spill]] %s7763_s4 }
   0x6   :  { %7796 = sst [smem:[#allocation12_spill]] %s7764_s5 }
   0x7   :  { %7797 = sst [smem:[#allocation13_spill]] %s7765_s6 }
   0x8   :  { %7798 = sst [smem:[#allocation14_spill]] %s7766_s7 }
   0x9   :  { %7799 = sst [smem:[#allocation15_spill]] %s7781_s22 }
   0xa   :  { %7800 = sst [smem:[#allocation16_spill]] %s7782_s23 }
   0xb   :  { %28 = vsyncpa [#allocation3], 0  ;;  %s6786_s4 = smov 0  }
   0xc LB: > { %7801 = sst [smem:[#allocation5_spill]] %s6660_s4  ;;  %s6792_s30 = sadd.s32 4294967295, %s6660_s4   ;;  %s6660_s4 = sphi %s6786_s4, %s34_s4  }
   0xd   : > { %p5389_p0 = scmp.ge.s32.totalorder %s6660_s4, 1  ;;  %p553_p1 = scmp.lt.s32.totalorder %s6660_s4, 6 }
   0xe   : > { %s7802_s22 = sld [smem:[#allocation15_spill]]  ;;  %p6568_p3 = scmp.eq.s32.totalorder %s6792_s30, 0 }
   0xf   : > { %p6799_p2 = pnand %p5389_p0, %p553_p1 }
  0x11   : > { %p6564_p4 = pneg %p6799_p2 }
  0x13   : > { %p6565_p5 = pnand %p6568_p3, %p6564_p4 }
  0x14   : > { %s629_s5 = sshll.u32 %s7802_s22, 4  ;;  %s630_s5 = int_to_ptr.vmem [resolvable:$true] %s629_s5 }
  0x15   : > { %s6635_s26 = scalar_lea.vmem %s630_s5, 16  ;;  %p6637_p7 = pneg %p6565_p5 }
  0x16   : > { %p6636_p6 = scmp.ne.s32.totalorder %s630_s5, %s6635_s26  ;;  %p6643_p10 = scmp.lt.s32.totalorder %s630_s5, %s630_s5 }
  0x17   : > { %p6644_p11 = scmp.lt.s32.totalorder %s6635_s26, %s6635_s26 }
  0x18   : > { %p6638_p8 = pnand %p6637_p7, %p6636_p6 }
  0x19   : > { %p6645_p12 = por %p6644_p11, %p6643_p10 }
  0x1a   : > { %p6639_p9 = pneg %p6638_p8 }
  0x1c   : > { %p6646_p13 = pnand %p6645_p12, %p6639_p9 }
  0x1e   : > { %6649 = shalt.err (!%p6646_p13)
}
  0x1f   : > { %s6662_s2 = smov [#allocation2]   ;;  %649 = sbr.rel (%p6799_p2) target bundleno = 9629 (0x259d), region = 112 }
  0x20   : > { %6567 = dma.vmem_to_smem (!%p6565_p5), %s630_s5, 16, %s6662_s2, [#allocation3]  }
  0x26   : > { %6655 = dma.done.wait (%p6568_p3), [#allocation3], 16  }
  0x27   : > { %6657 = vsyncadd (%p6568_p3), [#allocation3], 4294967280 }
  0x28   : > { %655 = sfence }
  0x29   : > { %p711_p0 = scmp.lt.s32.totalorder %s6792_s30, 4  ;;  %s7805_s29 = sld [smem:[#allocation8_spill]]  ;;  %vm724_vm0 = vcmask 261120   ;;  %v6663_v12 = vmov 0.0|0.0   ;;  %vm6664_vm1 = vmmov 0   ;;  %v6665_v16 = vmov 0.0  }
  0x2a   : > { %s7806_s24 = sld [smem:[#allocation7_spill]]  ;;  %s7807_s26 = sld [smem:[#allocation10_spill]]  ;;  %6350 = vmatprep.subr.bf16.mxu0 %v6663_v12  ;;  %5866 = vmatprep.mubr.msk.f32.mxu0 %vm6664_vm1, %v6665_v16  ;;  %v5395_v21 = vld [vmem:[%s7770_s11] ss:$0 sm:$0xff]  ;;  %vm999_vm2 = vcmask 64512   ;;  %vm5320_vm4 = vcmask 253952  }
  0x2b   : > { %s6816_s6 = scalar_select %p711_p0, %s6792_s30, 4  ;;  %5891 = vmatprep.subr.mxu1 %v6665_v16  ;;  %5893 = vmatprep.mubr.msk.f32.mxu1 %vm6664_vm1, %v6665_v16  ;;  %v5396_v25 = vld [vmem:[%s7771_s12] ss:$0 sm:$0xff] }
  0x2c   : > { %s7808_s1 = sld [smem:[#allocation11_spill]]  ;;  %s7809_s2 = sld [smem:[#allocation12_spill]]  ;;  %v5401_v58 = vld [vmem:[%s7767_s8] ss:$0 sm:$0xff] }
  0x2d   : > { %7804 = sst [smem:[#allocation6_spill]] %s6816_s6  ;;  %s5394_s27 = sshll.u32 %s6816_s6, 3 }
  0x2e   : > { %s7812_s0 = sld [smem:[#allocation9_spill]]  ;;  %s7813_s7 = sld [smem:[#allocation6_spill]] }
  0x2f   : > { %v719_v0 = vld [vmem:[%s7805_s29] sm:$0xff]  ;;  %s7814_s3 = sld [smem:[#allocation16_spill]] }
  0x30   : > { %s714_s25 = scalar_lea.vmem %s7806_s24, %s5394_s27  ;;  %v753_v9 = vld [vmem:[%s7807_s26] sm:$0xff]  ;;  %v754_v10 = vld [vmem:[%s7807_s26 + $0x8] sm:$0xff]  ;;  %v755_v13 = vld [vmem:[%s7807_s26 + $0x10] sm:$0xff]  ;;  %s7810_s24 = sld [smem:[#allocation14_spill]] }
  0x31   : > { %v718_v1 = vld [vmem:[%s714_s25] sm:$0xff]  ;;  %v6351_v11 = vpack.c.bf16 %v754_v10, %v753_v9  ;;  %v756_v14 = vld [vmem:[%s7807_s26 + $0x18] sm:$0xff]  ;;  %v5407_v39 = vld [vmem:[%s7807_s26 + $0x28] sm:$0xff]  ;;  %s7811_s27 = sld [smem:[#allocation13_spill]] }
  0x32   : > { %v6825_v2 = vadd.f32 %v719_v0, %v718_v1  ;;  %v6354_v15 = vpack.c.bf16 %v756_v14, %v755_v13  ;;  %v837_v23 = vld [vmem:[%s7808_s1] sm:$0xff]  ;;  %v838_v24 = vld [vmem:[%s7808_s1 + $0x8] sm:$0xff]  ;;  %v839_v29 = vld [vmem:[%s7808_s1 + $0x10] sm:$0xff]  ;;  %s5162_s25 = sld [smem:[#allocation2 + %s6792_s30]] }
  0x33   : > { %6352 = vmatpush3.bf16.msra.mxu0 %v6351_v11  ;;  %v6357_v27 = vpack.c.bf16 %v838_v24, %v837_v23  ;;  %v840_v30 = vld [vmem:[%s7808_s1 + $0x18] sm:$0xff]  ;;  %v918_v32 = vld [vmem:[%s7809_s2] sm:$0xff]  ;;  %v919_v33 = vld [vmem:[%s7809_s2 + $0x8] sm:$0xff] }
  0x34   : > { %v725_v3 = vsel %vm724_vm0, %v6825_v2, 0.0  ;;  %6353 = vmatprep.subr.bf16.mxu0 %v6663_v12  ;;  %v6360_v31 = vpack.c.bf16 %v840_v30, %v839_v29  ;;  %v6363_v34 = vpack.c.bf16 %v919_v33, %v918_v32  ;;  %v920_v35 = vld [vmem:[%s7809_s2 + $0x10] sm:$0xff]  ;;  %v921_v36 = vld [vmem:[%s7809_s2 + $0x18] sm:$0xff]  ;;  %v5406_v38 = vld [vmem:[%s7807_s26 + $0x20] sm:$0xff] }
  0x35   : > { %726 = vadd.xlane.f32.xlu0 %v725_v3  ;;  %v6366_v37 = vpack.c.bf16 %v921_v36, %v920_v35  ;;  %v6369_v40 = vpack.c.bf16 %v5407_v39, %v5406_v38  ;;  %v5408_v41 = vld [vmem:[%s7807_s26 + $0x30] sm:$0xff]  ;;  %v5409_v42 = vld [vmem:[%s7807_s26 + $0x38] sm:$0xff]  ;;  %v5420_v44 = vld [vmem:[%s7809_s2 + $0x20] sm:$0xff]  ;;  %s717_s22 = scalar_lea.vmem %s7814_s3, %s7813_s7 }
  0x36   : > { %v6372_v43 = vpack.c.bf16 %v5409_v42, %v5408_v41  ;;  %v5421_v45 = vld [vmem:[%s7809_s2 + $0x28] sm:$0xff]  ;;  %v5422_v47 = vld [vmem:[%s7809_s2 + $0x30] sm:$0xff]  ;;  %v5423_v48 = vld [vmem:[%s7809_s2 + $0x38] sm:$0xff] }
  0x37   : > { %6355 = vmatpush3.bf16.msra.mxu0 %v6354_v15  ;;  %v6381_v46 = vpack.c.bf16 %v5421_v45, %v5420_v44  ;;  %v6384_v49 = vpack.c.bf16 %v5423_v48, %v5422_v47  ;;  %v5399_v52 = vld [vmem:[%s7810_s24] ss:$0 sm:$0xff]  ;;  %v5414_v14 = vld [vmem:[%s7808_s1 + $0x28] sm:$0xff]  ;;  %v5418_v24 = vld [vmem:[%s7810_s24 + $0x1] ss:$0 sm:$0xff] }
  0x38   : > { %6356 = vmatprep.subr.bf16.mxu0 %v6663_v12  ;;  %v5397_v54 = vld [vmem:[%s7811_s27] ss:$0 sm:$0xff]  ;;  %v5425_v30 = vld [vmem:[%s7767_s8 + $0x1] ss:$0 sm:$0xff]  ;;  %v5441_v44 = vld [vmem:[%s7808_s1 + $0x48] sm:$0xff] }
  0x39   : > { %v5413_v13 = vld [vmem:[%s7808_s1 + $0x20] sm:$0xff] }
  0x3a   : > { %v6375_v15 = vpack.c.bf16 %v5414_v14, %v5413_v13  ;;  %v1162_v42 = vld [vmem:[%s7768_s9] sm:$0xff] }
  0xc2   : > { %v727_v4 = vpop.xlane.xlu0 %726 }
  0xc3   : > { %v729_v5 = vmul.f32 0.03125, %v727_v4  ;;  %v6953_v4 = vld [vmem:[%s7812_s0] sm:$0xff] }
  0xc5   : > { %v730_v6 = vsub.f32 %v6825_v2, %v729_v5 }
  0xc7   : > { %v731_v7 = vmul.f32 %v730_v6, %v730_v6 }
  0xc9   : > { %v732_v8 = vsel %vm724_vm0, %v731_v7, 0.0 }
  0xca   : > { %733 = vadd.xlane.f32.xlu0 %v732_v8 }
 0x157   : > { %v734_v17 = vpop.xlane.xlu0 %733 }
 0x158   : > { %v735_v18 = vmul.f32 0.03125, %v734_v17  ;;  %v5415_v17 = vld [vmem:[%s7808_s1 + $0x30] sm:$0xff] }
 0x15a   : > { %v736_v19 = vadd.f32 1e-05, %v735_v18  ;;  %v5416_v18 = vld [vmem:[%s7808_s1 + $0x38] sm:$0xff] }
 0x15c   : > { %6582 = vrsqrt.f32 %v736_v19 }
 0x166   : > { %v6583_v20 = vpop.eup %6582 }
 0x167   : > { %v738_v22 = vmul.f32 %v6583_v20, %v730_v6 }
 0x169   : > { %v745_v26 = vmul.f32 %v5395_v21, %v738_v22  ;;  %v6378_v21 = vpack.c.bf16 %v5416_v18, %v5415_v17 }
 0x16b   : > { %v6863_v28 = vadd.f32 %v5396_v25, %v745_v26  ;;  %v5411_v26 = vld [vmem:[%s7811_s27 + $0x1] ss:$0 sm:$0xff] }
 0x16d   : > { %5867 = vmatmul.mubr.msk.f32.vlgmr.msra.gmra.mrb[0].mxu0 %vm724_vm0, %v6863_v28 }
 0x16e   : > { %6358 = vmatpush3.bf16.msra.mxu0 %v6357_v27  ;;  %5877 = vmatprep.mubr.msk.f32.mxu0 %vm6664_vm1, %v6665_v16 }
 0x16f   : > { %6359 = vmatprep.subr.bf16.mxu0 %v6663_v12 }
 0x172   : > { %6361 = vmatpush3.bf16.msra.mxu0 %v6360_v31 }
 0x173   : > { %6362 = vmatprep.subr.bf16.mxu0 %v6663_v12 }
 0x175   : > { %5878 = vmatmul.mubr.msk.f32.vlgmr.msra.gmra.mrb[2].mxu0 %vm724_vm0, %v6863_v28 }
 0x176   : > { %6364 = vmatpush3.bf16.msra.mxu0 %v6363_v34  ;;  %5888 = vmatprep.mubr.msk.f32.mxu0 %vm6664_vm1, %v6665_v16 }
 0x177   : > { %6365 = vmatprep.subr.bf16.mxu0 %v6663_v12 }
 0x17a   : > { %6367 = vmatpush3.bf16.msra.mxu0 %v6366_v37 }
 0x17b   : > { %6368 = vmatprep.subr.bf16.mxu0 %v6663_v12 }
 0x17d   : > { %5889 = vmatmul.mubr.msk.f32.vlgmr.msra.gmra.mrb[4].mxu0 %vm724_vm0, %v6863_v28 }
 0x17e   : > { %6370 = vmatpush3.bf16.msra.mxu0 %v6369_v40  ;;  %5909 = vmatprep.mubr.msk.f32.mxu0 %vm6664_vm1, %v6665_v16 }
 0x17f   : > { %6371 = vmatprep.subr.bf16.mxu0 %v6663_v12 }
 0x182   : > { %6373 = vmatpush3.bf16.msra.mxu0 %v6372_v43  ;;  %v5440_v43 = vld [vmem:[%s7808_s1 + $0x40] sm:$0xff] }
 0x183   : > { %6380 = vmatprep.subr.bf16.mxu0 %v6663_v12  ;;  %v6393_v48 = vpack.c.bf16 %v5441_v44, %v5440_v43 }
 0x185   : > { %5910 = vmatmul.mubr.msk.f32.vlgmr.msra.gmra.mrb[6].mxu0 %vm724_vm0, %v6863_v28 }
 0x186   : > { %6382 = vmatpush3.bf16.msra.mxu0 %v6381_v46  ;;  %5931 = vmatprep.mubr.msk.f32.mxu0 %vm6664_vm1, %v6665_v16 }
 0x187   : > { %6383 = vmatprep.subr.bf16.mxu0 %v6663_v12 }
 0x18a   : > { %6385 = vmatpush3.bf16.msra.mxu0 %v6384_v49 }
 0x18b   : > { %5944 = vmatprep.subr.mxu0 %v6665_v16 }
 0x18d   : > { %5932 = vmatmul.mubr.msk.f32.vlgmr.msra.gmra.mrb[8].mxu0 %vm724_vm0, %v6863_v28 }
 0x18e   : > { %5946 = vmatprep.mubr.msk.f32.mxu0 %vm6664_vm1, %v6665_v16 }
 0x240   : > { %v833_v50 = vpop.f32.mrb[0].mxu0 }
 0x241   : > { %v5868_v51 = vpop.f32.mrb[1].mxu0  ;;  %v834_v57 = vadd.f32 %v5397_v54, %v833_v50  ;;  %v5442_v50 = vld [vmem:[%s7808_s1 + $0x50] sm:$0xff] }
 0x242   : > { %v5443_v51 = vld [vmem:[%s7808_s1 + $0x58] sm:$0xff] }
 0x248   : > { %v914_v53 = vpop.f32.mrb[2].mxu0 }
 0x249   : > { %v915_v55 = vadd.f32 %v5399_v52, %v914_v53  ;;  %v5879_v56 = vpop.f32.mrb[3].mxu0  ;;  %v6396_v52 = vpack.c.bf16 %v5443_v51, %v5442_v50  ;;  %v5430_v53 = vld [vmem:[%s7768_s9 + $0x8] sm:$0xff]  ;;  %v5457_v51 = vld [vmem:[%s7768_s9 + $0x10] sm:$0xff] }
 0x24a   : > { %5945 = vmatpush3.msra.mxu0 %v5430_v53  ;;  %v5434_v56 = vld [vmem:[%s7807_s26 + $0x48] sm:$0xff]  ;;  %v5466_v53 = vld [vmem:[%s7808_s1 + $0x60] sm:$0xff] }
 0x24b   : > { %5892 = vmatpush3.xpose.msk.msra.mxu1 %vm999_vm2, %v915_v55  ;;  %6386 = vmatprep.subr.bf16.mxu0 %v6663_v12  ;;  %v5433_v55 = vld [vmem:[%s7807_s26 + $0x40] sm:$0xff] }
 0x24c   : > { %5896 = vmatprep.subr.mxu1 %v6665_v16 }
 0x24e   : > { %5894 = vmatmul.mubr.msk.f32.vlgmr.msra.gmra.mrb[0].mxu1 %vm999_vm2, %v834_v57 }
 0x24f   : > { %5898 = vmatprep.mubr.msk.f32.mxu1 %vm6664_vm1, %v6665_v16 }
 0x250   : > { %v995_v59 = vpop.f32.mrb[4].mxu0 }
 0x251   : > { %v996_v60 = vadd.f32 %v5401_v58, %v995_v59  ;;  %v5890_v61 = vpop.f32.mrb[5].mxu0  ;;  %v6387_v59 = vpack.c.bf16 %v5434_v56, %v5433_v55 }
 0x253   : > { %5897 = vmatpush3.msra.mxu1 %v996_v60 }
 0x254   : > { %6374 = vmatprep.subr.bf16.mxu1 %v6663_v12 }
 0x258   : > { %v1242_v62 = vpop.f32.mrb[6].mxu0 }
 0x259   : > { %v5911_v63 = vpop.f32.mrb[7].mxu0  ;;  %v1243_v31 = vadd.f32 %v5411_v26, %v1242_v62  ;;  %v5435_v62 = vld [vmem:[%s7807_s26 + $0x50] sm:$0xff] }
 0x25a   : > { %v5436_v63 = vld [vmem:[%s7807_s26 + $0x58] sm:$0xff] }
 0x260   : > { %v1408_v0 = vpop.f32.mrb[8].mxu0 }
 0x261   : > { %v5933_v1 = vpop.f32.mrb[9].mxu0  ;;  %v1409_v32 = vadd.f32 %v5425_v30, %v1408_v0 }
 0x262   : > { %v6390_v1 = vpack.c.bf16 %v5436_v63, %v5435_v62 }
 0x321   : > { %v1072_v3 = vpop.f32.mrb[0].mxu1 }
 0x322   : > { %v1076_v5 = vmul.f32 0.35355338, %v1072_v3  ;;  %v5895_v6 = vpop.f32.mrb[1].mxu1 }
 0x323   : > { %v5448_v6 = vld [vmem:[%s7809_s2 + $0x48] sm:$0xff] }
 0x324   : > { %v1077_v7 = vadd.f32 %v1076_v5, %v6953_v4  ;;  %v5447_v5 = vld [vmem:[%s7809_s2 + $0x40] sm:$0xff] }
 0x326   : > { %v1078_v8 = vsel %vm999_vm2, %v1077_v7, -inf }
 0x327   : > { %1079 = vmax.xlane.f32.xlu1 %v1078_v8  ;;  %v5449_v8 = vld [vmem:[%s7809_s2 + $0x50] sm:$0xff] }
 0x3b4   : > { %v1080_v9 = vpop.xlane.xlu1 %1079 }
 0x3b5   : > { %v1081_v10 = vsub.f32 %v1077_v7, %v1080_v9  ;;  %v6399_v7 = vpack.c.bf16 %v5448_v6, %v5447_v5  ;;  %v5450_v9 = vld [vmem:[%s7809_s2 + $0x58] sm:$0xff] }
 0x3b6   : > { %v6402_v13 = vpack.c.bf16 %v5450_v9, %v5449_v8  ;;  %v5471_v8 = vld [vmem:[%s7810_s24 + $0x3] ss:$0 sm:$0xff] }
 0x3b7   : > { %v1082_v11 = vmul.f32 1.442695, %v1081_v10  ;;  %v5445_v10 = vld [vmem:[%s7810_s24 + $0x2] ss:$0 sm:$0xff] }
 0x3b9   : > { %6584 = vpow2.f32 %v1082_v11 }
 0x3c3   : > { %v6585_v19 = vpop.eup %6584 }
 0x3c4   : > { %5899 = vmatmul.mubr.msk.f32.vlgmr.msra.gmra.mrb[2].mxu1 %vm999_vm2, %v6585_v19  ;;  %v1084_v20 = vsel %vm999_vm2, %v6585_v19, 0.0 }
 0x3c5   : > { %6376 = vmatpush3.bf16.msra.mxu1 %v6375_v15  ;;  %1085 = vadd.xlane.f32.xlu0 %v1084_v20  ;;  %v5438_v20 = vld [vmem:[%s7811_s27 + $0x2] ss:$0 sm:$0xff] }
 0x3c6   : > { %6377 = vmatprep.subr.bf16.mxu1 %v6663_v12  ;;  %5920 = vmatprep.mubr.msk.f32.mxu1 %vm6664_vm1, %v6665_v16 }
 0x3c9   : > { %6379 = vmatpush3.bf16.msra.mxu1 %v6378_v21 }
 0x3ca   : > { %5934 = vmatprep.subr.mxu1 %v6665_v16 }
 0x3cc   : > { %5921 = vmatmul.mubr.msk.f32.vlgmr.msra.gmra.mrb[4].mxu1 %vm724_vm0, %v6863_v28 }
 0x3cd   : > { %5936 = vmatprep.mubr.msk.f32.mxu1 %vm6664_vm1, %v6665_v16 }
 0x452   : > { %v1086_v41 = vpop.xlane.xlu0 %1085 }
 0x497   : > { %v1157_v22 = vpop.f32.mrb[2].mxu1 }
 0x498   : > { %v5900_v23 = vpop.f32.mrb[3].mxu1 }
 0x49f   : > { %v1325_v25 = vpop.f32.mrb[4].mxu1 }
 0x4a0   : > { %v1326_v27 = vadd.f32 %v5418_v24, %v1325_v25  ;;  %v5922_v29 = vpop.f32.mrb[5].mxu1  ;;  %v5452_v24 = vld [vmem:[%s7767_s8 + $0x2] ss:$0 sm:$0xff] }
 0x4a2   : > { %5935 = vmatpush3.xpose.msk.msra.mxu1 %vm999_vm2, %v1326_v27 }
 0x4a3   : > { %5939 = vmatprep.subr.mxu1 %v6665_v16 }
 0x4a5   : > { %5937 = vmatmul.mubr.msk.f32.vlgmr.msra.gmra.mrb[6].mxu1 %vm999_vm2, %v1243_v31 }
 0x4a6   : > { %5940 = vmatpush3.msra.mxu1 %v1409_v32  ;;  %5941 = vmatprep.mubr.msk.f32.mxu1 %vm6664_vm1, %v6665_v16 }
 0x4a7   : > { %5949 = vmatprep.subr.mxu1 %v6665_v16 }
 0x578   : > { %v1484_v33 = vpop.f32.mrb[6].mxu1 }
 0x579   : > { %v1488_v34 = vmul.f32 0.35355338, %v1484_v33  ;;  %v5938_v35 = vpop.f32.mrb[7].mxu1 }
 0x57b   : > { %v1489_v36 = vadd.f32 %v1488_v34, %v6953_v4 }
 0x57d   : > { %v1490_v37 = vsel %vm999_vm2, %v1489_v36, -inf }
 0x57e   : > { %1491 = vmax.xlane.f32.xlu1 %v1490_v37  ;;  %v5459_v37 = vld [vmem:[%s7807_s26 + $0x60] sm:$0xff] }
 0x60b   : > { %v1492_v38 = vpop.xlane.xlu1 %1491 }
 0x60c   : > { %v1493_v39 = vsub.f32 %v1489_v36, %v1492_v38  ;;  %v5460_v38 = vld [vmem:[%s7807_s26 + $0x68] sm:$0xff] }
 0x60e   : > { %v1494_v40 = vmul.f32 1.442695, %v1493_v39  ;;  %v6405_v39 = vpack.c.bf16 %v5460_v38, %v5459_v37  ;;  %v5485_v37 = vld [vmem:[%s7769_s10] ss:$0 sm:$0xff] }
 0x610   : > { %6586 = vpow2.f32 %v1494_v40  ;;  %v5461_v40 = vld [vmem:[%s7807_s26 + $0x70] sm:$0xff] }
 0x611   : > { %6588 = vrcp.f32 %v1086_v41  ;;  %v5462_v41 = vld [vmem:[%s7807_s26 + $0x78] sm:$0xff] }
 0x612   : > { %v6408_v44 = vpack.c.bf16 %v5462_v41, %v5461_v40 }
 0x61a   : > { %v6587_v45 = vpop.eup %6586 }
 0x61b   : > { %5942 = vmatmul.mubr.msk.f32.vlgmr.msra.gmra.mrb[8].mxu1 %vm999_vm2, %v6587_v45  ;;  %v1496_v46 = vsel %vm999_vm2, %v6587_v45, 0.0  ;;  %v6589_v47 = vpop.eup %6588  ;;  %v5473_v45 = vld [vmem:[%s7809_s2 + $0x60] sm:$0xff] }
 0x61c   : > { %1497 = vadd.xlane.f32.xlu1 %v1496_v46  ;;  %5950 = vmatpush3.msra.mxu1 %v1162_v42  ;;  %v1161_v49 = vmul.f32 %v6589_v47, %v1157_v22  ;;  %v5474_v46 = vld [vmem:[%s7809_s2 + $0x68] sm:$0xff] }
 0x61d   : > { %5951 = vmatprep.mubr.msk.f32.mxu1 %vm6664_vm1, %v6665_v16  ;;  %6392 = vmatprep.subr.bf16.mxu1 %v6663_v12  ;;  %v6417_v47 = vpack.c.bf16 %v5474_v46, %v5473_v45  ;;  %v2734_v46 = vld [vmem:[%s7774_s15] sm:$0xff] }
 0x61f   : > { %5952 = vmatmul.mubr.msk.f32.vlgmr.msra.gmra.mrb[10].mxu1 %vm999_vm2, %v1161_v49  ;;  %v5476_v49 = vld [vmem:[%s7809_s2 + $0x78] sm:$0xff] }
 0x620   : > { %6394 = vmatpush3.bf16.msra.mxu1 %v6393_v48  ;;  %5973 = vmatprep.mubr.msk.f32.mxu1 %vm6664_vm1, %v6665_v16  ;;  %v5475_v48 = vld [vmem:[%s7809_s2 + $0x70] sm:$0xff] }
 0x621   : > { %6395 = vmatprep.subr.bf16.mxu1 %v6663_v12  ;;  %v6420_v50 = vpack.c.bf16 %v5476_v49, %v5475_v48  ;;  %v2736_v48 = vld [vmem:[%s7774_s15 + $0x10] sm:$0xff]  ;;  %v2737_v49 = vld [vmem:[%s7774_s15 + $0x18] sm:$0xff] }
 0x624   : > { %6397 = vmatpush3.bf16.msra.mxu1 %v6396_v52 }
 0x625   : > { %5987 = vmatprep.subr.mxu1 %v6665_v16 }
 0x627   : > { %5974 = vmatmul.mubr.msk.f32.vlgmr.msra.gmra.mrb[12].mxu1 %vm724_vm0, %v6863_v28 }
 0x628   : > { %5989 = vmatprep.mubr.msk.f32.mxu1 %vm6664_vm1, %v6665_v16 }
 0x6a9   : > { %v1498_v54 = vpop.xlane.xlu1 %1497 }
 0x6aa   : > { %6590 = vrcp.f32 %v1498_v54  ;;  %v5467_v54 = vld [vmem:[%s7808_s1 + $0x68] sm:$0xff] }
 0x6b4   : > { %v6591_v57 = vpop.eup %6590 }
 0x6ee   : > { %v1569_v58 = vpop.f32.mrb[8].mxu1 }
 0x6ef   : > { %v1573_v60 = vmul.f32 %v6591_v57, %v1569_v58  ;;  %v5943_v61 = vpop.f32.mrb[9].mxu1  ;;  %v6411_v57 = vpack.c.bf16 %v5467_v54, %v5466_v53 }
 0x6f0   : > { %v5469_v61 = vld [vmem:[%s7808_s1 + $0x78] sm:$0xff] }
 0x6f1   : > { %5947 = vmatmul.mubr.msk.f32.vlgmr.msra.gmra.mrb[10].mxu0 %vm999_vm2, %v1573_v60  ;;  %v5468_v60 = vld [vmem:[%s7808_s1 + $0x70] sm:$0xff] }
 0x6f2   : > { %6388 = vmatpush3.bf16.msra.mxu0 %v6387_v59  ;;  %v1718_v0 = vpop.f32.mrb[10].mxu1  ;;  %5962 = vmatprep.mubr.msk.f32.mxu0 %vm6664_vm1, %v6665_v16  ;;  %v6414_v62 = vpack.c.bf16 %v5469_v61, %v5468_v60  ;;  %v2826_v60 = vld [vmem:[%s7776_s17] sm:$0xff]  ;;  %v2827_v61 = vld [vmem:[%s7776_s17 + $0x8] sm:$0xff] }
 0x6f3   : > { %v5953_v3 = vpop.f32.mrb[11].mxu1  ;;  %6389 = vmatprep.subr.bf16.mxu0 %v6663_v12 }
 0x6f6   : > { %6391 = vmatpush3.bf16.msra.mxu0 %v6390_v1 }
 0x6f7   : > { %6398 = vmatprep.subr.bf16.mxu0 %v6663_v12 }
 0x6f9   : > { %5963 = vmatmul.mubr.msk.f32.vlgmr.msra.gmra.mrb[12].mxu0 %vm724_vm0, %v6863_v28 }
 0x6fa   : > { %v1884_v11 = vpop.f32.mrb[12].mxu1  ;;  %6400 = vmatpush3.bf16.msra.mxu0 %v6399_v7  ;;  %5984 = vmatprep.mubr.msk.f32.mxu0 %vm6664_vm1, %v6665_v16 }
 0x6fb   : > { %v1885_v14 = vadd.f32 %v5445_v10, %v1884_v11  ;;  %v5975_v15 = vpop.f32.mrb[13].mxu1  ;;  %6401 = vmatprep.subr.bf16.mxu0 %v6663_v12  ;;  %v5464_v10 = vld [vmem:[%s7811_s27 + $0x3] ss:$0 sm:$0xff] }
 0x6fd   : > { %5988 = vmatpush3.xpose.msk.msra.mxu1 %vm999_vm2, %v1885_v14 }
 0x6fe   : > { %6403 = vmatpush3.bf16.msra.mxu0 %v6402_v13  ;;  %5992 = vmatprep.subr.mxu1 %v6665_v16  ;;  %v5478_v13 = vld [vmem:[%s7767_s8 + $0x3] ss:$0 sm:$0xff] }
 0x6ff   : > { %5997 = vmatprep.subr.mxu0 %v6665_v16 }
 0x701   : > { %5985 = vmatmul.mubr.msk.f32.vlgmr.msra.gmra.mrb[14].mxu0 %vm724_vm0, %v6863_v28 }
 0x702   : > { %5999 = vmatprep.mubr.msk.f32.mxu0 %vm6664_vm1, %v6665_v16  ;;  %5998 = vmatpush3.msra.mxu0 %v5457_v51 }
 0x703   : > { %6410 = vmatprep.subr.bf16.mxu0 %v6663_v12 }
 0x7c4   : > { %v1645_v17 = vpop.f32.mrb[10].mxu0 }
 0x7c5   : > { %v7073_v18 = vadd.f32 %v1718_v0, %v1645_v17  ;;  %v5948_v19 = vpop.f32.mrb[11].mxu0 }
 0x7cc   : > { %v1801_v21 = vpop.f32.mrb[12].mxu0 }
 0x7cd   : > { %v1802_v22 = vadd.f32 %v5438_v20, %v1801_v21  ;;  %v5964_v23 = vpop.f32.mrb[13].mxu0 }
 0x7cf   : > { %5990 = vmatmul.mubr.msk.f32.vlgmr.msra.gmra.mrb[14].mxu1 %vm999_vm2, %v1802_v22 }
 0x7d0   : > { %5994 = vmatprep.mubr.msk.f32.mxu1 %vm6664_vm1, %v6665_v16 }
 0x7d4   : > { %v1967_v25 = vpop.f32.mrb[14].mxu0 }
 0x7d5   : > { %v1968_v26 = vadd.f32 %v5452_v24, %v1967_v25  ;;  %v5986_v27 = vpop.f32.mrb[15].mxu0 }
 0x7d6   : > { %v5483_v27 = vld [vmem:[%s7768_s9 + $0x18] sm:$0xff] }
 0x7d7   : > { %5993 = vmatpush3.msra.mxu1 %v1968_v26 }
 0x7d8   : > { %6404 = vmatprep.subr.bf16.mxu1 %v6663_v12 }
 0x8a2   : > { %v2043_v29 = vpop.f32.mrb[14].mxu1 }
 0x8a3   : > { %v2047_v30 = vmul.f32 0.35355338, %v2043_v29  ;;  %v5991_v31 = vpop.f32.mrb[15].mxu1 }
 0x8a5   : > { %v2048_v32 = vadd.f32 %v2047_v30, %v6953_v4 }
 0x8a7   : > { %v2049_v33 = vsel %vm999_vm2, %v2048_v32, -inf }
 0x8a8   : > { %2050 = vmax.xlane.f32.xlu0 %v2049_v33 }
 0x935   : > { %v2051_v34 = vpop.xlane.xlu0 %2050 }
 0x936   : > { %v2052_v35 = vsub.f32 %v2048_v32, %v2051_v34 }
 0x938   : > { %v2053_v36 = vmul.f32 1.442695, %v2052_v35 }
 0x93a   : > { %6592 = vpow2.f32 %v2053_v36 }
 0x944   : > { %v6593_v42 = vpop.eup %6592 }
 0x945   : > { %5995 = vmatmul.mubr.msk.f32.vlgmr.msra.gmra.mrb[16].mxu1 %vm999_vm2, %v6593_v42  ;;  %v2055_v43 = vsel %vm999_vm2, %v6593_v42, 0.0 }
 0x946   : > { %6406 = vmatpush3.bf16.msra.mxu1 %v6405_v39  ;;  %2056 = vadd.xlane.f32.xlu1 %v2055_v43 }
 0x947   : > { %6407 = vmatprep.subr.bf16.mxu1 %v6663_v12  ;;  %6010 = vmatprep.mubr.msk.f32.mxu1 %vm6664_vm1, %v6665_v16 }
 0x94a   : > { %6409 = vmatpush3.bf16.msra.mxu1 %v6408_v44 }
 0x94b   : > { %6416 = vmatprep.subr.bf16.mxu1 %v6663_v12 }
 0x94d   : > { %6011 = vmatmul.mubr.msk.f32.vlgmr.msra.gmra.mrb[18].mxu1 %vm724_vm0, %v6863_v28 }
 0x94e   : > { %6418 = vmatpush3.bf16.msra.mxu1 %v6417_v47  ;;  %6032 = vmatprep.mubr.msk.f32.mxu1 %vm6664_vm1, %v6665_v16 }
 0x94f   : > { %6419 = vmatprep.subr.bf16.mxu1 %v6663_v12 }
 0x952   : > { %6421 = vmatpush3.bf16.msra.mxu1 %v6420_v50  ;;  %v6426_v50 = vpack.c.bf16 %v2737_v49, %v2736_v48  ;;  %v5499_v48 = vld [vmem:[%s7807_s26 + $0x98] sm:$0xff] }
 0x953   : > { %6045 = vmatprep.subr.mxu1 %v6665_v16 }
 0x955   : > { %6033 = vmatmul.mubr.msk.f32.vlgmr.msra.gmra.mrb[20].mxu1 %vm724_vm0, %v6863_v28 }
 0x956   : > { %6047 = vmatprep.mubr.msk.f32.mxu1 %vm6664_vm1, %v6665_v16  ;;  %6046 = vmatpush3.msra.mxu1 %v5483_v27 }
 0x957   : > { %6428 = vmatprep.subr.bf16.mxu1 %v6663_v12 }
 0x9d3   : > { %v2057_v52 = vpop.xlane.xlu1 %2056 }
 0x9d4   : > { %6594 = vrcp.f32 %v2057_v52 }
 0x9de   : > { %v6595_v55 = vpop.eup %6594 }
 0xa18   : > { %v2128_v56 = vpop.f32.mrb[16].mxu1 }
 0xa19   : > { %v2132_v58 = vmul.f32 %v6595_v55, %v2128_v56  ;;  %v5996_v59 = vpop.f32.mrb[17].mxu1  ;;  %v5486_v55 = vld [vmem:[%s7772_s13] ss:$0 sm:$0xff] }
 0xa1b   : > { %6000 = vmatmul.mubr.msk.f32.vlgmr.msra.gmra.mrb[16].mxu0 %vm999_vm2, %v2132_v58 }
 0xa1c   : > { %6412 = vmatpush3.bf16.msra.mxu0 %v6411_v57  ;;  %6021 = vmatprep.mubr.msk.f32.mxu0 %vm6664_vm1, %v6665_v16  ;;  %v5487_v57 = vld [vmem:[%s7773_s14] ss:$0 sm:$0xff] }
 0xa1d   : > { %6413 = vmatprep.subr.bf16.mxu0 %v6663_v12 }
 0xa20   : > { %v2288_v63 = vpop.f32.mrb[18].mxu1  ;;  %6415 = vmatpush3.bf16.msra.mxu0 %v6414_v62  ;;  %v6429_v62 = vpack.c.bf16 %v2827_v61, %v2826_v60 }
 0xa21   : > { %v6012_v0 = vpop.f32.mrb[19].mxu1  ;;  %6035 = vmatprep.subr.mxu0 %v6665_v16  ;;  %v2289_v14 = vadd.f32 %v5464_v10, %v2288_v63  ;;  %v2828_v63 = vld [vmem:[%s7776_s17 + $0x10] sm:$0xff]  ;;  %v2834_v10 = vld [vmem:[%s7776_s17 + $0x40] sm:$0xff] }
 0xa22   : > { %v2829_v0 = vld [vmem:[%s7776_s17 + $0x18] sm:$0xff] }
 0xa23   : > { %6022 = vmatmul.mubr.msk.f32.vlgmr.msra.gmra.mrb[18].mxu0 %vm724_vm0, %v6863_v28 }
 0xa24   : > { %6037 = vmatprep.mubr.msk.f32.mxu0 %vm6664_vm1, %v6665_v16 }
 0xa28   : > { %v2454_v1 = vpop.f32.mrb[20].mxu1 }
 0xa29   : > { %v6034_v3 = vpop.f32.mrb[21].mxu1  ;;  %v2455_v15 = vadd.f32 %v5478_v13, %v2454_v1  ;;  %v6432_v1 = vpack.c.bf16 %v2829_v0, %v2828_v63  ;;  %v2836_v13 = vld [vmem:[%s7776_s17 + $0x50] sm:$0xff]  ;;  %v5506_v63 = vld [vmem:[%s7808_s1 + $0x98] sm:$0xff] }
 0xa2a   : > { %v2830_v3 = vld [vmem:[%s7776_s17 + $0x20] sm:$0xff] }
 0xaee   : > { %v2204_v5 = vpop.f32.mrb[16].mxu0 }
 0xaef   : > { %v2208_v6 = vadd.f32 %v2204_v5, %v7073_v18  ;;  %v6001_v7 = vpop.f32.mrb[17].mxu0  ;;  %v2831_v5 = vld [vmem:[%s7776_s17 + $0x28] sm:$0xff] }
 0xaf0   : > { %v2832_v7 = vld [vmem:[%s7776_s17 + $0x30] sm:$0xff] }
 0xaf6   : > { %v2371_v9 = vpop.f32.mrb[18].mxu0 }
 0xaf7   : > { %v2372_v11 = vadd.f32 %v5471_v8, %v2371_v9  ;;  %v6023_v28 = vpop.f32.mrb[19].mxu0  ;;  %v2833_v8 = vld [vmem:[%s7776_s17 + $0x38] sm:$0xff] }
 0xaf8   : > { %v6438_v9 = vpack.c.bf16 %v2833_v8, %v2832_v7  ;;  %v5513_v7 = vld [vmem:[%s7809_s2 + $0x98] sm:$0xff] }
 0xaf9   : > { %6036 = vmatpush3.xpose.msk.msra.mxu0 %vm999_vm2, %v2372_v11  ;;  %v2835_v11 = vld [vmem:[%s7776_s17 + $0x48] sm:$0xff] }
 0xafa   : > { %6040 = vmatprep.subr.mxu0 %v6665_v16  ;;  %v6441_v28 = vpack.c.bf16 %v2835_v11, %v2834_v10  ;;  %v5508_v11 = vld [vmem:[%s7810_s24 + $0x4] ss:$0 sm:$0xff] }
 0xafc   : > { %6038 = vmatmul.mubr.msk.f32.vlgmr.msra.gmra.mrb[20].mxu0 %vm999_vm2, %v2289_v14  ;;  %v2837_v14 = vld [vmem:[%s7776_s17 + $0x58] sm:$0xff] }
 0xafd   : > { %6041 = vmatpush3.msra.mxu0 %v2455_v15  ;;  %6042 = vmatprep.mubr.msk.f32.mxu0 %vm6664_vm1, %v6665_v16  ;;  %v6444_v15 = vpack.c.bf16 %v2837_v14, %v2836_v13  ;;  %v5521_v13 = vld [vmem:[%s7807_s26 + $0xa0] sm:$0xff]  ;;  %v5522_v14 = vld [vmem:[%s7807_s26 + $0xa8] sm:$0xff] }
 0xafe   : > { %6422 = vmatprep.subr.bf16.mxu0 %v6663_v12 }
 0xbcf   : > { %v2530_v17 = vpop.f32.mrb[20].mxu0 }
 0xbd0   : > { %v2534_v18 = vmul.f32 0.35355338, %v2530_v17  ;;  %v6039_v19 = vpop.f32.mrb[21].mxu0  ;;  %v2838_v17 = vld [vmem:[%s7776_s17 + $0x60] sm:$0xff] }
 0xbd2   : > { %v2535_v20 = vadd.f32 %v2534_v18, %v6953_v4  ;;  %v2839_v18 = vld [vmem:[%s7776_s17 + $0x68] sm:$0xff] }
 0xbd3   : > { %v6447_v19 = vpack.c.bf16 %v2839_v18, %v2838_v17 }
 0xbd4   : > { %v2536_v21 = vsel %vm999_vm2, %v2535_v20, -inf }
 0xbd5   : > { %2537 = vmax.xlane.f32.xlu0 %v2536_v21  ;;  %v2841_v21 = vld [vmem:[%s7776_s17 + $0x78] sm:$0xff] }
 0xc62   : > { %v2538_v22 = vpop.xlane.xlu0 %2537 }
 0xc63   : > { %v2539_v23 = vsub.f32 %v2535_v20, %v2538_v22  ;;  %v2840_v20 = vld [vmem:[%s7776_s17 + $0x70] sm:$0xff] }
 0xc64   : > { %v6450_v22 = vpack.c.bf16 %v2841_v21, %v2840_v20  ;;  %v5523_v21 = vld [vmem:[%s7807_s26 + $0xb0] sm:$0xff] }
 0xc65   : > { %v2540_v24 = vmul.f32 1.442695, %v2539_v23  ;;  %v5488_v23 = vld [vmem:[%s7775_s16] ss:$0 sm:$0xff] }
 0xc67   : > { %6596 = vpow2.f32 %v2540_v24 }
 0xc71   : > { %v6597_v25 = vpop.eup %6596 }
 0xc72   : > { %6043 = vmatmul.mubr.msk.f32.vlgmr.msra.gmra.mrb[22].mxu0 %vm999_vm2, %v6597_v25  ;;  %v2542_v26 = vsel %vm999_vm2, %v6597_v25, 0.0 }
 0xc73   : > { %2543 = vadd.xlane.f32.xlu1 %v2542_v26  ;;  %6058 = vmatprep.mubr.msk.f32.mxu0 %vm6664_vm1, %v6665_v16 }
 0xd00   : > { %v2544_v29 = vpop.xlane.xlu1 %2543 }
 0xd01   : > { %6598 = vrcp.f32 %v2544_v29 }
 0xd0b   : > { %v6599_v30 = vpop.eup %6598 }
 0xd45   : > { %v2615_v31 = vpop.f32.mrb[22].mxu0 }
 0xd46   : > { %v2619_v32 = vmul.f32 %v6599_v30, %v2615_v31  ;;  %v6044_v33 = vpop.f32.mrb[23].mxu0 }
 0xd48   : > { %6048 = vmatmul.mubr.msk.f32.vlgmr.msra.gmra.mrb[22].mxu1 %vm999_vm2, %v2619_v32 }
 0xd49   : > { %6093 = vmatprep.mubr.msk.f32.mxu1 %vm6664_vm1, %v6665_v16  ;;  %6430 = vmatpush3.bf16.msra.mxu1 %v6429_v62  ;;  %v5505_v62 = vld [vmem:[%s7808_s1 + $0x90] sm:$0xff] }
 0xd4a   : > { %6431 = vmatprep.subr.bf16.mxu1 %v6663_v12  ;;  %v6462_v0 = vpack.c.bf16 %v5506_v63, %v5505_v62  ;;  %v5540_v63 = vld [vmem:[%s7767_s8 + $0x5] ss:$0 sm:$0xff] }
 0xd4d   : > { %6433 = vmatpush3.bf16.msra.mxu1 %v6432_v1  ;;  %v5510_v1 = vld [vmem:[%s7809_s2 + $0x80] sm:$0xff] }
 0xd4e   : > { %6434 = vmatprep.subr.bf16.mxu1 %v6663_v12 }
 0xe1b   : > { %v2691_v34 = vpop.f32.mrb[22].mxu1 }
 0xe1c   : > { %v2695_v35 = vadd.f32 %v2691_v34, %v2208_v6  ;;  %v6049_v36 = vpop.f32.mrb[23].mxu1  ;;  %v6435_v6 = vpack.c.bf16 %v2831_v5, %v2830_v3  ;;  %v5511_v3 = vld [vmem:[%s7809_s2 + $0x88] sm:$0xff] }
 0xe1d   : > { %v6465_v5 = vpack.c.bf16 %v5511_v3, %v5510_v1 }
 0xe1e   : > { %v2696_v38 = vadd.f32 %v2695_v35, %v6825_v2  ;;  %v2735_v2 = vld [vmem:[%s7774_s15 + $0x8] sm:$0xff]  ;;  %6436 = vmatpush3.bf16.msra.mxu1 %v6435_v6  ;;  %v5491_v35 = vld [vmem:[%s7777_s18] ss:$0 sm:$0xff]  ;;  %v5512_v6 = vld [vmem:[%s7809_s2 + $0x90] sm:$0xff] }
 0xe1f   : > { %v6423_v47 = vpack.c.bf16 %v2735_v2, %v2734_v46  ;;  %6437 = vmatprep.subr.bf16.mxu1 %v6663_v12  ;;  %v5496_v46 = vld [vmem:[%s7807_s26 + $0x80] sm:$0xff]  ;;  %v6468_v8 = vpack.c.bf16 %v5513_v7, %v5512_v6 }
 0xe20   : > { %v7185_v39 = vadd.f32 %v5485_v37, %v2696_v38 }
 0xe21   : > { %6424 = vmatpush3.bf16.msra.mxu0 %v6423_v47  ;;  %v5498_v47 = vld [vmem:[%s7807_s26 + $0x90] sm:$0xff] }
 0xe22   : > { %v2707_v40 = vsel %vm724_vm0, %v7185_v39, 0.0  ;;  %6425 = vmatprep.subr.bf16.mxu0 %v6663_v12  ;;  %6439 = vmatpush3.bf16.msra.mxu1 %v6438_v9  ;;  %v6456_v49 = vpack.c.bf16 %v5499_v48, %v5498_v47  ;;  %v5528_v47 = vld [vmem:[%s7808_s1 + $0xa0] sm:$0xff]  ;;  %v5529_v48 = vld [vmem:[%s7808_s1 + $0xa8] sm:$0xff] }
 0xe23   : > { %2708 = vadd.xlane.f32.xlu0 %v2707_v40  ;;  %6440 = vmatprep.subr.bf16.mxu1 %v6663_v12 }
 0xe25   : > { %6427 = vmatpush3.bf16.msra.mxu0 %v6426_v50 }
 0xe26   : > { %6452 = vmatprep.subr.bf16.mxu0 %v6663_v12  ;;  %6442 = vmatpush3.bf16.msra.mxu1 %v6441_v28 }
 0xe27   : > { %6443 = vmatprep.subr.bf16.mxu1 %v6663_v12 }
 0xe2a   : > { %6445 = vmatpush3.bf16.msra.mxu1 %v6444_v15  ;;  %v5501_v15 = vld [vmem:[%s7811_s27 + $0x4] ss:$0 sm:$0xff] }
 0xe2b   : > { %6446 = vmatprep.subr.bf16.mxu1 %v6663_v12 }
 0xe2e   : > { %6448 = vmatpush3.bf16.msra.mxu1 %v6447_v19  ;;  %v6471_v19 = vpack.c.bf16 %v5522_v14, %v5521_v13  ;;  %v5520_v13 = vld [vmem:[%s7768_s9 + $0x20] sm:$0xff] }
 0xe2f   : > { %6449 = vmatprep.subr.bf16.mxu1 %v6663_v12  ;;  %v5555_v14 = vld [vmem:[%s7808_s1 + $0xc0] sm:$0xff] }
 0xe32   : > { %6451 = vmatpush3.bf16.msra.mxu1 %v6450_v22  ;;  %v5524_v22 = vld [vmem:[%s7807_s26 + $0xb8] sm:$0xff] }
 0xe33   : > { %6134 = vmatprep.subr.mxu1 %v6665_v16 }
 0xeb0   : > { %v2709_v41 = vpop.xlane.xlu0 %2708 }
 0xeb1   : > { %v2710_v42 = vmul.f32 0.03125, %v2709_v41 }
 0xeb3   : > { %v2711_v43 = vsub.f32 %v7185_v39, %v2710_v42 }
 0xeb5   : > { %v2712_v44 = vmul.f32 %v2711_v43, %v2711_v43 }
 0xeb7   : > { %v2713_v45 = vsel %vm724_vm0, %v2712_v44, 0.0 }
 0xeb8   : > { %2714 = vadd.xlane.f32.xlu1 %v2713_v45 }
 0xf45   : > { %v2715_v51 = vpop.xlane.xlu1 %2714 }
 0xf46   : > { %v2716_v52 = vmul.f32 0.03125, %v2715_v51 }
 0xf48   : > { %v2717_v53 = vadd.f32 1e-05, %v2716_v52 }
 0xf4a   : > { %6600 = vrsqrt.f32 %v2717_v53 }
 0xf54   : > { %v6601_v54 = vpop.eup %6600 }
 0xf55   : > { %v2719_v56 = vmul.f32 %v6601_v54, %v2711_v43  ;;  %v5494_v54 = vld [vmem:[%s7770_s11 + $0x1] ss:$0 sm:$0xff] }
 0xf57   : > { %v2726_v58 = vmul.f32 %v5486_v55, %v2719_v56  ;;  %v5503_v56 = vld [vmem:[%s7808_s1 + $0x80] sm:$0xff] }
 0xf59   : > { %v2733_v59 = vadd.f32 %v5487_v57, %v2726_v58  ;;  %v5504_v57 = vld [vmem:[%s7808_s1 + $0x88] sm:$0xff]  ;;  %v5495_v58 = vld [vmem:[%s7771_s12 + $0x1] ss:$0 sm:$0xff] }
 0xf5a   : > { %v6459_v60 = vpack.c.bf16 %v5504_v57, %v5503_v56  ;;  %v5533_v57 = vld [vmem:[%s7810_s24 + $0x5] ss:$0 sm:$0xff] }
 0xf5b   : > { %6059 = vmatmul.mubr.msk.f32.vlgmr.msra.gmra.mrb[24].mxu0 %vm724_vm0, %v2733_v59 }
 0xf5c   : > { %6104 = vmatprep.mubr.msk.f32.mxu0 %vm6664_vm1, %v6665_v16 }
0x102e   : > { %v2814_v24 = vpop.f32.mrb[24].mxu0 }
0x102f   : > { %v2815_v25 = vadd.f32 %v5488_v23, %v2814_v24  ;;  %v6060_v26 = vpop.f32.mrb[25].mxu0  ;;  %v5515_v23 = vld [vmem:[%s7767_s8 + $0x4] ss:$0 sm:$0xff]  ;;  %v6474_v24 = vpack.c.bf16 %v5524_v22, %v5523_v21  ;;  %v5557_v21 = vld [vmem:[%s7808_s1 + $0xd0] sm:$0xff]  ;;  %v5558_v22 = vld [vmem:[%s7808_s1 + $0xd8] sm:$0xff] }
0x1030   : > { %v5535_v26 = vld [vmem:[%s7809_s2 + $0xa0] sm:$0xff] }
0x1031   : > { %v5490_v27 = vmul.f32 -1.702, %v2815_v25 }
0x1033   : > { %v2820_v29 = vmul.f32 1.442695, %v5490_v27  ;;  %v5536_v27 = vld [vmem:[%s7809_s2 + $0xa8] sm:$0xff] }
0x1035   : > { %6602 = vpow2.f32 %v2820_v29 }
0x103f   : > { %v6603_v30 = vpop.eup %6602 }
0x1040   : > { %v2822_v31 = vadd.f32 1.0, %v6603_v30 }
0x1042   : > { %6604 = vrcp.f32 %v2822_v31  ;;  %v6483_v31 = vpack.c.bf16 %v5536_v27, %v5535_v26  ;;  %v5548_v26 = vld [vmem:[%s7807_s26 + $0xc0] sm:$0xff]  ;;  %v5549_v27 = vld [vmem:[%s7807_s26 + $0xc8] sm:$0xff] }
0x104c   : > { %v6605_v32 = vpop.eup %6604 }
0x104d   : > { %v2825_v33 = vmul.f32 %v6605_v32, %v2815_v25  ;;  %v5537_v32 = vld [vmem:[%s7809_s2 + $0xb0] sm:$0xff] }
0x104f   : > { %6094 = vmatmul.mubr.f32.vlgmr.msra.gmra.mrb[24].mxu1 %v2825_v33  ;;  %v5538_v33 = vld [vmem:[%s7809_s2 + $0xb8] sm:$0xff] }
0x1050   : > { %6136 = vmatprep.mubr.msk.f32.mxu1 %vm6664_vm1, %v6665_v16 }
0x1122   : > { %v2908_v34 = vpop.f32.mrb[24].mxu1 }
0x1123   : > { %v2912_v36 = vadd.f32 %v2908_v34, %v7185_v39  ;;  %v6095_v37 = vpop.f32.mrb[25].mxu1  ;;  %v5497_v39 = vld [vmem:[%s7807_s26 + $0x88] sm:$0xff]  ;;  %v6486_v34 = vpack.c.bf16 %v5538_v33, %v5537_v32 }
0x1124   : > { %v6453_v2 = vpack.c.bf16 %v5497_v39, %v5496_v46 }
0x1125   : > { %v7279_v38 = vadd.f32 %v5491_v35, %v2912_v36 }
0x1126   : > { %6454 = vmatpush3.bf16.msra.mxu0 %v6453_v2 }
0x1127   : > { %v2925_v40 = vsel %vm724_vm0, %v7279_v38, 0.0  ;;  %6455 = vmatprep.subr.bf16.mxu0 %v6663_v12 }
0x1128   : > { %2926 = vadd.xlane.f32.xlu0 %v2925_v40 }
0x112a   : > { %6457 = vmatpush3.bf16.msra.mxu0 %v6456_v49  ;;  %v6477_v49 = vpack.c.bf16 %v5529_v48, %v5528_v47 }
0x112b   : > { %6458 = vmatprep.subr.bf16.mxu0 %v6663_v12 }
0x11b5   : > { %v2927_v41 = vpop.xlane.xlu0 %2926 }
0x11b6   : > { %v2928_v42 = vmul.f32 0.03125, %v2927_v41 }
0x11b8   : > { %v2929_v43 = vsub.f32 %v7279_v38, %v2928_v42 }
0x11ba   : > { %v2930_v44 = vmul.f32 %v2929_v43, %v2929_v43 }
0x11bc   : > { %v2931_v45 = vsel %vm724_vm0, %v2930_v44, 0.0 }
0x11bd   : > { %2932 = vadd.xlane.f32.xlu1 %v2931_v45 }
0x124a   : > { %v2933_v50 = vpop.xlane.xlu1 %2932 }
0x124b   : > { %v2934_v51 = vmul.f32 0.03125, %v2933_v50  ;;  %v5530_v50 = vld [vmem:[%s7808_s1 + $0xb0] sm:$0xff] }
0x124d   : > { %v2935_v52 = vadd.f32 1e-05, %v2934_v51  ;;  %v5531_v51 = vld [vmem:[%s7808_s1 + $0xb8] sm:$0xff] }
0x124f   : > { %6606 = vrsqrt.f32 %v2935_v52 }
0x1259   : > { %v6607_v53 = vpop.eup %6606 }
0x125a   : > { %v2937_v55 = vmul.f32 %v6607_v53, %v2929_v43 }
0x125c   : > { %v2944_v59 = vmul.f32 %v5494_v54, %v2937_v55  ;;  %v6480_v54 = vpack.c.bf16 %v5531_v51, %v5530_v50 }
0x125e   : > { %v7311_v61 = vadd.f32 %v5495_v58, %v2944_v59  ;;  %v5526_v59 = vld [vmem:[%s7811_s27 + $0x5] ss:$0 sm:$0xff] }
0x1260   : > { %6105 = vmatmul.mubr.msk.f32.vlgmr.msra.gmra.mrb[26].mxu0 %vm724_vm0, %v7311_v61 }
0x1261   : > { %6460 = vmatpush3.bf16.msra.mxu0 %v6459_v60  ;;  %6115 = vmatprep.mubr.msk.f32.mxu0 %vm6664_vm1, %v6665_v16 }
0x1262   : > { %6461 = vmatprep.subr.bf16.mxu0 %v6663_v12 }
0x1265   : > { %6463 = vmatpush3.bf16.msra.mxu0 %v6462_v0 }
0x1266   : > { %6464 = vmatprep.subr.bf16.mxu0 %v6663_v12 }
0x1268   : > { %6116 = vmatmul.mubr.msk.f32.vlgmr.msra.gmra.mrb[28].mxu0 %vm724_vm0, %v7311_v61 }
0x1269   : > { %6466 = vmatpush3.bf16.msra.mxu0 %v6465_v5  ;;  %6126 = vmatprep.mubr.msk.f32.mxu0 %vm6664_vm1, %v6665_v16 }
0x126a   : > { %6467 = vmatprep.subr.bf16.mxu0 %v6663_v12 }
0x126d   : > { %6469 = vmatpush3.bf16.msra.mxu0 %v6468_v8 }
0x126e   : > { %6129 = vmatprep.subr.mxu0 %v6665_v16 }
0x1270   : > { %6127 = vmatmul.mubr.msk.f32.vlgmr.msra.gmra.mrb[30].mxu0 %vm724_vm0, %v7311_v61 }
0x1271   : > { %6131 = vmatprep.mubr.msk.f32.mxu0 %vm6664_vm1, %v6665_v16 }
0x1333   : > { %v3034_v9 = vpop.f32.mrb[26].mxu0 }
0x1334   : > { %v6106_v10 = vpop.f32.mrb[27].mxu0  ;;  %v3035_v20 = vadd.f32 %v5501_v15, %v3034_v9 }
0x133b   : > { %v3117_v28 = vpop.f32.mrb[28].mxu0 }
0x133c   : > { %v3118_v17 = vadd.f32 %v5508_v11, %v3117_v28  ;;  %v6117_v18 = vpop.f32.mrb[29].mxu0 }
0x133e   : > { %6130 = vmatpush3.xpose.msk.msra.mxu0 %vm999_vm2, %v3118_v17 }
0x133f   : > { %6470 = vmatprep.subr.bf16.mxu0 %v6663_v12 }
0x1341   : > { %6132 = vmatmul.mubr.msk.f32.vlgmr.msra.gmra.mrb[32].mxu0 %vm999_vm2, %v3035_v20 }
0x1342   : > { %6472 = vmatpush3.bf16.msra.mxu0 %v6471_v19  ;;  %6147 = vmatprep.mubr.msk.f32.mxu0 %vm6664_vm1, %v6665_v16 }
0x1343   : > { %v3200_v25 = vpop.f32.mrb[30].mxu0  ;;  %6473 = vmatprep.subr.bf16.mxu0 %v6663_v12 }
0x1344   : > { %v3201_v29 = vadd.f32 %v5515_v23, %v3200_v25  ;;  %v6128_v30 = vpop.f32.mrb[31].mxu0  ;;  %v6498_v23 = vpack.c.bf16 %v5558_v22, %v5557_v21  ;;  %v5572_v22 = vld [vmem:[%s7768_s9 + $0x30] sm:$0xff] }
0x1346   : > { %6135 = vmatpush3.msra.mxu1 %v3201_v29  ;;  %6475 = vmatpush3.bf16.msra.mxu0 %v6474_v24  ;;  %v5545_v24 = vld [vmem:[%s7768_s9 + $0x28] sm:$0xff] }
0x1347   : > { %6482 = vmatprep.subr.bf16.mxu0 %v6663_v12  ;;  %6476 = vmatprep.subr.bf16.mxu1 %v6663_v12 }
0x1349   : > { %6148 = vmatmul.mubr.msk.f32.vlgmr.msra.gmra.mrb[34].mxu0 %vm724_vm0, %v7311_v61 }
0x134a   : > { %6484 = vmatpush3.bf16.msra.mxu0 %v6483_v31  ;;  %6169 = vmatprep.mubr.msk.f32.mxu0 %vm6664_vm1, %v6665_v16  ;;  %v6489_v31 = vpack.c.bf16 %v5549_v27, %v5548_v26 }
0x134b   : > { %6485 = vmatprep.subr.bf16.mxu0 %v6663_v12 }
0x134e   : > { %6487 = vmatpush3.bf16.msra.mxu0 %v6486_v34  ;;  %v5550_v34 = vld [vmem:[%s7807_s26 + $0xd0] sm:$0xff] }
0x134f   : > { %6182 = vmatprep.subr.mxu0 %v6665_v16 }
0x1351   : > { %6170 = vmatmul.mubr.msk.f32.vlgmr.msra.gmra.mrb[36].mxu0 %vm724_vm0, %v7311_v61 }
0x1352   : > { %6184 = vmatprep.mubr.msk.f32.mxu0 %vm6664_vm1, %v6665_v16  ;;  %6183 = vmatpush3.msra.mxu0 %v5545_v24  ;;  %v5581_v24 = vld [vmem:[%s7808_s1 + $0xe0] sm:$0xff] }
0x1353   : > { %6488 = vmatprep.subr.bf16.mxu0 %v6663_v12 }
0x1414   : > { %v3276_v35 = vpop.f32.mrb[32].mxu0 }
0x1415   : > { %v3280_v36 = vmul.f32 0.35355338, %v3276_v35  ;;  %v6133_v37 = vpop.f32.mrb[33].mxu0  ;;  %v5551_v35 = vld [vmem:[%s7807_s26 + $0xd8] sm:$0xff] }
0x1416   : > { %v6492_v37 = vpack.c.bf16 %v5551_v35, %v5550_v34 }
0x1417   : > { %v3281_v40 = vadd.f32 %v3280_v36, %v6953_v4 }
0x1419   : > { %v3282_v41 = vsel %vm999_vm2, %v3281_v40, -inf }
0x141a   : > { %3283 = vmax.xlane.f32.xlu0 %v3282_v41  ;;  %v5562_v41 = vld [vmem:[%s7809_s2 + $0xc0] sm:$0xff] }
0x141c   : > { %v3447_v42 = vpop.f32.mrb[34].mxu0 }
0x141d   : > { %v6149_v43 = vpop.f32.mrb[35].mxu0  ;;  %v3448_v0 = vadd.f32 %v5526_v59, %v3447_v42  ;;  %v5563_v42 = vld [vmem:[%s7809_s2 + $0xc8] sm:$0xff] }
0x141e   : > { %v6501_v43 = vpack.c.bf16 %v5563_v42, %v5562_v41 }
0x1424   : > { %v3613_v44 = vpop.f32.mrb[36].mxu0 }
0x1425   : > { %v6171_v45 = vpop.f32.mrb[37].mxu0  ;;  %v3614_v1 = vadd.f32 %v5540_v63, %v3613_v44  ;;  %v5564_v44 = vld [vmem:[%s7809_s2 + $0xd0] sm:$0xff] }
0x1426   : > { %v5565_v45 = vld [vmem:[%s7809_s2 + $0xd8] sm:$0xff] }
0x14a7   : > { %v3284_v46 = vpop.xlane.xlu0 %3283 }
0x14a8   : > { %v3285_v39 = vsub.f32 %v3281_v40, %v3284_v46  ;;  %v5560_v46 = vld [vmem:[%s7810_s24 + $0x6] ss:$0 sm:$0xff] }
0x14aa   : > { %v3286_v2 = vmul.f32 1.442695, %v3285_v39 }
0x14ac   : > { %6608 = vpow2.f32 %v3286_v2  ;;  %v6504_v2 = vpack.c.bf16 %v5565_v45, %v5564_v44  ;;  %v5586_v44 = vld [vmem:[%s7810_s24 + $0x7] ss:$0 sm:$0xff] }
0x14b6   : > { %v6609_v52 = vpop.eup %6608 }
0x14b7   : > { %6137 = vmatmul.mubr.msk.f32.vlgmr.msra.gmra.mrb[26].mxu1 %vm999_vm2, %v6609_v52  ;;  %v3288_v53 = vsel %vm999_vm2, %v6609_v52, 0.0  ;;  %v5553_v52 = vld [vmem:[%s7811_s27 + $0x6] ss:$0 sm:$0xff] }
0x14b8   : > { %6478 = vmatpush3.bf16.msra.mxu1 %v6477_v49  ;;  %3289 = vadd.xlane.f32.xlu0 %v3288_v53 }
0x14b9   : > { %6479 = vmatprep.subr.bf16.mxu1 %v6663_v12  ;;  %6158 = vmatprep.mubr.msk.f32.mxu1 %vm6664_vm1, %v6665_v16 }
0x14bc   : > { %6481 = vmatpush3.bf16.msra.mxu1 %v6480_v54 }
0x14bd   : > { %6172 = vmatprep.subr.mxu1 %v6665_v16 }
0x14bf   : > { %6159 = vmatmul.mubr.msk.f32.vlgmr.msra.gmra.mrb[28].mxu1 %vm724_vm0, %v7311_v61 }
0x14c0   : > { %6174 = vmatprep.mubr.msk.f32.mxu1 %vm6664_vm1, %v6665_v16 }
0x1545   : > { %v3290_v28 = vpop.xlane.xlu0 %3289 }
0x158a   : > { %v3361_v55 = vpop.f32.mrb[26].mxu1 }
0x158b   : > { %v6138_v56 = vpop.f32.mrb[27].mxu1 }
0x158c   : > { %v5567_v56 = vld [vmem:[%s7767_s8 + $0x6] ss:$0 sm:$0xff] }
0x1592   : > { %v3530_v58 = vpop.f32.mrb[28].mxu1 }
0x1593   : > { %v3531_v60 = vadd.f32 %v5533_v57, %v3530_v58  ;;  %v6160_v62 = vpop.f32.mrb[29].mxu1 }
0x1595   : > { %6173 = vmatpush3.xpose.msk.msra.mxu1 %vm999_vm2, %v3531_v60 }
0x1596   : > { %6177 = vmatprep.subr.mxu1 %v6665_v16 }
0x1598   : > { %6175 = vmatmul.mubr.msk.f32.vlgmr.msra.gmra.mrb[30].mxu1 %vm999_vm2, %v3448_v0  ;;  %v7531_v0 = vld [vmem:[%s7812_s0] sm:$0xff] }
0x1599   : > { %6178 = vmatpush3.msra.mxu1 %v3614_v1  ;;  %6179 = vmatprep.mubr.msk.f32.mxu1 %vm6664_vm1, %v6665_v16 }
0x159a   : > { %6187 = vmatprep.subr.mxu1 %v6665_v16 }
0x166b   : > { %v3689_v3 = vpop.f32.mrb[30].mxu1 }
0x166c   : > { %v3693_v5 = vmul.f32 0.35355338, %v3689_v3  ;;  %v6176_v6 = vpop.f32.mrb[31].mxu1 }
0x166e   : > { %v3694_v7 = vadd.f32 %v3693_v5, %v6953_v4  ;;  %v5556_v4 = vld [vmem:[%s7808_s1 + $0xc8] sm:$0xff] }
0x166f   : > { %v6495_v19 = vpack.c.bf16 %v5556_v4, %v5555_v14 }
0x1670   : > { %v3695_v8 = vsel %vm999_vm2, %v3694_v7, -inf }
0x1671   : > { %3696 = vmax.xlane.f32.xlu1 %v3695_v8  ;;  %v5574_v8 = vld [vmem:[%s7807_s26 + $0xe0] sm:$0xff] }
0x16fe   : > { %v3697_v9 = vpop.xlane.xlu1 %3696 }
0x16ff   : > { %v3698_v10 = vsub.f32 %v3694_v7, %v3697_v9  ;;  %v5575_v9 = vld [vmem:[%s7807_s26 + $0xe8] sm:$0xff] }
0x1701   : > { %v3699_v11 = vmul.f32 1.442695, %v3698_v10  ;;  %v6507_v10 = vpack.c.bf16 %v5575_v9, %v5574_v8 }
0x1703   : > { %6610 = vpow2.f32 %v3699_v11  ;;  %v5576_v11 = vld [vmem:[%s7807_s26 + $0xf0] sm:$0xff] }
0x1704   : > { %6612 = vrcp.f32 %v3290_v28  ;;  %v5577_v28 = vld [vmem:[%s7807_s26 + $0xf8] sm:$0xff] }
0x1705   : > { %v6510_v4 = vpack.c.bf16 %v5577_v28, %v5576_v11 }
0x170d   : > { %v6611_v15 = vpop.eup %6610 }
0x170e   : > { %6180 = vmatmul.mubr.msk.f32.vlgmr.msra.gmra.mrb[32].mxu1 %vm999_vm2, %v6611_v15  ;;  %v3701_v17 = vsel %vm999_vm2, %v6611_v15, 0.0  ;;  %v6613_v18 = vpop.eup %6612  ;;  %v5588_v15 = vld [vmem:[%s7809_s2 + $0xe0] sm:$0xff] }
0x170f   : > { %3702 = vadd.xlane.f32.xlu1 %v3701_v17  ;;  %6188 = vmatpush3.msra.mxu1 %v5520_v13  ;;  %v3365_v20 = vmul.f32 %v6613_v18, %v3361_v55  ;;  %v5589_v17 = vld [vmem:[%s7809_s2 + $0xe8] sm:$0xff] }
0x1710   : > { %6189 = vmatprep.mubr.msk.f32.mxu1 %vm6664_vm1, %v6665_v16  ;;  %6494 = vmatprep.subr.bf16.mxu1 %v6663_v12  ;;  %v6519_v18 = vpack.c.bf16 %v5589_v17, %v5588_v15  ;;  %v5606_v15 = vld [vmem:[%s7774_s15 + $0x20] sm:$0xff] }
0x1712   : > { %6190 = vmatmul.mubr.msk.f32.vlgmr.msra.gmra.mrb[34].mxu1 %vm999_vm2, %v3365_v20  ;;  %v5591_v20 = vld [vmem:[%s7809_s2 + $0xf8] sm:$0xff] }
0x1713   : > { %6496 = vmatpush3.bf16.msra.mxu1 %v6495_v19  ;;  %6211 = vmatprep.mubr.msk.f32.mxu1 %vm6664_vm1, %v6665_v16  ;;  %v5590_v19 = vld [vmem:[%s7809_s2 + $0xf0] sm:$0xff] }
0x1714   : > { %6497 = vmatprep.subr.bf16.mxu1 %v6663_v12  ;;  %v6522_v21 = vpack.c.bf16 %v5591_v20, %v5590_v19  ;;  %v5609_v19 = vld [vmem:[%s7774_s15 + $0x38] sm:$0xff] }
0x1717   : > { %6499 = vmatpush3.bf16.msra.mxu1 %v6498_v23 }
0x1718   : > { %6225 = vmatprep.subr.mxu1 %v6665_v16 }
0x171a   : > { %6212 = vmatmul.mubr.msk.f32.vlgmr.msra.gmra.mrb[36].mxu1 %vm724_vm0, %v7311_v61 }
0x171b   : > { %6227 = vmatprep.mubr.msk.f32.mxu1 %vm6664_vm1, %v6665_v16 }
0x179c   : > { %v3703_v25 = vpop.xlane.xlu1 %3702 }
0x179d   : > { %6614 = vrcp.f32 %v3703_v25  ;;  %v5582_v25 = vld [vmem:[%s7808_s1 + $0xe8] sm:$0xff] }
0x17a7   : > { %v6615_v29 = vpop.eup %6614 }
0x17e1   : > { %v3774_v30 = vpop.f32.mrb[32].mxu1 }
0x17e2   : > { %v3778_v32 = vmul.f32 %v6615_v29, %v3774_v30  ;;  %v6181_v33 = vpop.f32.mrb[33].mxu1  ;;  %v6513_v29 = vpack.c.bf16 %v5582_v25, %v5581_v24  ;;  %v5604_v25 = vld [vmem:[%s7772_s13 + $0x1] ss:$0 sm:$0xff] }
0x17e3   : > { %v5584_v33 = vld [vmem:[%s7808_s1 + $0xf8] sm:$0xff] }
0x17e4   : > { %6185 = vmatmul.mubr.msk.f32.vlgmr.msra.gmra.mrb[38].mxu0 %vm999_vm2, %v3778_v32  ;;  %v5583_v32 = vld [vmem:[%s7808_s1 + $0xf0] sm:$0xff] }
0x17e5   : > { %6490 = vmatpush3.bf16.msra.mxu0 %v6489_v31  ;;  %v3923_v36 = vpop.f32.mrb[34].mxu1  ;;  %6200 = vmatprep.mubr.msk.f32.mxu0 %vm6664_vm1, %v6665_v16  ;;  %v6516_v34 = vpack.c.bf16 %v5584_v33, %v5583_v32  ;;  %v5615_v32 = vld [vmem:[%s7776_s17 + $0x88] sm:$0xff] }
0x17e6   : > { %v6191_v40 = vpop.f32.mrb[35].mxu1  ;;  %6491 = vmatprep.subr.bf16.mxu0 %v6663_v12 }
0x17e9   : > { %6493 = vmatpush3.bf16.msra.mxu0 %v6492_v37 }
0x17ea   : > { %6500 = vmatprep.subr.bf16.mxu0 %v6663_v12 }
0x17ec   : > { %6201 = vmatmul.mubr.msk.f32.vlgmr.msra.gmra.mrb[40].mxu0 %vm724_vm0, %v7311_v61 }
0x17ed   : > { %v4089_v39 = vpop.f32.mrb[36].mxu1  ;;  %6502 = vmatpush3.bf16.msra.mxu0 %v6501_v43  ;;  %6222 = vmatprep.mubr.msk.f32.mxu0 %vm6664_vm1, %v6665_v16 }
0x17ee   : > { %v4090_v47 = vadd.f32 %v5560_v46, %v4089_v39  ;;  %v6213_v48 = vpop.f32.mrb[37].mxu1  ;;  %6503 = vmatprep.subr.bf16.mxu0 %v6663_v12  ;;  %v5579_v46 = vld [vmem:[%s7811_s27 + $0x7] ss:$0 sm:$0xff] }
0x17f0   : > { %6226 = vmatpush3.xpose.msk.msra.mxu1 %vm999_vm2, %v4090_v47 }
0x17f1   : > { %6505 = vmatpush3.bf16.msra.mxu0 %v6504_v2  ;;  %6230 = vmatprep.subr.mxu1 %v6665_v16  ;;  %v5593_v2 = vld [vmem:[%s7767_s8 + $0x7] ss:$0 sm:$0xff] }
0x17f2   : > { %6235 = vmatprep.subr.mxu0 %v6665_v16 }
0x17f4   : > { %6223 = vmatmul.mubr.msk.f32.vlgmr.msra.gmra.mrb[42].mxu0 %vm724_vm0, %v7311_v61 }
0x17f5   : > { %6237 = vmatprep.mubr.msk.f32.mxu0 %vm6664_vm1, %v6665_v16  ;;  %6236 = vmatpush3.msra.mxu0 %v5572_v22 }
0x17f6   : > { %6512 = vmatprep.subr.bf16.mxu0 %v6663_v12 }
0x18b7   : > { %v3850_v49 = vpop.f32.mrb[38].mxu0 }
0x18b8   : > { %v7516_v50 = vadd.f32 %v3923_v36, %v3850_v49  ;;  %v6186_v51 = vpop.f32.mrb[39].mxu0 }
0x18bf   : > { %v4006_v53 = vpop.f32.mrb[40].mxu0 }
0x18c0   : > { %v4007_v54 = vadd.f32 %v5553_v52, %v4006_v53  ;;  %v6202_v55 = vpop.f32.mrb[41].mxu0 }
0x18c2   : > { %6228 = vmatmul.mubr.msk.f32.vlgmr.msra.gmra.mrb[38].mxu1 %vm999_vm2, %v4007_v54 }
0x18c3   : > { %6232 = vmatprep.mubr.msk.f32.mxu1 %vm6664_vm1, %v6665_v16 }
0x18c7   : > { %v4172_v57 = vpop.f32.mrb[42].mxu0 }
0x18c8   : > { %v4173_v58 = vadd.f32 %v5567_v56, %v4172_v57  ;;  %v6224_v59 = vpop.f32.mrb[43].mxu0 }
0x18c9   : > { %v5598_v59 = vld [vmem:[%s7768_s9 + $0x38] sm:$0xff] }
0x18ca   : > { %6231 = vmatpush3.msra.mxu1 %v4173_v58 }
0x18cb   : > { %6506 = vmatprep.subr.bf16.mxu1 %v6663_v12 }
0x1995   : > { %v4248_v60 = vpop.f32.mrb[38].mxu1 }
0x1996   : > { %v4252_v62 = vmul.f32 0.35355338, %v4248_v60  ;;  %v6229_v63 = vpop.f32.mrb[39].mxu1 }
0x1998   : > { %v4253_v1 = vadd.f32 %v7531_v0, %v4252_v62 }
0x199a   : > { %v4254_v3 = vsel %vm999_vm2, %v4253_v1, -inf }
0x199b   : > { %4255 = vmax.xlane.f32.xlu0 %v4254_v3 }
0x1a28   : > { %v4256_v5 = vpop.xlane.xlu0 %4255 }
0x1a29   : > { %v4257_v6 = vsub.f32 %v4253_v1, %v4256_v5 }
0x1a2b   : > { %v4258_v7 = vmul.f32 1.442695, %v4257_v6 }
0x1a2d   : > { %6616 = vpow2.f32 %v4258_v7  ;;  %v5601_v7 = vld [vmem:[%s7769_s10 + $0x1] ss:$0 sm:$0xff] }
0x1a37   : > { %v6617_v13 = vpop.eup %6616 }
0x1a38   : > { %6233 = vmatmul.mubr.msk.f32.vlgmr.msra.gmra.mrb[40].mxu1 %vm999_vm2, %v6617_v13  ;;  %v4260_v14 = vsel %vm999_vm2, %v6617_v13, 0.0 }
0x1a39   : > { %6508 = vmatpush3.bf16.msra.mxu1 %v6507_v10  ;;  %4261 = vadd.xlane.f32.xlu1 %v4260_v14 }
0x1a3a   : > { %6509 = vmatprep.subr.bf16.mxu1 %v6663_v12  ;;  %6248 = vmatprep.mubr.msk.f32.mxu1 %vm6664_vm1, %v6665_v16 }
0x1a3d   : > { %6511 = vmatpush3.bf16.msra.mxu1 %v6510_v4 }
0x1a3e   : > { %6518 = vmatprep.subr.bf16.mxu1 %v6663_v12 }
0x1a40   : > { %6249 = vmatmul.mubr.msk.f32.vlgmr.msra.gmra.mrb[42].mxu1 %vm724_vm0, %v7311_v61 }
0x1a41   : > { %6520 = vmatpush3.bf16.msra.mxu1 %v6519_v18  ;;  %6270 = vmatprep.mubr.msk.f32.mxu1 %vm6664_vm1, %v6665_v16  ;;  %v5608_v18 = vld [vmem:[%s7774_s15 + $0x30] sm:$0xff] }
0x1a42   : > { %6521 = vmatprep.subr.bf16.mxu1 %v6663_v12  ;;  %v6528_v20 = vpack.c.bf16 %v5609_v19, %v5608_v18 }
0x1a45   : > { %6523 = vmatpush3.bf16.msra.mxu1 %v6522_v21 }
0x1a46   : > { %6283 = vmatprep.subr.mxu1 %v6665_v16 }
0x1a48   : > { %6271 = vmatmul.mubr.msk.f32.vlgmr.msra.gmra.mrb[44].mxu1 %vm724_vm0, %v7311_v61 }
0x1a49   : > { %6285 = vmatprep.mubr.msk.f32.mxu1 %vm6664_vm1, %v6665_v16  ;;  %6284 = vmatpush3.msra.mxu1 %v5598_v59 }
0x1a4a   : > { %6530 = vmatprep.subr.bf16.mxu1 %v6663_v12 }
0x1ac6   : > { %v4262_v23 = vpop.xlane.xlu1 %4261 }
0x1ac7   : > { %6618 = vrcp.f32 %v4262_v23 }
0x1ad1   : > { %v6619_v26 = vpop.eup %6618 }
0x1b0b   : > { %v4333_v27 = vpop.f32.mrb[40].mxu1 }
0x1b0c   : > { %v4337_v30 = vmul.f32 %v6619_v26, %v4333_v27  ;;  %v6234_v31 = vpop.f32.mrb[41].mxu1  ;;  %v5605_v27 = vld [vmem:[%s7773_s14 + $0x1] ss:$0 sm:$0xff] }
0x1b0d   : > { %v5614_v31 = vld [vmem:[%s7776_s17 + $0x80] sm:$0xff] }
0x1b0e   : > { %6238 = vmatmul.mubr.msk.f32.vlgmr.msra.gmra.mrb[44].mxu0 %vm999_vm2, %v4337_v30  ;;  %v6531_v33 = vpack.c.bf16 %v5615_v32, %v5614_v31  ;;  %v5245_v31 = vld [vmem:[%s7780_s21 + $0x18] sm:$0xff] }
0x1b0f   : > { %6514 = vmatpush3.bf16.msra.mxu0 %v6513_v29  ;;  %6259 = vmatprep.mubr.msk.f32.mxu0 %vm6664_vm1, %v6665_v16 }
0x1b10   : > { %6515 = vmatprep.subr.bf16.mxu0 %v6663_v12 }
0x1b13   : > { %v4493_v35 = vpop.f32.mrb[42].mxu1  ;;  %6517 = vmatpush3.bf16.msra.mxu0 %v6516_v34  ;;  %v5616_v34 = vld [vmem:[%s7776_s17 + $0x90] sm:$0xff] }
0x1b14   : > { %v6250_v36 = vpop.f32.mrb[43].mxu1  ;;  %6273 = vmatprep.subr.mxu0 %v6665_v16  ;;  %v4494_v47 = vadd.f32 %v5579_v46, %v4493_v35  ;;  %v5617_v35 = vld [vmem:[%s7776_s17 + $0x98] sm:$0xff]  ;;  %v5623_v46 = vld [vmem:[%s7776_s17 + $0xc8] sm:$0xff] }
0x1b15   : > { %v6534_v36 = vpack.c.bf16 %v5617_v35, %v5616_v34 }
0x1b16   : > { %6260 = vmatmul.mubr.msk.f32.vlgmr.msra.gmra.mrb[46].mxu0 %vm724_vm0, %v7311_v61 }
0x1b17   : > { %6275 = vmatprep.mubr.msk.f32.mxu0 %vm6664_vm1, %v6665_v16 }
0x1b1b   : > { %v4659_v37 = vpop.f32.mrb[44].mxu1 }
0x1b1c   : > { %v6272_v40 = vpop.f32.mrb[45].mxu1  ;;  %v4660_v48 = vadd.f32 %v5593_v2, %v4659_v37  ;;  %v5618_v37 = vld [vmem:[%s7776_s17 + $0xa0] sm:$0xff]  ;;  %v5625_v2 = vld [vmem:[%s7776_s17 + $0xd8] sm:$0xff] }
0x1b1d   : > { %v5619_v40 = vld [vmem:[%s7776_s17 + $0xa8] sm:$0xff] }
0x1be1   : > { %v4409_v41 = vpop.f32.mrb[44].mxu0 }
0x1be2   : > { %v4413_v42 = vadd.f32 %v4409_v41, %v7516_v50  ;;  %v6239_v43 = vpop.f32.mrb[45].mxu0  ;;  %v6537_v41 = vpack.c.bf16 %v5619_v40, %v5618_v37 }
0x1be3   : > { %v5621_v43 = vld [vmem:[%s7776_s17 + $0xb8] sm:$0xff] }
0x1be9   : > { %v4576_v45 = vpop.f32.mrb[46].mxu0 }
0x1bea   : > { %v4577_v39 = vadd.f32 %v5586_v44, %v4576_v45  ;;  %v6261_v61 = vpop.f32.mrb[47].mxu0  ;;  %v5622_v45 = vld [vmem:[%s7776_s17 + $0xc0] sm:$0xff] }
0x1beb   : > { %v5624_v61 = vld [vmem:[%s7776_s17 + $0xd0] sm:$0xff] }
0x1bec   : > { %6274 = vmatpush3.xpose.msk.msra.mxu0 %vm999_vm2, %v4577_v39  ;;  %v6543_v39 = vpack.c.bf16 %v5623_v46, %v5622_v45 }
0x1bed   : > { %6278 = vmatprep.subr.mxu0 %v6665_v16 }
0x1bef   : > { %6276 = vmatmul.mubr.msk.f32.vlgmr.msra.gmra.mrb[48].mxu0 %vm999_vm2, %v4494_v47  ;;  %v6546_v47 = vpack.c.bf16 %v5625_v2, %v5624_v61 }
0x1bf0   : > { %6279 = vmatpush3.msra.mxu0 %v4660_v48  ;;  %6280 = vmatprep.mubr.msk.f32.mxu0 %vm6664_vm1, %v6665_v16  ;;  %v5626_v48 = vld [vmem:[%s7776_s17 + $0xe0] sm:$0xff] }
0x1bf1   : > { %6524 = vmatprep.subr.bf16.mxu0 %v6663_v12 }
0x1cc2   : > { %v4735_v49 = vpop.f32.mrb[48].mxu0 }
0x1cc3   : > { %v4739_v50 = vmul.f32 0.35355338, %v4735_v49  ;;  %v6277_v51 = vpop.f32.mrb[49].mxu0  ;;  %v5627_v49 = vld [vmem:[%s7776_s17 + $0xe8] sm:$0xff] }
0x1cc4   : > { %v5628_v51 = vld [vmem:[%s7776_s17 + $0xf0] sm:$0xff] }
0x1cc5   : > { %v4740_v52 = vadd.f32 %v7531_v0, %v4739_v50  ;;  %v6549_v50 = vpack.c.bf16 %v5627_v49, %v5626_v48 }
0x1cc7   : > { %v4741_v53 = vsel %vm999_vm2, %v4740_v52, -inf }
0x1cc8   : > { %4742 = vmax.xlane.f32.xlu0 %v4741_v53 }
0x1d55   : > { %v4743_v54 = vpop.xlane.xlu0 %4742 }
0x1d56   : > { %v4744_v55 = vsub.f32 %v4740_v52, %v4743_v54  ;;  %v5629_v52 = vld [vmem:[%s7776_s17 + $0xf8] sm:$0xff]  ;;  %v5611_v54 = vld [vmem:[%s7775_s16 + $0x1] ss:$0 sm:$0xff] }
0x1d57   : > { %v6552_v53 = vpack.c.bf16 %v5629_v52, %v5628_v51 }
0x1d58   : > { %v4745_v56 = vmul.f32 1.442695, %v4744_v55 }
0x1d5a   : > { %6620 = vpow2.f32 %v4745_v56 }
0x1d64   : > { %v6621_v57 = vpop.eup %6620 }
0x1d65   : > { %6281 = vmatmul.mubr.msk.f32.vlgmr.msra.gmra.mrb[50].mxu0 %vm999_vm2, %v6621_v57  ;;  %v4747_v58 = vsel %vm999_vm2, %v6621_v57, 0.0 }
0x1d66   : > { %4748 = vadd.xlane.f32.xlu1 %v4747_v58  ;;  %6296 = vmatprep.mubr.msk.f32.mxu0 %vm6664_vm1, %v6665_v16 }
0x1df3   : > { %v4749_v60 = vpop.xlane.xlu1 %4748 }
0x1df4   : > { %6622 = vrcp.f32 %v4749_v60 }
0x1dfe   : > { %v6623_v62 = vpop.eup %6622 }
0x1e38   : > { %v4820_v63 = vpop.f32.mrb[50].mxu0 }
0x1e39   : > { %v4824_v0 = vmul.f32 %v6623_v62, %v4820_v63  ;;  %v6282_v1 = vpop.f32.mrb[51].mxu0 }
0x1e3b   : > { %6286 = vmatmul.mubr.msk.f32.vlgmr.msra.gmra.mrb[46].mxu1 %vm999_vm2, %v4824_v0 }
0x1e3c   : > { %6331 = vmatprep.mubr.msk.f32.mxu1 %vm6664_vm1, %v6665_v16  ;;  %6532 = vmatpush3.bf16.msra.mxu1 %v6531_v33 }
0x1e3d   : > { %6533 = vmatprep.subr.bf16.mxu1 %v6663_v12 }
0x1e40   : > { %6535 = vmatpush3.bf16.msra.mxu1 %v6534_v36 }
0x1e41   : > { %6536 = vmatprep.subr.bf16.mxu1 %v6663_v12 }
0x1e44   : > { %6538 = vmatpush3.bf16.msra.mxu1 %v6537_v41 }
0x1e45   : > { %6539 = vmatprep.subr.bf16.mxu1 %v6663_v12 }
0x1f0e   : > { %v4896_v3 = vpop.f32.mrb[46].mxu1 }
0x1f0f   : > { %v4900_v5 = vadd.f32 %v4896_v3, %v4413_v42  ;;  %v6287_v6 = vpop.f32.mrb[47].mxu1  ;;  %v5620_v42 = vld [vmem:[%s7776_s17 + $0xb0] sm:$0xff]  ;;  %v5631_v3 = vld [vmem:[%s7777_s18 + $0x1] ss:$0 sm:$0xff] }
0x1f10   : > { %v6540_v44 = vpack.c.bf16 %v5621_v43, %v5620_v42 }
0x1f11   : > { %v4901_v8 = vadd.f32 %v4900_v5, %v7279_v38  ;;  %v5607_v38 = vld [vmem:[%s7774_s15 + $0x28] sm:$0xff] }
0x1f12   : > { %v6525_v17 = vpack.c.bf16 %v5607_v38, %v5606_v15  ;;  %6541 = vmatpush3.bf16.msra.mxu1 %v6540_v44 }
0x1f13   : > { %v7633_v9 = vadd.f32 %v5601_v7, %v4901_v8  ;;  %6542 = vmatprep.subr.bf16.mxu1 %v6663_v12 }
0x1f14   : > { %6526 = vmatpush3.bf16.msra.mxu0 %v6525_v17  ;;  %v5163_v17 = vlaneseq }
0x1f15   : > { %v4915_v10 = vsel %vm724_vm0, %v7633_v9, 0.0  ;;  %6527 = vmatprep.subr.bf16.mxu0 %v6663_v12 }
0x1f16   : > { %4916 = vadd.xlane.f32.xlu0 %v4915_v10  ;;  %6544 = vmatpush3.bf16.msra.mxu1 %v6543_v39  ;;  %v5164_v18 = vand.u32 127, %v5163_v17 }
0x1f17   : > { %6545 = vmatprep.subr.bf16.mxu1 %v6663_v12 }
0x1f18   : > { %6529 = vmatpush3.bf16.msra.mxu0 %v6528_v20  ;;  %v5632_v20 = vld [vmem:[%s7778_s19] ss:$0 sm:$0xff] }
0x1f19   : > { %6334 = vmatprep.subr.mxu0 %v6665_v16 }
0x1f1a   : > { %6547 = vmatpush3.bf16.msra.mxu1 %v6546_v47 }
0x1f1b   : > { %6548 = vmatprep.subr.bf16.mxu1 %v6663_v12 }
0x1f1e   : > { %6550 = vmatpush3.bf16.msra.mxu1 %v6549_v50 }
0x1f1f   : > { %6551 = vmatprep.subr.bf16.mxu1 %v6663_v12 }
0x1f22   : > { %6553 = vmatpush3.bf16.msra.mxu1 %v6552_v53 }
0x1fa3   : > { %v4917_v11 = vpop.xlane.xlu0 %4916 }
0x1fa4   : > { %v4918_v28 = vmul.f32 0.03125, %v4917_v11 }
0x1fa6   : > { %v4919_v13 = vsub.f32 %v7633_v9, %v4918_v28 }
0x1fa8   : > { %v4920_v14 = vmul.f32 %v4919_v13, %v4919_v13 }
0x1faa   : > { %v4921_v4 = vsel %vm724_vm0, %v4920_v14, 0.0 }
0x1fab   : > { %4922 = vadd.xlane.f32.xlu1 %v4921_v4 }
0x2038   : > { %v4923_v21 = vpop.xlane.xlu1 %4922 }
0x2039   : > { %v4924_v22 = vmul.f32 0.03125, %v4923_v21 }
0x203b   : > { %v4925_v23 = vadd.f32 1e-05, %v4924_v22  ;;  %v5633_v22 = vld [vmem:[%s7779_s20] ss:$0 sm:$0xff] }
0x203d   : > { %6624 = vrsqrt.f32 %v4925_v23  ;;  %v5242_v23 = vld [vmem:[%s7780_s21] sm:$0xff] }
0x2047   : > { %v6625_v24 = vpop.eup %6624 }
0x2048   : > { %v4927_v26 = vmul.f32 %v6625_v24, %v4919_v13  ;;  %v5243_v24 = vld [vmem:[%s7780_s21 + $0x8] sm:$0xff] }
0x204a   : > { %v4934_v29 = vmul.f32 %v5604_v25, %v4927_v26 }
0x204c   : > { %v4941_v30 = vadd.f32 %v5605_v27, %v4934_v29  ;;  %v6555_v29 = vpack.c.bf16 %v5243_v24, %v5242_v23 }
0x204e   : > { %6297 = vmatmul.mubr.msk.f32.vlgmr.msra.gmra.mrb[52].mxu0 %vm724_vm0, %v4941_v30  ;;  %v5244_v30 = vld [vmem:[%s7780_s21 + $0x10] sm:$0xff] }
0x204f   : > { %6336 = vmatprep.mubr.msk.f32.mxu0 %vm6664_vm1, %v6665_v16  ;;  %v6558_v32 = vpack.c.bf16 %v5245_v31, %v5244_v30 }
0x2121   : > { %v5024_v55 = vpop.f32.mrb[52].mxu0 }
0x2122   : > { %v5025_v56 = vadd.f32 %v5611_v54, %v5024_v55  ;;  %v6298_v57 = vpop.f32.mrb[53].mxu0 }
0x2124   : > { %v5613_v58 = vmul.f32 -1.702, %v5025_v56 }
0x2126   : > { %v5030_v59 = vmul.f32 1.442695, %v5613_v58 }
0x2128   : > { %6626 = vpow2.f32 %v5030_v59 }
0x2132   : > { %v6627_v60 = vpop.eup %6626 }
0x2133   : > { %v5032_v62 = vadd.f32 1.0, %v6627_v60 }
0x2135   : > { %6628 = vrcp.f32 %v5032_v62 }
0x213f   : > { %v6629_v63 = vpop.eup %6628 }
0x2140   : > { %v5035_v0 = vmul.f32 %v6629_v63, %v5025_v56 }
0x2142   : > { %6332 = vmatmul.mubr.f32.vlgmr.msra.gmra.mrb[48].mxu1 %v5035_v0 }
0x2215   : > { %v5119_v1 = vpop.f32.mrb[48].mxu1 }
0x2216   : > { %v5123_v5 = vadd.f32 %v5119_v1, %v7633_v9  ;;  %v6333_v6 = vpop.f32.mrb[49].mxu1  ;;  %v5165_v9 = vstv %s5162_s25 }
0x2217   : > { %vm5166_vm3 = vcmp.eq.s32.totalorder %v5164_v18, %v5165_v9 }
0x2218   : > { %v5132_v7 = vadd.f32 %v5631_v3, %v5123_v5  ;;  %v5634_v27 = vsel %vm5166_vm3, 1.0, %v6665_v16 }
0x221a   : > { %v5135_v8 = vsel %vm724_vm0, %v5132_v7, 0.0 }
0x221b   : > { %5136 = vadd.xlane.f32.xlu0 %v5135_v8 }
0x22a8   : > { %v5137_v10 = vpop.xlane.xlu0 %5136 }
0x22a9   : > { %v5138_v11 = vmul.f32 0.03125, %v5137_v10 }
0x22ab   : > { %v5139_v28 = vsub.f32 %v5132_v7, %v5138_v11 }
0x22ad   : > { %v5140_v13 = vmul.f32 %v5139_v28, %v5139_v28 }
0x22af   : > { %v5141_v14 = vsel %vm724_vm0, %v5140_v13, 0.0 }
0x22b0   : > { %5142 = vadd.xlane.f32.xlu1 %v5141_v14 }
0x233d   : > { %v5143_v4 = vpop.xlane.xlu1 %5142 }
0x233e   : > { %v5144_v15 = vmul.f32 0.03125, %v5143_v4 }
0x2340   : > { %v5145_v38 = vadd.f32 1e-05, %v5144_v15 }
0x2342   : > { %6630 = vrsqrt.f32 %v5145_v38 }
0x234c   : > { %v6631_v19 = vpop.eup %6630 }
0x234d   : > { %v5147_v21 = vmul.f32 %v6631_v19, %v5139_v28 }
0x234f   : > { %v5154_v25 = vmul.f32 %v5632_v20, %v5147_v21 }
0x2351   : > { %v5161_v26 = vadd.f32 %v5633_v22, %v5154_v25 }
0x2353   : > { %6335 = vmatpush3.msra.mxu0 %v5161_v26 }
0x2354   : > { %6337 = vmatmul.mubr.msk.f32.vlgmr.msra.gmra.mrb[54].mxu0 %vm999_vm2, %v5634_v27  ;;  %6554 = vmatprep.subr.bf16.mxu0 %v6663_v12 }
0x2355   : > { %6556 = vmatpush3.bf16.msra.mxu0 %v6555_v29  ;;  %6347 = vmatprep.mubr.msk.f32.mxu0 %vm6664_vm1, %v6665_v16 }
0x2356   : > { %6557 = vmatprep.subr.bf16.mxu0 %v6663_v12 }
0x2359   : > { %6559 = vmatpush3.bf16.msra.mxu0 %v6558_v32 }
0x2427   : > { %v5238_v33 = vpop.f32.mrb[54].mxu0 }
0x2428   : > { %6348 = vmatmul.mubr.msk.f32.vlgmr.msra.gmra.mrb[56].mxu0 %vm724_vm0, %v5238_v33  ;;  %v6338_v34 = vpop.f32.mrb[55].mxu0 }
0x24fb   : > { %v5315_v35 = vpop.f32.mrb[56].mxu0 }
0x24fc   : > { %v5319_v36 = vmul.f32 %v5315_v35, %v5315_v35  ;;  %v6349_v37 = vpop.f32.mrb[57].mxu0 }
0x24fe   : > { %v5321_v40 = vsel %vm5320_vm4, %v5319_v36, 0.0 }
0x24ff   : > { %5322 = vadd.xlane.f32.xlu0 %v5321_v40 }
0x258c   : > { %v5323_v41 = vpop.xlane.xlu0 %5322 }
0x258d   : > { %v5324_v42 = vadd.f32 1e-12, %v5323_v41 }
0x258f   : > { %6632 = vrsqrt.f32 %v5324_v42 }
0x2599   : > { %v6633_v43 = vpop.eup %6632 }
0x259a   : > { %v5326_v12 = vmul.f32 %v6633_v43, %v5315_v35 }
0x259c   : > { %5327 = vst.msk [vmem:[%s717_s22] sm:$0x1] %vm5320_vm4, %v5326_v12 }
0x259d PF: > { %s7815_s4 = sld [smem:[#allocation5_spill]] }
0x25a3   : > { %s34_s4 = sadd.s32 1, %s7815_s4  }
0x25a4   : > { %p31_p1 = scmp.ge.s32.totalorder %s34_s4, 7  }
0x25a6   :  { %33 = sbr.rel (!%p31_p1) target bundleno = 12 (0xc), region = 205 }
0x25ad   :  { %5345 = vsyncpa [#allocation3], 1 }
0x25ae   :  { %5347 = vsyncpa [#allocation3 + $0x1], 1 }

// kernel: clip_test_time_tuning_forward.3
= control target key start
LH: loop header
LB: loop body
LE: loop exit
PB: predicated region body
PF: predicated region fallthrough
CT: control target
= control target key end

     0   :  { %s11900_s0 = inlined_call_operand.vmem [shape: f32[2,17,48], index: 0, kind: input, shape index: {}]   ;;  %s11901_s1 = inlined_call_operand.vmem [shape: f32[48,32], index: 1, kind: input, shape index: {}]   ;;  %s11902_s2 = inlined_call_operand.vmem [shape: f32[17,32], index: 2, kind: input, shape index: {}]   ;;  %s11903_s3 = inlined_call_operand.vmem [shape: f32[1,32], index: 3, kind: input, shape index: {}]   ;;  %s11904_s4 = inlined_call_operand.vmem [shape: f32[1,32], index: 4, kind: input, shape index: {}]   ;;  %s11905_s5 = inlined_call_operand.vmem [shape: f32[8,32,8], index: 5, kind: input, shape index: {}]   ;;  %s11906_s6 = inlined_call_operand.vmem [shape: f32[8,32,8], index: 6, kind: input, shape index: {}]   ;;  %s11907_s7 = inlined_call_operand.vmem [shape: f32[8,32,8], index: 7, kind: input, shape index: {}]   ;;  %s11908_s8 = inlined_call_operand.vmem [shape: f32[8,1,8], index: 8, kind: input, shape index: {}]   ;;  %s11909_s9 = inlined_call_operand.vmem [shape: f32[8,1,8], index: 9, kind: input, shape index: {}]   ;;  %s11910_s10 = inlined_call_operand.vmem [shape: f32[8,1,8], index: 10, kind: input, shape index: {}]   ;;  %s11911_s11 = inlined_call_operand.vmem [shape: f32[8,8,32], index: 11, kind: input, shape index: {}]   ;;  %s11912_s12 = inlined_call_operand.vmem [shape: f32[2,1,32], index: 12, kind: input, shape index: {}]   ;;  %s11913_s13 = inlined_call_operand.vmem [shape: f32[2,1,32], index: 13, kind: input, shape index: {}]   ;;  %s11914_s14 = inlined_call_operand.vmem [shape: f32[2,1,32], index: 14, kind: input, shape index: {}]   ;;  %s11915_s15 = inlined_call_operand.vmem [shape: f32[2,1,32], index: 15, kind: input, shape index: {}]   ;;  %s11916_s16 = inlined_call_operand.vmem [shape: f32[2,1,32], index: 16, kind: input, shape index: {}]   ;;  %s11917_s17 = inlined_call_operand.vmem [shape: f32[2,32,128], index: 17, kind: input, shape index: {}]   ;;  %s11918_s18 = inlined_call_operand.vmem [shape: f32[2,1,128], index: 18, kind: input, shape index: {}]   ;;  %s11919_s19 = inlined_call_operand.vmem [shape: f32[2,128,32], index: 19, kind: input, shape index: {}]   ;;  %s11920_s20 = inlined_call_operand.vmem [shape: f32[2,1,32], index: 20, kind: input, shape index: {}]   ;;  %s11921_s21 = inlined_call_operand.vmem [shape: f32[1,32], index: 21, kind: input, shape index: {}]   ;;  %s11922_s22 = inlined_call_operand.vmem [shape: f32[1,32], index: 22, kind: input, shape index: {}]   ;;  %s11923_s23 = inlined_call_operand.vmem [shape: f32[32,32], index: 23, kind: input, shape index: {}]   ;;  %s11924_s24 = inlined_call_operand.vmem [shape: f32[1,1,32], index: 24, kind: input, shape index: {}]   ;;  %s11925_s25 = inlined_call_operand.vmem [shape: f32[1,1,32], index: 25, kind: input, shape index: {}]   ;;  %s11926_s26 = inlined_call_operand.vmem [shape: f32[5,32], index: 26, kind: input, shape index: {}]   ;;  %s11927_s27 = inlined_call_operand.<no memory space> [shape: f32[1,1], index: 27, kind: input, shape index: {}]   ;;  %s11928_s28 = inlined_call_operand.hbm [shape: f32[2,1,5], index: 28, kind: output, shape index: {}]  }
   0x1   :  { %11955 = sst [smem:[#allocation13_spill]] %s11900_s0 }
   0x2   :  { %11956 = sst [smem:[#allocation14_spill]] %s11901_s1 }
   0x3   :  { %11957 = sst [smem:[#allocation15_spill]] %s11902_s2 }
   0x4   :  { %11958 = sst [smem:[#allocation16_spill]] %s11903_s3 }
   0x5   :  { %11959 = sst [smem:[#allocation17_spill]] %s11904_s4 }
   0x6   :  { %11960 = sst [smem:[#allocation18_spill]] %s11905_s5 }
   0x7   :  { %11961 = sst [smem:[#allocation19_spill]] %s11906_s6 }
   0x8   :  { %11962 = sst [smem:[#allocation20_spill]] %s11907_s7 }
   0x9   :  { %11963 = sst [smem:[#allocation21_spill]] %s11908_s8 }
   0xa   :  { %11964 = sst [smem:[#allocation22_spill]] %s11909_s9 }
   0xb   :  { %11965 = sst [smem:[#allocation23_spill]] %s11910_s10 }
   0xc   :  { %11966 = sst [smem:[#allocation24_spill]] %s11911_s11 }
   0xd   :  { %11967 = sst [smem:[#allocation25_spill]] %s11912_s12 }
   0xe   :  { %11968 = sst [smem:[#allocation26_spill]] %s11924_s24 }
   0xf   :  { %11969 = sst [smem:[#allocation27_spill]] %s11928_s28 }
  0x10   :  { %33 = sst [smem:[#allocation2]] %s11927_s27 }
  0x11   :  { %34 = vsyncpa [#allocation4], 0 }
  0x12   :  { %36 = vsyncpa [#allocation4 + $0x1], 0  ;;  %s10042_s9 = smov 0   ;;  %s10044_s30 = smov 0  }
  0x13   :  { %s10046_s3 = smov 0   ;;  %s10048_s6 = smov 0  }
  0x14 LB: > { %11970 = sst [smem:[#allocation6_spill]] %s9876_s9  ;;  %s10063_s27 = sadd.s32 4294967295, %s9888_s6   ;;  %s9888_s6 = sphi %s10048_s6, %s12002_s6   ;;  %s9884_s3 = sphi %s10046_s3, %s12004_s3   ;;  %s9880_s30 = sphi %s10044_s30, %s12006_s30   ;;  %s9876_s9 = sphi %s10042_s9, %s12005_s9  }
  0x15   : > { %11971 = sst [smem:[#allocation7_spill]] %s9884_s3  ;;  %s7518_s10 = sadd.s32 4294967294, %s9888_s6  }
  0x16   : > { %11972 = sst [smem:[#allocation8_spill]] %s9888_s6  ;;  %s10067_s0 = sadd.s32 1, %s9888_s6  }
  0x17   : > { %11973 = sst [smem:[#allocation9_spill]] %s10067_s0  ;;  %s642_s11 = sadd.s32 1, %s9884_s3 }
  0x18   : > { %s639_s29 = ssub.s32 %s9888_s6, %s10067_s0  ;;  %p652_p0 = scmp.ne.s32.totalorder %s9884_s3, %s9880_s30 }
  0x19   : > { %p640_p1 = scmp.eq.s32.totalorder %s639_s29, 0  ;;  %p653_p2 = scmp.eq.s32.totalorder %s10063_s27, 1 }
  0x1a   : > { %p658_p3 = scmp.ne.s32.totalorder %s9880_s30, %s9876_s9  ;;  %p659_p4 = scmp.eq.s32.totalorder %s7518_s10, 1 }
  0x1b   : > { %s10078_s2 = scalar_select %p640_p1, %s9884_s3, %s642_s11  }
  0x1c   : > { %p10080_p5 = por %p653_p2, %p652_p0  ;;  %p10084_p6 = por %p659_p4, %p658_p3 }
  0x1d   : > { %11974 = sst [smem:[#allocation10_spill]] %s10078_s2  ;;  %p7521_p7 = scmp.ge.s32.totalorder %s9888_s6, 1 }
  0x1e   : > { %s11975_s7 = scalar_select %p10080_p5, 1, 0 }
  0x1f   : > { %s11977_s12 = scalar_select %p10084_p6, 1, 0 }
  0x20   : > { %11976 = sst [smem:[#allocation11_spill]] %s11975_s7  ;;  %p766_p8 = scmp.lt.s32.totalorder %s9888_s6, 3 }
  0x21   : > { %11978 = sst [smem:[#allocation12_spill]] %s11977_s12 }
  0x22   : > { %p767_p9 = pnand %p7521_p7, %p766_p8 }
  0x23   : > { %s11979_s8 = sld [smem:[#allocation14_spill]] (!%p767_p9)  ;;  %v9890_v3 = vmov (!%p767_p9), 0.0|0.0   ;;  %vm9891_vm0 = vmmov (!%p767_p9), 0   ;;  %v9892_v6 = vmov (!%p767_p9), 0.0   ;;  %p839_p10 = scmp.lt.s32.totalorder (!%p767_p9), %s10063_s27, 1  ;;  %vm856_vm1 = vcmask (!%p767_p9), 392192  }
  0x24   : > { %770 = sbr.rel (%p767_p9) target bundleno = 10305 (0x2841), region = 132  ;;  %9280 = vmatprep.subr.bf16.mxu0 (!%p767_p9), %v9890_v3  ;;  %8315 = vmatprep.mubr.msk.f32.mxu0 (!%p767_p9), %vm9891_vm0, %v9892_v6  ;;  %s11980_s0 = sld [smem:[#allocation13_spill]] (!%p767_p9)  ;;  %vm948_vm2 = vcmask (!%p767_p9), 261120   ;;  %vm955_vm3 = vcmask (!%p767_p9), 253952   ;;  %vm1351_vm4 = vcmask (!%p767_p9), 64512   ;;  %vm1682_vm6 = vcmask (!%p767_p9), 1040384  }
  0x25   : > { %9289 = vmatprep.subr.bf16.mxu1 (!%p767_p9), %v9890_v3  ;;  %8332 = vmatprep.mubr.msk.f32.mxu1 (!%p767_p9), %vm9891_vm0, %v9892_v6  ;;  %s11981_s4 = sld [smem:[#allocation15_spill]] (!%p767_p9)  ;;  %s11982_s29 = sld [smem:[#allocation16_spill]] (!%p767_p9)  ;;  %vm10393_vm5 = vmpackc.low (!%p767_p9), %vm1351_vm4, %vm1351_vm4  ;;  %vm1619_vm7 = vcmask (!%p767_p9), 138240   ;;  %vm1626_vm8 = vcmask (!%p767_p9), 131072   ;;  %vm1612_vm9 = vcmask (!%p767_p9), 57344   ;;  %vm7448_vm10 = vcmask (!%p767_p9), 32768  }
  0x26   : > { %s11983_s5 = sld [smem:[#allocation17_spill]] (!%p767_p9)  ;;  %s11984_s2 = sld [smem:[#allocation18_spill]] (!%p767_p9) }
  0x27   : > { %s11987_s24 = sld [smem:[#allocation26_spill]] (!%p767_p9)  ;;  %s11992_s3 = sld [smem:[#allocation21_spill]] (!%p767_p9) }
  0x28   : > { %s7369_s7 = sld [smem:[#allocation2]] (!%p767_p9) }
  0x29   : > { %v847_v0 = vld [vmem:[%s11979_s8] sm:$0xff] (!%p767_p9)  ;;  %v848_v1 = vld [vmem:[%s11979_s8 + $0x8] sm:$0xff] (!%p767_p9)  ;;  %v849_v2 = vld [vmem:[%s11979_s8 + $0x10] sm:$0xff] (!%p767_p9) }
  0x2a   : > { %v9281_v4 = vpack.c.bf16 (!%p767_p9), %v848_v1, %v847_v0  ;;  %v850_v5 = vld [vmem:[%s11979_s8 + $0x18] sm:$0xff] (!%p767_p9)  ;;  %v851_v8 = vld [vmem:[%s11979_s8 + $0x20] sm:$0xff] (!%p767_p9)  ;;  %v852_v9 = vld [vmem:[%s11979_s8 + $0x28] sm:$0xff] (!%p767_p9) }
  0x2b   : > { %v9284_v7 = vpack.c.bf16 %v850_v5, %v849_v2  ;;  %s840_s1 = scalar_select %p839_p10, %s10063_s27, 1  ;;  %v9287_v10 = vpack.c.bf16 %v852_v9, %v851_v8  ;;  %v853_v14 = vld [vmem:[%s11981_s4] sm:$0xff]  ;;  %v854_v18 = vld [vmem:[%s11981_s4 + $0x8] sm:$0xff]  ;;  %v855_v23 = vld [vmem:[%s11981_s4 + $0x10] sm:$0x1] }
  0x2c   : > { %9282 = vmatpush3.bf16.msra.mxu0 %v9281_v4  ;;  %v7526_v54 = vld [vmem:[%s11982_s29] ss:$0 sm:$0xff]  ;;  %s11986_s29 = sld [smem:[#allocation19_spill]]  ;;  %s837_s4 = sand.u32 1, %s9880_s30  }
  0x2d   : > { %9283 = vmatprep.subr.bf16.mxu0 %v9890_v3  ;;  %s9603_s10 = smul.u32 24, %s840_s1  ;;  %v7527_v56 = vld [vmem:[%s11983_s5] ss:$0 sm:$0xff]  ;;  %s11985_s1 = sld [smem:[#allocation20_spill]] }
  0x2e   : > { %s11994_s5 = sld [smem:[#allocation24_spill]]  ;;  %s838_s28 = scalar_lea.vmem [#allocation3], %s837_s4 }
  0x2f   : > { %s843_s12 = scalar_lea.vmem %s11980_s0, %s9603_s10  ;;  %s11988_s10 = sld [smem:[#allocation23_spill]] }
  0x30   : > { %9285 = vmatpush3.bf16.msra.mxu0 %v9284_v7  ;;  %v844_v11 = vld [vmem:[%s843_s12] sm:$0xff]  ;;  %v845_v12 = vld [vmem:[%s843_s12 + $0x8] sm:$0xff]  ;;  %v846_v13 = vld [vmem:[%s843_s12 + $0x10] sm:$0x1]  ;;  %s11989_s0 = sld [smem:[#allocation22_spill]]  ;;  %s11993_s12 = smov %s11992_s3 }
  0x31   : > { %9286 = vmatprep.subr.bf16.mxu0 %v9890_v3 }
  0x34   : > { %9288 = vmatpush3.bf16.msra.mxu0 %v9287_v10 }
  0x35   : > { %9301 = vmatprep.subr.bf16.mxu0 %v9890_v3 }
  0x37   : > { %8316 = vmatmul.mubr.msk.f32.vlgmr.msra.gmra.mrb[0].mxu0 %vm856_vm1, %v844_v11 }
  0x38   : > { %8318 = vmatprep.mubr.msk.f32.mxu0 %vm9891_vm0, %v9892_v6 }
  0x3b   : > { %8319 = vmatmul.mubr.msk.f32.gmra.mrb[2].mxu0 %vm856_vm1, %v845_v12 }
  0x3c   : > { %8321 = vmatprep.mubr.msk.f32.mxu0 %vm9891_vm0, %v9892_v6 }
  0x3f   : > { %8322 = vmatmul.mubr.msk.f32.gmra.mrb[4].mxu0 %vm856_vm1, %v846_v13 }
  0x40   : > { %8366 = vmatprep.mubr.msk.f32.mxu0 %vm9891_vm0, %v9892_v6 }
 0x10a   : > { %v932_v15 = vpop.f32.mrb[0].mxu0 }
 0x10b   : > { %v933_v16 = vadd.f32 %v932_v15, %v853_v14  ;;  %v8317_v17 = vpop.f32.mrb[1].mxu0 }
 0x10d   : > { %v949_v19 = vsel %vm948_vm2, %v933_v16, 0.0 }
 0x10e   : > { %950 = vadd.xlane.f32.xlu0 %v949_v19  ;;  %v937_v20 = vpop.f32.mrb[2].mxu0 }
 0x10f   : > { %v938_v21 = vadd.f32 %v937_v20, %v854_v18  ;;  %v8320_v22 = vpop.f32.mrb[3].mxu0 }
 0x111   : > { %v952_v24 = vsel %vm948_vm2, %v938_v21, 0.0 }
 0x112   : > { %953 = vadd.xlane.f32.xlu0 %v952_v24  ;;  %v942_v25 = vpop.f32.mrb[4].mxu0  ;;  %v1070_v24 = vld [vmem:[%s11984_s2 + $0x8] sm:$0xff] }
 0x113   : > { %v943_v26 = vadd.f32 %v942_v25, %v855_v23  ;;  %v8323_v27 = vpop.f32.mrb[5].mxu0  ;;  %v1069_v23 = vld [vmem:[%s11984_s2] sm:$0xff] }
 0x114   : > { %v1260_v25 = vld [vmem:[%s11985_s1] sm:$0xff]  ;;  %v1261_v27 = vld [vmem:[%s11985_s1 + $0x8] sm:$0xff] }
 0x115   : > { %v956_v28 = vsel %vm955_vm3, %v943_v26, 0.0 }
 0x116   : > { %957 = vadd.xlane.f32.xlu1 %v956_v28  ;;  %v9302_v28 = vpack.c.bf16 %v1261_v27, %v1260_v25  ;;  %v1175_v25 = vlaneseq }
 0x118   : > { %9303 = vmatpush3.bf16.msra.mxu0 %v9302_v28 }
 0x119   : > { %9304 = vmatprep.subr.bf16.mxu0 %v9890_v3 }
 0x19b   : > { %v951_v29 = vpop.xlane.xlu0 %950 }
 0x19c   : > { %v960_v30 = vmul.f32 0.03125, %v951_v29  ;;  %v1071_v29 = vld [vmem:[%s11984_s2 + $0x10] sm:$0xff] }
 0x19e   : > { %v963_v31 = vsub.f32 %v933_v16, %v960_v30  ;;  %v1072_v30 = vld [vmem:[%s11984_s2 + $0x18] sm:$0xff] }
 0x19f   : > { %v954_v32 = vpop.xlane.xlu0 %953 }
 0x1a0   : > { %v961_v33 = vmul.f32 0.03125, %v954_v32  ;;  %v966_v34 = vmul.f32 %v963_v31, %v963_v31  ;;  %v9293_v32 = vpack.c.bf16 %v1072_v30, %v1071_v29 }
 0x1a2   : > { %v964_v35 = vsub.f32 %v938_v21, %v961_v33  ;;  %v969_v36 = vsel %vm948_vm2, %v966_v34, 0.0  ;;  %v1263_v33 = vld [vmem:[%s11985_s1 + $0x18] sm:$0xff] }
 0x1a3   : > { %970 = vadd.xlane.f32.xlu1 %v969_v36  ;;  %v958_v37 = vpop.xlane.xlu1 %957 }
 0x1a4   : > { %v962_v38 = vmul.f32 0.03125, %v958_v37  ;;  %v967_v39 = vmul.f32 %v964_v35, %v964_v35 }
 0x1a6   : > { %v965_v40 = vsub.f32 %v943_v26, %v962_v38  ;;  %v972_v41 = vsel %vm948_vm2, %v967_v39, 0.0  ;;  %v9290_v26 = vpack.c.bf16 %v1070_v24, %v1069_v23  ;;  %v10355_v24 = vld [vmem:[%s11987_s24] sm:$0x1] }
 0x1a7   : > { %973 = vadd.xlane.f32.xlu0 %v972_v41 }
 0x1a8   : > { %v968_v42 = vmul.f32 %v965_v40, %v965_v40  ;;  %9291 = vmatpush3.bf16.msra.mxu1 %v9290_v26  ;;  %v1176_v26 = vshrl.u32 %v1175_v25, 7 }
 0x1a9   : > { %9292 = vmatprep.subr.bf16.mxu1 %v9890_v3 }
 0x1aa   : > { %v975_v43 = vsel %vm955_vm3, %v968_v42, 0.0  ;;  %v10361_v27 = vsub.s32 0, %v1176_v26 }
 0x1ab   : > { %976 = vadd.xlane.f32.xlu1 %v975_v43 }
 0x1ac   : > { %9294 = vmatpush3.bf16.msra.mxu1 %v9293_v32 }
 0x1ad   : > { %9295 = vmatprep.subr.bf16.mxu1 %v9890_v3 }
 0x230   : > { %v971_v44 = vpop.xlane.xlu1 %970 }
 0x231   : > { %v978_v45 = vmul.f32 0.03125, %v971_v44 }
 0x233   : > { %v981_v46 = vadd.f32 1e-05, %v978_v45  ;;  %v7528_v45 = vld [vmem:[%s11913_s13] ss:$0 sm:$0xff] }
 0x234   : > { %v974_v47 = vpop.xlane.xlu0 %973 }
 0x235   : > { %9646 = vrsqrt.f32 %v981_v46  ;;  %v979_v48 = vmul.f32 0.03125, %v974_v47  ;;  %v1169_v47 = vld [vmem:[%s11986_s29] sm:$0xff] }
 0x237   : > { %v982_v49 = vadd.f32 1e-05, %v979_v48  ;;  %v1170_v48 = vld [vmem:[%s11986_s29 + $0x8] sm:$0xff] }
 0x238   : > { %v977_v50 = vpop.xlane.xlu1 %976 }
 0x239   : > { %9648 = vrsqrt.f32 %v982_v49  ;;  %v980_v51 = vmul.f32 0.03125, %v977_v50  ;;  %v7529_v49 = vld [vmem:[%s11914_s14] ss:$0 sm:$0xff] }
 0x23b   : > { %v983_v52 = vadd.f32 1e-05, %v980_v51 }
 0x23d   : > { %9650 = vrsqrt.f32 %v983_v52  ;;  %v10207_v52 = vpack.c.bf16 %v1170_v48, %v1169_v47 }
 0x23f   : > { %v9647_v53 = vpop.eup %9646 }
 0x240   : > { %v987_v55 = vmul.f32 %v9647_v53, %v963_v31  ;;  %v1262_v31 = vld [vmem:[%s11985_s1 + $0x10] sm:$0xff] }
 0x241   : > { %v9305_v34 = vpack.c.bf16 %v1263_v33, %v1262_v31 }
 0x242   : > { %v996_v57 = vmul.f32 %v7526_v54, %v987_v55  ;;  %v1171_v55 = vld [vmem:[%s11986_s29 + $0x10] sm:$0xff] }
 0x243   : > { %v9649_v58 = vpop.eup %9648  ;;  %9306 = vmatpush3.bf16.msra.mxu0 %v9305_v34 }
 0x244   : > { %v10149_v59 = vadd.f32 %v7527_v56, %v996_v57  ;;  %v988_v60 = vmul.f32 %v9649_v58, %v964_v35  ;;  %9317 = vmatprep.subr.bf16.mxu0 %v9890_v3 }
 0x246   : > { %v1012_v61 = vsel %vm948_vm2, %v10149_v59, 0.0  ;;  %v997_v62 = vmul.f32 %v7526_v54, %v988_v60 }
 0x247   : > { %v9651_v63 = vpop.eup %9650  ;;  %1013 = vadd.xlane.f32.xlu0 %v1012_v61 }
 0x248   : > { %v10153_v0 = vadd.f32 %v7527_v56, %v997_v62  ;;  %v989_v1 = vmul.f32 %v9651_v63, %v965_v40 }
 0x24a   : > { %v1015_v2 = vsel %vm948_vm2, %v10153_v0, 0.0  ;;  %v998_v4 = vmul.f32 %v7526_v54, %v989_v1 }
 0x24b   : > { %1016 = vadd.xlane.f32.xlu1 %v1015_v2  ;;  %v7552_v2 = vld [vmem:[%s11984_s2 + $0x20] sm:$0xff] }
 0x24c   : > { %v10157_v5 = vadd.f32 %v7527_v56, %v998_v4  ;;  %v1172_v56 = vld [vmem:[%s11986_s29 + $0x18] sm:$0xff]  ;;  %v7553_v4 = vld [vmem:[%s11984_s2 + $0x28] sm:$0xff] }
 0x24d   : > { %v10228_v62 = vpack.c.bf16 %v1172_v56, %v1171_v55 }
 0x24e   : > { %v1018_v7 = vsel %vm955_vm3, %v10157_v5, 0.0 }
 0x24f   : > { %1019 = vadd.xlane.f32.xlu0 %v1018_v7  ;;  %v10262_v7 = vld [vmem:[%s11925_s25] sm:$0x1] }
 0x2d4   : > { %v1014_v8 = vpop.xlane.xlu0 %1013 }
 0x2d5   : > { %v1021_v9 = vmul.f32 0.03125, %v1014_v8  ;;  %v9327_v8 = vpack.c.bf16 %v7553_v4, %v7552_v2 }
 0x2d7   : > { %v1024_v10 = vsub.f32 %v10149_v59, %v1021_v9  ;;  %v7554_v9 = vld [vmem:[%s11984_s2 + $0x30] sm:$0xff] }
 0x2d8   : > { %v1017_v11 = vpop.xlane.xlu1 %1016 }
 0x2d9   : > { %v1022_v12 = vmul.f32 0.03125, %v1017_v11  ;;  %v1027_v13 = vmul.f32 %v1024_v10, %v1024_v10 }
 0x2db   : > { %v1025_v14 = vsub.f32 %v10153_v0, %v1022_v12  ;;  %v1030_v15 = vsel %vm948_vm2, %v1027_v13, 0.0  ;;  %v7569_v12 = vld [vmem:[%s11985_s1 + $0x20] sm:$0xff]  ;;  %v7570_v13 = vld [vmem:[%s11985_s1 + $0x28] sm:$0xff] }
 0x2dc   : > { %1031 = vadd.xlane.f32.xlu1 %v1030_v15  ;;  %v1020_v16 = vpop.xlane.xlu0 %1019  ;;  %v7571_v15 = vld [vmem:[%s11985_s1 + $0x30] sm:$0xff] }
 0x2dd   : > { %v1023_v17 = vmul.f32 0.03125, %v1020_v16  ;;  %v1028_v18 = vmul.f32 %v1025_v14, %v1025_v14  ;;  %v7572_v16 = vld [vmem:[%s11985_s1 + $0x38] sm:$0xff] }
 0x2df   : > { %v1026_v19 = vsub.f32 %v10157_v5, %v1023_v17  ;;  %v1033_v20 = vsel %vm948_vm2, %v1028_v18, 0.0  ;;  %v10305_v17 = vpack.c.bf16 %v7572_v16, %v7571_v15  ;;  %v7561_v18 = vld [vmem:[%s11986_s29 + $0x20] sm:$0xff] }
 0x2e0   : > { %1034 = vadd.xlane.f32.xlu0 %v1033_v20  ;;  %v10413_v16 = vld [vmem:[%s11988_s10 + $0x1] sm:$0x1] }
 0x2e1   : > { %v1029_v21 = vmul.f32 %v1026_v19, %v1026_v19 }
 0x2e3   : > { %v1036_v22 = vsel %vm955_vm3, %v1029_v21, 0.0  ;;  %v7563_v21 = vld [vmem:[%s11986_s29 + $0x30] sm:$0xff] }
 0x2e4   : > { %1037 = vadd.xlane.f32.xlu1 %v1036_v22  ;;  %v7564_v22 = vld [vmem:[%s11986_s29 + $0x38] sm:$0xff] }
 0x2e5   : > { %v10339_v23 = vpack.c.bf16 %v7564_v22, %v7563_v21 }
 0x369   : > { %v1032_v35 = vpop.xlane.xlu1 %1031 }
 0x36a   : > { %v1039_v36 = vmul.f32 0.03125, %v1032_v35 }
 0x36c   : > { %v1042_v37 = vadd.f32 1e-05, %v1039_v36 }
 0x36d   : > { %v1035_v38 = vpop.xlane.xlu0 %1034 }
 0x36e   : > { %9652 = vrsqrt.f32 %v1042_v37  ;;  %v1040_v39 = vmul.f32 0.03125, %v1035_v38 }
 0x370   : > { %v1043_v40 = vadd.f32 1e-05, %v1040_v39 }
 0x371   : > { %v1038_v41 = vpop.xlane.xlu1 %1037 }
 0x372   : > { %9654 = vrsqrt.f32 %v1043_v40  ;;  %v1041_v42 = vmul.f32 0.03125, %v1038_v41 }
 0x374   : > { %v1044_v43 = vadd.f32 1e-05, %v1041_v42 }
 0x376   : > { %9656 = vrsqrt.f32 %v1044_v43 }
 0x378   : > { %v9653_v44 = vpop.eup %9652 }
 0x379   : > { %v1048_v46 = vmul.f32 %v9653_v44, %v1024_v10  ;;  %v7555_v10 = vld [vmem:[%s11984_s2 + $0x38] sm:$0xff] }
 0x37a   : > { %v9330_v11 = vpack.c.bf16 %v7555_v10, %v7554_v9  ;;  %v7530_v10 = vld [vmem:[%s11992_s3] ss:$0 sm:$0xff]  ;;  %s11995_s3 = sld [smem:[#allocation25_spill]] }
 0x37b   : > { %v1057_v50 = vmul.f32 %v7528_v45, %v1048_v46 }
 0x37c   : > { %v9655_v51 = vpop.eup %9654 }
 0x37d   : > { %v10209_v53 = vadd.f32 %v7529_v49, %v1057_v50  ;;  %v1049_v54 = vmul.f32 %v9655_v51, %v1025_v14  ;;  %v10289_v14 = vpack.c.bf16 %v7570_v13, %v7569_v12 }
 0x37f   : > { %v1058_v57 = vmul.f32 %v7528_v45, %v1049_v54  ;;  %8333 = vmatmul.mubr.msk.f32.vlgmr.msra.gmra.mrb[0].mxu1 %vm948_vm2, %v10209_v53  ;;  %8367 = vmatmul.mubr.msk.f32.vlgmr.msra.gmra.mrb[6].mxu0 %vm948_vm2, %v10209_v53 }
 0x380   : > { %v9657_v58 = vpop.eup %9656  ;;  %8335 = vmatprep.mubr.msk.f32.mxu1 %vm9891_vm0, %v9892_v6  ;;  %9297 = vmatpush3.bf16.msra.mxu1 %v10207_v52  ;;  %s11996_s11 = smov %s11995_s3 }
 0x381   : > { %v10224_v60 = vadd.f32 %v7529_v49, %v1058_v57  ;;  %v1050_v61 = vmul.f32 %v9657_v58, %v1026_v19  ;;  %8369 = vmatprep.mubr.msk.f32.mxu0 %vm9891_vm0, %v9892_v6  ;;  %9319 = vmatpush3.bf16.msra.mxu0 %v9302_v28  ;;  %v7562_v19 = vld [vmem:[%s11986_s29 + $0x28] sm:$0xff]  ;;  %v10366_v28 = vld [vmem:[%s11988_s10] sm:$0x1] }
 0x382   : > { %9320 = vmatprep.subr.bf16.mxu0 %v9890_v3  ;;  %9298 = vmatprep.subr.bf16.mxu1 %v9890_v3  ;;  %v10326_v20 = vpack.c.bf16 %v7562_v19, %v7561_v18  ;;  %v10370_v31 = vrot.slane %v10366_v28, %v10361_v27  ;;  %v1967_v19 = vrot.slane %v10413_v16, %v10361_v27 }
 0x383   : > { %v1059_v63 = vmul.f32 %v7528_v45, %v1050_v61  ;;  %8336 = vmatmul.mubr.msk.f32.gmra.mrb[2].mxu1 %vm948_vm2, %v10224_v60  ;;  %8370 = vmatmul.mubr.msk.f32.gmra.mrb[8].mxu0 %vm948_vm2, %v10224_v60  ;;  %v10385_v45 = vld [vmem:[%s11989_s0] sm:$0x1] }
 0x384   : > { %8338 = vmatprep.mubr.msk.f32.mxu1 %vm9891_vm0, %v9892_v6  ;;  %8372 = vmatprep.mubr.msk.f32.mxu0 %vm9891_vm0, %v9892_v6  ;;  %v1178_v48 = vrot.slane %v10385_v45, %v10361_v27 }
 0x385   : > { %v10240_v1 = vadd.f32 %v7529_v49, %v1059_v63  ;;  %9322 = vmatpush3.bf16.msra.mxu0 %v9305_v34  ;;  %9300 = vmatpush3.bf16.msra.mxu1 %v10228_v62 }
 0x386   : > { %9326 = vmatprep.subr.bf16.mxu0 %v9890_v3  ;;  %9307 = vmatprep.subr.bf16.mxu1 %v9890_v3 }
 0x387   : > { %8339 = vmatmul.mubr.msk.f32.gmra.mrb[4].mxu1 %vm948_vm2, %v10240_v1  ;;  %8373 = vmatmul.mubr.msk.f32.gmra.mrb[10].mxu0 %vm948_vm2, %v10240_v1 }
 0x388   : > { %8349 = vmatprep.mubr.msk.f32.mxu1 %vm9891_vm0, %v9892_v6  ;;  %8409 = vmatprep.mubr.msk.f32.mxu0 %vm9891_vm0, %v9892_v6 }
 0x38b   : > { %8350 = vmatmul.mubr.msk.f32.vlgmr.msra.gmra.mrb[6].mxu1 %vm948_vm2, %v10209_v53  ;;  %8410 = vmatmul.mubr.msk.f32.vlgmr.msra.gmra.mrb[12].mxu0 %vm948_vm2, %v10262_v7 }
 0x38c   : > { %9328 = vmatpush3.bf16.msra.mxu0 %v9327_v8  ;;  %8352 = vmatprep.mubr.msk.f32.mxu1 %vm9891_vm0, %v9892_v6 }
 0x38d   : > { %9329 = vmatprep.subr.bf16.mxu0 %v9890_v3  ;;  %8435 = vmatprep.mubr.msk.f32.mxu0 %vm9891_vm0, %v9892_v6 }
 0x38f   : > { %8353 = vmatmul.mubr.msk.f32.gmra.mrb[8].mxu1 %vm948_vm2, %v10224_v60 }
 0x390   : > { %9331 = vmatpush3.bf16.msra.mxu0 %v9330_v11  ;;  %8355 = vmatprep.mubr.msk.f32.mxu1 %vm9891_vm0, %v9892_v6 }
 0x391   : > { %9338 = vmatprep.subr.bf16.mxu0 %v9890_v3 }
 0x393   : > { %8436 = vmatmul.mubr.msk.f32.vlgmr.msra.gmra.mrb[14].mxu0 %vm948_vm2, %v10209_v53  ;;  %8356 = vmatmul.mubr.msk.f32.gmra.mrb[10].mxu1 %vm948_vm2, %v10240_v1 }
 0x394   : > { %8438 = vmatprep.mubr.msk.f32.mxu0 %vm9891_vm0, %v9892_v6  ;;  %9340 = vmatpush3.bf16.msra.mxu0 %v10289_v14 }
 0x395   : > { %9341 = vmatprep.subr.bf16.mxu0 %v9890_v3  ;;  %8381 = vmatprep.mubr.msk.f32.mxu1 %vm9891_vm0, %v9892_v6 }
 0x397   : > { %8439 = vmatmul.mubr.msk.f32.gmra.mrb[16].mxu0 %vm948_vm2, %v10224_v60 }
 0x398   : > { %8441 = vmatprep.mubr.msk.f32.mxu0 %vm9891_vm0, %v9892_v6  ;;  %9343 = vmatpush3.bf16.msra.mxu0 %v10305_v17 }
 0x399   : > { %9348 = vmatprep.subr.bf16.mxu0 %v9890_v3 }
 0x39b   : > { %8442 = vmatmul.mubr.msk.f32.gmra.mrb[18].mxu0 %vm948_vm2, %v10240_v1 }
 0x39c   : > { %8469 = vmatprep.mubr.msk.f32.mxu0 %vm9891_vm0, %v9892_v6 }
 0x39f   : > { %8470 = vmatmul.mubr.msk.f32.vlgmr.msra.gmra.mrb[20].mxu0 %vm948_vm2, %v10209_v53 }
 0x3a0   : > { %8472 = vmatprep.mubr.msk.f32.mxu0 %vm9891_vm0, %v9892_v6  ;;  %9350 = vmatpush3.bf16.msra.mxu0 %v10326_v20 }
 0x3a1   : > { %9351 = vmatprep.subr.bf16.mxu0 %v9890_v3 }
 0x3a3   : > { %8473 = vmatmul.mubr.msk.f32.gmra.mrb[22].mxu0 %vm948_vm2, %v10224_v60 }
 0x3a4   : > { %8475 = vmatprep.mubr.msk.f32.mxu0 %vm9891_vm0, %v9892_v6  ;;  %9353 = vmatpush3.bf16.msra.mxu0 %v10339_v23 }
 0x3a5   : > { %9360 = vmatprep.subr.bf16.mxu0 %v9890_v3 }
 0x3a7   : > { %8476 = vmatmul.mubr.msk.f32.gmra.mrb[24].mxu0 %vm948_vm2, %v10240_v1 }
 0x3a8   : > { %8501 = vmatprep.mubr.msk.f32.mxu0 %vm9891_vm0, %v9892_v6 }
 0x3ab   : > { %8502 = vmatmul.mubr.msk.f32.vlgmr.msra.gmra.mrb[26].mxu0 %vm948_vm2, %v10355_v24 }
 0x3ac   : > { %8521 = vmatprep.mubr.msk.f32.mxu0 %vm9891_vm0, %v9892_v6 }
 0x452   : > { %v1155_v29 = vpop.f32.mrb[0].mxu1  ;;  %v1337_v30 = vpop.f32.mrb[6].mxu0 }
 0x453   : > { %v8334_v32 = vpop.f32.mrb[1].mxu1  ;;  %v8368_v33 = vpop.f32.mrb[7].mxu0  ;;  %v10373_v36 = vadd.f32 %v1337_v30, %v10370_v31  ;;  %v1156_v15 = vadd.f32 %v7530_v10, %v1155_v29 }
 0x456   : > { %v1160_v34 = vpop.f32.mrb[2].mxu1  ;;  %v1342_v35 = vpop.f32.mrb[8].mxu0 }
 0x457   : > { %v10376_v37 = vadd.f32 %v1342_v35, %v10370_v31  ;;  %v8337_v38 = vpop.f32.mrb[3].mxu1  ;;  %v8371_v39 = vpop.f32.mrb[9].mxu0  ;;  %v1161_v22 = vadd.f32 %v7530_v10, %v1160_v34 }
 0x459   : > { %v9324_v40 = vpack.c.bf16 %v10376_v37, %v10373_v36 }
 0x45a   : > { %v1165_v41 = vpop.f32.mrb[4].mxu1  ;;  %v10380_v42 = vpop.f32.mrb[10].mxu0 }
 0x45b   : > { %v8340_v43 = vpop.f32.mrb[5].mxu1  ;;  %v8374_v44 = vpop.f32.mrb[11].mxu0  ;;  %v1166_v32 = vadd.f32 %v7530_v10, %v1165_v41  ;;  %v1348_v37 = vadd.f32 %v10380_v42, %v10370_v31  ;;  %v7557_v10 = vld [vmem:[%s11993_s12 + $0x1] ss:$0 sm:$0xff] }
 0x45e   : > { %v1246_v46 = vpop.f32.mrb[6].mxu1  ;;  %v10387_v47 = vpop.f32.mrb[12].mxu0 }
 0x45f   : > { %v8351_v49 = vpop.f32.mrb[7].mxu1  ;;  %v8411_v50 = vpop.f32.mrb[13].mxu0  ;;  %v1247_v54 = vadd.f32 %v1246_v46, %v1178_v48 }
 0x462   : > { %v1251_v51 = vpop.f32.mrb[8].mxu1 }
 0x463   : > { %v1252_v55 = vadd.f32 %v1251_v51, %v1178_v48  ;;  %v8354_v56 = vpop.f32.mrb[9].mxu1 }
 0x465   : > { %v9308_v58 = vpack.c.bf16 %v1252_v55, %v1247_v54 }
 0x466   : > { %v10397_v61 = vpop.f32.mrb[14].mxu0  ;;  %v1256_v63 = vpop.f32.mrb[10].mxu1 }
 0x467   : > { %v8437_v2 = vpop.f32.mrb[15].mxu0  ;;  %v8357_v4 = vpop.f32.mrb[11].mxu1  ;;  %9310 = vmatpush3.bf16.xpose.msk.msra.mxu1 %vm10393_vm5, %v9308_v58  ;;  %v1257_v11 = vadd.f32 %v1256_v63, %v1178_v48  ;;  %v10451_v58 = vld [vmem:[%s11989_s0 + $0x1] sm:$0x1] }
 0x468   : > { %8379 = vmatprep.subr.mxu1 %v9892_v6 }
 0x46a   : > { %v10402_v8 = vpop.f32.mrb[16].mxu0 }
 0x46b   : > { %v8440_v9 = vpop.f32.mrb[17].mxu0 }
 0x46e   : > { %v10407_v12 = vpop.f32.mrb[18].mxu0 }
 0x46f   : > { %v8443_v13 = vpop.f32.mrb[19].mxu0  ;;  %8380 = vmatpush3.xpose.msk.msra.mxu1 %vm1351_vm4, %v1257_v11 }
 0x470   : > { %9311 = vmatprep.subr.bf16.mxu1 %v9890_v3 }
 0x472   : > { %v2035_v18 = vpop.f32.mrb[20].mxu0  ;;  %8382 = vmatmul.mubr.msk.f32.vlgmr.msra.gmra.mrb[12].mxu1 %vm1351_vm4, %v1156_v15 }
 0x473   : > { %v8471_v21 = vpop.f32.mrb[21].mxu0  ;;  %8384 = vmatprep.mubr.msk.f32.mxu1 %vm9891_vm0, %v9892_v6  ;;  %9313 = vmatpush3.bf16.msra.mxu1 %v10207_v52  ;;  %v2036_v26 = vadd.f32 %v2035_v18, %v1967_v19  ;;  %v10461_v18 = vadd.f32 %v7557_v10, %v10397_v61 }
 0x474   : > { %9314 = vmatprep.subr.bf16.mxu1 %v9890_v3  ;;  %v10466_v21 = vadd.f32 %v7557_v10, %v10402_v8 }
 0x476   : > { %v2040_v25 = vpop.f32.mrb[22].mxu0  ;;  %8385 = vmatmul.mubr.msk.f32.gmra.mrb[14].mxu1 %vm1351_vm4, %v1161_v22 }
 0x477   : > { %v2041_v29 = vadd.f32 %v2040_v25, %v1967_v19  ;;  %v8474_v30 = vpop.f32.mrb[23].mxu0  ;;  %8387 = vmatprep.mubr.msk.f32.mxu1 %vm9891_vm0, %v9892_v6  ;;  %9316 = vmatpush3.bf16.msra.mxu1 %v10228_v62 }
 0x478   : > { %9323 = vmatprep.subr.bf16.mxu1 %v9890_v3 }
 0x479   : > { %v9361_v33 = vpack.c.bf16 %v2041_v29, %v2036_v26  ;;  %v10471_v26 = vadd.f32 %v7557_v10, %v10407_v12 }
 0x47a   : > { %v2045_v35 = vpop.f32.mrb[24].mxu0  ;;  %8388 = vmatmul.mubr.msk.f32.gmra.mrb[16].mxu1 %vm1351_vm4, %v1166_v32 }
 0x47b   : > { %v8477_v52 = vpop.f32.mrb[25].mxu0  ;;  %9362 = vmatpush3.bf16.msra.mxu0 %v9361_v33  ;;  %8398 = vmatprep.mubr.msk.f32.mxu1 %vm9891_vm0, %v9892_v6  ;;  %v2046_v34 = vadd.f32 %v2045_v35, %v1967_v19 }
 0x47c   : > { %8519 = vmatprep.subr.mxu0 %v9892_v6 }
 0x47e   : > { %v2216_v36 = vpop.f32.mrb[26].mxu0  ;;  %8399 = vmatmul.mubr.msk.f32.vlgmr.msra.gmra.mrb[18].mxu1 %vm948_vm2, %v10355_v24 }
 0x47f   : > { %9325 = vmatpush3.bf16.msra.mxu1 %v9324_v40  ;;  %8520 = vmatpush3.msk.msra.mxu0 %vm1682_vm6, %v2046_v34  ;;  %v8503_v62 = vpop.f32.mrb[27].mxu0  ;;  %v2217_v2 = vadd.f32 %v10451_v58, %v2216_v36 }
 0x480   : > { %8416 = vmatprep.subr.mxu1 %v9892_v6  ;;  %8418 = vmatprep.mubr.msk.f32.mxu1 %vm9891_vm0, %v9892_v6 }
 0x481   : > { %8541 = vmatprep.subr.mxu0 %v9892_v6 }
 0x483   : > { %8417 = vmatpush3.msk.msra.mxu1 %vm1682_vm6, %v1348_v37 }
 0x484   : > { %9332 = vmatprep.subr.bf16.mxu1 %v9890_v3 }
 0x545   : > { %v1436_v38 = vpop.f32.mrb[12].mxu1 }
 0x546   : > { %v1450_v39 = vmul.f32 0.35355338, %v1436_v38  ;;  %v8383_v40 = vpop.f32.mrb[13].mxu1 }
 0x548   : > { %v1620_v41 = vsel %vm1619_vm7, %v1450_v39, -inf }
 0x549   : > { %1621 = vmax.xlane.f32.xlu1 %v1620_v41  ;;  %v1441_v43 = vpop.f32.mrb[14].mxu1 }
 0x54a   : > { %v1451_v44 = vmul.f32 0.35355338, %v1441_v43  ;;  %v8386_v46 = vpop.f32.mrb[15].mxu1 }
 0x54c   : > { %v1623_v48 = vsel %vm1619_vm7, %v1451_v44, -inf }
 0x54d   : > { %1624 = vmax.xlane.f32.xlu1 %v1623_v48  ;;  %v1446_v31 = vpop.f32.mrb[16].mxu1 }
 0x54e   : > { %v1452_v42 = vmul.f32 0.35355338, %v1446_v31  ;;  %v8389_v49 = vpop.f32.mrb[17].mxu1 }
 0x550   : > { %v1627_v50 = vsel %vm1626_vm8, %v1452_v42, -inf }
 0x551   : > { %1628 = vmax.xlane.f32.xlu1 %v1627_v50  ;;  %v1522_v51 = vpop.f32.mrb[18].mxu1 }
 0x552   : > { %v1523_v54 = vadd.f32 %v1522_v51, %v10385_v45  ;;  %v8400_v55 = vpop.f32.mrb[19].mxu1  ;;  %v2293_v45 = vrot.slane %v2217_v2, %v10361_v27 }
 0x554   : > { %v1602_v56 = vrot.slane %v1523_v54, %v10361_v27  ;;  %v2294_v19 = vmul.f32 %v2293_v45, %v10461_v18  ;;  %v2295_v25 = vmul.f32 %v2293_v45, %v10466_v21  ;;  %v2296_v29 = vmul.f32 %v2293_v45, %v10471_v26 }
 0x555   : > { %v1596_v54 = vadd.f32 %v10387_v47, %v10366_v28 }
 0x556   : > { %v1603_v63 = vmul.f32 %v1602_v56, %v1156_v15  ;;  %v1604_v9 = vmul.f32 %v1602_v56, %v1161_v22  ;;  %v1605_v13 = vmul.f32 %v1602_v56, %v1166_v32  ;;  %v2297_v22 = vsel %vm1351_vm4, %v2294_v19, 0.0 }
 0x557   : > { %v2300_v61 = vsel %vm1351_vm4, %v2295_v25, 0.0  ;;  %v2303_v30 = vsel %vm1612_vm9, %v2296_v29, 0.0  ;;  %v1669_v2 = vrot.slane %v1596_v54, %v10361_v27 }
 0x558   : > { %v1606_v4 = vsel %vm1351_vm4, %v1603_v63, 0.0  ;;  %v1609_v11 = vsel %vm1351_vm4, %v1604_v9, 0.0  ;;  %v1613_v15 = vsel %vm1612_vm9, %v1605_v13, 0.0 }
 0x559   : > { %1607 = vadd.xlane.f32.xlu0 %v1606_v4 }
 0x55d   : > { %1610 = vadd.xlane.f32.xlu0 %v1609_v11 }
 0x561   : > { %1614 = vadd.xlane.f32.xlu0 %v1613_v15 }
 0x565   : > { %2298 = vadd.xlane.f32.xlu0 %v2297_v22 }
 0x569   : > { %2301 = vadd.xlane.f32.xlu0 %v2300_v61 }
 0x56d   : > { %2304 = vadd.xlane.f32.xlu0 %v2303_v30 }
 0x5d6   : > { %v1622_v32 = vpop.xlane.xlu1 %1621 }
 0x5da   : > { %v1625_v52 = vpop.xlane.xlu1 %1624 }
 0x5de   : > { %v1629_v31 = vpop.xlane.xlu1 %1628 }
 0x5e6   : > { %v1608_v33 = vpop.xlane.xlu0 %1607 }
 0x5e7   : > { %v1616_v8 = vmul.f32 0.35355338, %v1608_v33 }
 0x5e9   : > { %v1630_v35 = vmax.f32 %v1622_v32, %v1616_v8 }
 0x5ea   : > { %v1611_v34 = vpop.xlane.xlu0 %1610 }
 0x5eb   : > { %v1633_v36 = vsub.f32 %v1450_v39, %v1630_v35  ;;  %v1642_v62 = vsub.f32 %v1616_v8, %v1630_v35  ;;  %v1617_v37 = vmul.f32 0.35355338, %v1611_v34 }
 0x5ed   : > { %v1636_v38 = vmul.f32 1.442695, %v1633_v36  ;;  %v1645_v12 = vmul.f32 1.442695, %v1642_v62  ;;  %v1631_v40 = vmax.f32 %v1625_v52, %v1617_v37 }
 0x5ee   : > { %v1615_v41 = vpop.xlane.xlu0 %1614 }
 0x5ef   : > { %9658 = vpow2.f32 %v1636_v38  ;;  %v1634_v43 = vsub.f32 %v1451_v44, %v1631_v40  ;;  %v1643_v46 = vsub.f32 %v1617_v37, %v1631_v40  ;;  %v1618_v48 = vmul.f32 0.35355338, %v1615_v41 }
 0x5f0   : > { %9660 = vpow2.f32 %v1645_v12 }
 0x5f1   : > { %v1638_v49 = vmul.f32 1.442695, %v1634_v43  ;;  %v1647_v50 = vmul.f32 1.442695, %v1643_v46  ;;  %v1632_v51 = vmax.f32 %v1629_v31, %v1618_v48  ;;  %v1874_v43 = vrot.slane %v10451_v58, %v10361_v27 }
 0x5f3   : > { %9662 = vpow2.f32 %v1638_v49  ;;  %v1635_v39 = vsub.f32 %v1452_v42, %v1632_v51  ;;  %v1644_v55 = vsub.f32 %v1618_v48, %v1632_v51 }
 0x5f4   : > { %9664 = vpow2.f32 %v1647_v50 }
 0x5f5   : > { %v1640_v56 = vmul.f32 1.442695, %v1635_v39  ;;  %v1649_v63 = vmul.f32 1.442695, %v1644_v55 }
 0x5f7   : > { %9666 = vpow2.f32 %v1640_v56 }
 0x5f8   : > { %9668 = vpow2.f32 %v1649_v63 }
 0x5f9   : > { %v9659_v44 = vpop.eup %9658 }
 0x5fa   : > { %v9661_v4 = vpop.eup %9660  ;;  %8419 = vmatmul.mubr.msk.f32.vlgmr.msra.gmra.mrb[20].mxu1 %vm1619_vm7, %v9659_v44  ;;  %v1651_v9 = vsel %vm1619_vm7, %v9659_v44, 0.0 }
 0x5fb   : > { %1652 = vadd.xlane.f32.xlu0 %v1651_v9  ;;  %8421 = vmatprep.mubr.msk.f32.mxu1 %vm9891_vm0, %v9892_v6  ;;  %v1670_v28 = vmul.f32 %v9661_v4, %v1669_v2 }
 0x5fc   : > { %9334 = vmatpush3.bf16.msra.mxu1 %v10326_v20 }
 0x5fd   : > { %v10484_v47 = vpop.eup %9662  ;;  %9335 = vmatprep.subr.bf16.mxu1 %v9890_v3 }
 0x5fe   : > { %v10487_v42 = vpop.eup %9664  ;;  %8422 = vmatmul.mubr.msk.f32.gmra.mrb[22].mxu1 %vm1619_vm7, %v10484_v47 }
 0x5ff   : > { %8424 = vmatprep.mubr.msk.f32.mxu1 %vm9891_vm0, %v9892_v6  ;;  %v1671_v10 = vmul.f32 %v10487_v42, %v1669_v2 }
 0x600   : > { %9337 = vmatpush3.bf16.msra.mxu1 %v10339_v23  ;;  %v10512_v23 = vpop.xlane.xlu0 %2298 }
 0x601   : > { %v9667_v45 = vpop.eup %9666  ;;  %9344 = vmatprep.subr.bf16.mxu1 %v9890_v3 }
 0x602   : > { %v9669_v20 = vpop.eup %9668  ;;  %8425 = vmatmul.mubr.msk.f32.gmra.mrb[24].mxu1 %vm1619_vm7, %v9667_v45  ;;  %v1657_v11 = vsel %vm1626_vm8, %v9667_v45, 0.0 }
 0x603   : > { %1658 = vadd.xlane.f32.xlu0 %v1657_v11  ;;  %8452 = vmatprep.mubr.msk.f32.mxu1 %vm9891_vm0, %v9892_v6  ;;  %v1672_v13 = vmul.f32 %v9669_v20, %v1669_v2 }
 0x604   : > { %v10514_v15 = vpop.xlane.xlu0 %2301 }
 0x606   : > { %8453 = vmatmul.mubr.msk.f32.vlgmr.msra.gmra.mrb[26].mxu1 %vm948_vm2, %v10209_v53 }
 0x607   : > { %8455 = vmatprep.mubr.msk.f32.mxu1 %vm9891_vm0, %v9892_v6 }
 0x608   : > { %v10516_v19 = vpop.xlane.xlu0 %2304 }
 0x60a   : > { %8456 = vmatmul.mubr.msk.f32.gmra.mrb[28].mxu1 %vm948_vm2, %v10224_v60 }
 0x60b   : > { %8458 = vmatprep.mubr.msk.f32.mxu1 %vm9891_vm0, %v9892_v6 }
 0x60e   : > { %8459 = vmatmul.mubr.msk.f32.gmra.mrb[30].mxu1 %vm948_vm2, %v10240_v1 }
 0x60f   : > { %8484 = vmatprep.mubr.msk.f32.mxu1 %vm9891_vm0, %v9892_v6 }
 0x688   : > { %v1653_v22 = vpop.xlane.xlu0 %1652 }
 0x689   : > { %v1660_v25 = vadd.f32 %v9661_v4, %v1653_v22  ;;  %v2307_v22 = vmul.f32 0.35355338, %v10514_v15 }
 0x68b   : > { %9670 = vrcp.f32 %v1660_v25 }
 0x690   : > { %v1659_v61 = vpop.xlane.xlu0 %1658 }
 0x691   : > { %v1662_v29 = vadd.f32 %v9669_v20, %v1659_v61  ;;  %v2306_v20 = vmul.f32 0.35355338, %v10512_v23 }
 0x693   : > { %9672 = vrcp.f32 %v1662_v29 }
 0x695   : > { %v9671_v8 = vpop.eup %9670 }
 0x69d   : > { %v9673_v12 = vpop.eup %9672 }
 0x6cd   : > { %v1752_v30 = vpop.f32.mrb[20].mxu1 }
 0x6ce   : > { %v1753_v32 = vadd.f32 %v1752_v30, %v1670_v28  ;;  %v8420_v33 = vpop.f32.mrb[21].mxu1  ;;  %v1654_v28 = vsel %vm1619_vm7, %v10484_v47, 0.0 }
 0x6d0   : > { %v10518_v35 = vmul.f32 %v9671_v8, %v1753_v32  ;;  %v2308_v8 = vmul.f32 0.35355338, %v10516_v19 }
 0x6d1   : > { %v1757_v52 = vpop.f32.mrb[22].mxu1 }
 0x6d2   : > { %v10520_v34 = vadd.f32 %v1757_v52, %v1671_v10  ;;  %v8423_v36 = vpop.f32.mrb[23].mxu1 }
 0x6d5   : > { %v1762_v62 = vpop.f32.mrb[24].mxu1 }
 0x6d6   : > { %v1763_v37 = vadd.f32 %v1762_v62, %v1672_v13  ;;  %v8426_v38 = vpop.f32.mrb[25].mxu1 }
 0x6d8   : > { %v10522_v40 = vmul.f32 %v9673_v12, %v1763_v37 }
 0x6d9   : > { %v1942_v41 = vpop.f32.mrb[26].mxu1 }
 0x6da   : > { %v8454_v46 = vpop.f32.mrb[27].mxu1  ;;  %v1943_v31 = vadd.f32 %v1942_v41, %v1874_v43 }
 0x6dd   : > { %v1947_v48 = vpop.f32.mrb[28].mxu1 }
 0x6de   : > { %v1948_v49 = vadd.f32 %v1947_v48, %v1874_v43  ;;  %v8457_v50 = vpop.f32.mrb[29].mxu1 }
 0x6e0   : > { %v9345_v51 = vpack.c.bf16 %v1948_v49, %v1943_v31  ;;  %v1769_v49 = vld [vmem:[%s11994_s5] sm:$0xff] }
 0x6e1   : > { %v1952_v54 = vpop.f32.mrb[30].mxu1 }
 0x6e2   : > { %v8460_v39 = vpop.f32.mrb[31].mxu1  ;;  %9347 = vmatpush3.bf16.xpose.msk.msra.mxu1 %vm10393_vm5, %v9345_v51  ;;  %v1953_v55 = vadd.f32 %v1952_v54, %v1874_v43 }
 0x6e3   : > { %8482 = vmatprep.subr.mxu1 %v9892_v6 }
 0x6ea   : > { %8483 = vmatpush3.xpose.msk.msra.mxu1 %vm1351_vm4, %v1953_v55 }
 0x6eb   : > { %9354 = vmatprep.subr.bf16.mxu1 %v9890_v3 }
 0x6ed   : > { %8485 = vmatmul.mubr.msk.f32.vlgmr.msra.gmra.mrb[32].mxu1 %vm1351_vm4, %v10461_v18 }
 0x6ee   : > { %8487 = vmatprep.mubr.msk.f32.mxu1 %vm9891_vm0, %v9892_v6  ;;  %9356 = vmatpush3.bf16.msra.mxu1 %v10289_v14 }
 0x6ef   : > { %9357 = vmatprep.subr.bf16.mxu1 %v9890_v3 }
 0x6f1   : > { %8488 = vmatmul.mubr.msk.f32.gmra.mrb[34].mxu1 %vm1351_vm4, %v10466_v21 }
 0x6f2   : > { %8490 = vmatprep.mubr.msk.f32.mxu1 %vm9891_vm0, %v9892_v6  ;;  %9359 = vmatpush3.bf16.msra.mxu1 %v10305_v17 }
 0x6f3   : > { %8530 = vmatprep.subr.mxu1 %v9892_v6 }
 0x6f5   : > { %8491 = vmatmul.mubr.msk.f32.gmra.mrb[36].mxu1 %vm1351_vm4, %v10471_v26 }
 0x6f6   : > { %8512 = vmatprep.mubr.msk.f32.mxu1 %vm9891_vm0, %v9892_v6 }
 0x6f9   : > { %8513 = vmatmul.mubr.msk.f32.vlgmr.msra.gmra.mrb[38].mxu1 %vm948_vm2, %v10262_v7 }
 0x6fa   : > { %8532 = vmatprep.mubr.msk.f32.mxu1 %vm9891_vm0, %v9892_v6 }
 0x7c0   : > { %v2133_v14 = vpop.f32.mrb[32].mxu1 }
 0x7c1   : > { %v2147_v58 = vmul.f32 0.35355338, %v2133_v14  ;;  %v8486_v18 = vpop.f32.mrb[33].mxu1  ;;  %v7605_v14 = vld [vmem:[%s11986_s29 + $0x40] sm:$0xff] }
 0x7c3   : > { %v2309_v21 = vsel %vm1619_vm7, %v2147_v58, -inf }
 0x7c4   : > { %2310 = vmax.xlane.f32.xlu1 %v2309_v21  ;;  %v2138_v17 = vpop.f32.mrb[34].mxu1 }
 0x7c5   : > { %v2148_v56 = vmul.f32 0.35355338, %v2138_v17  ;;  %v8489_v63 = vpop.f32.mrb[35].mxu1 }
 0x7c7   : > { %v2312_v26 = vsel %vm1619_vm7, %v2148_v56, -inf }
 0x7c8   : > { %2313 = vmax.xlane.f32.xlu1 %v2312_v26  ;;  %v2143_v2 = vpop.f32.mrb[36].mxu1 }
 0x7c9   : > { %v2149_v44 = vmul.f32 0.35355338, %v2143_v2  ;;  %v8492_v4 = vpop.f32.mrb[37].mxu1 }
 0x7ca   : > { %v7608_v4 = vld [vmem:[%s11986_s29 + $0x58] sm:$0xff] }
 0x7cb   : > { %v2315_v9 = vsel %vm1626_vm8, %v2149_v44, -inf }
 0x7cc   : > { %2316 = vmax.xlane.f32.xlu1 %v2315_v9  ;;  %v2286_v10 = vpop.f32.mrb[38].mxu1 }
 0x7cd   : > { %v8514_v45 = vpop.f32.mrb[39].mxu1  ;;  %v2287_v15 = vadd.f32 %v10413_v16, %v2286_v10 }
 0x7cf   : > { %v2357_v19 = vrot.slane %v2287_v15, %v10361_v27 }
 0x7d0   : > { %1655 = vadd.xlane.f32.xlu1 %v1654_v28 }
 0x851   : > { %v2311_v11 = vpop.xlane.xlu1 %2310 }
 0x852   : > { %v2318_v13 = vmax.f32 %v2311_v11, %v2306_v20  ;;  %v7596_v11 = vld [vmem:[%s11984_s2 + $0x40] sm:$0xff] }
 0x854   : > { %v2321_v25 = vsub.f32 %v2147_v58, %v2318_v13  ;;  %v2330_v61 = vsub.f32 %v2306_v20, %v2318_v13  ;;  %v7606_v58 = vld [vmem:[%s11986_s29 + $0x48] sm:$0xff] }
 0x855   : > { %v2314_v29 = vpop.xlane.xlu1 %2313  ;;  %v10584_v63 = vpack.c.bf16 %v7606_v58, %v7605_v14  ;;  %v7597_v13 = vld [vmem:[%s11984_s2 + $0x48] sm:$0xff]  ;;  %v10673_v14 = vld [vmem:[%s11989_s0 + $0x2] sm:$0x1] }
 0x856   : > { %v2324_v30 = vmul.f32 1.442695, %v2321_v25  ;;  %v2333_v32 = vmul.f32 1.442695, %v2330_v61  ;;  %v2319_v33 = vmax.f32 %v2314_v29, %v2307_v22 }
 0x858   : > { %9674 = vpow2.f32 %v2324_v30  ;;  %v2322_v52 = vsub.f32 %v2148_v56, %v2319_v33  ;;  %v2331_v47 = vsub.f32 %v2307_v22, %v2319_v33  ;;  %v9364_v30 = vpack.c.bf16 %v7597_v13, %v7596_v11  ;;  %v7598_v33 = vld [vmem:[%s11984_s2 + $0x50] sm:$0xff]  ;;  %v7601_v13 = vld [vmem:[%s11993_s12 + $0x2] ss:$0 sm:$0xff] }
 0x859   : > { %9676 = vpow2.f32 %v2333_v32  ;;  %v2317_v36 = vpop.xlane.xlu1 %2316 }
 0x85a   : > { %v2326_v62 = vmul.f32 1.442695, %v2322_v52  ;;  %v2335_v37 = vmul.f32 1.442695, %v2331_v47  ;;  %v2320_v23 = vmax.f32 %v2317_v36, %v2308_v8 }
 0x85c   : > { %9678 = vpow2.f32 %v2326_v62  ;;  %v2323_v38 = vsub.f32 %v2149_v44, %v2320_v23  ;;  %v2332_v12 = vsub.f32 %v2308_v8, %v2320_v23  ;;  %v7607_v44 = vld [vmem:[%s11986_s29 + $0x50] sm:$0xff]  ;;  %v7599_v8 = vld [vmem:[%s11984_s2 + $0x58] sm:$0xff] }
 0x85d   : > { %9680 = vpow2.f32 %v2335_v37  ;;  %v1656_v41 = vpop.xlane.xlu1 %1655  ;;  %v10598_v9 = vpack.c.bf16 %v7608_v4, %v7607_v44  ;;  %v9367_v37 = vpack.c.bf16 %v7599_v8, %v7598_v33 }
 0x85e   : > { %v2328_v43 = vmul.f32 1.442695, %v2323_v38  ;;  %v2337_v46 = vmul.f32 1.442695, %v2332_v12  ;;  %v1661_v48 = vadd.f32 %v10487_v42, %v1656_v41 }
 0x860   : > { %9682 = vpow2.f32 %v2328_v43 }
 0x861   : > { %9684 = vpow2.f32 %v2337_v46  ;;  %v7613_v46 = vld [vmem:[%s11985_s1 + $0x40] sm:$0xff] }
 0x862   : > { %v9675_v31 = vpop.eup %9674  ;;  %9686 = vrcp.f32 %v1661_v48  ;;  %v7614_v48 = vld [vmem:[%s11985_s1 + $0x48] sm:$0xff] }
 0x863   : > { %v9677_v50 = vpop.eup %9676  ;;  %8522 = vmatmul.mubr.msk.f32.vlgmr.msra.gmra.mrb[28].mxu0 %vm1619_vm7, %v9675_v31  ;;  %v2339_v16 = vsel %vm1619_vm7, %v9675_v31, 0.0 }
 0x864   : > { %2340 = vadd.xlane.f32.xlu1 %v2339_v16  ;;  %8524 = vmatprep.mubr.msk.f32.mxu0 %vm9891_vm0, %v9892_v6  ;;  %v2358_v42 = vmul.f32 %v9677_v50, %v2357_v19  ;;  %v7616_v16 = vld [vmem:[%s11985_s1 + $0x58] sm:$0xff] }
 0x865   : > { %8542 = vmatpush3.msra.mxu0 %v1769_v49  ;;  %v9376_v49 = vpack.c.bf16 %v7614_v48, %v7613_v46 }
 0x866   : > { %v9679_v51 = vpop.eup %9678  ;;  %9369 = vmatprep.subr.bf16.mxu0 %v9890_v3 }
 0x867   : > { %v9681_v54 = vpop.eup %9680  ;;  %8525 = vmatmul.mubr.msk.f32.gmra.mrb[30].mxu0 %vm1619_vm7, %v9679_v51  ;;  %v2342_v39 = vsel %vm1619_vm7, %v9679_v51, 0.0 }
 0x868   : > { %2343 = vadd.xlane.f32.xlu0 %v2342_v39  ;;  %8527 = vmatprep.mubr.msk.f32.mxu0 %vm9891_vm0, %v9892_v6  ;;  %v2359_v55 = vmul.f32 %v9681_v54, %v2357_v19 }
 0x86a   : > { %v9683_v18 = vpop.eup %9682 }
 0x86b   : > { %v9685_v21 = vpop.eup %9684  ;;  %8528 = vmatmul.mubr.msk.f32.gmra.mrb[32].mxu0 %vm1619_vm7, %v9683_v18  ;;  %v2345_v17 = vsel %vm1626_vm8, %v9683_v18, 0.0  ;;  %v2740_v18 = vrot.slane %v10673_v14, %v10361_v27 }
 0x86c   : > { %v9687_v56 = vpop.eup %9686  ;;  %2346 = vadd.xlane.f32.xlu1 %v2345_v17  ;;  %8543 = vmatprep.mubr.msk.f32.mxu0 %vm9891_vm0, %v9892_v6  ;;  %v2360_v26 = vmul.f32 %v9685_v21, %v2357_v19 }
 0x86d   : > { %v1767_v2 = vmul.f32 %v9687_v56, %v10520_v34 }
 0x86f   : > { %8544 = vmatmul.mubr.msk.f32.vlgmr.msra.gmra.mrb[34].mxu0 %vm1351_vm4, %v10518_v35  ;;  %v7589_v35 = vld [vmem:[%s11994_s5 + $0x8] sm:$0xff] }
 0x870   : > { %8546 = vmatprep.mubr.msk.f32.mxu0 %vm9891_vm0, %v9892_v6  ;;  %9371 = vmatpush3.bf16.msra.mxu0 %v10584_v63 }
 0x871   : > { %9372 = vmatprep.subr.bf16.mxu0 %v9890_v3  ;;  %8531 = vmatpush3.msra.mxu1 %v7589_v35 }
 0x872   : > { %9363 = vmatprep.subr.bf16.mxu1 %v9890_v3 }
 0x873   : > { %8547 = vmatmul.mubr.msk.f32.gmra.mrb[36].mxu0 %vm1351_vm4, %v1767_v2 }
 0x874   : > { %8549 = vmatprep.mubr.msk.f32.mxu0 %vm9891_vm0, %v9892_v6  ;;  %9374 = vmatpush3.bf16.msra.mxu0 %v10598_v9 }
 0x875   : > { %9381 = vmatprep.subr.bf16.mxu0 %v9890_v3 }
 0x877   : > { %8550 = vmatmul.mubr.msk.f32.gmra.mrb[38].mxu0 %vm1351_vm4, %v10522_v40 }
 0x878   : > { %8577 = vmatprep.mubr.msk.f32.mxu0 %vm9891_vm0, %v9892_v6 }
 0x87b   : > { %8578 = vmatmul.mubr.msk.f32.vlgmr.msra.gmra.mrb[40].mxu0 %vm948_vm2, %v10209_v53 }
 0x87c   : > { %8580 = vmatprep.mubr.msk.f32.mxu0 %vm9891_vm0, %v9892_v6 }
 0x87f   : > { %8581 = vmatmul.mubr.msk.f32.gmra.mrb[42].mxu0 %vm948_vm2, %v10224_v60 }
 0x880   : > { %8583 = vmatprep.mubr.msk.f32.mxu0 %vm9891_vm0, %v9892_v6 }
 0x883   : > { %8584 = vmatmul.mubr.msk.f32.gmra.mrb[44].mxu0 %vm948_vm2, %v10240_v1 }
 0x884   : > { %8609 = vmatprep.mubr.msk.f32.mxu0 %vm9891_vm0, %v9892_v6 }
 0x8f1   : > { %v2341_v34 = vpop.xlane.xlu1 %2340 }
 0x8f2   : > { %v2348_v40 = vadd.f32 %v9677_v50, %v2341_v34  ;;  %v7615_v50 = vld [vmem:[%s11985_s1 + $0x50] sm:$0xff] }
 0x8f4   : > { %9688 = vrcp.f32 %v2348_v40 }
 0x8f5   : > { %v2344_v28 = vpop.xlane.xlu0 %2343 }
 0x8f6   : > { %v2349_v10 = vadd.f32 %v9681_v54, %v2344_v28  ;;  %v9379_v54 = vpack.c.bf16 %v7616_v16, %v7615_v50 }
 0x8f8   : > { %9690 = vrcp.f32 %v2349_v10 }
 0x8f9   : > { %v2347_v45 = vpop.xlane.xlu1 %2346 }
 0x8fa   : > { %v2350_v20 = vadd.f32 %v9685_v21, %v2347_v45 }
 0x8fc   : > { %9692 = vrcp.f32 %v2350_v20 }
 0x8fe   : > { %v9689_v29 = vpop.eup %9688 }
 0x902   : > { %v9691_v62 = vpop.eup %9690 }
 0x906   : > { %v9693_v41 = vpop.eup %9692 }
 0x936   : > { %v2439_v22 = vpop.f32.mrb[28].mxu0 }
 0x937   : > { %v2440_v25 = vadd.f32 %v2439_v22, %v2358_v42  ;;  %v8523_v61 = vpop.f32.mrb[29].mxu0 }
 0x939   : > { %v2453_v32 = vmul.f32 %v9689_v29, %v2440_v25 }
 0x93a   : > { %v2444_v52 = vpop.f32.mrb[30].mxu0 }
 0x93b   : > { %v2445_v47 = vadd.f32 %v2444_v52, %v2359_v55  ;;  %v8526_v36 = vpop.f32.mrb[31].mxu0  ;;  %8533 = vmatmul.mubr.msk.f32.vlgmr.msra.gmra.mrb[40].mxu1 %vm1351_vm4, %v2453_v32  ;;  %v10731_v52 = vld [vmem:[%s11988_s10 + $0x2] sm:$0x1] }
 0x93c   : > { %8535 = vmatprep.mubr.msk.f32.mxu1 %vm9891_vm0, %v9892_v6  ;;  %9365 = vmatpush3.bf16.msra.mxu1 %v9364_v30  ;;  %v2833_v36 = vrot.slane %v10731_v52, %v10361_v27 }
 0x93d   : > { %v2454_v23 = vmul.f32 %v9691_v62, %v2445_v47  ;;  %9366 = vmatprep.subr.bf16.mxu1 %v9890_v3 }
 0x93e   : > { %v2449_v38 = vpop.f32.mrb[32].mxu0 }
 0x93f   : > { %v2450_v12 = vadd.f32 %v2449_v38, %v2360_v26  ;;  %v8529_v15 = vpop.f32.mrb[33].mxu0  ;;  %8536 = vmatmul.mubr.msk.f32.gmra.mrb[42].mxu1 %vm1351_vm4, %v2454_v23 }
 0x940   : > { %8538 = vmatprep.mubr.msk.f32.mxu1 %vm9891_vm0, %v9892_v6  ;;  %9368 = vmatpush3.bf16.msra.mxu1 %v9367_v37 }
 0x941   : > { %v2455_v43 = vmul.f32 %v9693_v41, %v2450_v12  ;;  %9375 = vmatprep.subr.bf16.mxu1 %v9890_v3 }
 0x942   : > { %v2622_v19 = vpop.f32.mrb[34].mxu0 }
 0x943   : > { %8539 = vmatmul.mubr.msk.f32.gmra.mrb[44].mxu1 %vm1351_vm4, %v2455_v43  ;;  %v8545_v31 = vpop.f32.mrb[35].mxu0 }
 0x944   : > { %8560 = vmatprep.mubr.msk.f32.mxu1 %vm9891_vm0, %v9892_v6 }
 0x946   : > { %v2627_v42 = vpop.f32.mrb[36].mxu0 }
 0x947   : > { %v8548_v51 = vpop.f32.mrb[37].mxu0  ;;  %8561 = vmatmul.mubr.msk.f32.vlgmr.msra.gmra.mrb[46].mxu1 %vm948_vm2, %v10209_v53 }
 0x948   : > { %8563 = vmatprep.mubr.msk.f32.mxu1 %vm9891_vm0, %v9892_v6  ;;  %9377 = vmatpush3.bf16.msra.mxu1 %v9376_v49 }
 0x949   : > { %9378 = vmatprep.subr.bf16.mxu1 %v9890_v3 }
 0x94a   : > { %v2632_v39 = vpop.f32.mrb[38].mxu0 }
 0x94b   : > { %v8551_v55 = vpop.f32.mrb[39].mxu0  ;;  %8564 = vmatmul.mubr.msk.f32.gmra.mrb[48].mxu1 %vm948_vm2, %v10224_v60 }
 0x94c   : > { %8566 = vmatprep.mubr.msk.f32.mxu1 %vm9891_vm0, %v9892_v6  ;;  %9380 = vmatpush3.bf16.msra.mxu1 %v9379_v54 }
 0x94d   : > { %9385 = vmatprep.subr.bf16.mxu1 %v9890_v3 }
 0x94e   : > { %v2808_v58 = vpop.f32.mrb[40].mxu0 }
 0x94f   : > { %8567 = vmatmul.mubr.msk.f32.gmra.mrb[50].mxu1 %vm948_vm2, %v10240_v1  ;;  %v8579_v21 = vpop.f32.mrb[41].mxu0  ;;  %v2809_v56 = vadd.f32 %v2808_v58, %v2740_v18 }
 0x950   : > { %8594 = vmatprep.mubr.msk.f32.mxu1 %vm9891_vm0, %v9892_v6 }
 0x952   : > { %v2813_v17 = vpop.f32.mrb[42].mxu0 }
 0x953   : > { %v2814_v26 = vadd.f32 %v2813_v17, %v2740_v18  ;;  %v8582_v2 = vpop.f32.mrb[43].mxu0  ;;  %8595 = vmatmul.mubr.msk.f32.vlgmr.msra.gmra.mrb[52].mxu1 %vm948_vm2, %v10209_v53 }
 0x954   : > { %8597 = vmatprep.mubr.msk.f32.mxu1 %vm9891_vm0, %v9892_v6  ;;  %9387 = vmatpush3.bf16.msra.mxu1 %v10584_v63 }
 0x955   : > { %v9382_v44 = vpack.c.bf16 %v2814_v26, %v2809_v56  ;;  %9388 = vmatprep.subr.bf16.mxu1 %v9890_v3 }
 0x956   : > { %v2818_v4 = vpop.f32.mrb[44].mxu0 }
 0x957   : > { %v8585_v35 = vpop.f32.mrb[45].mxu0  ;;  %8598 = vmatmul.mubr.msk.f32.gmra.mrb[54].mxu1 %vm948_vm2, %v10224_v60  ;;  %9384 = vmatpush3.bf16.xpose.msk.msra.mxu0 %vm10393_vm5, %v9382_v44  ;;  %v2819_v63 = vadd.f32 %v2818_v4, %v2740_v18 }
 0x958   : > { %8600 = vmatprep.mubr.msk.f32.mxu1 %vm9891_vm0, %v9892_v6  ;;  %9390 = vmatpush3.bf16.msra.mxu1 %v10598_v9 }
 0x959   : > { %8607 = vmatprep.subr.mxu0 %v9892_v6  ;;  %9391 = vmatprep.subr.bf16.mxu1 %v9890_v3 }
 0x95b   : > { %8601 = vmatmul.mubr.msk.f32.gmra.mrb[56].mxu1 %vm948_vm2, %v10240_v1 }
 0x95c   : > { %8626 = vmatprep.mubr.msk.f32.mxu1 %vm9891_vm0, %v9892_v6 }
 0x95f   : > { %8608 = vmatpush3.xpose.msk.msra.mxu0 %vm1351_vm4, %v2819_v63  ;;  %8627 = vmatmul.mubr.msk.f32.vlgmr.msra.gmra.mrb[58].mxu1 %vm948_vm2, %v10355_v24 }
 0x960   : > { %9397 = vmatprep.subr.bf16.mxu0 %v9890_v3  ;;  %9393 = vmatpush3.bf16.msra.mxu1 %v9376_v49 }
 0x961   : > { %9394 = vmatprep.subr.bf16.mxu1 %v9890_v3  ;;  %8637 = vmatprep.mubr.msk.f32.mxu1 %vm9891_vm0, %v9892_v6 }
 0x964   : > { %9396 = vmatpush3.bf16.msra.mxu1 %v9379_v54 }
 0x965   : > { %8655 = vmatprep.subr.mxu1 %v9892_v6 }
 0x967   : > { %8638 = vmatmul.mubr.msk.f32.vlgmr.msra.gmra.mrb[60].mxu1 %vm948_vm2, %v10262_v7 }
 0x968   : > { %8657 = vmatprep.mubr.msk.f32.mxu1 %vm9891_vm0, %v9892_v6 }
 0xa0e   : > { %v2533_v9 = vpop.f32.mrb[40].mxu1 }
 0xa0f   : > { %v10713_v34 = vadd.f32 %v2622_v19, %v2533_v9  ;;  %v8534_v24 = vpop.f32.mrb[41].mxu1 }
 0xa12   : > { %v2538_v40 = vpop.f32.mrb[42].mxu1 }
 0xa13   : > { %v10715_v28 = vadd.f32 %v2627_v42, %v2538_v40  ;;  %v8537_v10 = vpop.f32.mrb[43].mxu1 }
 0xa16   : > { %v2543_v45 = vpop.f32.mrb[44].mxu1 }
 0xa17   : > { %v10717_v20 = vadd.f32 %v2632_v39, %v2543_v45  ;;  %v8540_v11 = vpop.f32.mrb[45].mxu1 }
 0xa1a   : > { %v2715_v7 = vpop.f32.mrb[46].mxu1 }
 0xa1b   : > { %v2716_v22 = vadd.f32 %v7601_v13, %v2715_v7  ;;  %v8562_v25 = vpop.f32.mrb[47].mxu1 }
 0xa1d   : > { %8610 = vmatmul.mubr.msk.f32.vlgmr.msra.gmra.mrb[46].mxu0 %vm1351_vm4, %v2716_v22 }
 0xa1e   : > { %v2720_v61 = vpop.f32.mrb[48].mxu1  ;;  %8612 = vmatprep.mubr.msk.f32.mxu0 %vm9891_vm0, %v9892_v6 }
 0xa1f   : > { %v2721_v29 = vadd.f32 %v7601_v13, %v2720_v61  ;;  %v8565_v30 = vpop.f32.mrb[49].mxu1 }
 0xa21   : > { %8613 = vmatmul.mubr.msk.f32.gmra.mrb[48].mxu0 %vm1351_vm4, %v2721_v29 }
 0xa22   : > { %v2725_v32 = vpop.f32.mrb[50].mxu1  ;;  %8615 = vmatprep.mubr.msk.f32.mxu0 %vm9891_vm0, %v9892_v6 }
 0xa23   : > { %v2726_v33 = vadd.f32 %v7601_v13, %v2725_v32  ;;  %v8568_v8 = vpop.f32.mrb[51].mxu1 }
 0xa25   : > { %8616 = vmatmul.mubr.msk.f32.gmra.mrb[50].mxu0 %vm1351_vm4, %v2726_v33 }
 0xa26   : > { %v2901_v47 = vpop.f32.mrb[52].mxu1  ;;  %8646 = vmatprep.mubr.msk.f32.mxu0 %vm9891_vm0, %v9892_v6 }
 0xa27   : > { %v8596_v62 = vpop.f32.mrb[53].mxu1  ;;  %v2902_v23 = vadd.f32 %v2901_v47, %v2833_v36 }
 0xa2a   : > { %v2906_v37 = vpop.f32.mrb[54].mxu1 }
 0xa2b   : > { %v2907_v38 = vadd.f32 %v2906_v37, %v2833_v36  ;;  %v8599_v12 = vpop.f32.mrb[55].mxu1 }
 0xa2d   : > { %v9398_v15 = vpack.c.bf16 %v2907_v38, %v2902_v23 }
 0xa2e   : > { %v2911_v41 = vpop.f32.mrb[56].mxu1 }
 0xa2f   : > { %v8602_v43 = vpop.f32.mrb[57].mxu1  ;;  %9399 = vmatpush3.bf16.msra.mxu0 %v9398_v15  ;;  %v2912_v46 = vadd.f32 %v2911_v41, %v2833_v36 }
 0xa30   : > { %8644 = vmatprep.subr.mxu0 %v9892_v6 }
 0xa32   : > { %v3082_v48 = vpop.f32.mrb[58].mxu1 }
 0xa33   : > { %v3083_v19 = vadd.f32 %v10673_v14, %v3082_v48  ;;  %8645 = vmatpush3.msk.msra.mxu0 %vm1682_vm6, %v2912_v46  ;;  %v8628_v31 = vpop.f32.mrb[59].mxu1  ;;  %v7637_v46 = vld [vmem:[%s11984_s2 + $0x60] sm:$0xff]  ;;  %v7638_v48 = vld [vmem:[%s11984_s2 + $0x68] sm:$0xff] }
 0xa34   : > { %9400 = vmatprep.subr.bf16.mxu0 %v9890_v3  ;;  %v9401_v31 = vpack.c.bf16 %v7638_v48, %v7637_v46 }
 0xa35   : > { %v3159_v49 = vrot.slane %v3083_v19, %v10361_v27 }
 0xa37   : > { %v3160_v50 = vmul.f32 %v3159_v49, %v2716_v22  ;;  %v3161_v16 = vmul.f32 %v3159_v49, %v2721_v29  ;;  %v3162_v42 = vmul.f32 %v3159_v49, %v2726_v33 }
 0xa39   : > { %v3163_v51 = vsel %vm1351_vm4, %v3160_v50, 0.0  ;;  %v3166_v54 = vsel %vm1351_vm4, %v3161_v16, 0.0  ;;  %v3169_v39 = vsel %vm1612_vm9, %v3162_v42, 0.0  ;;  %v7640_v50 = vld [vmem:[%s11984_s2 + $0x78] sm:$0xff] }
 0xa3a   : > { %3164 = vadd.xlane.f32.xlu0 %v3163_v51  ;;  %v3152_v63 = vpop.f32.mrb[60].mxu1 }
 0xa3b   : > { %v8639_v9 = vpop.f32.mrb[61].mxu1  ;;  %v3153_v15 = vadd.f32 %v10731_v52, %v3152_v63  ;;  %v7639_v52 = vld [vmem:[%s11984_s2 + $0x70] sm:$0xff] }
 0xa3c   : > { %v7646_v9 = vld [vmem:[%s11986_s29 + $0x60] sm:$0xff] }
 0xa3d   : > { %v3223_v19 = vrot.slane %v3153_v15, %v10361_v27 }
 0xa3e   : > { %3167 = vadd.xlane.f32.xlu0 %v3166_v54  ;;  %v9404_v54 = vpack.c.bf16 %v7640_v50, %v7639_v52 }
 0xa42   : > { %3170 = vadd.xlane.f32.xlu0 %v3169_v39 }
 0xac7   : > { %v3165_v24 = vpop.xlane.xlu0 %3164 }
 0xac8   : > { %v3172_v10 = vmul.f32 0.35355338, %v3165_v24  ;;  %v7647_v24 = vld [vmem:[%s11986_s29 + $0x68] sm:$0xff] }
 0xacb   : > { %v3168_v40 = vpop.xlane.xlu0 %3167 }
 0xacc   : > { %v3173_v13 = vmul.f32 0.35355338, %v3168_v40  ;;  %v9407_v40 = vpack.c.bf16 %v7647_v24, %v7646_v9 }
 0xacf   : > { %v3171_v25 = vpop.xlane.xlu0 %3170 }
 0xad0   : > { %v3174_v33 = vmul.f32 0.35355338, %v3171_v25 }
 0xaf0   : > { %v2999_v55 = vpop.f32.mrb[46].mxu0 }
 0xaf1   : > { %v3013_v14 = vmul.f32 0.35355338, %v2999_v55  ;;  %v8611_v58 = vpop.f32.mrb[47].mxu0 }
 0xaf3   : > { %v3175_v18 = vsel %vm1619_vm7, %v3013_v14, -inf }
 0xaf4   : > { %3176 = vmax.xlane.f32.xlu1 %v3175_v18  ;;  %v3004_v21 = vpop.f32.mrb[48].mxu0  ;;  %v7654_v18 = vld [vmem:[%s11985_s1 + $0x60] sm:$0xff] }
 0xaf5   : > { %v3014_v17 = vmul.f32 0.35355338, %v3004_v21  ;;  %v8614_v56 = vpop.f32.mrb[49].mxu0  ;;  %v7655_v21 = vld [vmem:[%s11985_s1 + $0x68] sm:$0xff] }
 0xaf7   : > { %v3178_v26 = vsel %vm1619_vm7, %v3014_v17, -inf }
 0xaf8   : > { %3179 = vmax.xlane.f32.xlu1 %v3178_v26  ;;  %v3009_v2 = vpop.f32.mrb[50].mxu0 }
 0xaf9   : > { %v3015_v44 = vmul.f32 0.35355338, %v3009_v2  ;;  %v8617_v4 = vpop.f32.mrb[51].mxu0  ;;  %v10790_v2 = vpack.c.bf16 %v7655_v21, %v7654_v18 }
 0xafa   : > { %v7656_v4 = vld [vmem:[%s11985_s1 + $0x70] sm:$0xff] }
 0xafb   : > { %v3181_v35 = vsel %vm1626_vm8, %v3015_v44, -inf }
 0xafc   : > { %3182 = vmax.xlane.f32.xlu1 %v3181_v35  ;;  %v7657_v35 = vld [vmem:[%s11985_s1 + $0x78] sm:$0xff] }
 0xafd   : > { %v10803_v63 = vpack.c.bf16 %v7657_v35, %v7656_v4 }
 0xb81   : > { %v3177_v45 = vpop.xlane.xlu1 %3176 }
 0xb82   : > { %v3184_v11 = vmax.f32 %v3177_v45, %v3172_v10  ;;  %v7649_v45 = vld [vmem:[%s11986_s29 + $0x78] sm:$0xff] }
 0xb84   : > { %v3187_v7 = vsub.f32 %v3013_v14, %v3184_v11  ;;  %v3196_v22 = vsub.f32 %v3172_v10, %v3184_v11  ;;  %v7648_v10 = vld [vmem:[%s11986_s29 + $0x70] sm:$0xff] }
 0xb85   : > { %v3180_v61 = vpop.xlane.xlu1 %3179  ;;  %v9410_v11 = vpack.c.bf16 %v7649_v45, %v7648_v10 }
 0xb86   : > { %v3190_v29 = vmul.f32 1.442695, %v3187_v7  ;;  %v3199_v30 = vmul.f32 1.442695, %v3196_v22  ;;  %v3185_v32 = vmax.f32 %v3180_v61, %v3173_v13  ;;  %v7633_v7 = vld [vmem:[%s11994_s5 + $0x10] sm:$0xff] }
 0xb87   : > { %8656 = vmatpush3.msra.mxu1 %v7633_v7 }
 0xb88   : > { %9694 = vpow2.f32 %v3190_v29  ;;  %v3188_v8 = vsub.f32 %v3014_v17, %v3185_v32  ;;  %v3197_v47 = vsub.f32 %v3173_v13, %v3185_v32  ;;  %v9824_v13 = vld [vmem:[%s11987_s24] sm:$0x1]  ;;  %9406 = vmatprep.subr.bf16.mxu1 %v9890_v3  ;;  %s7463_s24 = sshll.u32 %s838_s28, 4  ;;  %s11860_s24 = int_to_ptr.vmem [resolvable:$true] %s7463_s24 }
 0xb89   : > { %9696 = vpow2.f32 %v3199_v30  ;;  %v3183_v36 = vpop.xlane.xlu1 %3182 }
 0xb8a   : > { %v3192_v62 = vmul.f32 1.442695, %v3188_v8  ;;  %v3201_v37 = vmul.f32 1.442695, %v3197_v47  ;;  %v3186_v23 = vmax.f32 %v3183_v36, %v3174_v33 }
 0xb8c   : > { %9698 = vpow2.f32 %v3192_v62  ;;  %v3189_v38 = vsub.f32 %v3015_v44, %v3186_v23  ;;  %v3198_v12 = vsub.f32 %v3174_v33, %v3186_v23 }
 0xb8d   : > { %9700 = vpow2.f32 %v3201_v37 }
 0xb8e   : > { %v3194_v41 = vmul.f32 1.442695, %v3189_v38  ;;  %v3203_v43 = vmul.f32 1.442695, %v3198_v12 }
 0xb90   : > { %9702 = vpow2.f32 %v3194_v41 }
 0xb91   : > { %9704 = vpow2.f32 %v3203_v43 }
 0xb92   : > { %v9695_v49 = vpop.eup %9694 }
 0xb93   : > { %v10763_v16 = vpop.eup %9696  ;;  %8647 = vmatmul.mubr.msk.f32.vlgmr.msra.gmra.mrb[52].mxu0 %vm1619_vm7, %v9695_v49  ;;  %v3205_v42 = vsel %vm1619_vm7, %v9695_v49, 0.0 }
 0xb94   : > { %3206 = vadd.xlane.f32.xlu0 %v3205_v42  ;;  %8649 = vmatprep.mubr.msk.f32.mxu0 %vm9891_vm0, %v9892_v6  ;;  %v10770_v51 = vmul.f32 %v10763_v16, %v3223_v19 }
 0xb95   : > { %9402 = vmatpush3.bf16.msra.mxu0 %v9401_v31 }
 0xb96   : > { %v9699_v39 = vpop.eup %9698  ;;  %9403 = vmatprep.subr.bf16.mxu0 %v9890_v3 }
 0xb97   : > { %v9701_v55 = vpop.eup %9700  ;;  %8650 = vmatmul.mubr.msk.f32.gmra.mrb[54].mxu0 %vm1619_vm7, %v9699_v39  ;;  %v3208_v14 = vsel %vm1619_vm7, %v9699_v39, 0.0 }
 0xb98   : > { %3209 = vadd.xlane.f32.xlu1 %v3208_v14  ;;  %8652 = vmatprep.mubr.msk.f32.mxu0 %vm9891_vm0, %v9892_v6  ;;  %v10777_v58 = vmul.f32 %v9701_v55, %v3223_v19 }
 0xb99   : > { %9405 = vmatpush3.bf16.msra.mxu0 %v9404_v54 }
 0xb9a   : > { %v9703_v17 = vpop.eup %9702  ;;  %9412 = vmatprep.subr.bf16.mxu0 %v9890_v3 }
 0xb9b   : > { %v9705_v56 = vpop.eup %9704  ;;  %8653 = vmatmul.mubr.msk.f32.gmra.mrb[56].mxu0 %vm1619_vm7, %v9703_v17  ;;  %v3211_v26 = vsel %vm1626_vm8, %v9703_v17, 0.0 }
 0xb9c   : > { %3212 = vadd.xlane.f32.xlu0 %v3211_v26  ;;  %8674 = vmatprep.mubr.msk.f32.mxu0 %vm9891_vm0, %v9892_v6  ;;  %v3226_v44 = vmul.f32 %v9705_v56, %v3223_v19 }
 0xb9f   : > { %8675 = vmatmul.mubr.msk.f32.vlgmr.msra.gmra.mrb[58].mxu0 %vm948_vm2, %v10209_v53 }
 0xba0   : > { %8677 = vmatprep.mubr.msk.f32.mxu0 %vm9891_vm0, %v9892_v6  ;;  %9414 = vmatpush3.bf16.msra.mxu0 %v10790_v2 }
 0xba1   : > { %9415 = vmatprep.subr.bf16.mxu0 %v9890_v3 }
 0xba3   : > { %8678 = vmatmul.mubr.msk.f32.gmra.mrb[60].mxu0 %vm948_vm2, %v10224_v60 }
 0xba4   : > { %8680 = vmatprep.mubr.msk.f32.mxu0 %vm9891_vm0, %v9892_v6  ;;  %9417 = vmatpush3.bf16.msra.mxu0 %v10803_v63 }
 0xba5   : > { %9422 = vmatprep.subr.bf16.mxu0 %v9890_v3 }
 0xba7   : > { %8681 = vmatmul.mubr.msk.f32.gmra.mrb[62].mxu0 %vm948_vm2, %v10240_v1 }
 0xba8   : > { %8708 = vmatprep.mubr.msk.f32.mxu0 %vm9891_vm0, %v9892_v6 }
 0xbab   : > { %8709 = vmatmul.mubr.msk.f32.vlgmr.msra.gmra.mrb[64].mxu0 %vm948_vm2, %v10209_v53 }
 0xbac   : > { %8711 = vmatprep.mubr.msk.f32.mxu0 %vm9891_vm0, %v9892_v6  ;;  %9424 = vmatpush3.bf16.msra.mxu0 %v9407_v40 }
 0xbad   : > { %9425 = vmatprep.subr.bf16.mxu0 %v9890_v3 }
 0xbaf   : > { %8712 = vmatmul.mubr.msk.f32.gmra.mrb[66].mxu0 %vm948_vm2, %v10224_v60 }
 0xbb0   : > { %8714 = vmatprep.mubr.msk.f32.mxu0 %vm9891_vm0, %v9892_v6  ;;  %9427 = vmatpush3.bf16.msra.mxu0 %v9410_v11 }
 0xbb1   : > { %9434 = vmatprep.subr.bf16.mxu0 %v9890_v3 }
 0xbb3   : > { %8715 = vmatmul.mubr.msk.f32.gmra.mrb[68].mxu0 %vm948_vm2, %v10240_v1 }
 0xbb4   : > { %8740 = vmatprep.mubr.msk.f32.mxu0 %vm9891_vm0, %v9892_v6 }
 0xbb7   : > { %8741 = vmatmul.mubr.msk.f32.vlgmr.msra.gmra.mrb[70].mxu0 %vm948_vm2, %v9824_v13 }
 0xbb8   : > { %8760 = vmatprep.mubr.msk.f32.mxu0 %vm9891_vm0, %v9892_v6 }
 0xc21   : > { %v3207_v22 = vpop.xlane.xlu0 %3206 }
 0xc22   : > { %v3214_v25 = vadd.f32 %v10763_v16, %v3207_v22 }
 0xc24   : > { %9706 = vrcp.f32 %v3214_v25 }
 0xc25   : > { %v3210_v61 = vpop.xlane.xlu1 %3209 }
 0xc26   : > { %v3215_v29 = vadd.f32 %v9701_v55, %v3210_v61 }
 0xc28   : > { %9708 = vrcp.f32 %v3215_v29 }
 0xc29   : > { %v3213_v30 = vpop.xlane.xlu0 %3212 }
 0xc2a   : > { %v3216_v32 = vadd.f32 %v9705_v56, %v3213_v30  ;;  %v7650_v56 = vld [vmem:[%s11989_s0 + $0x3] sm:$0x1] }
 0xc2c   : > { %9710 = vrcp.f32 %v3216_v32 }
 0xc2e   : > { %v9707_v36 = vpop.eup %9706 }
 0xc32   : > { %v9709_v12 = vpop.eup %9708 }
 0xc36   : > { %v9711_v48 = vpop.eup %9710 }
 0xc66   : > { %v3305_v33 = vpop.f32.mrb[52].mxu0 }
 0xc67   : > { %v3306_v8 = vadd.f32 %v3305_v33, %v10770_v51  ;;  %v8648_v47 = vpop.f32.mrb[53].mxu0  ;;  %v10877_v51 = vld [vmem:[%s11988_s10 + $0x3] sm:$0x1] }
 0xc69   : > { %v3319_v62 = vmul.f32 %v9707_v36, %v3306_v8 }
 0xc6a   : > { %v3310_v37 = vpop.f32.mrb[54].mxu0 }
 0xc6b   : > { %v3311_v23 = vadd.f32 %v3310_v37, %v10777_v58  ;;  %v8651_v38 = vpop.f32.mrb[55].mxu0  ;;  %8658 = vmatmul.mubr.msk.f32.vlgmr.msra.gmra.mrb[62].mxu1 %vm1351_vm4, %v3319_v62 }
 0xc6c   : > { %8660 = vmatprep.mubr.msk.f32.mxu1 %vm9891_vm0, %v9892_v6  ;;  %9408 = vmatpush3.bf16.msra.mxu1 %v9407_v40 }
 0xc6d   : > { %v3320_v15 = vmul.f32 %v9709_v12, %v3311_v23  ;;  %9409 = vmatprep.subr.bf16.mxu1 %v9890_v3  ;;  %v3520_v23 = vrot.slane %v7650_v56, %v10361_v27 }
 0xc6e   : > { %v3315_v41 = vpop.f32.mrb[56].mxu0 }
 0xc6f   : > { %v3316_v43 = vadd.f32 %v3315_v41, %v3226_v44  ;;  %v8654_v46 = vpop.f32.mrb[57].mxu0  ;;  %8661 = vmatmul.mubr.msk.f32.gmra.mrb[64].mxu1 %vm1351_vm4, %v3320_v15 }
 0xc70   : > { %8663 = vmatprep.mubr.msk.f32.mxu1 %vm9891_vm0, %v9892_v6  ;;  %9411 = vmatpush3.bf16.msra.mxu1 %v9410_v11 }
 0xc71   : > { %v3321_v19 = vmul.f32 %v9711_v48, %v3316_v43  ;;  %9418 = vmatprep.subr.bf16.mxu1 %v9890_v3 }
 0xc72   : > { %v3495_v31 = vpop.f32.mrb[58].mxu0 }
 0xc73   : > { %8664 = vmatmul.mubr.msk.f32.gmra.mrb[66].mxu1 %vm1351_vm4, %v3321_v19  ;;  %v8676_v49 = vpop.f32.mrb[59].mxu0 }
 0xc74   : > { %8691 = vmatprep.mubr.msk.f32.mxu1 %vm9891_vm0, %v9892_v6 }
 0xc76   : > { %v3500_v52 = vpop.f32.mrb[60].mxu0 }
 0xc77   : > { %v8679_v50 = vpop.f32.mrb[61].mxu0  ;;  %8692 = vmatmul.mubr.msk.f32.vlgmr.msra.gmra.mrb[68].mxu1 %vm948_vm2, %v10209_v53  ;;  %v3613_v53 = vrot.slane %v10877_v51, %v10361_v27 }
 0xc78   : > { %8694 = vmatprep.mubr.msk.f32.mxu1 %vm9891_vm0, %v9892_v6 }
 0xc7a   : > { %v3505_v16 = vpop.f32.mrb[62].mxu0 }
 0xc7b   : > { %v8682_v42 = vpop.f32.mrb[63].mxu0  ;;  %8695 = vmatmul.mubr.msk.f32.gmra.mrb[70].mxu1 %vm948_vm2, %v10224_v60 }
 0xc7c   : > { %8697 = vmatprep.mubr.msk.f32.mxu1 %vm9891_vm0, %v9892_v6 }
 0xc7e   : > { %v3681_v54 = vpop.f32.mrb[64].mxu0 }
 0xc7f   : > { %8698 = vmatmul.mubr.msk.f32.gmra.mrb[72].mxu1 %vm948_vm2, %v10240_v1  ;;  %v8710_v39 = vpop.f32.mrb[65].mxu0  ;;  %v3682_v55 = vadd.f32 %v3681_v54, %v3613_v53  ;;  %v7642_v1 = vld [vmem:[%s11993_s12 + $0x3] ss:$0 sm:$0xff] }
 0xc80   : > { %8723 = vmatprep.mubr.msk.f32.mxu1 %vm9891_vm0, %v9892_v6  ;;  %v3496_v9 = vadd.f32 %v7642_v1, %v3495_v31  ;;  %v3501_v40 = vadd.f32 %v7642_v1, %v3500_v52  ;;  %v3506_v13 = vadd.f32 %v7642_v1, %v3505_v16 }
 0xc82   : > { %v3686_v60 = vpop.f32.mrb[66].mxu0 }
 0xc83   : > { %v3687_v14 = vadd.f32 %v3686_v60, %v3613_v53  ;;  %v8713_v58 = vpop.f32.mrb[67].mxu0 }
 0xc85   : > { %v9435_v18 = vpack.c.bf16 %v3687_v14, %v3682_v55 }
 0xc86   : > { %v3691_v21 = vpop.f32.mrb[68].mxu0 }
 0xc87   : > { %v8716_v17 = vpop.f32.mrb[69].mxu0  ;;  %9436 = vmatpush3.bf16.msra.mxu0 %v9435_v18  ;;  %v3692_v26 = vadd.f32 %v3691_v21, %v3613_v53 }
 0xc88   : > { %8758 = vmatprep.subr.mxu0 %v9892_v6 }
 0xc8a   : > { %v3862_v44 = vpop.f32.mrb[70].mxu0 }
 0xc8b   : > { %v3863_v4 = vadd.f32 %v7650_v56, %v3862_v44  ;;  %8759 = vmatpush3.msk.msra.mxu0 %vm1682_vm6, %v3692_v26  ;;  %v8742_v35 = vpop.f32.mrb[71].mxu0 }
 0xc8c   : > { %9437 = vmatprep.subr.bf16.mxu0 %v9890_v3 }
 0xc8d   : > { %v3939_v24 = vrot.slane %v3863_v4, %v10361_v27 }
 0xc8f   : > { %v3940_v10 = vmul.f32 %v3939_v24, %v3496_v9  ;;  %v3941_v11 = vmul.f32 %v3939_v24, %v3501_v40  ;;  %v3942_v22 = vmul.f32 %v3939_v24, %v3506_v13 }
 0xc91   : > { %v3943_v45 = vsel %vm1351_vm4, %v3940_v10, 0.0  ;;  %v3946_v7 = vsel %vm1351_vm4, %v3941_v11, 0.0  ;;  %v3949_v25 = vsel %vm1612_vm9, %v3942_v22, 0.0 }
 0xc92   : > { %3944 = vadd.xlane.f32.xlu1 %v3943_v45 }
 0xc96   : > { %3947 = vadd.xlane.f32.xlu1 %v3946_v7 }
 0xc9a   : > { %3950 = vadd.xlane.f32.xlu1 %v3949_v25 }
 0xd1f   : > { %v3945_v14 = vpop.xlane.xlu1 %3944 }
 0xd20   : > { %v3952_v18 = vmul.f32 0.35355338, %v3945_v14 }
 0xd23   : > { %v3948_v58 = vpop.xlane.xlu1 %3947 }
 0xd24   : > { %v3953_v56 = vmul.f32 0.35355338, %v3948_v58 }
 0xd27   : > { %v3951_v44 = vpop.xlane.xlu1 %3950 }
 0xd3e   : > { %v3399_v61 = vpop.f32.mrb[62].mxu1 }
 0xd3f   : > { %v10899_v29 = vadd.f32 %v3399_v61, %v10713_v34  ;;  %v8659_v30 = vpop.f32.mrb[63].mxu1 }
 0xd42   : > { %v3404_v32 = vpop.f32.mrb[64].mxu1 }
 0xd43   : > { %v10902_v33 = vadd.f32 %v3404_v32, %v10715_v28  ;;  %v8662_v8 = vpop.f32.mrb[65].mxu1 }
 0xd46   : > { %v3409_v47 = vpop.f32.mrb[66].mxu1 }
 0xd47   : > { %v10905_v36 = vadd.f32 %v3409_v47, %v10717_v20  ;;  %v8665_v62 = vpop.f32.mrb[67].mxu1  ;;  %v9825_v20 = vld [vmem:[%s11925_s25] sm:$0x1] }
 0xd4a   : > { %v3588_v37 = vpop.f32.mrb[68].mxu1 }
 0xd4b   : > { %v8693_v38 = vpop.f32.mrb[69].mxu1  ;;  %v3589_v15 = vadd.f32 %v3588_v37, %v3520_v23 }
 0xd4e   : > { %v3593_v12 = vpop.f32.mrb[70].mxu1 }
 0xd4f   : > { %v3594_v41 = vadd.f32 %v3593_v12, %v3520_v23  ;;  %v8696_v34 = vpop.f32.mrb[71].mxu1 }
 0xd51   : > { %v9419_v43 = vpack.c.bf16 %v3594_v41, %v3589_v15 }
 0xd52   : > { %v3598_v46 = vpop.f32.mrb[72].mxu1 }
 0xd53   : > { %v8699_v48 = vpop.f32.mrb[73].mxu1  ;;  %9421 = vmatpush3.bf16.xpose.msk.msra.mxu1 %vm10393_vm5, %v9419_v43  ;;  %v3599_v28 = vadd.f32 %v3598_v46, %v3520_v23 }
 0xd54   : > { %8721 = vmatprep.subr.mxu1 %v9892_v6  ;;  %v7674_v48 = vld [vmem:[%s11994_s5 + $0x18] sm:$0xff] }
 0xd5b   : > { %8722 = vmatpush3.xpose.msk.msra.mxu1 %vm1351_vm4, %v3599_v28 }
 0xd5c   : > { %9428 = vmatprep.subr.bf16.mxu1 %v9890_v3 }
 0xd5e   : > { %8724 = vmatmul.mubr.msk.f32.vlgmr.msra.gmra.mrb[74].mxu1 %vm1351_vm4, %v3496_v9 }
 0xd5f   : > { %8726 = vmatprep.mubr.msk.f32.mxu1 %vm9891_vm0, %v9892_v6  ;;  %9430 = vmatpush3.bf16.msra.mxu1 %v10790_v2 }
 0xd60   : > { %9431 = vmatprep.subr.bf16.mxu1 %v9890_v3 }
 0xd62   : > { %8727 = vmatmul.mubr.msk.f32.gmra.mrb[76].mxu1 %vm1351_vm4, %v3501_v40  ;;  %v3954_v40 = vmul.f32 0.35355338, %v3951_v44  ;;  %v7678_v44 = vld [vmem:[%s11995_s3] ss:$0 sm:$0xff]  ;;  %s7896_s3 = sshll.u32 %s10063_s27, 4  ;;  %s9893_s27 = smov [#allocation3]  }
 0xd63   : > { %8729 = vmatprep.mubr.msk.f32.mxu1 %vm9891_vm0, %v9892_v6  ;;  %9433 = vmatpush3.bf16.msra.mxu1 %v10803_v63 }
 0xd64   : > { %8769 = vmatprep.subr.mxu1 %v9892_v6 }
 0xd66   : > { %8730 = vmatmul.mubr.msk.f32.gmra.mrb[78].mxu1 %vm1351_vm4, %v3506_v13 }
 0xd67   : > { %8751 = vmatprep.mubr.msk.f32.mxu1 %vm9891_vm0, %v9892_v6 }
 0xd6a   : > { %8752 = vmatmul.mubr.msk.f32.vlgmr.msra.gmra.mrb[80].mxu1 %vm948_vm2, %v9825_v20 }
 0xd6b   : > { %8771 = vmatprep.mubr.msk.f32.mxu1 %vm9891_vm0, %v9892_v6  ;;  %8770 = vmatpush3.msra.mxu1 %v7674_v48 }
 0xd6c   : > { %9443 = vmatprep.subr.bf16.mxu1 %v9890_v3 }
 0xe31   : > { %v3779_v2 = vpop.f32.mrb[74].mxu1 }
 0xe32   : > { %v3793_v19 = vmul.f32 0.35355338, %v3779_v2  ;;  %v8725_v31 = vpop.f32.mrb[75].mxu1 }
 0xe34   : > { %v3955_v63 = vsel %vm1619_vm7, %v3793_v19, -inf }
 0xe35   : > { %3956 = vmax.xlane.f32.xlu0 %v3955_v63  ;;  %v3784_v49 = vpop.f32.mrb[76].mxu1 }
 0xe36   : > { %v3794_v52 = vmul.f32 0.35355338, %v3784_v49  ;;  %v8728_v50 = vpop.f32.mrb[77].mxu1 }
 0xe38   : > { %v3958_v16 = vsel %vm1619_vm7, %v3794_v52, -inf }
 0xe39   : > { %3959 = vmax.xlane.f32.xlu0 %v3958_v16  ;;  %v3789_v42 = vpop.f32.mrb[78].mxu1 }
 0xe3a   : > { %v3795_v54 = vmul.f32 0.35355338, %v3789_v42  ;;  %v8731_v53 = vpop.f32.mrb[79].mxu1 }
 0xe3c   : > { %v3961_v39 = vsel %vm1626_vm8, %v3795_v54, -inf }
 0xe3d   : > { %3962 = vmax.xlane.f32.xlu0 %v3961_v39  ;;  %v3932_v60 = vpop.f32.mrb[80].mxu1 }
 0xe3e   : > { %v8753_v55 = vpop.f32.mrb[81].mxu1  ;;  %v3933_v30 = vadd.f32 %v10877_v51, %v3932_v60 }
 0xe40   : > { %v4003_v47 = vrot.slane %v3933_v30, %v10361_v27 }
 0xec2   : > { %v3957_v21 = vpop.xlane.xlu0 %3956 }
 0xec3   : > { %v3964_v17 = vmax.f32 %v3957_v21, %v3952_v18 }
 0xec5   : > { %v3967_v26 = vsub.f32 %v3793_v19, %v3964_v17  ;;  %v3976_v1 = vsub.f32 %v3952_v18, %v3964_v17 }
 0xec6   : > { %v3960_v4 = vpop.xlane.xlu0 %3959 }
 0xec7   : > { %v3970_v35 = vmul.f32 1.442695, %v3967_v26  ;;  %v3979_v9 = vmul.f32 1.442695, %v3976_v1  ;;  %v3965_v24 = vmax.f32 %v3960_v4, %v3953_v56 }
 0xec9   : > { %9712 = vpow2.f32 %v3970_v35  ;;  %v3968_v10 = vsub.f32 %v3794_v52, %v3965_v24  ;;  %v3977_v45 = vsub.f32 %v3953_v56, %v3965_v24 }
 0xeca   : > { %9714 = vpow2.f32 %v3979_v9  ;;  %v3963_v11 = vpop.xlane.xlu0 %3962 }
 0xecb   : > { %v3972_v13 = vmul.f32 1.442695, %v3968_v10  ;;  %v3981_v7 = vmul.f32 1.442695, %v3977_v45  ;;  %v3966_v22 = vmax.f32 %v3963_v11, %v3954_v40 }
 0xecd   : > { %9716 = vpow2.f32 %v3972_v13  ;;  %v3969_v25 = vsub.f32 %v3795_v54, %v3966_v22  ;;  %v3978_v61 = vsub.f32 %v3954_v40, %v3966_v22 }
 0xece   : > { %9718 = vpow2.f32 %v3981_v7 }
 0xecf   : > { %v3974_v32 = vmul.f32 1.442695, %v3969_v25  ;;  %v3983_v8 = vmul.f32 1.442695, %v3978_v61 }
 0xed1   : > { %9720 = vpow2.f32 %v3974_v32 }
 0xed2   : > { %9722 = vpow2.f32 %v3983_v8 }
 0xed3   : > { %v9713_v62 = vpop.eup %9712 }
 0xed4   : > { %v9715_v37 = vpop.eup %9714  ;;  %8761 = vmatmul.mubr.msk.f32.vlgmr.msra.gmra.mrb[72].mxu0 %vm1619_vm7, %v9713_v62  ;;  %v3985_v23 = vsel %vm1619_vm7, %v9713_v62, 0.0 }
 0xed5   : > { %3986 = vadd.xlane.f32.xlu1 %v3985_v23  ;;  %8763 = vmatprep.mubr.msk.f32.mxu0 %vm9891_vm0, %v9892_v6  ;;  %v4004_v38 = vmul.f32 %v9715_v37, %v4003_v47 }
 0xed7   : > { %v9717_v12 = vpop.eup %9716 }
 0xed8   : > { %v9719_v51 = vpop.eup %9718  ;;  %8764 = vmatmul.mubr.msk.f32.gmra.mrb[74].mxu0 %vm1619_vm7, %v9717_v12  ;;  %v3988_v15 = vsel %vm1619_vm7, %v9717_v12, 0.0 }
 0xed9   : > { %3989 = vadd.xlane.f32.xlu0 %v3988_v15  ;;  %8766 = vmatprep.mubr.msk.f32.mxu0 %vm9891_vm0, %v9892_v6  ;;  %v4005_v27 = vmul.f32 %v9719_v51, %v4003_v47 }
 0xedb   : > { %v9721_v41 = vpop.eup %9720 }
 0xedc   : > { %v9723_v34 = vpop.eup %9722  ;;  %8767 = vmatmul.mubr.msk.f32.gmra.mrb[76].mxu0 %vm1619_vm7, %v9721_v41  ;;  %v3991_v43 = vsel %vm1626_vm8, %v9721_v41, 0.0  ;;  %v4269_v41 = vld [vmem:[%s11917_s17 + $0x8] sm:$0xff] }
 0xedd   : > { %3992 = vadd.xlane.f32.xlu1 %v3991_v43  ;;  %v4006_v46 = vmul.f32 %v9723_v34, %v4003_v47  ;;  %8788 = vmatprep.mubr.msk.f32.mxu0 %vm9891_vm0, %v9892_v6  ;;  %v4270_v43 = vld [vmem:[%s11917_s17 + $0x10] sm:$0xff] }
 0xf62   : > { %v3987_v28 = vpop.xlane.xlu1 %3986 }
 0xf63   : > { %v3994_v20 = vadd.f32 %v9715_v37, %v3987_v28 }
 0xf65   : > { %9724 = vrcp.f32 %v3994_v20 }
 0xf66   : > { %v3990_v2 = vpop.xlane.xlu0 %3989 }
 0xf67   : > { %v3995_v19 = vadd.f32 %v9719_v51, %v3990_v2 }
 0xf69   : > { %9726 = vrcp.f32 %v3995_v19 }
 0xf6a   : > { %v3993_v31 = vpop.xlane.xlu1 %3992 }
 0xf6b   : > { %v3996_v63 = vadd.f32 %v9723_v34, %v3993_v31 }
 0xf6d   : > { %9728 = vrcp.f32 %v3996_v63 }
 0xf6f   : > { %v9725_v16 = vpop.eup %9724 }
 0xf73   : > { %v9727_v60 = vpop.eup %9726 }
 0xf77   : > { %v9729_v21 = vpop.eup %9728 }
 0xfa7   : > { %v4085_v49 = vpop.f32.mrb[72].mxu0 }
 0xfa8   : > { %v4086_v52 = vadd.f32 %v4085_v49, %v4004_v38  ;;  %v8762_v50 = vpop.f32.mrb[73].mxu0 }
 0xfaa   : > { %v4099_v42 = vmul.f32 %v9725_v16, %v4086_v52 }
 0xfab   : > { %v4090_v54 = vpop.f32.mrb[74].mxu0 }
 0xfac   : > { %v4091_v53 = vadd.f32 %v4090_v54, %v4005_v27  ;;  %v8765_v39 = vpop.f32.mrb[75].mxu0  ;;  %8772 = vmatmul.mubr.msk.f32.vlgmr.msra.gmra.mrb[82].mxu1 %vm1351_vm4, %v4099_v42  ;;  %v4268_v27 = vld [vmem:[%s11917_s17] sm:$0xff] }
 0xfad   : > { %8774 = vmatprep.mubr.msk.f32.mxu1 %vm9891_vm0, %v9892_v6  ;;  %v9438_v34 = vpack.c.bf16 %v4269_v41, %v4268_v27  ;;  %v7679_v42 = vld [vmem:[%s11915_s15] ss:$0 sm:$0xff] }
 0xfae   : > { %v4100_v55 = vmul.f32 %v9727_v60, %v4091_v53  ;;  %v7680_v53 = vld [vmem:[%s11916_s16] ss:$0 sm:$0xff] }
 0xfaf   : > { %v4095_v14 = vpop.f32.mrb[76].mxu0  ;;  %9439 = vmatpush3.bf16.msra.mxu0 %v9438_v34 }
 0xfb0   : > { %v4096_v58 = vadd.f32 %v4095_v14, %v4006_v46  ;;  %v8768_v18 = vpop.f32.mrb[77].mxu0  ;;  %8775 = vmatmul.mubr.msk.f32.gmra.mrb[84].mxu1 %vm1351_vm4, %v4100_v55  ;;  %9440 = vmatprep.subr.bf16.mxu0 %v9890_v3  ;;  %v4271_v46 = vld [vmem:[%s11917_s17 + $0x18] sm:$0xff] }
 0xfb1   : > { %8777 = vmatprep.mubr.msk.f32.mxu1 %vm9891_vm0, %v9892_v6  ;;  %v9441_v48 = vpack.c.bf16 %v4271_v46, %v4270_v43 }
 0xfb2   : > { %v4101_v17 = vmul.f32 %v9729_v21, %v4096_v58 }
 0xfb3   : > { %9442 = vmatpush3.bf16.msra.mxu0 %v9441_v48 }
 0xfb4   : > { %8778 = vmatmul.mubr.msk.f32.gmra.mrb[86].mxu1 %vm1351_vm4, %v4101_v17  ;;  %9467 = vmatprep.subr.bf16.mxu0 %v9890_v3 }
 0xfb5   : > { %8829 = vmatprep.mubr.msk.f32.mxu1 %vm9891_vm0, %v9892_v6 }
0x107f   : > { %v4179_v56 = vpop.f32.mrb[82].mxu1 }
0x1080   : > { %v4193_v26 = vadd.f32 %v4179_v56, %v10899_v29  ;;  %v8773_v1 = vpop.f32.mrb[83].mxu1 }
0x1081   : > { %v4392_v1 = vld [vmem:[%s11919_s19] sm:$0xff] }
0x1082   : > { %v4196_v4 = vadd.f32 %v4193_v26, %v10149_v59 }
0x1083   : > { %v4184_v35 = vpop.f32.mrb[84].mxu1 }
0x1084   : > { %v10967_v9 = vadd.f32 %v7678_v44, %v4196_v4  ;;  %v4194_v24 = vadd.f32 %v4184_v35, %v10902_v33  ;;  %v8776_v40 = vpop.f32.mrb[85].mxu1  ;;  %v4394_v35 = vld [vmem:[%s11919_s19 + $0x10] sm:$0xff] }
0x1086   : > { %v4197_v10 = vadd.f32 %v4194_v24, %v10153_v0  ;;  %v4211_v45 = vsel %vm948_vm2, %v10967_v9, 0.0  ;;  %v4395_v24 = vld [vmem:[%s11919_s19 + $0x18] sm:$0xff] }
0x1087   : > { %4212 = vadd.xlane.f32.xlu0 %v4211_v45  ;;  %v4189_v29 = vpop.f32.mrb[86].mxu1  ;;  %v9447_v40 = vpack.c.bf16 %v4395_v24, %v4394_v35  ;;  %v4397_v45 = vld [vmem:[%s11919_s19 + $0x28] sm:$0xff] }
0x1088   : > { %v10973_v11 = vadd.f32 %v7678_v44, %v4197_v10  ;;  %v4195_v13 = vadd.f32 %v4189_v29, %v10905_v36  ;;  %v8779_v7 = vpop.f32.mrb[87].mxu1  ;;  %v4396_v10 = vld [vmem:[%s11919_s19 + $0x20] sm:$0xff] }
0x1089   : > { %v9450_v29 = vpack.c.bf16 %v4397_v45, %v4396_v10  ;;  %v4399_v7 = vld [vmem:[%s11919_s19 + $0x38] sm:$0xff] }
0x108a   : > { %v4198_v59 = vadd.f32 %v4195_v13, %v10157_v5  ;;  %v4214_v22 = vsel %vm948_vm2, %v10973_v11, 0.0  ;;  %v4398_v13 = vld [vmem:[%s11919_s19 + $0x30] sm:$0xff] }
0x108b   : > { %4215 = vadd.xlane.f32.xlu1 %v4214_v22  ;;  %v4400_v22 = vld [vmem:[%s11919_s19 + $0x40] sm:$0xff] }
0x108c   : > { %v10979_v33 = vadd.f32 %v7678_v44, %v4198_v59  ;;  %v4393_v44 = vld [vmem:[%s11919_s19 + $0x8] sm:$0xff]  ;;  %v9453_v59 = vpack.c.bf16 %v4399_v7, %v4398_v13 }
0x108d   : > { %v9444_v4 = vpack.c.bf16 %v4393_v44, %v4392_v1 }
0x108e   : > { %v4217_v0 = vsel %vm955_vm3, %v10979_v33, 0.0 }
0x108f   : > { %4218 = vadd.xlane.f32.xlu0 %v4217_v0  ;;  %9445 = vmatpush3.bf16.msra.mxu1 %v9444_v4  ;;  %v4401_v0 = vld [vmem:[%s11919_s19 + $0x48] sm:$0xff] }
0x1090   : > { %9446 = vmatprep.subr.bf16.mxu1 %v9890_v3 }
0x1093   : > { %9448 = vmatpush3.bf16.msra.mxu1 %v9447_v40 }
0x1094   : > { %9449 = vmatprep.subr.bf16.mxu1 %v9890_v3 }
0x1097   : > { %9451 = vmatpush3.bf16.msra.mxu1 %v9450_v29 }
0x1098   : > { %9452 = vmatprep.subr.bf16.mxu1 %v9890_v3 }
0x109b   : > { %9454 = vmatpush3.bf16.msra.mxu1 %v9453_v59 }
0x109c   : > { %9455 = vmatprep.subr.bf16.mxu1 %v9890_v3 }
0x1114   : > { %v4213_v25 = vpop.xlane.xlu0 %4212 }
0x1115   : > { %v4220_v61 = vmul.f32 0.03125, %v4213_v25  ;;  %v9456_v25 = vpack.c.bf16 %v4401_v0, %v4400_v22 }
0x1117   : > { %v4223_v30 = vsub.f32 %v10967_v9, %v4220_v61  ;;  %9457 = vmatpush3.bf16.msra.mxu1 %v9456_v25  ;;  %v4402_v61 = vld [vmem:[%s11919_s19 + $0x50] sm:$0xff] }
0x1118   : > { %v4216_v32 = vpop.xlane.xlu1 %4215  ;;  %9458 = vmatprep.subr.bf16.mxu1 %v9890_v3 }
0x1119   : > { %v4221_v8 = vmul.f32 0.03125, %v4216_v32  ;;  %v4226_v36 = vmul.f32 %v4223_v30, %v4223_v30 }
0x111b   : > { %v4224_v47 = vsub.f32 %v10973_v11, %v4221_v8  ;;  %v4229_v5 = vsel %vm948_vm2, %v4226_v36, 0.0  ;;  %v4404_v8 = vld [vmem:[%s11919_s19 + $0x60] sm:$0xff]  ;;  %v4405_v36 = vld [vmem:[%s11919_s19 + $0x68] sm:$0xff] }
0x111c   : > { %4230 = vadd.xlane.f32.xlu1 %v4229_v5  ;;  %v4219_v62 = vpop.xlane.xlu0 %4218  ;;  %v4406_v5 = vld [vmem:[%s11919_s19 + $0x70] sm:$0xff] }
0x111d   : > { %v4222_v37 = vmul.f32 0.03125, %v4219_v62  ;;  %v4227_v23 = vmul.f32 %v4224_v47, %v4224_v47  ;;  %v4407_v62 = vld [vmem:[%s11919_s19 + $0x78] sm:$0xff] }
0x111f   : > { %v4225_v38 = vsub.f32 %v10979_v33, %v4222_v37  ;;  %v4232_v12 = vsel %vm948_vm2, %v4227_v23, 0.0  ;;  %v9465_v37 = vpack.c.bf16 %v4407_v62, %v4406_v5  ;;  %v7681_v23 = vld [vmem:[%s11918_s18] ss:$0 sm:$0xff] }
0x1120   : > { %4233 = vadd.xlane.f32.xlu0 %v4232_v12  ;;  %v7693_v62 = vld [vmem:[%s11984_s2 + $0x80] sm:$0xff] }
0x1121   : > { %v4228_v51 = vmul.f32 %v4225_v38, %v4225_v38 }
0x1123   : > { %v4235_v15 = vsel %vm955_vm3, %v4228_v51, 0.0 }
0x1124   : > { %4236 = vadd.xlane.f32.xlu1 %v4235_v15 }
0x11a9   : > { %v4231_v28 = vpop.xlane.xlu1 %4230 }
0x11aa   : > { %v4238_v20 = vmul.f32 0.03125, %v4231_v28 }
0x11ac   : > { %v4241_v2 = vadd.f32 1e-05, %v4238_v20 }
0x11ad   : > { %v4234_v19 = vpop.xlane.xlu0 %4233 }
0x11ae   : > { %9730 = vrsqrt.f32 %v4241_v2  ;;  %v4239_v31 = vmul.f32 0.03125, %v4234_v19 }
0x11b0   : > { %v4242_v63 = vadd.f32 1e-05, %v4239_v31 }
0x11b1   : > { %v4237_v49 = vpop.xlane.xlu1 %4236 }
0x11b2   : > { %9732 = vrsqrt.f32 %v4242_v63  ;;  %v4240_v52 = vmul.f32 0.03125, %v4237_v49 }
0x11b4   : > { %v4243_v50 = vadd.f32 1e-05, %v4240_v52 }
0x11b6   : > { %9734 = vrsqrt.f32 %v4243_v50 }
0x11b8   : > { %v9731_v16 = vpop.eup %9730 }
0x11b9   : > { %v4247_v54 = vmul.f32 %v9731_v16, %v4223_v30  ;;  %v4403_v30 = vld [vmem:[%s11919_s19 + $0x58] sm:$0xff] }
0x11ba   : > { %v9459_v32 = vpack.c.bf16 %v4403_v30, %v4402_v61 }
0x11bb   : > { %v4256_v39 = vmul.f32 %v7679_v42, %v4247_v54 }
0x11bc   : > { %v9733_v60 = vpop.eup %9732  ;;  %9460 = vmatpush3.bf16.msra.mxu1 %v9459_v32 }
0x11bd   : > { %v4265_v55 = vadd.f32 %v7680_v53, %v4256_v39  ;;  %v4248_v14 = vmul.f32 %v9733_v60, %v4224_v47  ;;  %9461 = vmatprep.subr.bf16.mxu1 %v9890_v3  ;;  %v9462_v47 = vpack.c.bf16 %v4405_v36, %v4404_v8 }
0x11bf   : > { %8789 = vmatmul.mubr.msk.f32.vlgmr.msra.gmra.mrb[78].mxu0 %vm948_vm2, %v4265_v55  ;;  %v4257_v58 = vmul.f32 %v7679_v42, %v4248_v14 }
0x11c0   : > { %v9735_v18 = vpop.eup %9734  ;;  %8791 = vmatprep.mubr.msk.f32.mxu0 %vm9891_vm0, %v9892_v6  ;;  %9463 = vmatpush3.bf16.msra.mxu1 %v9462_v47 }
0x11c1   : > { %v4266_v21 = vadd.f32 %v7680_v53, %v4257_v58  ;;  %v4249_v17 = vmul.f32 %v9735_v18, %v4225_v38  ;;  %9464 = vmatprep.subr.bf16.mxu1 %v9890_v3  ;;  %v7688_v18 = vld [vmem:[%s11920_s20] ss:$0 sm:$0xff] }
0x11c3   : > { %8792 = vmatmul.mubr.msk.f32.gmra.mrb[80].mxu0 %vm948_vm2, %v4266_v21  ;;  %v4258_v56 = vmul.f32 %v7679_v42, %v4249_v17 }
0x11c4   : > { %8794 = vmatprep.mubr.msk.f32.mxu0 %vm9891_vm0, %v9892_v6  ;;  %9466 = vmatpush3.bf16.msra.mxu1 %v9465_v37  ;;  %v7694_v37 = vld [vmem:[%s11984_s2 + $0x88] sm:$0xff] }
0x11c5   : > { %v4267_v26 = vadd.f32 %v7680_v53, %v4258_v56  ;;  %9479 = vmatprep.subr.bf16.mxu1 %v9890_v3 }
0x11c7   : > { %8795 = vmatmul.mubr.msk.f32.gmra.mrb[82].mxu0 %vm948_vm2, %v4267_v26 }
0x11c8   : > { %8846 = vmatprep.mubr.msk.f32.mxu0 %vm9891_vm0, %v9892_v6 }
0x1292   : > { %v4354_v38 = vpop.f32.mrb[78].mxu0 }
0x1293   : > { %v4355_v12 = vadd.f32 %v7681_v23, %v4354_v38  ;;  %v8790_v51 = vpop.f32.mrb[79].mxu0  ;;  %v9468_v38 = vpack.c.bf16 %v7694_v37, %v7693_v62 }
0x1295   : > { %v7685_v15 = vmul.f32 -1.702, %v4355_v12  ;;  %9469 = vmatpush3.bf16.msra.mxu0 %v9468_v38 }
0x1296   : > { %v4359_v27 = vpop.f32.mrb[80].mxu0  ;;  %9470 = vmatprep.subr.bf16.mxu0 %v9890_v3 }
0x1297   : > { %v4374_v41 = vmul.f32 1.442695, %v7685_v15  ;;  %v4360_v34 = vadd.f32 %v7681_v23, %v4359_v27  ;;  %v8793_v43 = vpop.f32.mrb[81].mxu0  ;;  %v7695_v15 = vld [vmem:[%s11984_s2 + $0x90] sm:$0xff]  ;;  %v7696_v27 = vld [vmem:[%s11984_s2 + $0x98] sm:$0xff] }
0x1298   : > { %v7714_v43 = vld [vmem:[%s11985_s1 + $0x98] sm:$0xff] }
0x1299   : > { %9736 = vpow2.f32 %v4374_v41  ;;  %v7686_v46 = vmul.f32 -1.702, %v4360_v34  ;;  %v7713_v41 = vld [vmem:[%s11985_s1 + $0x90] sm:$0xff] }
0x129a   : > { %v4364_v48 = vpop.f32.mrb[82].mxu0 }
0x129b   : > { %v4376_v28 = vmul.f32 1.442695, %v7686_v46  ;;  %v4365_v20 = vadd.f32 %v7681_v23, %v4364_v48  ;;  %v8796_v2 = vpop.f32.mrb[83].mxu0  ;;  %v7711_v23 = vld [vmem:[%s11985_s1 + $0x80] sm:$0xff]  ;;  %v9483_v46 = vpack.c.bf16 %v7714_v43, %v7713_v41 }
0x129c   : > { %v7731_v43 = vld [vmem:[%s11984_s2 + $0xa0] sm:$0xff] }
0x129d   : > { %9738 = vpow2.f32 %v4376_v28  ;;  %v7687_v19 = vmul.f32 -1.702, %v4365_v20 }
0x129f   : > { %v4378_v31 = vmul.f32 1.442695, %v7687_v19 }
0x12a1   : > { %9740 = vpow2.f32 %v4378_v31 }
0x12a3   : > { %v9737_v63 = vpop.eup %9736 }
0x12a4   : > { %v4380_v49 = vadd.f32 1.0, %v9737_v63 }
0x12a6   : > { %9742 = vrcp.f32 %v4380_v49 }
0x12a7   : > { %v9739_v52 = vpop.eup %9738 }
0x12a8   : > { %v4381_v50 = vadd.f32 1.0, %v9739_v52 }
0x12aa   : > { %9744 = vrcp.f32 %v4381_v50 }
0x12ab   : > { %v9741_v16 = vpop.eup %9740 }
0x12ac   : > { %v4382_v42 = vadd.f32 1.0, %v9741_v16  ;;  %v7691_v16 = vld [vmem:[%s11913_s13 + $0x1] ss:$0 sm:$0xff] }
0x12ae   : > { %9746 = vrcp.f32 %v4382_v42 }
0x12b0   : > { %v9743_v54 = vpop.eup %9742 }
0x12b1   : > { %v4389_v53 = vmul.f32 %v9743_v54, %v4355_v12  ;;  %v7712_v12 = vld [vmem:[%s11985_s1 + $0x88] sm:$0xff]  ;;  %v7702_v54 = vld [vmem:[%s11986_s29 + $0x80] sm:$0xff] }
0x12b2   : > { %v9480_v51 = vpack.c.bf16 %v7712_v12, %v7711_v23  ;;  %v7707_v23 = vld [vmem:[%s11989_s0 + $0x4] ss:$0 sm:$0xff] }
0x12b3   : > { %8830 = vmatmul.mubr.f32.vlgmr.msra.gmra.mrb[88].mxu1 %v4389_v53  ;;  %v7703_v53 = vld [vmem:[%s11986_s29 + $0x88] sm:$0xff] }
0x12b4   : > { %v9745_v39 = vpop.eup %9744  ;;  %8832 = vmatprep.mubr.msk.f32.mxu1 %vm9891_vm0, %v9892_v6  ;;  %9481 = vmatpush3.bf16.msra.mxu1 %v9480_v51 }
0x12b5   : > { %v4390_v60 = vmul.f32 %v9745_v39, %v4360_v34  ;;  %9482 = vmatprep.subr.bf16.mxu1 %v9890_v3  ;;  %v9471_v34 = vpack.c.bf16 %v7696_v27, %v7695_v15  ;;  %v7692_v39 = vld [vmem:[%s11914_s14 + $0x1] ss:$0 sm:$0xff] }
0x12b7   : > { %8833 = vmatmul.mubr.f32.gmra.mrb[90].mxu1 %v4390_v60  ;;  %9472 = vmatpush3.bf16.msra.mxu0 %v9471_v34 }
0x12b8   : > { %v9747_v55 = vpop.eup %9746  ;;  %8835 = vmatprep.mubr.msk.f32.mxu1 %vm9891_vm0, %v9892_v6  ;;  %9484 = vmatpush3.bf16.msra.mxu1 %v9483_v46  ;;  %v7732_v46 = vld [vmem:[%s11984_s2 + $0xa8] sm:$0xff] }
0x12b9   : > { %v4391_v14 = vmul.f32 %v9747_v55, %v4365_v20  ;;  %9473 = vmatprep.subr.bf16.mxu0 %v9890_v3  ;;  %9489 = vmatprep.subr.bf16.mxu1 %v9890_v3 }
0x12bb   : > { %8836 = vmatmul.mubr.f32.gmra.mrb[92].mxu1 %v4391_v14  ;;  %v9474_v14 = vpack.c.bf16 %v7703_v53, %v7702_v54  ;;  %v7751_v54 = vld [vmem:[%s11985_s1 + $0xb0] sm:$0xff]  ;;  %v7752_v53 = vld [vmem:[%s11985_s1 + $0xb8] sm:$0xff] }
0x12bc   : > { %8880 = vmatprep.mubr.msk.f32.mxu1 %vm9891_vm0, %v9892_v6 }
0x1386   : > { %v4474_v58 = vpop.f32.mrb[88].mxu1 }
0x1387   : > { %v4488_v21 = vadd.f32 %v4474_v58, %v10967_v9  ;;  %v8831_v17 = vpop.f32.mrb[89].mxu1 }
0x1388   : > { %v7705_v17 = vld [vmem:[%s11986_s29 + $0x98] sm:$0xff] }
0x1389   : > { %v11087_v56 = vadd.f32 %v7688_v18, %v4488_v21  ;;  %v7704_v21 = vld [vmem:[%s11986_s29 + $0x90] sm:$0xff] }
0x138a   : > { %v4479_v26 = vpop.f32.mrb[90].mxu1 }
0x138b   : > { %v4489_v1 = vadd.f32 %v4479_v26, %v10973_v11  ;;  %v8834_v44 = vpop.f32.mrb[91].mxu1  ;;  %v4505_v4 = vsel %vm948_vm2, %v11087_v56, 0.0 }
0x138c   : > { %4506 = vadd.xlane.f32.xlu0 %v4505_v4 }
0x138d   : > { %v11092_v35 = vadd.f32 %v7688_v18, %v4489_v1 }
0x138e   : > { %v4484_v24 = vpop.f32.mrb[92].mxu1 }
0x138f   : > { %v4490_v40 = vadd.f32 %v4484_v24, %v10979_v33  ;;  %v8837_v10 = vpop.f32.mrb[93].mxu1  ;;  %v4508_v9 = vsel %vm948_vm2, %v11092_v35, 0.0  ;;  %v9477_v24 = vpack.c.bf16 %v7705_v17, %v7704_v21 }
0x1390   : > { %4509 = vadd.xlane.f32.xlu1 %v4508_v9 }
0x1391   : > { %v11097_v45 = vadd.f32 %v7688_v18, %v4490_v40 }
0x1393   : > { %v4511_v11 = vsel %vm955_vm3, %v11097_v45, 0.0 }
0x1394   : > { %4512 = vadd.xlane.f32.xlu0 %v4511_v11 }
0x1419   : > { %v4507_v29 = vpop.xlane.xlu0 %4506 }
0x141a   : > { %v4514_v13 = vmul.f32 0.03125, %v4507_v29 }
0x141c   : > { %v4517_v7 = vsub.f32 %v11087_v56, %v4514_v13 }
0x141d   : > { %v4510_v59 = vpop.xlane.xlu1 %4509 }
0x141e   : > { %v4515_v22 = vmul.f32 0.03125, %v4510_v59  ;;  %v4520_v0 = vmul.f32 %v4517_v7, %v4517_v7 }
0x1420   : > { %v4518_v33 = vsub.f32 %v11092_v35, %v4515_v22  ;;  %v4523_v25 = vsel %vm948_vm2, %v4520_v0, 0.0 }
0x1421   : > { %4524 = vadd.xlane.f32.xlu1 %v4523_v25  ;;  %v4513_v61 = vpop.xlane.xlu0 %4512 }
0x1422   : > { %v4516_v30 = vmul.f32 0.03125, %v4513_v61  ;;  %v4521_v32 = vmul.f32 %v4518_v33, %v4518_v33 }
0x1424   : > { %v4519_v8 = vsub.f32 %v11097_v45, %v4516_v30  ;;  %v4526_v36 = vsel %vm948_vm2, %v4521_v32, 0.0 }
0x1425   : > { %4527 = vadd.xlane.f32.xlu0 %v4526_v36 }
0x1426   : > { %v4522_v47 = vmul.f32 %v4519_v8, %v4519_v8 }
0x1428   : > { %v4529_v5 = vsel %vm955_vm3, %v4522_v47, 0.0 }
0x1429   : > { %4530 = vadd.xlane.f32.xlu1 %v4529_v5 }
0x14ae   : > { %v4525_v48 = vpop.xlane.xlu1 %4524 }
0x14af   : > { %v4532_v28 = vmul.f32 0.03125, %v4525_v48  ;;  %v7698_v48 = vld [vmem:[%s11993_s12 + $0x4] ss:$0 sm:$0xff] }
0x14b1   : > { %v4535_v20 = vadd.f32 1e-05, %v4532_v28 }
0x14b2   : > { %v4528_v2 = vpop.xlane.xlu0 %4527 }
0x14b3   : > { %9748 = vrsqrt.f32 %v4535_v20  ;;  %v4533_v19 = vmul.f32 0.03125, %v4528_v2  ;;  %v9493_v20 = vpack.c.bf16 %v7732_v46, %v7731_v43  ;;  %v7741_v43 = vld [vmem:[%s11986_s29 + $0xa8] sm:$0xff] }
0x14b5   : > { %v4536_v31 = vadd.f32 1e-05, %v4533_v19  ;;  %v7733_v19 = vld [vmem:[%s11984_s2 + $0xb0] sm:$0xff] }
0x14b6   : > { %v4531_v63 = vpop.xlane.xlu1 %4530 }
0x14b7   : > { %9750 = vrsqrt.f32 %v4536_v31  ;;  %v4534_v49 = vmul.f32 0.03125, %v4531_v63  ;;  %v7734_v31 = vld [vmem:[%s11984_s2 + $0xb8] sm:$0xff] }
0x14b8   : > { %v9496_v63 = vpack.c.bf16 %v7734_v31, %v7733_v19 }
0x14b9   : > { %v4537_v52 = vadd.f32 1e-05, %v4534_v49 }
0x14bb   : > { %9752 = vrsqrt.f32 %v4537_v52 }
0x14bd   : > { %v9749_v50 = vpop.eup %9748 }
0x14be   : > { %v4541_v42 = vmul.f32 %v9749_v50, %v4517_v7  ;;  %v7716_v7 = vld [vmem:[%s11988_s10 + $0x4] ss:$0 sm:$0xff] }
0x14bf   : > { %v7749_v50 = vld [vmem:[%s11985_s1 + $0xa0] sm:$0xff] }
0x14c0   : > { %v4550_v60 = vmul.f32 %v7691_v16, %v4541_v42 }
0x14c1   : > { %v9751_v55 = vpop.eup %9750 }
0x14c2   : > { %v11147_v58 = vadd.f32 %v7692_v39, %v4550_v60  ;;  %v4542_v18 = vmul.f32 %v9751_v55, %v4518_v33 }
0x14c4   : > { %v4551_v26 = vmul.f32 %v7691_v16, %v4542_v18  ;;  %8847 = vmatmul.mubr.msk.f32.vlgmr.msra.gmra.mrb[84].mxu0 %vm948_vm2, %v11147_v58  ;;  %8881 = vmatmul.mubr.msk.f32.vlgmr.msra.gmra.mrb[94].mxu1 %vm948_vm2, %v11147_v58 }
0x14c5   : > { %v9753_v1 = vpop.eup %9752  ;;  %8849 = vmatprep.mubr.msk.f32.mxu0 %vm9891_vm0, %v9892_v6  ;;  %9475 = vmatpush3.bf16.msra.mxu0 %v9474_v14 }
0x14c6   : > { %v11161_v44 = vadd.f32 %v7692_v39, %v4551_v26  ;;  %v4543_v4 = vmul.f32 %v9753_v1, %v4519_v8  ;;  %8883 = vmatprep.mubr.msk.f32.mxu1 %vm9891_vm0, %v9892_v6  ;;  %9476 = vmatprep.subr.bf16.mxu0 %v9890_v3 }
0x14c8   : > { %v4552_v40 = vmul.f32 %v7691_v16, %v4543_v4  ;;  %8850 = vmatmul.mubr.msk.f32.gmra.mrb[86].mxu0 %vm948_vm2, %v11161_v44  ;;  %8884 = vmatmul.mubr.msk.f32.gmra.mrb[96].mxu1 %vm948_vm2, %v11161_v44  ;;  %v7750_v16 = vld [vmem:[%s11985_s1 + $0xa8] sm:$0xff] }
0x14c9   : > { %8852 = vmatprep.mubr.msk.f32.mxu0 %vm9891_vm0, %v9892_v6  ;;  %8886 = vmatprep.mubr.msk.f32.mxu1 %vm9891_vm0, %v9892_v6  ;;  %v9505_v42 = vpack.c.bf16 %v7750_v16, %v7749_v50 }
0x14ca   : > { %v11174_v10 = vadd.f32 %v7692_v39, %v4552_v40  ;;  %9478 = vmatpush3.bf16.msra.mxu0 %v9477_v24  ;;  %v9508_v39 = vpack.c.bf16 %v7752_v53, %v7751_v54 }
0x14cb   : > { %9485 = vmatprep.subr.bf16.mxu0 %v9890_v3 }
0x14cc   : > { %8853 = vmatmul.mubr.msk.f32.gmra.mrb[88].mxu0 %vm948_vm2, %v11174_v10  ;;  %8887 = vmatmul.mubr.msk.f32.gmra.mrb[98].mxu1 %vm948_vm2, %v11174_v10 }
0x14cd   : > { %8863 = vmatprep.mubr.msk.f32.mxu0 %vm9891_vm0, %v9892_v6  ;;  %8910 = vmatprep.mubr.msk.f32.mxu1 %vm9891_vm0, %v9892_v6 }
0x14d0   : > { %8864 = vmatmul.mubr.msk.f32.vlgmr.msra.gmra.mrb[90].mxu0 %vm948_vm2, %v11147_v58 }
0x14d1   : > { %8866 = vmatprep.mubr.msk.f32.mxu0 %vm9891_vm0, %v9892_v6 }
0x14d4   : > { %8867 = vmatmul.mubr.msk.f32.gmra.mrb[92].mxu0 %vm948_vm2, %v11161_v44 }
0x14d5   : > { %8869 = vmatprep.mubr.msk.f32.mxu0 %vm9891_vm0, %v9892_v6 }
0x14d8   : > { %8870 = vmatmul.mubr.msk.f32.gmra.mrb[94].mxu0 %vm948_vm2, %v11174_v10 }
0x14d9   : > { %8895 = vmatprep.mubr.msk.f32.mxu0 %vm9891_vm0, %v9892_v6 }
0x1597   : > { %v4650_v9 = vpop.f32.mrb[84].mxu0  ;;  %v4836_v11 = vpop.f32.mrb[94].mxu1 }
0x1598   : > { %v8848_v29 = vpop.f32.mrb[85].mxu0  ;;  %v8882_v13 = vpop.f32.mrb[95].mxu1  ;;  %v4837_v0 = vadd.f32 %v7716_v7, %v4836_v11  ;;  %v4651_v2 = vadd.f32 %v7698_v48, %v4650_v9 }
0x159b   : > { %v4655_v59 = vpop.f32.mrb[86].mxu0  ;;  %v4841_v22 = vpop.f32.mrb[96].mxu1 }
0x159c   : > { %v4842_v33 = vadd.f32 %v7716_v7, %v4841_v22  ;;  %v8851_v25 = vpop.f32.mrb[87].mxu0  ;;  %v8885_v61 = vpop.f32.mrb[97].mxu1  ;;  %v4656_v49 = vadd.f32 %v7698_v48, %v4655_v59 }
0x159d   : > { %v7754_v25 = vld [vmem:[%s11988_s10 + $0x5] ss:$0 sm:$0xff] }
0x159e   : > { %v9490_v30 = vpack.c.bf16 %v4842_v33, %v4837_v0 }
0x159f   : > { %v4660_v32 = vpop.f32.mrb[88].mxu0  ;;  %v4846_v8 = vpop.f32.mrb[98].mxu1 }
0x15a0   : > { %v8854_v36 = vpop.f32.mrb[89].mxu0  ;;  %v8888_v47 = vpop.f32.mrb[99].mxu1  ;;  %9491 = vmatpush3.bf16.msra.mxu1 %v9490_v30  ;;  %v4847_v5 = vadd.f32 %v7716_v7, %v4846_v8  ;;  %v4661_v52 = vadd.f32 %v7698_v48, %v4660_v32 }
0x15a1   : > { %8908 = vmatprep.subr.mxu1 %v9892_v6 }
0x15a3   : > { %v4743_v62 = vpop.f32.mrb[90].mxu0 }
0x15a4   : > { %v8865_v37 = vpop.f32.mrb[91].mxu0  ;;  %8909 = vmatpush3.msk.msra.mxu1 %vm1682_vm6, %v4847_v5  ;;  %v4744_v12 = vadd.f32 %v7707_v23, %v4743_v62 }
0x15a5   : > { %9498 = vmatprep.subr.bf16.mxu1 %v9890_v3 }
0x15a7   : > { %v4748_v38 = vpop.f32.mrb[92].mxu0 }
0x15a8   : > { %v4749_v51 = vadd.f32 %v7707_v23, %v4748_v38  ;;  %v8868_v15 = vpop.f32.mrb[93].mxu0 }
0x15aa   : > { %v9486_v27 = vpack.c.bf16 %v4749_v51, %v4744_v12 }
0x15ab   : > { %v4753_v41 = vpop.f32.mrb[94].mxu0 }
0x15ac   : > { %v8871_v34 = vpop.f32.mrb[95].mxu0  ;;  %9488 = vmatpush3.bf16.xpose.msk.msra.mxu0 %vm10393_vm5, %v9486_v27  ;;  %v4754_v28 = vadd.f32 %v7707_v23, %v4753_v41 }
0x15ad   : > { %8893 = vmatprep.subr.mxu0 %v9892_v6  ;;  %v7740_v34 = vld [vmem:[%s11986_s29 + $0xa0] sm:$0xff] }
0x15ae   : > { %v9499_v48 = vpack.c.bf16 %v7741_v43, %v7740_v34 }
0x15b4   : > { %8894 = vmatpush3.xpose.msk.msra.mxu0 %vm1351_vm4, %v4754_v28  ;;  %v7742_v28 = vld [vmem:[%s11986_s29 + $0xb0] sm:$0xff] }
0x15b5   : > { %9492 = vmatprep.subr.bf16.mxu0 %v9890_v3 }
0x15b7   : > { %8896 = vmatmul.mubr.msk.f32.vlgmr.msra.gmra.mrb[96].mxu0 %vm1351_vm4, %v4651_v2 }
0x15b8   : > { %8898 = vmatprep.mubr.msk.f32.mxu0 %vm9891_vm0, %v9892_v6  ;;  %9494 = vmatpush3.bf16.msra.mxu0 %v9493_v20  ;;  %v7743_v20 = vld [vmem:[%s11986_s29 + $0xb8] sm:$0xff] }
0x15b9   : > { %9495 = vmatprep.subr.bf16.mxu0 %v9890_v3  ;;  %v9502_v19 = vpack.c.bf16 %v7743_v20, %v7742_v28 }
0x15bb   : > { %8899 = vmatmul.mubr.msk.f32.gmra.mrb[98].mxu0 %vm1351_vm4, %v4656_v49 }
0x15bc   : > { %8901 = vmatprep.mubr.msk.f32.mxu0 %vm9891_vm0, %v9892_v6  ;;  %9497 = vmatpush3.bf16.msra.mxu0 %v9496_v63 }
0x15bd   : > { %9504 = vmatprep.subr.bf16.mxu0 %v9890_v3 }
0x15bf   : > { %8902 = vmatmul.mubr.msk.f32.gmra.mrb[100].mxu0 %vm1351_vm4, %v4661_v52 }
0x15c0   : > { %8927 = vmatprep.mubr.msk.f32.mxu0 %vm9891_vm0, %v9892_v6 }
0x15c3   : > { %8928 = vmatmul.mubr.msk.f32.vlgmr.msra.gmra.mrb[102].mxu0 %vm948_vm2, %v11147_v58 }
0x15c4   : > { %8930 = vmatprep.mubr.msk.f32.mxu0 %vm9891_vm0, %v9892_v6  ;;  %9506 = vmatpush3.bf16.msra.mxu0 %v9505_v42 }
0x15c5   : > { %9507 = vmatprep.subr.bf16.mxu0 %v9890_v3 }
0x15c7   : > { %8931 = vmatmul.mubr.msk.f32.gmra.mrb[104].mxu0 %vm948_vm2, %v11161_v44 }
0x15c8   : > { %8933 = vmatprep.mubr.msk.f32.mxu0 %vm9891_vm0, %v9892_v6  ;;  %9509 = vmatpush3.bf16.msra.mxu0 %v9508_v39 }
0x15c9   : > { %9514 = vmatprep.subr.bf16.mxu0 %v9890_v3 }
0x15cb   : > { %8934 = vmatmul.mubr.msk.f32.gmra.mrb[106].mxu0 %vm948_vm2, %v11174_v10 }
0x15cc   : > { %8961 = vmatprep.mubr.msk.f32.mxu0 %vm9891_vm0, %v9892_v6 }
0x15cf   : > { %8962 = vmatmul.mubr.msk.f32.vlgmr.msra.gmra.mrb[108].mxu0 %vm948_vm2, %v11147_v58 }
0x15d0   : > { %8964 = vmatprep.mubr.msk.f32.mxu0 %vm9891_vm0, %v9892_v6 }
0x15d3   : > { %8965 = vmatmul.mubr.msk.f32.gmra.mrb[110].mxu0 %vm948_vm2, %v11161_v44 }
0x15d4   : > { %8967 = vmatprep.mubr.msk.f32.mxu0 %vm9891_vm0, %v9892_v6 }
0x15d7   : > { %8968 = vmatmul.mubr.msk.f32.gmra.mrb[112].mxu0 %vm948_vm2, %v11174_v10 }
0x15d8   : > { %8991 = vmatprep.mubr.msk.f32.mxu0 %vm9891_vm0, %v9892_v6 }
0x168a   : > { %v4934_v60 = vpop.f32.mrb[96].mxu0 }
0x168b   : > { %v4948_v55 = vmul.f32 0.35355338, %v4934_v60  ;;  %v8897_v14 = vpop.f32.mrb[97].mxu0  ;;  %v7745_v60 = vld [vmem:[%s11989_s0 + $0x5] ss:$0 sm:$0xff] }
0x168d   : > { %v4951_v18 = vsel %vm1619_vm7, %v4948_v55, -inf }
0x168e   : > { %4952 = vmax.xlane.f32.xlu0 %v4951_v18  ;;  %v4939_v21 = vpop.f32.mrb[98].mxu0 }
0x168f   : > { %v4949_v17 = vmul.f32 0.35355338, %v4939_v21  ;;  %v8900_v26 = vpop.f32.mrb[99].mxu0 }
0x1691   : > { %v4954_v1 = vsel %vm1619_vm7, %v4949_v17, -inf }
0x1692   : > { %4955 = vmax.xlane.f32.xlu1 %v4954_v1  ;;  %v4944_v4 = vpop.f32.mrb[100].mxu0 }
0x1693   : > { %v4950_v24 = vmul.f32 0.35355338, %v4944_v4  ;;  %v8903_v40 = vpop.f32.mrb[101].mxu0  ;;  %v7736_v4 = vld [vmem:[%s11993_s12 + $0x5] ss:$0 sm:$0xff] }
0x1695   : > { %v4957_v9 = vsel %vm1626_vm8, %v4950_v24, -inf }
0x1696   : > { %4958 = vmax.xlane.f32.xlu0 %v4957_v9  ;;  %v11278_v11 = vpop.f32.mrb[102].mxu0 }
0x1697   : > { %v8929_v29 = vpop.f32.mrb[103].mxu0  ;;  %v5158_v40 = vadd.f32 %v7736_v4, %v11278_v11 }
0x169a   : > { %v11280_v13 = vpop.f32.mrb[104].mxu0 }
0x169b   : > { %v8932_v7 = vpop.f32.mrb[105].mxu0  ;;  %v5163_v9 = vadd.f32 %v7736_v4, %v11280_v13 }
0x169e   : > { %v11282_v59 = vpop.f32.mrb[106].mxu0 }
0x169f   : > { %v8935_v22 = vpop.f32.mrb[107].mxu0  ;;  %v5168_v29 = vadd.f32 %v7736_v4, %v11282_v59  ;;  %v7775_v4 = vld [vmem:[%s11984_s2 + $0xc0] sm:$0xff] }
0x16a2   : > { %v5343_v0 = vpop.f32.mrb[108].mxu0 }
0x16a3   : > { %v8963_v33 = vpop.f32.mrb[109].mxu0  ;;  %v5344_v30 = vadd.f32 %v7754_v25, %v5343_v0 }
0x16a6   : > { %v5348_v61 = vpop.f32.mrb[110].mxu0 }
0x16a7   : > { %v5349_v32 = vadd.f32 %v7754_v25, %v5348_v61  ;;  %v8966_v8 = vpop.f32.mrb[111].mxu0 }
0x16a9   : > { %v9515_v36 = vpack.c.bf16 %v5349_v32, %v5344_v30 }
0x16aa   : > { %v5353_v47 = vpop.f32.mrb[112].mxu0 }
0x16ab   : > { %v8969_v5 = vpop.f32.mrb[113].mxu0  ;;  %9516 = vmatpush3.bf16.msra.mxu0 %v9515_v36  ;;  %v5354_v62 = vadd.f32 %v7754_v25, %v5353_v47 }
0x16ac   : > { %8989 = vmatprep.subr.mxu0 %v9892_v6 }
0x16af   : > { %8990 = vmatpush3.msk.msra.mxu0 %vm1682_vm6, %v5354_v62 }
0x16b0   : > { %9011 = vmatprep.subr.mxu0 %v9892_v6 }
0x171b   : > { %v4953_v37 = vpop.xlane.xlu0 %4952 }
0x171c   : > { %v4960_v23 = vsub.f32 %v4948_v55, %v4953_v37 }
0x171e   : > { %v4963_v38 = vmul.f32 1.442695, %v4960_v23 }
0x171f   : > { %v4956_v12 = vpop.xlane.xlu1 %4955 }
0x1720   : > { %9754 = vpow2.f32 %v4963_v38  ;;  %v4961_v51 = vsub.f32 %v4949_v17, %v4956_v12 }
0x1722   : > { %v4965_v15 = vmul.f32 1.442695, %v4961_v51 }
0x1723   : > { %v4959_v27 = vpop.xlane.xlu0 %4958 }
0x1724   : > { %9756 = vpow2.f32 %v4965_v15  ;;  %v4962_v41 = vsub.f32 %v4950_v24, %v4959_v27 }
0x1726   : > { %v4967_v46 = vmul.f32 1.442695, %v4962_v41 }
0x1728   : > { %9758 = vpow2.f32 %v4967_v46 }
0x172a   : > { %v11302_v2 = vpop.eup %9754 }
0x172b   : > { %8911 = vmatmul.mubr.msk.f32.vlgmr.msra.gmra.mrb[100].mxu1 %vm1619_vm7, %v11302_v2  ;;  %v4969_v8 = vsel %vm1619_vm7, %v11302_v2, 0.0 }
0x172c   : > { %8913 = vmatprep.mubr.msk.f32.mxu1 %vm9891_vm0, %v9892_v6  ;;  %9500 = vmatpush3.bf16.msra.mxu1 %v9499_v48  ;;  %v7730_v48 = vld [vmem:[%s11994_s5 + $0x20] sm:$0xff] }
0x172d   : > { %9501 = vmatprep.subr.bf16.mxu1 %v9890_v3 }
0x172e   : > { %v11309_v31 = vpop.eup %9756 }
0x172f   : > { %8914 = vmatmul.mubr.msk.f32.gmra.mrb[102].mxu1 %vm1619_vm7, %v11309_v31  ;;  %v4972_v5 = vsel %vm1619_vm7, %v11309_v31, 0.0 }
0x1730   : > { %8916 = vmatprep.mubr.msk.f32.mxu1 %vm9891_vm0, %v9892_v6  ;;  %9503 = vmatpush3.bf16.msra.mxu1 %v9502_v19 }
0x1731   : > { %9510 = vmatprep.subr.bf16.mxu1 %v9890_v3 }
0x1732   : > { %v9759_v63 = vpop.eup %9758 }
0x1733   : > { %8917 = vmatmul.mubr.msk.f32.gmra.mrb[104].mxu1 %vm1619_vm7, %v9759_v63  ;;  %v4975_v47 = vsel %vm1626_vm8, %v9759_v63, 0.0  ;;  %v7784_v63 = vld [vmem:[%s11986_s29 + $0xc0] sm:$0xff] }
0x1734   : > { %8944 = vmatprep.mubr.msk.f32.mxu1 %vm9891_vm0, %v9892_v6 }
0x1737   : > { %8945 = vmatmul.mubr.msk.f32.vlgmr.msra.gmra.mrb[106].mxu1 %vm948_vm2, %v11147_v58 }
0x1738   : > { %8947 = vmatprep.mubr.msk.f32.mxu1 %vm9891_vm0, %v9892_v6 }
0x173b   : > { %8948 = vmatmul.mubr.msk.f32.gmra.mrb[108].mxu1 %vm948_vm2, %v11161_v44 }
0x173c   : > { %8950 = vmatprep.mubr.msk.f32.mxu1 %vm9891_vm0, %v9892_v6 }
0x173f   : > { %8951 = vmatmul.mubr.msk.f32.gmra.mrb[110].mxu1 %vm948_vm2, %v11174_v10 }
0x1740   : > { %8976 = vmatprep.mubr.msk.f32.mxu1 %vm9891_vm0, %v9892_v6 }
0x17fe   : > { %v11331_v49 = vpop.f32.mrb[100].mxu1 }
0x17ff   : > { %v8912_v52 = vpop.f32.mrb[101].mxu1 }
0x1800   : > { %v7785_v52 = vld [vmem:[%s11986_s29 + $0xc8] sm:$0xff] }
0x1802   : > { %v11333_v50 = vpop.f32.mrb[102].mxu1 }
0x1803   : > { %v8915_v16 = vpop.f32.mrb[103].mxu1 }
0x1806   : > { %v11335_v42 = vpop.f32.mrb[104].mxu1 }
0x1807   : > { %v8918_v54 = vpop.f32.mrb[105].mxu1 }
0x180a   : > { %v5250_v53 = vpop.f32.mrb[106].mxu1 }
0x180b   : > { %v8946_v39 = vpop.f32.mrb[107].mxu1  ;;  %v5251_v14 = vadd.f32 %v7745_v60, %v5250_v53  ;;  %v9524_v53 = vpack.c.bf16 %v7785_v52, %v7784_v63 }
0x180e   : > { %v5255_v55 = vpop.f32.mrb[108].mxu1 }
0x180f   : > { %v5256_v18 = vadd.f32 %v7745_v60, %v5255_v55  ;;  %v8949_v21 = vpop.f32.mrb[109].mxu1  ;;  %v7787_v55 = vld [vmem:[%s11986_s29 + $0xd8] sm:$0xff] }
0x1811   : > { %v9511_v17 = vpack.c.bf16 %v5256_v18, %v5251_v14 }
0x1812   : > { %v5260_v26 = vpop.f32.mrb[110].mxu1 }
0x1813   : > { %v8952_v1 = vpop.f32.mrb[111].mxu1  ;;  %9513 = vmatpush3.bf16.xpose.msk.msra.mxu1 %vm10393_vm5, %v9511_v17  ;;  %v5261_v24 = vadd.f32 %v7745_v60, %v5260_v26  ;;  %v7786_v60 = vld [vmem:[%s11986_s29 + $0xd0] sm:$0xff] }
0x1814   : > { %8974 = vmatprep.subr.mxu1 %v9892_v6  ;;  %v9527_v18 = vpack.c.bf16 %v7787_v55, %v7786_v60 }
0x181b   : > { %8975 = vmatpush3.xpose.msk.msra.mxu1 %vm1351_vm4, %v5261_v24  ;;  %v7776_v24 = vld [vmem:[%s11984_s2 + $0xc8] sm:$0xff] }
0x181c   : > { %9000 = vmatprep.subr.mxu1 %v9892_v6 }
0x181e   : > { %8977 = vmatmul.mubr.msk.f32.vlgmr.msra.gmra.mrb[112].mxu1 %vm1351_vm4, %v5158_v40 }
0x181f   : > { %8979 = vmatprep.mubr.msk.f32.mxu1 %vm9891_vm0, %v9892_v6 }
0x1822   : > { %8980 = vmatmul.mubr.msk.f32.gmra.mrb[114].mxu1 %vm1351_vm4, %v5163_v9 }
0x1823   : > { %8982 = vmatprep.mubr.msk.f32.mxu1 %vm9891_vm0, %v9892_v6 }
0x1826   : > { %8983 = vmatmul.mubr.msk.f32.gmra.mrb[116].mxu1 %vm1351_vm4, %v5168_v29  ;;  %v9518_v29 = vpack.c.bf16 %v7776_v24, %v7775_v4 }
0x1827   : > { %9002 = vmatprep.mubr.msk.f32.mxu1 %vm9891_vm0, %v9892_v6 }
0x18f1   : > { %v5441_v11 = vpop.f32.mrb[112].mxu1 }
0x18f2   : > { %v5455_v7 = vmul.f32 0.35355338, %v5441_v11  ;;  %v8978_v22 = vpop.f32.mrb[113].mxu1 }
0x18f3   : > { %v7777_v22 = vld [vmem:[%s11984_s2 + $0xd0] sm:$0xff] }
0x18f4   : > { %v5458_v0 = vsel %vm1619_vm7, %v5455_v7, -inf }
0x18f5   : > { %5459 = vmax.xlane.f32.xlu1 %v5458_v0  ;;  %v5446_v33 = vpop.f32.mrb[114].mxu1  ;;  %v7778_v0 = vld [vmem:[%s11984_s2 + $0xd8] sm:$0xff] }
0x18f6   : > { %v5456_v13 = vmul.f32 0.35355338, %v5446_v33  ;;  %v8981_v25 = vpop.f32.mrb[115].mxu1 }
0x18f7   : > { %v9521_v25 = vpack.c.bf16 %v7778_v0, %v7777_v22  ;;  %v7798_v22 = vld [vmem:[%s11988_s10 + $0x6] ss:$0 sm:$0xff] }
0x18f8   : > { %v5461_v61 = vsel %vm1619_vm7, %v5456_v13, -inf }
0x18f9   : > { %5462 = vmax.xlane.f32.xlu0 %v5461_v61  ;;  %v5451_v30 = vpop.f32.mrb[116].mxu1 }
0x18fa   : > { %v5457_v32 = vmul.f32 0.35355338, %v5451_v30  ;;  %v8984_v59 = vpop.f32.mrb[117].mxu1 }
0x18fc   : > { %v5464_v36 = vsel %vm1626_vm8, %v5457_v32, -inf }
0x18fd   : > { %4970 = vadd.xlane.f32.xlu0 %v4969_v8  ;;  %5465 = vmax.xlane.f32.xlu1 %v5464_v36 }
0x1901   : > { %4976 = vadd.xlane.f32.xlu0 %v4975_v47  ;;  %4973 = vadd.xlane.f32.xlu1 %v4972_v5  ;;  %v7793_v47 = vld [vmem:[%s11985_s1 + $0xc0] sm:$0xff]  ;;  %v7794_v5 = vld [vmem:[%s11985_s1 + $0xc8] sm:$0xff] }
0x1982   : > { %v5460_v62 = vpop.xlane.xlu1 %5459 }
0x1983   : > { %v5467_v37 = vsub.f32 %v5455_v7, %v5460_v62 }
0x1985   : > { %v5470_v23 = vmul.f32 1.442695, %v5467_v37  ;;  %v9530_v37 = vpack.c.bf16 %v7794_v5, %v7793_v47 }
0x1986   : > { %v5463_v38 = vpop.xlane.xlu0 %5462 }
0x1987   : > { %9760 = vpow2.f32 %v5470_v23  ;;  %v5468_v12 = vsub.f32 %v5456_v13, %v5463_v38  ;;  %v7795_v38 = vld [vmem:[%s11985_s1 + $0xd0] sm:$0xff] }
0x1989   : > { %v5472_v51 = vmul.f32 1.442695, %v5468_v12  ;;  %v7796_v12 = vld [vmem:[%s11985_s1 + $0xd8] sm:$0xff] }
0x198a   : > { %v5466_v15 = vpop.xlane.xlu1 %5465  ;;  %v4971_v27 = vpop.xlane.xlu0 %4970 }
0x198b   : > { %9762 = vpow2.f32 %v5472_v51  ;;  %v5469_v41 = vsub.f32 %v5457_v32, %v5466_v15  ;;  %v9533_v15 = vpack.c.bf16 %v7796_v12, %v7795_v38 }
0x198c   : > { %9764 = vrcp.f32 %v4971_v27 }
0x198d   : > { %v5474_v34 = vmul.f32 1.442695, %v5469_v41 }
0x198e   : > { %v4974_v43 = vpop.xlane.xlu1 %4973  ;;  %v4977_v20 = vpop.xlane.xlu0 %4976 }
0x198f   : > { %9766 = vpow2.f32 %v5474_v34 }
0x1990   : > { %9768 = vrcp.f32 %v4974_v43 }
0x1991   : > { %v9761_v46 = vpop.eup %9760  ;;  %9770 = vrcp.f32 %v4977_v20 }
0x1992   : > { %8992 = vmatmul.mubr.msk.f32.vlgmr.msra.gmra.mrb[114].mxu0 %vm1619_vm7, %v9761_v46  ;;  %v5476_v28 = vsel %vm1619_vm7, %v9761_v46, 0.0 }
0x1993   : > { %5477 = vadd.xlane.f32.xlu1 %v5476_v28  ;;  %8994 = vmatprep.mubr.msk.f32.mxu0 %vm9891_vm0, %v9892_v6 }
0x1994   : > { %9012 = vmatpush3.msra.mxu0 %v7730_v48  ;;  %v7789_v48 = vld [vmem:[%s11989_s0 + $0x6] ss:$0 sm:$0xff] }
0x1995   : > { %v9763_v2 = vpop.eup %9762  ;;  %9523 = vmatprep.subr.bf16.mxu0 %v9890_v3 }
0x1996   : > { %8995 = vmatmul.mubr.msk.f32.gmra.mrb[116].mxu0 %vm1619_vm7, %v9763_v2  ;;  %v5479_v19 = vsel %vm1619_vm7, %v9763_v2, 0.0  ;;  %v9765_v31 = vpop.eup %9764 }
0x1997   : > { %5480 = vadd.xlane.f32.xlu0 %v5479_v19  ;;  %8997 = vmatprep.mubr.msk.f32.mxu0 %vm9891_vm0, %v9892_v6  ;;  %v5073_v39 = vmul.f32 %v9765_v31, %v11331_v49 }
0x1999   : > { %v9767_v16 = vpop.eup %9766 }
0x199a   : > { %8998 = vmatmul.mubr.msk.f32.gmra.mrb[118].mxu0 %vm1619_vm7, %v9767_v16  ;;  %v5482_v54 = vsel %vm1626_vm8, %v9767_v16, 0.0  ;;  %v9769_v14 = vpop.eup %9768 }
0x199b   : > { %5483 = vadd.xlane.f32.xlu1 %v5482_v54  ;;  %9013 = vmatprep.mubr.msk.f32.mxu0 %vm9891_vm0, %v9892_v6  ;;  %v5074_v21 = vmul.f32 %v9769_v14, %v11333_v50  ;;  %v9771_v49 = vpop.eup %9770  ;;  %v7768_v50 = vld [vmem:[%s11994_s5 + $0x28] sm:$0xff] }
0x199c   : > { %v5075_v17 = vmul.f32 %v9771_v49, %v11335_v42  ;;  %9001 = vmatpush3.msra.mxu1 %v7768_v50 }
0x199d   : > { %9517 = vmatprep.subr.bf16.mxu1 %v9890_v3 }
0x199e   : > { %9014 = vmatmul.mubr.msk.f32.vlgmr.msra.gmra.mrb[120].mxu0 %vm1351_vm4, %v5073_v39 }
0x199f   : > { %9016 = vmatprep.mubr.msk.f32.mxu0 %vm9891_vm0, %v9892_v6  ;;  %9525 = vmatpush3.bf16.msra.mxu0 %v9524_v53 }
0x19a0   : > { %9526 = vmatprep.subr.bf16.mxu0 %v9890_v3 }
0x19a2   : > { %9017 = vmatmul.mubr.msk.f32.gmra.mrb[122].mxu0 %vm1351_vm4, %v5074_v21 }
0x19a3   : > { %9019 = vmatprep.mubr.msk.f32.mxu0 %vm9891_vm0, %v9892_v6  ;;  %9528 = vmatpush3.bf16.msra.mxu0 %v9527_v18 }
0x19a4   : > { %9535 = vmatprep.subr.bf16.mxu0 %v9890_v3 }
0x19a6   : > { %9020 = vmatmul.mubr.msk.f32.gmra.mrb[124].mxu0 %vm1351_vm4, %v5075_v17  ;;  %v7780_v17 = vld [vmem:[%s11993_s12 + $0x6] ss:$0 sm:$0xff] }
0x19a7   : > { %9047 = vmatprep.mubr.msk.f32.mxu0 %vm9891_vm0, %v9892_v6 }
0x19aa   : > { %9048 = vmatmul.mubr.msk.f32.vlgmr.msra.gmra.mrb[126].mxu0 %vm948_vm2, %v11147_v58 }
0x19ab   : > { %9050 = vmatprep.mubr.msk.f32.mxu0 %vm9891_vm0, %v9892_v6 }
0x19ae   : > { %9051 = vmatmul.mubr.msk.f32.gmra.mrb[128].mxu0 %vm948_vm2, %v11161_v44 }
0x19af   : > { %9053 = vmatprep.mubr.msk.f32.mxu0 %vm9891_vm0, %v9892_v6 }
0x19b2   : > { %9054 = vmatmul.mubr.msk.f32.gmra.mrb[130].mxu0 %vm948_vm2, %v11174_v10 }
0x19b3   : > { %9079 = vmatprep.mubr.msk.f32.mxu0 %vm9891_vm0, %v9892_v6 }
0x1a20   : > { %v5478_v42 = vpop.xlane.xlu1 %5477 }
0x1a21   : > { %9772 = vrcp.f32 %v5478_v42 }
0x1a24   : > { %v5481_v26 = vpop.xlane.xlu0 %5480 }
0x1a25   : > { %9774 = vrcp.f32 %v5481_v26 }
0x1a28   : > { %v5484_v1 = vpop.xlane.xlu1 %5483 }
0x1a29   : > { %9776 = vrcp.f32 %v5484_v1 }
0x1a2b   : > { %v9773_v40 = vpop.eup %9772 }
0x1a2f   : > { %v9775_v33 = vpop.eup %9774 }
0x1a33   : > { %v9777_v32 = vpop.eup %9776 }
0x1a65   : > { %v5566_v9 = vpop.f32.mrb[114].mxu0 }
0x1a66   : > { %v5580_v11 = vmul.f32 %v9773_v40, %v5566_v9  ;;  %v8993_v7 = vpop.f32.mrb[115].mxu0 }
0x1a68   : > { %9003 = vmatmul.mubr.msk.f32.vlgmr.msra.gmra.mrb[118].mxu1 %vm1351_vm4, %v5580_v11 }
0x1a69   : > { %v5571_v13 = vpop.f32.mrb[116].mxu0  ;;  %9005 = vmatprep.mubr.msk.f32.mxu1 %vm9891_vm0, %v9892_v6  ;;  %9519 = vmatpush3.bf16.msra.mxu1 %v9518_v29 }
0x1a6a   : > { %v5581_v61 = vmul.f32 %v9775_v33, %v5571_v13  ;;  %v8996_v30 = vpop.f32.mrb[117].mxu0  ;;  %9520 = vmatprep.subr.bf16.mxu1 %v9890_v3 }
0x1a6c   : > { %9006 = vmatmul.mubr.msk.f32.gmra.mrb[120].mxu1 %vm1351_vm4, %v5581_v61 }
0x1a6d   : > { %v5576_v59 = vpop.f32.mrb[118].mxu0  ;;  %9008 = vmatprep.mubr.msk.f32.mxu1 %vm9891_vm0, %v9892_v6  ;;  %9522 = vmatpush3.bf16.msra.mxu1 %v9521_v25 }
0x1a6e   : > { %v5582_v8 = vmul.f32 %v9777_v32, %v5576_v59  ;;  %v8999_v36 = vpop.f32.mrb[119].mxu0  ;;  %9529 = vmatprep.subr.bf16.mxu1 %v9890_v3 }
0x1a70   : > { %9009 = vmatmul.mubr.msk.f32.gmra.mrb[122].mxu1 %vm1351_vm4, %v5582_v8 }
0x1a71   : > { %v5749_v62 = vpop.f32.mrb[120].mxu0  ;;  %9030 = vmatprep.mubr.msk.f32.mxu1 %vm9891_vm0, %v9892_v6 }
0x1a72   : > { %v9015_v23 = vpop.f32.mrb[121].mxu0 }
0x1a74   : > { %9031 = vmatmul.mubr.msk.f32.vlgmr.msra.gmra.mrb[124].mxu1 %vm948_vm2, %v11147_v58 }
0x1a75   : > { %v5754_v51 = vpop.f32.mrb[122].mxu0  ;;  %9033 = vmatprep.mubr.msk.f32.mxu1 %vm9891_vm0, %v9892_v6  ;;  %9531 = vmatpush3.bf16.msra.mxu1 %v9530_v37 }
0x1a76   : > { %v9018_v27 = vpop.f32.mrb[123].mxu0  ;;  %9532 = vmatprep.subr.bf16.mxu1 %v9890_v3 }
0x1a78   : > { %9034 = vmatmul.mubr.msk.f32.gmra.mrb[126].mxu1 %vm948_vm2, %v11161_v44 }
0x1a79   : > { %v5759_v41 = vpop.f32.mrb[124].mxu0  ;;  %9036 = vmatprep.mubr.msk.f32.mxu1 %vm9891_vm0, %v9892_v6  ;;  %9534 = vmatpush3.bf16.msra.mxu1 %v9533_v15 }
0x1a7a   : > { %v9021_v34 = vpop.f32.mrb[125].mxu0  ;;  %9539 = vmatprep.subr.bf16.mxu1 %v9890_v3 }
0x1a7c   : > { %9037 = vmatmul.mubr.msk.f32.gmra.mrb[128].mxu1 %vm948_vm2, %v11174_v10 }
0x1a7d   : > { %v5935_v43 = vpop.f32.mrb[126].mxu0  ;;  %9064 = vmatprep.mubr.msk.f32.mxu1 %vm9891_vm0, %v9892_v6 }
0x1a7e   : > { %v9049_v46 = vpop.f32.mrb[127].mxu0  ;;  %v5936_v20 = vadd.f32 %v7789_v48, %v5935_v43 }
0x1a80   : > { %9065 = vmatmul.mubr.msk.f32.vlgmr.msra.gmra.mrb[130].mxu1 %vm948_vm2, %v11147_v58 }
0x1a81   : > { %v5940_v28 = vpop.f32.mrb[128].mxu0  ;;  %9067 = vmatprep.mubr.msk.f32.mxu1 %vm9891_vm0, %v9892_v6 }
0x1a82   : > { %v5941_v2 = vadd.f32 %v7789_v48, %v5940_v28  ;;  %v9052_v19 = vpop.f32.mrb[129].mxu0 }
0x1a84   : > { %v9536_v31 = vpack.c.bf16 %v5941_v2, %v5936_v20  ;;  %9068 = vmatmul.mubr.msk.f32.gmra.mrb[132].mxu1 %vm948_vm2, %v11161_v44 }
0x1a85   : > { %v5945_v63 = vpop.f32.mrb[130].mxu0  ;;  %9070 = vmatprep.mubr.msk.f32.mxu1 %vm9891_vm0, %v9892_v6 }
0x1a86   : > { %v9055_v52 = vpop.f32.mrb[131].mxu0  ;;  %9538 = vmatpush3.bf16.xpose.msk.msra.mxu0 %vm10393_vm5, %v9536_v31  ;;  %v5946_v16 = vadd.f32 %v7789_v48, %v5945_v63  ;;  %v7816_v31 = vld [vmem:[%s11984_s2 + $0xe0] sm:$0xff]  ;;  %v7817_v63 = vld [vmem:[%s11984_s2 + $0xe8] sm:$0xff] }
0x1a87   : > { %9077 = vmatprep.subr.mxu0 %v9892_v6  ;;  %v9543_v52 = vpack.c.bf16 %v7817_v63, %v7816_v31 }
0x1a88   : > { %9071 = vmatmul.mubr.msk.f32.gmra.mrb[134].mxu1 %vm948_vm2, %v11174_v10 }
0x1a89   : > { %9094 = vmatprep.mubr.msk.f32.mxu1 %vm9891_vm0, %v9892_v6 }
0x1a8e   : > { %9078 = vmatpush3.xpose.msk.msra.mxu0 %vm1351_vm4, %v5946_v16 }
0x1a8f   : > { %9103 = vmatprep.subr.mxu0 %v9892_v6 }
0x1b3b   : > { %v5660_v54 = vpop.f32.mrb[118].mxu1 }
0x1b3c   : > { %v11495_v53 = vadd.f32 %v5749_v62, %v5660_v54  ;;  %v9004_v39 = vpop.f32.mrb[119].mxu1  ;;  %v7818_v54 = vld [vmem:[%s11984_s2 + $0xf0] sm:$0xff] }
0x1b3d   : > { %v7819_v39 = vld [vmem:[%s11984_s2 + $0xf8] sm:$0xff]  ;;  %s7451_s2 = scalar_lea.sflag [#allocation4], %s837_s4 }
0x1b3f   : > { %v5665_v60 = vpop.f32.mrb[120].mxu1 }
0x1b40   : > { %v11497_v55 = vadd.f32 %v5754_v51, %v5665_v60  ;;  %v9007_v14 = vpop.f32.mrb[121].mxu1 }
0x1b41   : > { %v9546_v14 = vpack.c.bf16 %v7819_v39, %v7818_v54 }
0x1b43   : > { %v5670_v18 = vpop.f32.mrb[122].mxu1 }
0x1b44   : > { %v11499_v21 = vadd.f32 %v5759_v41, %v5670_v18  ;;  %v9010_v49 = vpop.f32.mrb[123].mxu1 }
0x1b47   : > { %v5842_v50 = vpop.f32.mrb[124].mxu1 }
0x1b48   : > { %v5843_v42 = vadd.f32 %v7780_v17, %v5842_v50  ;;  %v9032_v26 = vpop.f32.mrb[125].mxu1  ;;  %v7835_v50 = vld [vmem:[%s11985_s1 + $0xe8] sm:$0xff] }
0x1b4a   : > { %9080 = vmatmul.mubr.msk.f32.vlgmr.msra.gmra.mrb[132].mxu0 %vm1351_vm4, %v5843_v42 }
0x1b4b   : > { %v5847_v1 = vpop.f32.mrb[126].mxu1  ;;  %9082 = vmatprep.mubr.msk.f32.mxu0 %vm9891_vm0, %v9892_v6 }
0x1b4c   : > { %v5848_v4 = vadd.f32 %v7780_v17, %v5847_v1  ;;  %v9035_v24 = vpop.f32.mrb[127].mxu1 }
0x1b4d   : > { %v7837_v24 = vld [vmem:[%s11985_s1 + $0xf8] sm:$0xff] }
0x1b4e   : > { %9083 = vmatmul.mubr.msk.f32.gmra.mrb[134].mxu0 %vm1351_vm4, %v5848_v4  ;;  %v7836_v4 = vld [vmem:[%s11985_s1 + $0xf0] sm:$0xff] }
0x1b4f   : > { %v5852_v40 = vpop.f32.mrb[128].mxu1  ;;  %9085 = vmatprep.mubr.msk.f32.mxu0 %vm9891_vm0, %v9892_v6 }
0x1b50   : > { %v5853_v9 = vadd.f32 %v7780_v17, %v5852_v40  ;;  %v9038_v29 = vpop.f32.mrb[129].mxu1  ;;  %v7834_v17 = vld [vmem:[%s11985_s1 + $0xe0] sm:$0xff]  ;;  %v9558_v40 = vpack.c.bf16 %v7837_v24, %v7836_v4 }
0x1b51   : > { %v9555_v1 = vpack.c.bf16 %v7835_v50, %v7834_v17 }
0x1b52   : > { %9086 = vmatmul.mubr.msk.f32.gmra.mrb[136].mxu0 %vm1351_vm4, %v5853_v9  ;;  %v7812_v9 = vld [vmem:[%s11994_s5 + $0x30] sm:$0xff] }
0x1b53   : > { %v6028_v11 = vpop.f32.mrb[130].mxu1  ;;  %9105 = vmatprep.mubr.msk.f32.mxu0 %vm9891_vm0, %v9892_v6  ;;  %9104 = vmatpush3.msra.mxu0 %v7812_v9 }
0x1b54   : > { %v9066_v7 = vpop.f32.mrb[131].mxu1  ;;  %v6029_v33 = vadd.f32 %v7798_v22, %v6028_v11  ;;  %9548 = vmatprep.subr.bf16.mxu0 %v9890_v3 }
0x1b57   : > { %v6033_v0 = vpop.f32.mrb[132].mxu1 }
0x1b58   : > { %v6034_v13 = vadd.f32 %v7798_v22, %v6033_v0  ;;  %v9069_v25 = vpop.f32.mrb[133].mxu1  ;;  %v7826_v0 = vld [vmem:[%s11986_s29 + $0xe8] sm:$0xff] }
0x1b5a   : > { %v9540_v61 = vpack.c.bf16 %v6034_v13, %v6029_v33 }
0x1b5b   : > { %v6038_v30 = vpop.f32.mrb[134].mxu1 }
0x1b5c   : > { %v9072_v32 = vpop.f32.mrb[135].mxu1  ;;  %9541 = vmatpush3.bf16.msra.mxu1 %v9540_v61  ;;  %v6039_v59 = vadd.f32 %v7798_v22, %v6038_v30  ;;  %v7825_v22 = vld [vmem:[%s11986_s29 + $0xe0] sm:$0xff] }
0x1b5d   : > { %9092 = vmatprep.subr.mxu1 %v9892_v6  ;;  %v9549_v25 = vpack.c.bf16 %v7826_v0, %v7825_v22  ;;  %v7827_v32 = vld [vmem:[%s11986_s29 + $0xf0] sm:$0xff] }
0x1b60   : > { %9093 = vmatpush3.msk.msra.mxu1 %vm1682_vm6, %v6039_v59  ;;  %v7828_v59 = vld [vmem:[%s11986_s29 + $0xf8] sm:$0xff] }
0x1b61   : > { %9542 = vmatprep.subr.bf16.mxu1 %v9890_v3 }
0x1c1d   : > { %v6126_v8 = vpop.f32.mrb[132].mxu0 }
0x1c1e   : > { %v6140_v36 = vmul.f32 0.35355338, %v6126_v8  ;;  %v9081_v47 = vpop.f32.mrb[133].mxu0 }
0x1c1f   : > { %v9552_v47 = vpack.c.bf16 %v7828_v59, %v7827_v32 }
0x1c20   : > { %v6143_v5 = vsel %vm1619_vm7, %v6140_v36, -inf }
0x1c21   : > { %6144 = vmax.xlane.f32.xlu0 %v6143_v5  ;;  %v6131_v62 = vpop.f32.mrb[134].mxu0 }
0x1c22   : > { %v6141_v37 = vmul.f32 0.35355338, %v6131_v62  ;;  %v9084_v23 = vpop.f32.mrb[135].mxu0 }
0x1c24   : > { %v6146_v38 = vsel %vm1619_vm7, %v6141_v37, -inf }
0x1c25   : > { %6147 = vmax.xlane.f32.xlu1 %v6146_v38  ;;  %v6136_v12 = vpop.f32.mrb[136].mxu0 }
0x1c26   : > { %v6142_v51 = vmul.f32 0.35355338, %v6136_v12  ;;  %v9087_v15 = vpop.f32.mrb[137].mxu0 }
0x1c28   : > { %v6149_v27 = vsel %vm1626_vm8, %v6142_v51, -inf }
0x1c29   : > { %6150 = vmax.xlane.f32.xlu0 %v6149_v27 }
0x1cae   : > { %v6145_v41 = vpop.xlane.xlu0 %6144 }
0x1caf   : > { %v6152_v34 = vsub.f32 %v6140_v36, %v6145_v41 }
0x1cb1   : > { %v6155_v43 = vmul.f32 1.442695, %v6152_v34 }
0x1cb2   : > { %v6148_v46 = vpop.xlane.xlu1 %6147 }
0x1cb3   : > { %9778 = vpow2.f32 %v6155_v43  ;;  %v6153_v48 = vsub.f32 %v6141_v37, %v6148_v46 }
0x1cb5   : > { %v6157_v28 = vmul.f32 1.442695, %v6153_v48  ;;  %v7839_v48 = vld [vmem:[%s11988_s10 + $0x7] ss:$0 sm:$0xff] }
0x1cb6   : > { %v6151_v20 = vpop.xlane.xlu0 %6150 }
0x1cb7   : > { %9780 = vpow2.f32 %v6157_v28  ;;  %v6154_v2 = vsub.f32 %v6142_v51, %v6151_v20 }
0x1cb9   : > { %v6159_v19 = vmul.f32 1.442695, %v6154_v2 }
0x1cbb   : > { %9782 = vpow2.f32 %v6159_v19 }
0x1cbd   : > { %v9779_v16 = vpop.eup %9778 }
0x1cbe   : > { %9095 = vmatmul.mubr.msk.f32.vlgmr.msra.gmra.mrb[136].mxu1 %vm1619_vm7, %v9779_v16  ;;  %v6161_v60 = vsel %vm1619_vm7, %v9779_v16, 0.0 }
0x1cbf   : > { %6162 = vadd.xlane.f32.xlu1 %v6161_v60  ;;  %9097 = vmatprep.mubr.msk.f32.mxu1 %vm9891_vm0, %v9892_v6 }
0x1cc0   : > { %9544 = vmatpush3.bf16.msra.mxu1 %v9543_v52 }
0x1cc1   : > { %v9781_v18 = vpop.eup %9780  ;;  %9545 = vmatprep.subr.bf16.mxu1 %v9890_v3 }
0x1cc2   : > { %9098 = vmatmul.mubr.msk.f32.gmra.mrb[138].mxu1 %vm1619_vm7, %v9781_v18  ;;  %v6164_v49 = vsel %vm1619_vm7, %v9781_v18, 0.0 }
0x1cc3   : > { %6165 = vadd.xlane.f32.xlu0 %v6164_v49  ;;  %9100 = vmatprep.mubr.msk.f32.mxu1 %vm9891_vm0, %v9892_v6 }
0x1cc4   : > { %9547 = vmatpush3.bf16.msra.mxu1 %v9546_v14 }
0x1cc5   : > { %v9783_v42 = vpop.eup %9782  ;;  %9554 = vmatprep.subr.bf16.mxu1 %v9890_v3 }
0x1cc6   : > { %9101 = vmatmul.mubr.msk.f32.gmra.mrb[140].mxu1 %vm1619_vm7, %v9783_v42  ;;  %v6167_v26 = vsel %vm1626_vm8, %v9783_v42, 0.0 }
0x1cc7   : > { %6168 = vadd.xlane.f32.xlu1 %v6167_v26  ;;  %9122 = vmatprep.mubr.msk.f32.mxu1 %vm9891_vm0, %v9892_v6  ;;  %v7830_v26 = vld [vmem:[%s11989_s0 + $0x7] ss:$0 sm:$0xff]  ;;  %s11998_s0 = sld [smem:[#allocation27_spill]] }
0x1cca   : > { %9123 = vmatmul.mubr.msk.f32.vlgmr.msra.gmra.mrb[142].mxu1 %vm948_vm2, %v11147_v58 }
0x1ccb   : > { %9125 = vmatprep.mubr.msk.f32.mxu1 %vm9891_vm0, %v9892_v6  ;;  %9556 = vmatpush3.bf16.msra.mxu1 %v9555_v1 }
0x1ccc   : > { %9557 = vmatprep.subr.bf16.mxu1 %v9890_v3 }
0x1ccd   : > { %s11858_s1 = scalar_lea.hbm %s11998_s0, %s7896_s3 }
0x1cce   : > { %9126 = vmatmul.mubr.msk.f32.gmra.mrb[144].mxu1 %vm948_vm2, %v11161_v44 }
0x1ccf   : > { %9128 = vmatprep.mubr.msk.f32.mxu1 %vm9891_vm0, %v9892_v6  ;;  %9559 = vmatpush3.bf16.msra.mxu1 %v9558_v40 }
0x1cd0   : > { %9564 = vmatprep.subr.bf16.mxu1 %v9890_v3 }
0x1cd2   : > { %9129 = vmatmul.mubr.msk.f32.gmra.mrb[146].mxu1 %vm948_vm2, %v11174_v10 }
0x1cd3   : > { %9156 = vmatprep.mubr.msk.f32.mxu1 %vm9891_vm0, %v9892_v6 }
0x1cd6   : > { %9157 = vmatmul.mubr.msk.f32.vlgmr.msra.gmra.mrb[148].mxu1 %vm948_vm2, %v11147_v58 }
0x1cd7   : > { %9159 = vmatprep.mubr.msk.f32.mxu1 %vm9891_vm0, %v9892_v6 }
0x1cda   : > { %9160 = vmatmul.mubr.msk.f32.gmra.mrb[150].mxu1 %vm948_vm2, %v11161_v44 }
0x1cdb   : > { %9162 = vmatprep.mubr.msk.f32.mxu1 %vm9891_vm0, %v9892_v6 }
0x1cde   : > { %9163 = vmatmul.mubr.msk.f32.gmra.mrb[152].mxu1 %vm948_vm2, %v11174_v10 }
0x1cdf   : > { %9186 = vmatprep.mubr.msk.f32.mxu1 %vm9891_vm0, %v9892_v6 }
0x1d4c   : > { %v6163_v29 = vpop.xlane.xlu1 %6162 }
0x1d4d   : > { %9784 = vrcp.f32 %v6163_v29 }
0x1d50   : > { %v6166_v11 = vpop.xlane.xlu0 %6165 }
0x1d51   : > { %9786 = vrcp.f32 %v6166_v11 }
0x1d54   : > { %v6169_v7 = vpop.xlane.xlu1 %6168 }
0x1d55   : > { %9788 = vrcp.f32 %v6169_v7 }
0x1d57   : > { %v9785_v33 = vpop.eup %9784 }
0x1d5b   : > { %v9787_v8 = vpop.eup %9786 }
0x1d5f   : > { %v9789_v37 = vpop.eup %9788 }
0x1d91   : > { %v6251_v13 = vpop.f32.mrb[136].mxu1 }
0x1d92   : > { %v6265_v61 = vmul.f32 %v9785_v33, %v6251_v13  ;;  %v9096_v30 = vpop.f32.mrb[137].mxu1 }
0x1d94   : > { %9106 = vmatmul.mubr.msk.f32.vlgmr.msra.gmra.mrb[138].mxu0 %vm1351_vm4, %v6265_v61 }
0x1d95   : > { %v6256_v36 = vpop.f32.mrb[138].mxu1  ;;  %9108 = vmatprep.mubr.msk.f32.mxu0 %vm9891_vm0, %v9892_v6  ;;  %9550 = vmatpush3.bf16.msra.mxu0 %v9549_v25 }
0x1d96   : > { %v6266_v5 = vmul.f32 %v9787_v8, %v6256_v36  ;;  %v9099_v62 = vpop.f32.mrb[139].mxu1  ;;  %9551 = vmatprep.subr.bf16.mxu0 %v9890_v3 }
0x1d98   : > { %9109 = vmatmul.mubr.msk.f32.gmra.mrb[140].mxu0 %vm1351_vm4, %v6266_v5 }
0x1d99   : > { %v6261_v23 = vpop.f32.mrb[140].mxu1  ;;  %9111 = vmatprep.mubr.msk.f32.mxu0 %vm9891_vm0, %v9892_v6  ;;  %9553 = vmatpush3.bf16.msra.mxu0 %v9552_v47 }
0x1d9a   : > { %v6267_v38 = vmul.f32 %v9789_v37, %v6261_v23  ;;  %v9102_v12 = vpop.f32.mrb[141].mxu1  ;;  %9560 = vmatprep.subr.bf16.mxu0 %v9890_v3 }
0x1d9b   : > { %v7853_v12 = vld [vmem:[%s11994_s5 + $0x38] sm:$0xff]  ;;  %s9830_s5 = sshll.u32 %s9893_s27, 4  ;;  %s9831_s5 = int_to_ptr.vmem [resolvable:$false] %s9830_s5 }
0x1d9c   : > { %9112 = vmatmul.mubr.msk.f32.gmra.mrb[142].mxu0 %vm1351_vm4, %v6267_v38  ;;  %s9832_s10 = scalar_lea.vmem %s9831_s5, 32  ;;  %p9833_p0 = scmp.lt.s32.totalorder %s11860_s24, %s9831_s5 }
0x1d9d   : > { %v6441_v51 = vpop.f32.mrb[142].mxu1  ;;  %9139 = vmatprep.mubr.msk.f32.mxu0 %vm9891_vm0, %v9892_v6 }
0x1d9e   : > { %v9124_v15 = vpop.f32.mrb[143].mxu1 }
0x1da0   : > { %9140 = vmatmul.mubr.msk.f32.vlgmr.msra.gmra.mrb[144].mxu0 %vm948_vm2, %v11147_v58 }
0x1da1   : > { %v6446_v27 = vpop.f32.mrb[144].mxu1  ;;  %9142 = vmatprep.mubr.msk.f32.mxu0 %vm9891_vm0, %v9892_v6 }
0x1da2   : > { %v9127_v41 = vpop.f32.mrb[145].mxu1 }
0x1da4   : > { %9143 = vmatmul.mubr.msk.f32.gmra.mrb[146].mxu0 %vm948_vm2, %v11161_v44 }
0x1da5   : > { %v6451_v34 = vpop.f32.mrb[146].mxu1  ;;  %9145 = vmatprep.mubr.msk.f32.mxu0 %vm9891_vm0, %v9892_v6 }
0x1da6   : > { %v9130_v43 = vpop.f32.mrb[147].mxu1 }
0x1da8   : > { %9146 = vmatmul.mubr.msk.f32.gmra.mrb[148].mxu0 %vm948_vm2, %v11174_v10 }
0x1da9   : > { %v6627_v46 = vpop.f32.mrb[148].mxu1  ;;  %9171 = vmatprep.mubr.msk.f32.mxu0 %vm9891_vm0, %v9892_v6 }
0x1daa   : > { %v9158_v58 = vpop.f32.mrb[149].mxu1  ;;  %v6628_v20 = vadd.f32 %v7839_v48, %v6627_v46 }
0x1dad   : > { %v6632_v28 = vpop.f32.mrb[150].mxu1 }
0x1dae   : > { %v6633_v44 = vadd.f32 %v7839_v48, %v6632_v28  ;;  %v9161_v2 = vpop.f32.mrb[151].mxu1 }
0x1db0   : > { %v9565_v19 = vpack.c.bf16 %v6633_v44, %v6628_v20 }
0x1db1   : > { %v6637_v31 = vpop.f32.mrb[152].mxu1 }
0x1db2   : > { %v9164_v63 = vpop.f32.mrb[153].mxu1  ;;  %9566 = vmatpush3.bf16.msra.mxu1 %v9565_v19  ;;  %v6638_v10 = vadd.f32 %v7839_v48, %v6637_v31 }
0x1db3   : > { %9184 = vmatprep.subr.mxu1 %v9892_v6 }
0x1db6   : > { %9185 = vmatpush3.msk.msra.mxu1 %vm1682_vm6, %v6638_v10 }
0x1db7   : > { %9567 = vmatprep.subr.bf16.mxu1 %v9890_v3 }
0x1e67   : > { %v6345_v52 = vpop.f32.mrb[138].mxu0 }
0x1e68   : > { %v11632_v16 = vadd.f32 %v6345_v52, %v11495_v53  ;;  %v9107_v54 = vpop.f32.mrb[139].mxu0 }
0x1e6b   : > { %v6350_v39 = vpop.f32.mrb[140].mxu0 }
0x1e6c   : > { %v11635_v60 = vadd.f32 %v6350_v39, %v11497_v55  ;;  %v9110_v14 = vpop.f32.mrb[141].mxu0 }
0x1e6f   : > { %v6355_v18 = vpop.f32.mrb[142].mxu0 }
0x1e70   : > { %v11638_v49 = vadd.f32 %v6355_v18, %v11499_v21  ;;  %v9113_v17 = vpop.f32.mrb[143].mxu0  ;;  %v7821_v21 = vld [vmem:[%s11993_s12 + $0x7] ss:$0 sm:$0xff]  ;;  %v11685_v18 = vld [vmem:[%s11996_s11 + $0x1] ss:$0 sm:$0xff] }
0x1e71   : > { %v6442_v11 = vadd.f32 %v7821_v21, %v6441_v51  ;;  %v6447_v7 = vadd.f32 %v7821_v21, %v6446_v27  ;;  %v6452_v57 = vadd.f32 %v7821_v21, %v6451_v34  ;;  %v7866_v21 = vld [vmem:[%s11917_s17 + $0x38] sm:$0xff] }
0x1e73   : > { %v6534_v50 = vpop.f32.mrb[144].mxu0 }
0x1e74   : > { %v9141_v42 = vpop.f32.mrb[145].mxu0  ;;  %v6535_v53 = vadd.f32 %v7830_v26, %v6534_v50 }
0x1e77   : > { %v6539_v1 = vpop.f32.mrb[146].mxu0 }
0x1e78   : > { %v6540_v4 = vadd.f32 %v7830_v26, %v6539_v1  ;;  %v9144_v24 = vpop.f32.mrb[147].mxu0 }
0x1e7a   : > { %v9561_v40 = vpack.c.bf16 %v6540_v4, %v6535_v53 }
0x1e7b   : > { %v6544_v9 = vpop.f32.mrb[148].mxu0 }
0x1e7c   : > { %v9147_v55 = vpop.f32.mrb[149].mxu0  ;;  %9563 = vmatpush3.bf16.xpose.msk.msra.mxu0 %vm10393_vm5, %v9561_v40  ;;  %v6545_v29 = vadd.f32 %v7830_v26, %v6544_v9  ;;  %v7864_v40 = vld [vmem:[%s11917_s17 + $0x28] sm:$0xff] }
0x1e7d   : > { %9169 = vmatprep.subr.mxu0 %v9892_v6  ;;  %v7865_v55 = vld [vmem:[%s11917_s17 + $0x30] sm:$0xff] }
0x1e84   : > { %9170 = vmatpush3.xpose.msk.msra.mxu0 %vm1351_vm4, %v6545_v29  ;;  %v9571_v29 = vpack.c.bf16 %v7866_v21, %v7865_v55 }
0x1e85   : > { %9195 = vmatprep.subr.mxu0 %v9892_v6 }
0x1e87   : > { %9172 = vmatmul.mubr.msk.f32.vlgmr.msra.gmra.mrb[150].mxu0 %vm1351_vm4, %v6442_v11 }
0x1e88   : > { %9174 = vmatprep.mubr.msk.f32.mxu0 %vm9891_vm0, %v9892_v6  ;;  %9196 = vmatpush3.msra.mxu0 %v7853_v12 }
0x1e89   : > { %9573 = vmatprep.subr.bf16.mxu0 %v9890_v3 }
0x1e8b   : > { %9175 = vmatmul.mubr.msk.f32.gmra.mrb[152].mxu0 %vm1351_vm4, %v6447_v7 }
0x1e8c   : > { %9177 = vmatprep.mubr.msk.f32.mxu0 %vm9891_vm0, %v9892_v6 }
0x1e8f   : > { %9178 = vmatmul.mubr.msk.f32.gmra.mrb[154].mxu0 %vm1351_vm4, %v6452_v57 }
0x1e90   : > { %9197 = vmatprep.mubr.msk.f32.mxu0 %vm9891_vm0, %v9892_v6 }
0x1f5a   : > { %v6725_v22 = vpop.f32.mrb[150].mxu0 }
0x1f5b   : > { %v6739_v0 = vmul.f32 0.35355338, %v6725_v22  ;;  %v9173_v33 = vpop.f32.mrb[151].mxu0 }
0x1f5d   : > { %v6742_v13 = vsel %vm1619_vm7, %v6739_v0, -inf }
0x1f5e   : > { %6743 = vmax.xlane.f32.xlu0 %v6742_v13  ;;  %v6730_v25 = vpop.f32.mrb[152].mxu0  ;;  %v11713_v13 = vld [vmem:[%s11915_s15 + $0x1] ss:$0 sm:$0xff] }
0x1f5f   : > { %v9176_v61 = vpop.f32.mrb[153].mxu0  ;;  %v6740_v5 = vmul.f32 0.35355338, %v6730_v25 }
0x1f61   : > { %v6745_v23 = vsel %vm1619_vm7, %v6740_v5, -inf }
0x1f62   : > { %v6735_v30 = vpop.f32.mrb[154].mxu0 }
0x1f63   : > { %v9179_v32 = vpop.f32.mrb[155].mxu0  ;;  %v6741_v37 = vmul.f32 0.35355338, %v6735_v30  ;;  %v11718_v30 = vld [vmem:[%s11916_s16 + $0x1] ss:$0 sm:$0xff] }
0x1f65   : > { %v6748_v38 = vsel %vm1626_vm8, %v6741_v37, -inf }
0x1feb   : > { %v6744_v59 = vpop.xlane.xlu0 %6743 }
0x1fec   : > { %v6751_v8 = vsub.f32 %v6739_v0, %v6744_v59 }
0x1fee   : > { %v6754_v36 = vmul.f32 1.442695, %v6751_v8 }
0x1ff0   : > { %9790 = vpow2.f32 %v6754_v36 }
0x1ffa   : > { %v9791_v47 = vpop.eup %9790 }
0x1ffb   : > { %9187 = vmatmul.mubr.msk.f32.vlgmr.msra.gmra.mrb[154].mxu1 %vm1619_vm7, %v9791_v47  ;;  %v6760_v62 = vsel %vm1619_vm7, %v9791_v47, 0.0 }
0x1ffc   : > { %6761 = vadd.xlane.f32.xlu1 %v6760_v62  ;;  %9189 = vmatprep.mubr.msk.f32.mxu1 %vm9891_vm0, %v9892_v6  ;;  %v7876_v62 = vld [vmem:[%s11919_s19 + $0x88] sm:$0xff] }
0x2000   : > { %6746 = vmax.xlane.f32.xlu1 %v6745_v23  ;;  %v7877_v23 = vld [vmem:[%s11919_s19 + $0x90] sm:$0xff] }
0x2004   : > { %6749 = vmax.xlane.f32.xlu1 %v6748_v38  ;;  %v7878_v38 = vld [vmem:[%s11919_s19 + $0x98] sm:$0xff] }
0x2005   : > { %v9577_v12 = vpack.c.bf16 %v7878_v38, %v7877_v23 }
0x2089   : > { %v6762_v51 = vpop.xlane.xlu1 %6761 }
0x208d   : > { %v6747_v15 = vpop.xlane.xlu1 %6746 }
0x208e   : > { %v6752_v27 = vsub.f32 %v6740_v5, %v6747_v15  ;;  %v7875_v5 = vld [vmem:[%s11919_s19 + $0x80] sm:$0xff]  ;;  %v7880_v15 = vld [vmem:[%s11919_s19 + $0xa8] sm:$0xff] }
0x2090   : > { %v6756_v41 = vmul.f32 1.442695, %v6752_v27 }
0x2091   : > { %v6750_v34 = vpop.xlane.xlu1 %6749 }
0x2092   : > { %9792 = vpow2.f32 %v6756_v41  ;;  %v6753_v43 = vsub.f32 %v6741_v37, %v6750_v34  ;;  %v9574_v37 = vpack.c.bf16 %v7876_v62, %v7875_v5  ;;  %v7881_v41 = vld [vmem:[%s11919_s19 + $0xb0] sm:$0xff]  ;;  %v7882_v34 = vld [vmem:[%s11919_s19 + $0xb8] sm:$0xff] }
0x2094   : > { %v6758_v46 = vmul.f32 1.442695, %v6753_v43  ;;  %v9583_v43 = vpack.c.bf16 %v7882_v34, %v7881_v41 }
0x2096   : > { %9794 = vpow2.f32 %v6758_v46  ;;  %v7883_v46 = vld [vmem:[%s11919_s19 + $0xc0] sm:$0xff] }
0x2097   : > { %9796 = vrcp.f32 %v6762_v51  ;;  %v7879_v51 = vld [vmem:[%s11919_s19 + $0xa0] sm:$0xff] }
0x2098   : > { %v9580_v27 = vpack.c.bf16 %v7880_v15, %v7879_v51 }
0x209c   : > { %v9793_v58 = vpop.eup %9792 }
0x209d   : > { %9190 = vmatmul.mubr.msk.f32.gmra.mrb[156].mxu1 %vm1619_vm7, %v9793_v58  ;;  %v6763_v24 = vsel %vm1619_vm7, %v9793_v58, 0.0  ;;  %v7884_v58 = vld [vmem:[%s11919_s19 + $0xc8] sm:$0xff] }
0x209e   : > { %9192 = vmatprep.mubr.msk.f32.mxu1 %vm9891_vm0, %v9892_v6 }
0x20a0   : > { %v9795_v48 = vpop.eup %9794 }
0x20a1   : > { %9193 = vmatmul.mubr.msk.f32.gmra.mrb[158].mxu1 %vm1619_vm7, %v9795_v48  ;;  %v6766_v28 = vsel %vm1626_vm8, %v9795_v48, 0.0  ;;  %v9797_v20 = vpop.eup %9796  ;;  %v9586_v48 = vpack.c.bf16 %v7884_v58, %v7883_v46 }
0x20a2   : > { %6767 = vadd.xlane.f32.xlu1 %v6766_v28  ;;  %9214 = vmatprep.mubr.msk.f32.mxu1 %vm9891_vm0, %v9892_v6  ;;  %v7885_v28 = vld [vmem:[%s11919_s19 + $0xd0] sm:$0xff] }
0x20ce   : > { %v6850_v44 = vpop.f32.mrb[154].mxu1 }
0x20cf   : > { %v6864_v2 = vmul.f32 %v9797_v20, %v6850_v44  ;;  %v9188_v19 = vpop.f32.mrb[155].mxu1  ;;  %v7886_v20 = vld [vmem:[%s11919_s19 + $0xd8] sm:$0xff] }
0x20d0   : > { %v9589_v44 = vpack.c.bf16 %v7886_v20, %v7885_v28  ;;  %v7888_v19 = vld [vmem:[%s11919_s19 + $0xe8] sm:$0xff] }
0x20d1   : > { %9198 = vmatmul.mubr.msk.f32.vlgmr.msra.gmra.mrb[156].mxu0 %vm1351_vm4, %v6864_v2  ;;  %v7887_v2 = vld [vmem:[%s11919_s19 + $0xe0] sm:$0xff] }
0x20d2   : > { %9200 = vmatprep.mubr.msk.f32.mxu0 %vm9891_vm0, %v9892_v6  ;;  %9575 = vmatpush3.bf16.msra.mxu0 %v9574_v37 }
0x20d3   : > { %9576 = vmatprep.subr.bf16.mxu0 %v9890_v3 }
0x20d6   : > { %9578 = vmatpush3.bf16.msra.mxu0 %v9577_v12 }
0x20d7   : > { %9579 = vmatprep.subr.bf16.mxu0 %v9890_v3 }
0x20da   : > { %9581 = vmatpush3.bf16.msra.mxu0 %v9580_v27 }
0x20db   : > { %9582 = vmatprep.subr.bf16.mxu0 %v9890_v3 }
0x20de   : > { %9584 = vmatpush3.bf16.msra.mxu0 %v9583_v43 }
0x20df   : > { %9585 = vmatprep.subr.bf16.mxu0 %v9890_v3 }
0x20e2   : > { %9587 = vmatpush3.bf16.msra.mxu0 %v9586_v48 }
0x20e3   : > { %9588 = vmatprep.subr.bf16.mxu0 %v9890_v3 }
0x20e6   : > { %9590 = vmatpush3.bf16.msra.mxu0 %v9589_v44 }
0x20e7   : > { %9591 = vmatprep.subr.bf16.mxu0 %v9890_v3 }
0x212f   : > { %v6768_v0 = vpop.xlane.xlu1 %6767 }
0x2170   : > { %v6855_v31 = vpop.f32.mrb[156].mxu1 }
0x2171   : > { %v9191_v63 = vpop.f32.mrb[157].mxu1 }
0x2172   : > { %v7889_v63 = vld [vmem:[%s11919_s19 + $0xf0] sm:$0xff] }
0x2174   : > { %v6860_v10 = vpop.f32.mrb[158].mxu1 }
0x2175   : > { %v9194_v52 = vpop.f32.mrb[159].mxu1 }
0x21a4   : > { %v6944_v54 = vpop.f32.mrb[156].mxu0 }
0x21a5   : > { %v6958_v39 = vadd.f32 %v6944_v54, %v11632_v16  ;;  %v9199_v14 = vpop.f32.mrb[157].mxu0 }
0x21a7   : > { %v6961_v17 = vadd.f32 %v6958_v39, %v11087_v56  ;;  %v7863_v56 = vld [vmem:[%s11917_s17 + $0x20] sm:$0xff] }
0x21a8   : > { %v9568_v9 = vpack.c.bf16 %v7864_v40, %v7863_v56 }
0x21a9   : > { %v11689_v50 = vadd.f32 %v11685_v18, %v6961_v17  ;;  %v11790_v17 = vld [vmem:[%s11918_s18 + $0x1] ss:$0 sm:$0xff] }
0x21aa   : > { %9569 = vmatpush3.bf16.msra.mxu1 %v9568_v9 }
0x21ab   : > { %v6979_v42 = vsel %vm948_vm2, %v11689_v50, 0.0  ;;  %9570 = vmatprep.subr.bf16.mxu1 %v9890_v3 }
0x21ac   : > { %6980 = vadd.xlane.f32.xlu0 %v6979_v42 }
0x21ae   : > { %9572 = vmatpush3.bf16.msra.mxu1 %v9571_v29 }
0x21af   : > { %9597 = vmatprep.subr.bf16.mxu1 %v9890_v3 }
0x2239   : > { %v6981_v26 = vpop.xlane.xlu0 %6980 }
0x223a   : > { %v6988_v1 = vmul.f32 0.03125, %v6981_v26 }
0x223c   : > { %v6991_v53 = vsub.f32 %v11689_v50, %v6988_v1 }
0x223e   : > { %v6994_v16 = vmul.f32 %v6991_v53, %v6991_v53 }
0x2240   : > { %v6997_v4 = vsel %vm948_vm2, %v6994_v16, 0.0 }
0x2241   : > { %6998 = vadd.xlane.f32.xlu0 %v6997_v4 }
0x2245   : > { %6764 = vadd.xlane.f32.xlu0 %v6763_v24 }
0x22ce   : > { %v6999_v11 = vpop.xlane.xlu0 %6998 }
0x22cf   : > { %v7006_v7 = vmul.f32 0.03125, %v6999_v11 }
0x22d1   : > { %v7009_v57 = vadd.f32 1e-05, %v7006_v7 }
0x22d2   : > { %v6765_v22 = vpop.xlane.xlu0 %6764 }
0x22d3   : > { %9798 = vrsqrt.f32 %v7009_v57 }
0x22d4   : > { %9800 = vrcp.f32 %v6765_v22 }
0x22d5   : > { %9802 = vrcp.f32 %v6768_v0 }
0x22dd   : > { %v9799_v33 = vpop.eup %9798 }
0x22de   : > { %v9801_v25 = vpop.eup %9800  ;;  %v7015_v61 = vmul.f32 %v9799_v33, %v6991_v53 }
0x22df   : > { %v6865_v32 = vmul.f32 %v9801_v25, %v6855_v31  ;;  %v9803_v8 = vpop.eup %9802  ;;  %v9592_v31 = vpack.c.bf16 %v7888_v19, %v7887_v2 }
0x22e0   : > { %v7024_v59 = vmul.f32 %v11713_v13, %v7015_v61  ;;  %v6866_v47 = vmul.f32 %v9803_v8, %v6860_v10  ;;  %v7890_v10 = vld [vmem:[%s11919_s19 + $0xf8] sm:$0xff] }
0x22e1   : > { %9201 = vmatmul.mubr.msk.f32.gmra.mrb[158].mxu0 %vm1351_vm4, %v6865_v32  ;;  %v9595_v52 = vpack.c.bf16 %v7890_v10, %v7889_v63  ;;  %v7892_v32 = vld [vmem:[%s11920_s20 + $0x1] ss:$0 sm:$0xff]  ;;  %v7285_v10 = vld [vmem:[%s11923_s23 + $0x8] sm:$0xff] }
0x22e2   : > { %v7033_v36 = vadd.f32 %v11718_v30, %v7024_v59  ;;  %9203 = vmatprep.mubr.msk.f32.mxu0 %vm9891_vm0, %v9892_v6  ;;  %9593 = vmatpush3.bf16.msra.mxu0 %v9592_v31  ;;  %v7284_v63 = vld [vmem:[%s11923_s23] sm:$0xff] }
0x22e3   : > { %9594 = vmatprep.subr.bf16.mxu0 %v9890_v3 }
0x22e4   : > { %9215 = vmatmul.mubr.msk.f32.vlgmr.msra.gmra.mrb[160].mxu1 %vm948_vm2, %v7033_v36 }
0x22e5   : > { %9204 = vmatmul.mubr.msk.f32.gmra.mrb[160].mxu0 %vm1351_vm4, %v6866_v47  ;;  %9217 = vmatprep.mubr.msk.f32.mxu1 %vm9891_vm0, %v9892_v6 }
0x22e6   : > { %9255 = vmatprep.mubr.msk.f32.mxu0 %vm9891_vm0, %v9892_v6  ;;  %9596 = vmatpush3.bf16.msra.mxu0 %v9595_v52  ;;  %v9598_v52 = vpack.c.bf16 %v7285_v10, %v7284_v63 }
0x22e8   : > { %9599 = vmatpush3.bf16.msra.mxu1 %v9598_v52 }
0x22e9   : > { %9600 = vmatprep.subr.bf16.mxu1 %v9890_v3 }
0x23b4   : > { %v6949_v54 = vpop.f32.mrb[158].mxu0 }
0x23b5   : > { %v6959_v39 = vadd.f32 %v6949_v54, %v11635_v60  ;;  %v9202_v14 = vpop.f32.mrb[159].mxu0 }
0x23b7   : > { %v6962_v42 = vadd.f32 %v6959_v39, %v11092_v35  ;;  %v7124_v26 = vpop.f32.mrb[160].mxu1 }
0x23b8   : > { %v6954_v1 = vpop.f32.mrb[160].mxu0  ;;  %v7125_v53 = vadd.f32 %v11790_v17, %v7124_v26  ;;  %v9216_v16 = vpop.f32.mrb[161].mxu1 }
0x23b9   : > { %v6960_v4 = vadd.f32 %v6954_v1, %v11638_v49  ;;  %v9205_v24 = vpop.f32.mrb[161].mxu0  ;;  %v6973_v56 = vadd.f32 %v11685_v18, %v6962_v42 }
0x23ba   : > { %v7872_v40 = vmul.f32 -1.702, %v7125_v53 }
0x23bb   : > { %v6963_v60 = vadd.f32 %v6960_v4, %v11097_v45  ;;  %v6982_v9 = vsel %vm948_vm2, %v6973_v56, 0.0 }
0x23bc   : > { %v7144_v55 = vmul.f32 1.442695, %v7872_v40  ;;  %6983 = vadd.xlane.f32.xlu0 %v6982_v9  ;;  %v7267_v40 = vld [vmem:[%s11921_s21] sm:$0x1] }
0x23bd   : > { %v6974_v21 = vadd.f32 %v11685_v18, %v6963_v60  ;;  %v7268_v9 = vld [vmem:[%s11922_s22] sm:$0x1] }
0x23be   : > { %9804 = vpow2.f32 %v7144_v55 }
0x23bf   : > { %v6985_v35 = vsel %vm955_vm3, %v6974_v21, 0.0 }
0x23c0   : > { %6986 = vadd.xlane.f32.xlu1 %v6985_v35 }
0x23c8   : > { %v9805_v29 = vpop.eup %9804 }
0x23c9   : > { %v7150_v11 = vadd.f32 1.0, %v9805_v29 }
0x23cb   : > { %9806 = vrcp.f32 %v7150_v11 }
0x23d5   : > { %v9807_v49 = vpop.eup %9806 }
0x23d6   : > { %v7159_v7 = vmul.f32 %v9807_v49, %v7125_v53 }
0x23d8   : > { %9256 = vmatmul.mubr.f32.vlgmr.msra.gmra.mrb[162].mxu0 %v7159_v7 }
0x23d9   : > { %9258 = vmatprep.mubr.msk.f32.mxu0 %vm9891_vm0, %v9892_v6 }
0x2449   : > { %v6984_v45 = vpop.xlane.xlu0 %6983 }
0x244a   : > { %v6989_v57 = vmul.f32 0.03125, %v6984_v45 }
0x244c   : > { %v6992_v22 = vsub.f32 %v6973_v56, %v6989_v57 }
0x244d   : > { %v6987_v18 = vpop.xlane.xlu1 %6986 }
0x244e   : > { %v6995_v0 = vmul.f32 %v6992_v22, %v6992_v22  ;;  %v6990_v25 = vmul.f32 0.03125, %v6987_v18 }
0x2450   : > { %v7000_v33 = vsel %vm948_vm2, %v6995_v0, 0.0  ;;  %v6993_v59 = vsub.f32 %v6974_v21, %v6990_v25 }
0x2451   : > { %7001 = vadd.xlane.f32.xlu1 %v7000_v33 }
0x2452   : > { %v6996_v62 = vmul.f32 %v6993_v59, %v6993_v59 }
0x2454   : > { %v7003_v37 = vsel %vm955_vm3, %v6996_v62, 0.0 }
0x24ab   : > { %v7245_v61 = vpop.f32.mrb[162].mxu0 }
0x24ac   : > { %v7257_v8 = vadd.f32 %v7245_v61, %v11689_v50  ;;  %v9257_v36 = vpop.f32.mrb[163].mxu0 }
0x24ae   : > { %v7266_v47 = vadd.f32 %v7892_v32, %v7257_v8 }
0x24b0   : > { %v7269_v5 = vsel %vm955_vm3, %v7266_v47, 0.0 }
0x24b1   : > { %7270 = vadd.xlane.f32.xlu0 %v7269_v5 }
0x24b5   : > { %7004 = vadd.xlane.f32.xlu0 %v7003_v37 }
0x24de   : > { %v7002_v23 = vpop.xlane.xlu1 %7001 }
0x24df   : > { %v7007_v38 = vmul.f32 0.03125, %v7002_v23 }
0x24e1   : > { %v7010_v12 = vadd.f32 1e-05, %v7007_v38  ;;  %v7446_v38 = vstv %s7369_s7  ;;  %s9826_s7 = scalar_lea.vmem %s11860_s24, 16 }
0x24e2   : > { %p9827_p11 = scmp.ne.s32.totalorder %s11860_s24, %s9826_s7  ;;  %p9834_p1 = scmp.lt.s32.totalorder %s9832_s10, %s9826_s7 }
0x24e3   : > { %9808 = vrsqrt.f32 %v7010_v12 }
0x24e4   : > { %p9828_p12 = pnand %p9827_p11, %p10080_p5  ;;  %p9835_p2 = por %p9834_p1, %p9833_p0 }
0x24e6   : > { %p9829_p13 = pneg %p9828_p12 }
0x24e8   : > { %p9836_p3 = pnand %p9835_p2, %p9829_p13 }
0x24ed   : > { %v9809_v51 = vpop.eup %9808 }
0x24ee   : > { %v7016_v15 = vmul.f32 %v9809_v51, %v6992_v22 }
0x24f0   : > { %v7025_v27 = vmul.f32 %v11713_v13, %v7016_v15 }
0x24f2   : > { %v7034_v41 = vadd.f32 %v11718_v30, %v7025_v27 }
0x24f4   : > { %9218 = vmatmul.mubr.msk.f32.gmra.mrb[162].mxu1 %vm948_vm2, %v7034_v41 }
0x24f5   : > { %9220 = vmatprep.mubr.msk.f32.mxu1 %vm9891_vm0, %v9892_v6 }
0x253e   : > { %v7271_v50 = vpop.xlane.xlu0 %7270 }
0x253f   : > { %v7272_v34 = vmul.f32 0.03125, %v7271_v50 }
0x2541   : > { %v7273_v43 = vsub.f32 %v7266_v47, %v7272_v34 }
0x2542   : > { %v7005_v46 = vpop.xlane.xlu0 %7004 }
0x2543   : > { %v7008_v58 = vmul.f32 0.03125, %v7005_v46  ;;  %v7274_v48 = vmul.f32 %v7273_v43, %v7273_v43 }
0x2545   : > { %v7011_v28 = vadd.f32 1e-05, %v7008_v58  ;;  %v7275_v20 = vsel %vm955_vm3, %v7274_v48, 0.0 }
0x2546   : > { %7276 = vadd.xlane.f32.xlu1 %v7275_v20 }
0x2547   : > { %9810 = vrsqrt.f32 %v7011_v28 }
0x2551   : > { %v9811_v44 = vpop.eup %9810 }
0x2552   : > { %v7017_v2 = vmul.f32 %v9811_v44, %v6993_v59 }
0x2554   : > { %v7026_v19 = vmul.f32 %v11713_v13, %v7017_v2  ;;  %v7286_v13 = vld [vmem:[%s11923_s23 + $0x10] sm:$0xff] }
0x2556   : > { %v7035_v31 = vadd.f32 %v11718_v30, %v7026_v19  ;;  %v7287_v30 = vld [vmem:[%s11923_s23 + $0x18] sm:$0xff] }
0x2557   : > { %v9601_v54 = vpack.c.bf16 %v7287_v30, %v7286_v13 }
0x2558   : > { %9221 = vmatmul.mubr.msk.f32.gmra.mrb[164].mxu1 %vm948_vm2, %v7035_v31 }
0x2559   : > { %9272 = vmatprep.mubr.msk.f32.mxu1 %vm9891_vm0, %v9892_v6  ;;  %9602 = vmatpush3.bf16.msra.mxu1 %v9601_v54 }
0x255a   : > { %9275 = vmatprep.subr.mxu1 %v9892_v6 }
0x25c7   : > { %v7129_v39 = vpop.f32.mrb[162].mxu1 }
0x25c8   : > { %v7130_v14 = vadd.f32 %v11790_v17, %v7129_v39  ;;  %v9219_v42 = vpop.f32.mrb[163].mxu1 }
0x25ca   : > { %v7873_v26 = vmul.f32 -1.702, %v7130_v14 }
0x25cc   : > { %v7146_v1 = vmul.f32 1.442695, %v7873_v26 }
0x25ce   : > { %9812 = vpow2.f32 %v7146_v1 }
0x25d3   : > { %v7277_v3 = vpop.xlane.xlu1 %7276 }
0x25d4   : > { %v7278_v53 = vmul.f32 0.03125, %v7277_v3 }
0x25d6   : > { %v7279_v16 = vadd.f32 1e-05, %v7278_v53 }
0x25d8   : > { %v9813_v4 = vpop.eup %9812  ;;  %9814 = vrsqrt.f32 %v7279_v16 }
0x25d9   : > { %v7151_v24 = vadd.f32 1.0, %v9813_v4 }
0x25db   : > { %9816 = vrcp.f32 %v7151_v24 }
0x25e2   : > { %v9815_v56 = vpop.eup %9814 }
0x25e3   : > { %v7281_v60 = vmul.f32 %v9815_v56, %v7273_v43 }
0x25e5   : > { %v9817_v55 = vpop.eup %9816  ;;  %v7282_v21 = vmul.f32 %v7281_v60, %v7267_v40 }
0x25e6   : > { %v7160_v35 = vmul.f32 %v9817_v55, %v7130_v14 }
0x25e7   : > { %v7283_v29 = vadd.f32 %v7282_v21, %v7268_v9 }
0x25e8   : > { %9259 = vmatmul.mubr.f32.gmra.mrb[164].mxu0 %v7160_v35 }
0x25e9   : > { %9273 = vmatmul.mubr.msk.f32.vlgmr.msra.gmra.mrb[166].mxu1 %vm948_vm2, %v7283_v29  ;;  %9261 = vmatprep.mubr.msk.f32.mxu0 %vm9891_vm0, %v9892_v6 }
0x25ea   : > { %9277 = vmatprep.mubr.msk.f32.mxu1 %vm9891_vm0, %v9892_v6 }
0x262b   : > { %v7134_v11 = vpop.f32.mrb[164].mxu1 }
0x262c   : > { %v7135_v49 = vadd.f32 %v11790_v17, %v7134_v11  ;;  %v9222_v7 = vpop.f32.mrb[165].mxu1  ;;  %v7368_v17 = vld [vmem:[%s11926_s26] sm:$0x1f] }
0x262d   : > { %9276 = vmatpush3.xpose.msk.msra.mxu1 %vm948_vm2, %v7368_v17 }
0x262e   : > { %v7874_v45 = vmul.f32 -1.702, %v7135_v49 }
0x2630   : > { %v7148_v57 = vmul.f32 1.442695, %v7874_v45 }
0x2632   : > { %9818 = vpow2.f32 %v7148_v57 }
0x263c   : > { %v9819_v22 = vpop.eup %9818 }
0x263d   : > { %v7152_v0 = vadd.f32 1.0, %v9819_v22 }
0x263f   : > { %9820 = vrcp.f32 %v7152_v0 }
0x2649   : > { %v9821_v33 = vpop.eup %9820 }
0x264a   : > { %v7161_v18 = vmul.f32 %v9821_v33, %v7135_v49 }
0x264c   : > { %9262 = vmatmul.mubr.f32.gmra.mrb[166].mxu0 %v7161_v18 }
0x26bb   : > { %v7250_v25 = vpop.f32.mrb[164].mxu0 }
0x26bc   : > { %v9260_v61 = vpop.f32.mrb[165].mxu0  ;;  %v7357_v32 = vpop.f32.mrb[166].mxu1 }
0x26bd   : > { %v7361_v59 = vmul.f32 %v7357_v32, %v7357_v32  ;;  %v9274_v8 = vpop.f32.mrb[167].mxu1 }
0x26bf   : > { %v7362_v6 = vsel %vm955_vm3, %v7361_v59, 0.0 }
0x26c0   : > { %7363 = vadd.xlane.f32.xlu0 %v7362_v6 }
0x271f   : > { %v7254_v36 = vpop.f32.mrb[166].mxu0 }
0x2720   : > { %v9263_v47 = vpop.f32.mrb[167].mxu0 }
0x274d   : > { %v7364_v5 = vpop.xlane.xlu0 %7363 }
0x274e   : > { %v7365_v62 = vadd.f32 1e-12, %v7364_v5 }
0x2750   : > { %9822 = vrsqrt.f32 %v7365_v62 }
0x275a   : > { %v9823_v37 = vpop.eup %9822 }
0x275b   : > { %v7367_v23 = vmul.f32 %v9823_v37, %v7357_v32 }
0x275d   : > { %9278 = vmatmul.mubr.msk.f32.vlgmr.msra.gmra.mrb[168].mxu1 %vm948_vm2, %v7367_v23 }
0x2830   : > { %v7442_v12 = vpop.f32.mrb[168].mxu1 }
0x2831   : > { %v7447_v51 = vmul.f32 %v7446_v38, %v7442_v12  ;;  %v9279_v15 = vpop.f32.mrb[169].mxu1 }
0x2833   : > { %7449 = vst.msk [vmem:[%s838_s28] sm:$0x1] %vm7448_vm10, %v7447_v51 }
0x2834   : > { %9839 = shalt.err (!%p9836_p3)
}
0x2835   : > { %s9840_s4 = scalar_lea.hbm %s11858_s1, 16  ;;  %s9844_s9 = scalar_lea.hbm %s11998_s0, 32 }
0x2836   : > { %p9841_p4 = scmp.ne.s32.totalorder %s11858_s1, %s9840_s4  ;;  %p9845_p9 = scmp.lt.u32.totalorder %s11858_s1, %s11998_s0 }
0x2837   : > { %p9846_p10 = scmp.lt.u32.totalorder %s9844_s9, %s9840_s4  ;;  %p9848_p12 = scmp.lt.u32.totalorder %s9840_s4, %s11858_s1 }
0x2838   : > { %p9842_p7 = pnand %p9841_p4, %p10080_p5 }
0x2839   : > { %p9847_p11 = por %p9846_p10, %p9845_p9 }
0x283a   : > { %p9843_p8 = pneg %p9842_p7 }
0x283b   : > { %p9849_p13 = por %p9848_p12, %p9847_p11 }
0x283d   : > { %p9850_p0 = pnand %p9849_p13, %p9843_p8 }
0x283f   : > { %9853 = shalt.err (!%p9850_p0)
}
0x2840   : > { %9604 = dma.vmem_to_hbm [thread:$0]  (%p10080_p5), %s11860_s24, 16, %s11858_s1, %s7451_s2  }
0x2841 PF: > { %s11999_s10 = sld [smem:[#allocation8_spill]]  ;;  %s12000_s7 = sld [smem:[#allocation6_spill]] }
0x2847   : > { %p9610_p1 = scmp.ge.s32.totalorder %s11999_s10, 2  ;;  %s7475_s3 = sand.u32 1, %s12000_s7  }
0x2848   : > { %s7476_s28 = scalar_lea.sflag [#allocation4], %s7475_s3 }
0x2849   : > { %p9607_p2 = pnand %p9610_p1, %p10084_p6 }
0x284b   : > { %9871 = dma.done.wait (!%p9607_p2), %s7476_s28, 16  }
0x284c   : > { %9873 = vsyncadd (!%p9607_p2), %s7476_s28, 4294967280  ;;  %s12002_s6 = sld [smem:[#allocation9_spill]]  ;;  %s12003_s4 = sld [smem:[#allocation7_spill]] }
0x284d   : > { %s12004_s3 = sld [smem:[#allocation10_spill]]  ;;  %s12005_s9 = smov %s9880_s30 }
0x2852   : > { %p39_p3 = scmp.ge.s32.totalorder %s12002_s6, 4   ;;  %s12006_s30 = smov %s12003_s4 }
0x2854   :  { %41 = sbr.rel (!%p39_p3) target bundleno = 20 (0x14), region = 225 }
0x285b   :  { %7480 = vsyncpa [#allocation4], 1 }
0x285c   :  { %7482 = vsyncpa [#allocation4 + $0x1], 1 }

</bundles_post_ra>
